<compile_context>
chip_gen: v6e
topology: v6e:2x2x1
jax: 0.10.0
libtpu: 0.0.40
codegen_flags: <defaults>
</compile_context>

<pallas_src>
import jax
import jax.numpy as jnp
from jax import lax
from jax.experimental import pallas as pl
from jax.experimental.pallas import tpu as pltpu


# ----------------------------------------------------------------------------
# In-kernel helpers.
# ----------------------------------------------------------------------------
def _maxpool2x2(x, W):
    """2x2 stride-2 max pool of a raster-ordered (M, C) activation.

    Rows are (image, h, w) raster order with row width W; the batch is stacked
    along the leading axis (safe: every image spans whole 2*W-row groups).
    """
    M, C = x.shape
    # h direction: rows h and h+1 are W flat-rows apart.
    x = x.reshape(M // (2 * W), 2, W, C)
    x = jnp.maximum(x[:, 0], x[:, 1]).reshape(M // 2, C)
    # w direction: neighbouring flat rows are (w even, w odd).
    x = x.reshape(M // 4, 2, 1, C)
    x = jnp.maximum(x[:, 0], x[:, 1]).reshape(M // 4, C)
    return x


def _autoencoder_kernel(x_ref, m1_ref, m2_ref,
                        w1_ref, b1_ref, w2_ref, b2_ref,
                        w3_ref, b3_ref, w4_ref, b4_ref,
                        o_ref,
                        pad1_ref, pad2_ref, col2_ref):
    f32 = jnp.float32
    bf16 = jnp.bfloat16

    x = x_ref[0]                      # (B*256, 1) f32, raster rows (b, h, w)
    M1 = x.shape[0]
    M2 = M1 // 4

    # ---------------- enc1: Conv2d(1->32, 3x3, pad=1) + ReLU ----------------
    # Cin == 1 -> direct 9-tap VPU multiply-accumulate; each tap is a flat
    # row-shifted copy of x read from a zero-haloed scratch, masked at image
    # edges, lane-broadcast against one weight row.  No im2col buffer.
    W1 = 16
    off1 = 2 * W1
    pad1_ref[0:off1, :] = jnp.zeros((off1, 1), f32)                  # top halo
    pad1_ref[off1 + M1:off1 + M1 + off1, :] = jnp.zeros((off1, 1), f32)
    pad1_ref[off1:off1 + M1, :] = x

    m1 = m1_ref[...]                  # (M1, 9) hoisted 0/1 edge masks
    w1 = w1_ref[...]                  # (9, 32)
    acc1 = jnp.zeros((M1, 32), f32)
    for k in range(9):
        ky, kx = divmod(k, 3)
        sft = (ky - 1) * W1 + (kx - 1)
        tap = pad1_ref[off1 + sft:off1 + sft + M1, :]                # (M1, 1)
        acc1 = acc1 + (tap * m1[:, k:k + 1]) * w1[k:k + 1, :]
    a1 = jnp.maximum(acc1 + b1_ref[...], 0.0)                        # (M1, 32)

    p1 = _maxpool2x2(a1, W1)                                         # (M2, 32)

    # ---------------- enc2: Conv2d(32->64, 3x3, pad=1) + ReLU ---------------
    # im2col (K = 9*32 = 288) assembled from a zero-haloed scratch, then ONE
    # bf16 MXU matmul with f32 accumulation.
    W2 = 8
    off2 = 2 * W2
    pad2_ref[0:off2, :] = jnp.zeros((off2, 32), f32)
    pad2_ref[off2 + M2:off2 + M2 + off2, :] = jnp.zeros((off2, 32), f32)
    pad2_ref[off2:off2 + M2, :] = p1

    m2 = m2_ref[...]                  # (M2, 9)
    for k in range(9):
        ky, kx = divmod(k, 3)
        sft = (ky - 1) * W2 + (kx - 1)
        tap = pad2_ref[off2 + sft:off2 + sft + M2, :]                # (M2, 32)
        col2_ref[:, k * 32:(k + 1) * 32] = (tap * m2[:, k:k + 1]).astype(bf16)

    a2 = jnp.dot(col2_ref[...], w2_ref[...],
                 preferred_element_type=f32) + b2_ref[...]
    a2 = jnp.maximum(a2, 0.0)                                        # (M2, 64)

    p2 = _maxpool2x2(a2, W2)                                         # (M1//16, 64)

    # ------------- dec1: ConvTranspose2d(64->32, 2, stride=2) + ReLU --------
    # 2x2 kernel positions folded into the output-channel axis -> one bf16
    # matmul.  Columns of z are ordered (dy, dx, co).
    z = jnp.dot(p2.astype(bf16), w3_ref[...],
                preferred_element_type=f32) + b3_ref[...]
    z = jnp.maximum(z, 0.0)                                          # (M1//16, 128)

    # ------------- dec2: ConvTranspose2d(32->1, 2, stride=2) + sigmoid ------
    # Block-diagonal fused weight; columns of y are ordered (dy, dx, ey, ex).
    y = jnp.dot(z.astype(bf16), w4_ref[...],
                preferred_element_type=f32) + b4_ref[...]
    o_ref[0] = jax.nn.sigmoid(y)                                     # (M1//16, 16)


# ----------------------------------------------------------------------------
# Wrapper-side constants.
# ----------------------------------------------------------------------------
def _edge_masks(b_tile, H, W):
    """(b_tile*H*W, 9) 0/1 masks: mask[i, k] == 0 where 3x3 tap k of flat row i
    lands on the conv's zero padding (or would read a neighbouring image in
    the batch-stacked flat layout)."""
    idx = jnp.arange(b_tile * H * W)
    h = (idx // W) % H
    w = idx % W
    cols = []
    for ky in range(3):
        for kx in range(3):
            m = jnp.ones_like(idx, dtype=jnp.bool_)
            if ky == 0:
                m = m & (h != 0)
            if ky == 2:
                m = m & (h != H - 1)
            if kx == 0:
                m = m & (w != 0)
            if kx == 2:
                m = m & (w != W - 1)
            cols.append(m)
    return jnp.stack(cols, axis=1).astype(jnp.float32)


# ----------------------------------------------------------------------------
# Public wrapper (NCHW in / NCHW out, matching the PyTorch module).
# ----------------------------------------------------------------------------
def conv_autoencoder_forward(x_nchw, params):
    N = x_nchw.shape[0]
    H = W = 16
    S = H * W

    # Batch tile: amortize per-grid-step overhead but keep >= 2 grid steps
    # when possible so both v7x TensorCores get work.
    b_tile = min(8, max(1, N // 2))
    grid_n = -(-N // b_tile)
    n_pad = grid_n * b_tile

    x_flat = x_nchw.reshape(N, S).astype(jnp.float32)
    if n_pad != N:
        x_flat = jnp.concatenate(
            [x_flat, jnp.zeros((n_pad - N, S), jnp.float32)], axis=0)
    x_in = x_flat.reshape(grid_n, b_tile * S, 1)

    # Hoisted loop-invariant constants (resident inputs).
    mask1 = _edge_masks(b_tile, 16, 16)             # (b_tile*256, 9)
    mask2 = _edge_masks(b_tile, 8, 8)               # (b_tile*64, 9)

    # enc weights: (KH, KW, Cin, Cout) -> (9*Cin, Cout), rows ordered (ky,kx,ci).
    w1 = params["enc1_w"].reshape(9, 32)                                # f32 (VPU path)
    b1 = params["enc1_b"].reshape(1, 32)
    w2 = params["enc2_w"].reshape(288, 64).astype(jnp.bfloat16)         # MXU operand
    b2 = params["enc2_b"].reshape(1, 64)
    # dec1: (2,2,64,32) -> (Cin, (dy,dx,co)) = (64, 128); bias tiled to match.
    w3 = params["dec1_w"].transpose(2, 0, 1, 3).reshape(64, 128).astype(jnp.bfloat16)
    b3 = jnp.tile(params["dec1_b"], 4).reshape(1, 128)
    # dec2 folded over dec1's 4 (dy,dx) slots: block-diagonal (128, 16),
    # output columns ordered (dy, dx, ey, ex).
    w4_blk = params["dec2_w"].transpose(2, 0, 1, 3).reshape(32, 4)
    w4 = jnp.kron(jnp.eye(4, dtype=w4_blk.dtype), w4_blk).astype(jnp.bfloat16)
    b4 = jnp.tile(params["dec2_b"], 16).reshape(1, 16)

    def const_spec(shape):
        return pl.BlockSpec(shape, lambda n: (0, 0))

    y = pl.pallas_call(
        _autoencoder_kernel,
        out_shape=jax.ShapeDtypeStruct((grid_n, b_tile * 16, 16), jnp.float32),
        grid=(grid_n,),
        in_specs=[
            pl.BlockSpec((1, b_tile * S, 1), lambda n: (n, 0, 0)),
            const_spec((b_tile * 256, 9)),
            const_spec((b_tile * 64, 9)),
            const_spec((9, 32)), const_spec((1, 32)),
            const_spec((288, 64)), const_spec((1, 64)),
            const_spec((64, 128)), const_spec((1, 128)),
            const_spec((128, 16)), const_spec((1, 16)),
        ],
        out_specs=pl.BlockSpec((1, b_tile * 16, 16), lambda n: (n, 0, 0)),
        scratch_shapes=[
            pltpu.VMEM((b_tile * 256 + 64, 1), jnp.float32),   # enc1 zero-haloed input
            pltpu.VMEM((b_tile * 64 + 32, 32), jnp.float32),   # enc2 zero-haloed input
            pltpu.VMEM((b_tile * 64, 288), jnp.bfloat16),      # enc2 im2col (bf16 MXU operand)
        ],
        compiler_params=pltpu.CompilerParams(
            dimension_semantics=("parallel",)),                # v7x: split grid over 2 TCs
    )(x_in, mask1, mask2, w1, b1, w2, b2, w3, b3, w4, b4)

    # Untangle the fused-deconv layout (tiny, pure layout work outside the kernel):
    #   y[n, h2*4+w2, ((dy*2+dx)*2+ey)*2+ex] -> out[n, 0, 4*h2+2*dy+ey, 4*w2+2*dx+ex]
    y = y.reshape(n_pad, 16, 16)[:N]
    y = y.reshape(N, 4, 4, 2, 2, 2, 2).transpose(0, 1, 3, 5, 2, 4, 6)
    return y.reshape(N, 1, 16, 16)


# ----------------------------------------------------------------------------
# Independent pure-JAX reference (correctness check only).
# ----------------------------------------------------------------------------
def reference_forward(x_nchw, params):
    hi = lax.Precision.HIGHEST
    x = jnp.transpose(x_nchw, (0, 2, 3, 1))

    def conv(x, w, b):
        y = lax.conv_general_dilated(
            x, w, (1, 1), "SAME",
            dimension_numbers=("NHWC", "HWIO", "NHWC"), precision=hi)
        return jnp.maximum(y + b, 0.0)

    def pool(x):
        return lax.reduce_window(x, -jnp.inf, lax.max,
                                 (1, 2, 2, 1), (1, 2, 2, 1), "VALID")

    def deconv(x, w, b):
        N, H, W, Cin = x.shape
        Cout = w.shape[-1]
        y = jnp.einsum("nhwc,ijco->nhiwjo", x, w, precision=hi)
        return y.reshape(N, 2 * H, 2 * W, Cout) + b

    x = conv(x, params["enc1_w"], params["enc1_b"])
    x = pool(x)
    x = conv(x, params["enc2_w"], params["enc2_b"])
    x = pool(x)
    x = jnp.maximum(deconv(x, params["dec1_w"], params["dec1_b"]), 0.0)
    x = jax.nn.sigmoid(deconv(x, params["dec2_w"], params["dec2_b"]))
    return jnp.transpose(x, (0, 3, 1, 2))


if __name__ == "__main__":
    key = jax.random.PRNGKey(0)
    ks = jax.random.split(key, 9)
    # Weights stored as (KH, KW, Cin, Cout); deterministic synthetic init.
    params = {
        "enc1_w": jax.random.normal(ks[0], (3, 3, 1, 32), jnp.float32) * 0.1,
        "enc1_b": jax.random.normal(ks[1], (32,), jnp.float32) * 0.1,
        "enc2_w": jax.random.normal(ks[2], (3, 3, 32, 64), jnp.float32) * 0.1,
        "enc2_b": jax.random.normal(ks[3], (64,), jnp.float32) * 0.1,
        "dec1_w": jax.random.normal(ks[4], (2, 2, 64, 32), jnp.float32) * 0.1,
        "dec1_b": jax.random.normal(ks[5], (32,), jnp.float32) * 0.1,
        "dec2_w": jax.random.normal(ks[6], (2, 2, 32, 1), jnp.float32) * 0.1,
        "dec2_b": jax.random.normal(ks[7], (1,), jnp.float32) * 0.1,
    }
    # Input matching PyTorch NCHW convention: (batch=2, channels=1, 16, 16)
    x = jax.random.uniform(ks[8], (2, 1, 16, 16), jnp.float32)

    out = jax.jit(conv_autoencoder_forward)(x, params)
    out = jax.block_until_ready(out)

    assert out.shape == (2, 1, 16, 16), out.shape
    assert bool(jnp.all(jnp.isfinite(out)))

    ref = reference_forward(x, params)
    err = float(jnp.max(jnp.abs(out - ref)))
    # bf16 MXU operands (f32 accumulation) vs. a HIGHEST-precision f32
    # reference; any structural bug would show up as O(0.1+) error.
    assert err < 2e-2, err
    print("KERNEL_OK")
</pallas_src>

<mosaic_0001>
module attributes {stable_mosaic.version = 11 : i64} {
  func.func @_autoencoder_kernel(%arg0: i32, %arg1: memref<1x256x1xf32, #tpu.memory_space<vmem>>, %arg2: memref<256x9xf32, #tpu.memory_space<vmem>>, %arg3: memref<64x9xf32, #tpu.memory_space<vmem>>, %arg4: memref<9x32xf32, #tpu.memory_space<vmem>>, %arg5: memref<1x32xf32, #tpu.memory_space<vmem>>, %arg6: memref<288x64xbf16, #tpu.memory_space<vmem>>, %arg7: memref<1x64xf32, #tpu.memory_space<vmem>>, %arg8: memref<64x128xbf16, #tpu.memory_space<vmem>>, %arg9: memref<1x128xf32, #tpu.memory_space<vmem>>, %arg10: memref<128x16xbf16, #tpu.memory_space<vmem>>, %arg11: memref<1x16xf32, #tpu.memory_space<vmem>>, %arg12: memref<1x16x16xf32, #tpu.memory_space<vmem>>, %arg13: memref<320x1xf32, #tpu.memory_space<vmem>>, %arg14: memref<96x32xf32, #tpu.memory_space<vmem>>, %arg15: memref<64x288xbf16, #tpu.memory_space<vmem>>) attributes {dimension_semantics = [#tpu.dimension_semantics<parallel>], iteration_bounds = array<i64: 2>, scalar_prefetch = 0 : i64, scratch_operands = 3 : i64, tpu.core_type = #tpu.core_type<tc>, window_params = [{transform_indices = @transform_0, window_bounds = array<i64: 1, 256, 1>}, {pipeline_mode = #tpu.pipeline_mode<synchronous>, transform_indices = @transform_1, window_bounds = array<i64: 256, 9>}, {pipeline_mode = #tpu.pipeline_mode<synchronous>, transform_indices = @transform_2, window_bounds = array<i64: 64, 9>}, {pipeline_mode = #tpu.pipeline_mode<synchronous>, transform_indices = @transform_3, window_bounds = array<i64: 9, 32>}, {pipeline_mode = #tpu.pipeline_mode<synchronous>, transform_indices = @transform_4, window_bounds = array<i64: 1, 32>}, {pipeline_mode = #tpu.pipeline_mode<synchronous>, transform_indices = @transform_5, window_bounds = array<i64: 288, 64>}, {pipeline_mode = #tpu.pipeline_mode<synchronous>, transform_indices = @transform_6, window_bounds = array<i64: 1, 64>}, {pipeline_mode = #tpu.pipeline_mode<synchronous>, transform_indices = @transform_7, window_bounds = array<i64: 64, 128>}, {pipeline_mode = #tpu.pipeline_mode<synchronous>, transform_indices = @transform_8, window_bounds = array<i64: 1, 128>}, {pipeline_mode = #tpu.pipeline_mode<synchronous>, transform_indices = @transform_9, window_bounds = array<i64: 128, 16>}, {pipeline_mode = #tpu.pipeline_mode<synchronous>, transform_indices = @transform_10, window_bounds = array<i64: 1, 16>}, {transform_indices = @transform_11, window_bounds = array<i64: 1, 16, 16>}]} {
    %c0 = arith.constant 0 : index
    %c0_0 = arith.constant 0 : index
    %c0_1 = arith.constant 0 : index
    %0 = vector.load %arg1[%c0, %c0_0, %c0_1] : memref<1x256x1xf32, #tpu.memory_space<vmem>>, vector<1x256x1xf32>
    %1 = vector.shape_cast %0 : vector<1x256x1xf32> to vector<256x1xf32>
    %cst = arith.constant 0.000000e+00 : f32
    %2 = vector.broadcast %cst : f32 to vector<32x1xf32>
    %c0_2 = arith.constant 0 : index
    %c0_3 = arith.constant 0 : index
    %3 = vector.load %arg13[%c0_2, %c0_3] : memref<320x1xf32, #tpu.memory_space<vmem>>, vector<32x1xf32>
    tpu.vector_store %arg13[%c0_2, %c0_3], %2 {strides = array<i32>} : memref<320x1xf32, #tpu.memory_space<vmem>>, vector<32x1xf32>,
    %cst_4 = arith.constant 0.000000e+00 : f32
    %4 = vector.broadcast %cst_4 : f32 to vector<32x1xf32>
    %c288 = arith.constant 288 : index
    %c0_5 = arith.constant 0 : index
    %5 = vector.load %arg13[%c288, %c0_5] : memref<320x1xf32, #tpu.memory_space<vmem>>, vector<32x1xf32>
    tpu.vector_store %arg13[%c288, %c0_5], %4 {strides = array<i32>} : memref<320x1xf32, #tpu.memory_space<vmem>>, vector<32x1xf32>,
    %c32 = arith.constant 32 : index
    %c0_6 = arith.constant 0 : index
    %6 = vector.load %arg13[%c32, %c0_6] : memref<320x1xf32, #tpu.memory_space<vmem>>, vector<256x1xf32>
    tpu.vector_store %arg13[%c32, %c0_6], %1 {strides = array<i32>} : memref<320x1xf32, #tpu.memory_space<vmem>>, vector<256x1xf32>,
    %c0_7 = arith.constant 0 : index
    %c0_8 = arith.constant 0 : index
    %7 = vector.load %arg2[%c0_7, %c0_8] : memref<256x9xf32, #tpu.memory_space<vmem>>, vector<256x9xf32>
    %c0_9 = arith.constant 0 : index
    %c0_10 = arith.constant 0 : index
    %8 = vector.load %arg4[%c0_9, %c0_10] : memref<9x32xf32, #tpu.memory_space<vmem>>, vector<9x32xf32>
    %cst_11 = arith.constant 0.000000e+00 : f32
    %9 = vector.broadcast %cst_11 : f32 to vector<256x32xf32>
    %c15 = arith.constant 15 : index
    %c0_12 = arith.constant 0 : index
    %10 = vector.load %arg13[%c15, %c0_12] : memref<320x1xf32, #tpu.memory_space<vmem>>, vector<256x1xf32>
    %11 = vector.extract_strided_slice %7 {offsets = [0, 0], sizes = [256, 1], strides = [1, 1]} : vector<256x9xf32> to vector<256x1xf32>
    %12 = arith.mulf %10, %11 : vector<256x1xf32>
    %13 = vector.extract_strided_slice %8 {offsets = [0, 0], sizes = [1, 32], strides = [1, 1]} : vector<9x32xf32> to vector<1x32xf32>
    %14 = vector.broadcast %12 : vector<256x1xf32> to vector<256x32xf32>
    %15 = vector.broadcast %13 : vector<1x32xf32> to vector<256x32xf32>
    %16 = arith.mulf %14, %15 : vector<256x32xf32>
    %17 = arith.addf %9, %16 : vector<256x32xf32>
    %c16 = arith.constant 16 : index
    %c0_13 = arith.constant 0 : index
    %18 = vector.load %arg13[%c16, %c0_13] : memref<320x1xf32, #tpu.memory_space<vmem>>, vector<256x1xf32>
    %19 = vector.extract_strided_slice %7 {offsets = [0, 1], sizes = [256, 1], strides = [1, 1]} : vector<256x9xf32> to vector<256x1xf32>
    %20 = arith.mulf %18, %19 : vector<256x1xf32>
    %21 = vector.extract_strided_slice %8 {offsets = [1, 0], sizes = [1, 32], strides = [1, 1]} : vector<9x32xf32> to vector<1x32xf32>
    %22 = vector.broadcast %20 : vector<256x1xf32> to vector<256x32xf32>
    %23 = vector.broadcast %21 : vector<1x32xf32> to vector<256x32xf32>
    %24 = arith.mulf %22, %23 : vector<256x32xf32>
    %25 = arith.addf %17, %24 : vector<256x32xf32>
    %c17 = arith.constant 17 : index
    %c0_14 = arith.constant 0 : index
    %26 = vector.load %arg13[%c17, %c0_14] : memref<320x1xf32, #tpu.memory_space<vmem>>, vector<256x1xf32>
    %27 = vector.extract_strided_slice %7 {offsets = [0, 2], sizes = [256, 1], strides = [1, 1]} : vector<256x9xf32> to vector<256x1xf32>
    %28 = arith.mulf %26, %27 : vector<256x1xf32>
    %29 = vector.extract_strided_slice %8 {offsets = [2, 0], sizes = [1, 32], strides = [1, 1]} : vector<9x32xf32> to vector<1x32xf32>
    %30 = vector.broadcast %28 : vector<256x1xf32> to vector<256x32xf32>
    %31 = vector.broadcast %29 : vector<1x32xf32> to vector<256x32xf32>
    %32 = arith.mulf %30, %31 : vector<256x32xf32>
    %33 = arith.addf %25, %32 : vector<256x32xf32>
    %c31 = arith.constant 31 : index
    %c0_15 = arith.constant 0 : index
    %34 = vector.load %arg13[%c31, %c0_15] : memref<320x1xf32, #tpu.memory_space<vmem>>, vector<256x1xf32>
    %35 = vector.extract_strided_slice %7 {offsets = [0, 3], sizes = [256, 1], strides = [1, 1]} : vector<256x9xf32> to vector<256x1xf32>
    %36 = arith.mulf %34, %35 : vector<256x1xf32>
    %37 = vector.extract_strided_slice %8 {offsets = [3, 0], sizes = [1, 32], strides = [1, 1]} : vector<9x32xf32> to vector<1x32xf32>
    %38 = vector.broadcast %36 : vector<256x1xf32> to vector<256x32xf32>
    %39 = vector.broadcast %37 : vector<1x32xf32> to vector<256x32xf32>
    %40 = arith.mulf %38, %39 : vector<256x32xf32>
    %41 = arith.addf %33, %40 : vector<256x32xf32>
    %c32_16 = arith.constant 32 : index
    %c0_17 = arith.constant 0 : index
    %42 = vector.load %arg13[%c32_16, %c0_17] : memref<320x1xf32, #tpu.memory_space<vmem>>, vector<256x1xf32>
    %43 = vector.extract_strided_slice %7 {offsets = [0, 4], sizes = [256, 1], strides = [1, 1]} : vector<256x9xf32> to vector<256x1xf32>
    %44 = arith.mulf %42, %43 : vector<256x1xf32>
    %45 = vector.extract_strided_slice %8 {offsets = [4, 0], sizes = [1, 32], strides = [1, 1]} : vector<9x32xf32> to vector<1x32xf32>
    %46 = vector.broadcast %44 : vector<256x1xf32> to vector<256x32xf32>
    %47 = vector.broadcast %45 : vector<1x32xf32> to vector<256x32xf32>
    %48 = arith.mulf %46, %47 : vector<256x32xf32>
    %49 = arith.addf %41, %48 : vector<256x32xf32>
    %c33 = arith.constant 33 : index
    %c0_18 = arith.constant 0 : index
    %50 = vector.load %arg13[%c33, %c0_18] : memref<320x1xf32, #tpu.memory_space<vmem>>, vector<256x1xf32>
    %51 = vector.extract_strided_slice %7 {offsets = [0, 5], sizes = [256, 1], strides = [1, 1]} : vector<256x9xf32> to vector<256x1xf32>
    %52 = arith.mulf %50, %51 : vector<256x1xf32>
    %53 = vector.extract_strided_slice %8 {offsets = [5, 0], sizes = [1, 32], strides = [1, 1]} : vector<9x32xf32> to vector<1x32xf32>
    %54 = vector.broadcast %52 : vector<256x1xf32> to vector<256x32xf32>
    %55 = vector.broadcast %53 : vector<1x32xf32> to vector<256x32xf32>
    %56 = arith.mulf %54, %55 : vector<256x32xf32>
    %57 = arith.addf %49, %56 : vector<256x32xf32>
    %c47 = arith.constant 47 : index
    %c0_19 = arith.constant 0 : index
    %58 = vector.load %arg13[%c47, %c0_19] : memref<320x1xf32, #tpu.memory_space<vmem>>, vector<256x1xf32>
    %59 = vector.extract_strided_slice %7 {offsets = [0, 6], sizes = [256, 1], strides = [1, 1]} : vector<256x9xf32> to vector<256x1xf32>
    %60 = arith.mulf %58, %59 : vector<256x1xf32>
    %61 = vector.extract_strided_slice %8 {offsets = [6, 0], sizes = [1, 32], strides = [1, 1]} : vector<9x32xf32> to vector<1x32xf32>
    %62 = vector.broadcast %60 : vector<256x1xf32> to vector<256x32xf32>
    %63 = vector.broadcast %61 : vector<1x32xf32> to vector<256x32xf32>
    %64 = arith.mulf %62, %63 : vector<256x32xf32>
    %65 = arith.addf %57, %64 : vector<256x32xf32>
    %c48 = arith.constant 48 : index
    %c0_20 = arith.constant 0 : index
    %66 = vector.load %arg13[%c48, %c0_20] : memref<320x1xf32, #tpu.memory_space<vmem>>, vector<256x1xf32>
    %67 = vector.extract_strided_slice %7 {offsets = [0, 7], sizes = [256, 1], strides = [1, 1]} : vector<256x9xf32> to vector<256x1xf32>
    %68 = arith.mulf %66, %67 : vector<256x1xf32>
    %69 = vector.extract_strided_slice %8 {offsets = [7, 0], sizes = [1, 32], strides = [1, 1]} : vector<9x32xf32> to vector<1x32xf32>
    %70 = vector.broadcast %68 : vector<256x1xf32> to vector<256x32xf32>
    %71 = vector.broadcast %69 : vector<1x32xf32> to vector<256x32xf32>
    %72 = arith.mulf %70, %71 : vector<256x32xf32>
    %73 = arith.addf %65, %72 : vector<256x32xf32>
    %c49 = arith.constant 49 : index
    %c0_21 = arith.constant 0 : index
    %74 = vector.load %arg13[%c49, %c0_21] : memref<320x1xf32, #tpu.memory_space<vmem>>, vector<256x1xf32>
    %75 = vector.extract_strided_slice %7 {offsets = [0, 8], sizes = [256, 1], strides = [1, 1]} : vector<256x9xf32> to vector<256x1xf32>
    %76 = arith.mulf %74, %75 : vector<256x1xf32>
    %77 = vector.extract_strided_slice %8 {offsets = [8, 0], sizes = [1, 32], strides = [1, 1]} : vector<9x32xf32> to vector<1x32xf32>
    %78 = vector.broadcast %76 : vector<256x1xf32> to vector<256x32xf32>
    %79 = vector.broadcast %77 : vector<1x32xf32> to vector<256x32xf32>
    %80 = arith.mulf %78, %79 : vector<256x32xf32>
    %81 = arith.addf %73, %80 : vector<256x32xf32>
    %c0_22 = arith.constant 0 : index
    %c0_23 = arith.constant 0 : index
    %82 = vector.load %arg5[%c0_22, %c0_23] : memref<1x32xf32, #tpu.memory_space<vmem>>, vector<1x32xf32>
    %83 = vector.broadcast %82 : vector<1x32xf32> to vector<256x32xf32>
    %84 = arith.addf %81, %83 : vector<256x32xf32>
    %cst_24 = arith.constant 0.000000e+00 : f32
    %85 = vector.broadcast %cst_24 : f32 to vector<256x32xf32>
    %86 = arith.maximumf %84, %85 : vector<256x32xf32>
    %87 = vector.shape_cast %86 : vector<256x32xf32> to vector<8x2x16x32xf32>
    %88 = vector.extract_strided_slice %87 {offsets = [0, 0, 0, 0], sizes = [8, 1, 16, 32], strides = [1, 1, 1, 1]} : vector<8x2x16x32xf32> to vector<8x1x16x32xf32>
    %89 = vector.shape_cast %88 : vector<8x1x16x32xf32> to vector<8x16x32xf32>
    %90 = vector.extract_strided_slice %87 {offsets = [0, 1, 0, 0], sizes = [8, 1, 16, 32], strides = [1, 1, 1, 1]} : vector<8x2x16x32xf32> to vector<8x1x16x32xf32>
    %91 = vector.shape_cast %90 : vector<8x1x16x32xf32> to vector<8x16x32xf32>
    %92 = arith.maximumf %89, %91 : vector<8x16x32xf32>
    %93 = vector.shape_cast %92 : vector<8x16x32xf32> to vector<128x32xf32>
    %94 = vector.shape_cast %93 : vector<128x32xf32> to vector<64x2x1x32xf32>
    %95 = vector.extract_strided_slice %94 {offsets = [0, 0, 0, 0], sizes = [64, 1, 1, 32], strides = [1, 1, 1, 1]} : vector<64x2x1x32xf32> to vector<64x1x1x32xf32>
    %96 = vector.shape_cast %95 : vector<64x1x1x32xf32> to vector<64x1x32xf32>
    %97 = vector.extract_strided_slice %94 {offsets = [0, 1, 0, 0], sizes = [64, 1, 1, 32], strides = [1, 1, 1, 1]} : vector<64x2x1x32xf32> to vector<64x1x1x32xf32>
    %98 = vector.shape_cast %97 : vector<64x1x1x32xf32> to vector<64x1x32xf32>
    %99 = arith.maximumf %96, %98 : vector<64x1x32xf32>
    %100 = vector.shape_cast %99 : vector<64x1x32xf32> to vector<64x32xf32>
    %cst_25 = arith.constant 0.000000e+00 : f32
    %101 = vector.broadcast %cst_25 : f32 to vector<16x32xf32>
    %c0_26 = arith.constant 0 : index
    %c0_27 = arith.constant 0 : index
    %102 = vector.load %arg14[%c0_26, %c0_27] : memref<96x32xf32, #tpu.memory_space<vmem>>, vector<16x32xf32>
    tpu.vector_store %arg14[%c0_26, %c0_27], %101 {strides = array<i32>} : memref<96x32xf32, #tpu.memory_space<vmem>>, vector<16x32xf32>,
    %cst_28 = arith.constant 0.000000e+00 : f32
    %103 = vector.broadcast %cst_28 : f32 to vector<16x32xf32>
    %c80 = arith.constant 80 : index
    %c0_29 = arith.constant 0 : index
    %104 = vector.load %arg14[%c80, %c0_29] : memref<96x32xf32, #tpu.memory_space<vmem>>, vector<16x32xf32>
    tpu.vector_store %arg14[%c80, %c0_29], %103 {strides = array<i32>} : memref<96x32xf32, #tpu.memory_space<vmem>>, vector<16x32xf32>,
    %c16_30 = arith.constant 16 : index
    %c0_31 = arith.constant 0 : index
    %105 = vector.load %arg14[%c16_30, %c0_31] : memref<96x32xf32, #tpu.memory_space<vmem>>, vector<64x32xf32>
    tpu.vector_store %arg14[%c16_30, %c0_31], %100 {strides = array<i32>} : memref<96x32xf32, #tpu.memory_space<vmem>>, vector<64x32xf32>,
    %c0_32 = arith.constant 0 : index
    %c0_33 = arith.constant 0 : index
    %106 = vector.load %arg3[%c0_32, %c0_33] : memref<64x9xf32, #tpu.memory_space<vmem>>, vector<64x9xf32>
    %c7 = arith.constant 7 : index
    %c0_34 = arith.constant 0 : index
    %107 = vector.load %arg14[%c7, %c0_34] : memref<96x32xf32, #tpu.memory_space<vmem>>, vector<64x32xf32>
    %108 = vector.extract_strided_slice %106 {offsets = [0, 0], sizes = [64, 1], strides = [1, 1]} : vector<64x9xf32> to vector<64x1xf32>
    %109 = vector.broadcast %108 : vector<64x1xf32> to vector<64x32xf32>
    %110 = arith.mulf %107, %109 : vector<64x32xf32>
    %111 = arith.truncf %110 : vector<64x32xf32> to vector<64x32xbf16>
    %c0_35 = arith.constant 0 : index
    %c0_36 = arith.constant 0 : index
    %112 = vector.load %arg15[%c0_35, %c0_36] : memref<64x288xbf16, #tpu.memory_space<vmem>>, vector<64x32xbf16>
    tpu.vector_store %arg15[%c0_35, %c0_36], %111 {strides = array<i32>} : memref<64x288xbf16, #tpu.memory_space<vmem>>, vector<64x32xbf16>,
    %c8 = arith.constant 8 : index
    %c0_37 = arith.constant 0 : index
    %113 = vector.load %arg14[%c8, %c0_37] : memref<96x32xf32, #tpu.memory_space<vmem>>, vector<64x32xf32>
    %114 = vector.extract_strided_slice %106 {offsets = [0, 1], sizes = [64, 1], strides = [1, 1]} : vector<64x9xf32> to vector<64x1xf32>
    %115 = vector.broadcast %114 : vector<64x1xf32> to vector<64x32xf32>
    %116 = arith.mulf %113, %115 : vector<64x32xf32>
    %117 = arith.truncf %116 : vector<64x32xf32> to vector<64x32xbf16>
    %c0_38 = arith.constant 0 : index
    %c32_39 = arith.constant 32 : index
    %118 = vector.load %arg15[%c0_38, %c32_39] : memref<64x288xbf16, #tpu.memory_space<vmem>>, vector<64x32xbf16>
    tpu.vector_store %arg15[%c0_38, %c32_39], %117 {strides = array<i32>} : memref<64x288xbf16, #tpu.memory_space<vmem>>, vector<64x32xbf16>,
    %c9 = arith.constant 9 : index
    %c0_40 = arith.constant 0 : index
    %119 = vector.load %arg14[%c9, %c0_40] : memref<96x32xf32, #tpu.memory_space<vmem>>, vector<64x32xf32>
    %120 = vector.extract_strided_slice %106 {offsets = [0, 2], sizes = [64, 1], strides = [1, 1]} : vector<64x9xf32> to vector<64x1xf32>
    %121 = vector.broadcast %120 : vector<64x1xf32> to vector<64x32xf32>
    %122 = arith.mulf %119, %121 : vector<64x32xf32>
    %123 = arith.truncf %122 : vector<64x32xf32> to vector<64x32xbf16>
    %c0_41 = arith.constant 0 : index
    %c64 = arith.constant 64 : index
    %124 = vector.load %arg15[%c0_41, %c64] : memref<64x288xbf16, #tpu.memory_space<vmem>>, vector<64x32xbf16>
    tpu.vector_store %arg15[%c0_41, %c64], %123 {strides = array<i32>} : memref<64x288xbf16, #tpu.memory_space<vmem>>, vector<64x32xbf16>,
    %c15_42 = arith.constant 15 : index
    %c0_43 = arith.constant 0 : index
    %125 = vector.load %arg14[%c15_42, %c0_43] : memref<96x32xf32, #tpu.memory_space<vmem>>, vector<64x32xf32>
    %126 = vector.extract_strided_slice %106 {offsets = [0, 3], sizes = [64, 1], strides = [1, 1]} : vector<64x9xf32> to vector<64x1xf32>
    %127 = vector.broadcast %126 : vector<64x1xf32> to vector<64x32xf32>
    %128 = arith.mulf %125, %127 : vector<64x32xf32>
    %129 = arith.truncf %128 : vector<64x32xf32> to vector<64x32xbf16>
    %c0_44 = arith.constant 0 : index
    %c96 = arith.constant 96 : index
    %130 = vector.load %arg15[%c0_44, %c96] : memref<64x288xbf16, #tpu.memory_space<vmem>>, vector<64x32xbf16>
    tpu.vector_store %arg15[%c0_44, %c96], %129 {strides = array<i32>} : memref<64x288xbf16, #tpu.memory_space<vmem>>, vector<64x32xbf16>,
    %c16_45 = arith.constant 16 : index
    %c0_46 = arith.constant 0 : index
    %131 = vector.load %arg14[%c16_45, %c0_46] : memref<96x32xf32, #tpu.memory_space<vmem>>, vector<64x32xf32>
    %132 = vector.extract_strided_slice %106 {offsets = [0, 4], sizes = [64, 1], strides = [1, 1]} : vector<64x9xf32> to vector<64x1xf32>
    %133 = vector.broadcast %132 : vector<64x1xf32> to vector<64x32xf32>
    %134 = arith.mulf %131, %133 : vector<64x32xf32>
    %135 = arith.truncf %134 : vector<64x32xf32> to vector<64x32xbf16>
    %c0_47 = arith.constant 0 : index
    %c128 = arith.constant 128 : index
    %136 = vector.load %arg15[%c0_47, %c128] : memref<64x288xbf16, #tpu.memory_space<vmem>>, vector<64x32xbf16>
    tpu.vector_store %arg15[%c0_47, %c128], %135 {strides = array<i32>} : memref<64x288xbf16, #tpu.memory_space<vmem>>, vector<64x32xbf16>,
    %c17_48 = arith.constant 17 : index
    %c0_49 = arith.constant 0 : index
    %137 = vector.load %arg14[%c17_48, %c0_49] : memref<96x32xf32, #tpu.memory_space<vmem>>, vector<64x32xf32>
    %138 = vector.extract_strided_slice %106 {offsets = [0, 5], sizes = [64, 1], strides = [1, 1]} : vector<64x9xf32> to vector<64x1xf32>
    %139 = vector.broadcast %138 : vector<64x1xf32> to vector<64x32xf32>
    %140 = arith.mulf %137, %139 : vector<64x32xf32>
    %141 = arith.truncf %140 : vector<64x32xf32> to vector<64x32xbf16>
    %c0_50 = arith.constant 0 : index
    %c160 = arith.constant 160 : index
    %142 = vector.load %arg15[%c0_50, %c160] : memref<64x288xbf16, #tpu.memory_space<vmem>>, vector<64x32xbf16>
    tpu.vector_store %arg15[%c0_50, %c160], %141 {strides = array<i32>} : memref<64x288xbf16, #tpu.memory_space<vmem>>, vector<64x32xbf16>,
    %c23 = arith.constant 23 : index
    %c0_51 = arith.constant 0 : index
    %143 = vector.load %arg14[%c23, %c0_51] : memref<96x32xf32, #tpu.memory_space<vmem>>, vector<64x32xf32>
    %144 = vector.extract_strided_slice %106 {offsets = [0, 6], sizes = [64, 1], strides = [1, 1]} : vector<64x9xf32> to vector<64x1xf32>
    %145 = vector.broadcast %144 : vector<64x1xf32> to vector<64x32xf32>
    %146 = arith.mulf %143, %145 : vector<64x32xf32>
    %147 = arith.truncf %146 : vector<64x32xf32> to vector<64x32xbf16>
    %c0_52 = arith.constant 0 : index
    %c192 = arith.constant 192 : index
    %148 = vector.load %arg15[%c0_52, %c192] : memref<64x288xbf16, #tpu.memory_space<vmem>>, vector<64x32xbf16>
    tpu.vector_store %arg15[%c0_52, %c192], %147 {strides = array<i32>} : memref<64x288xbf16, #tpu.memory_space<vmem>>, vector<64x32xbf16>,
    %c24 = arith.constant 24 : index
    %c0_53 = arith.constant 0 : index
    %149 = vector.load %arg14[%c24, %c0_53] : memref<96x32xf32, #tpu.memory_space<vmem>>, vector<64x32xf32>
    %150 = vector.extract_strided_slice %106 {offsets = [0, 7], sizes = [64, 1], strides = [1, 1]} : vector<64x9xf32> to vector<64x1xf32>
    %151 = vector.broadcast %150 : vector<64x1xf32> to vector<64x32xf32>
    %152 = arith.mulf %149, %151 : vector<64x32xf32>
    %153 = arith.truncf %152 : vector<64x32xf32> to vector<64x32xbf16>
    %c0_54 = arith.constant 0 : index
    %c224 = arith.constant 224 : index
    %154 = vector.load %arg15[%c0_54, %c224] : memref<64x288xbf16, #tpu.memory_space<vmem>>, vector<64x32xbf16>
    tpu.vector_store %arg15[%c0_54, %c224], %153 {strides = array<i32>} : memref<64x288xbf16, #tpu.memory_space<vmem>>, vector<64x32xbf16>,
    %c25 = arith.constant 25 : index
    %c0_55 = arith.constant 0 : index
    %155 = vector.load %arg14[%c25, %c0_55] : memref<96x32xf32, #tpu.memory_space<vmem>>, vector<64x32xf32>
    %156 = vector.extract_strided_slice %106 {offsets = [0, 8], sizes = [64, 1], strides = [1, 1]} : vector<64x9xf32> to vector<64x1xf32>
    %157 = vector.broadcast %156 : vector<64x1xf32> to vector<64x32xf32>
    %158 = arith.mulf %155, %157 : vector<64x32xf32>
    %159 = arith.truncf %158 : vector<64x32xf32> to vector<64x32xbf16>
    %c0_56 = arith.constant 0 : index
    %c256 = arith.constant 256 : index
    %160 = vector.load %arg15[%c0_56, %c256] : memref<64x288xbf16, #tpu.memory_space<vmem>>, vector<64x32xbf16>
    tpu.vector_store %arg15[%c0_56, %c256], %159 {strides = array<i32>} : memref<64x288xbf16, #tpu.memory_space<vmem>>, vector<64x32xbf16>,
    %c0_57 = arith.constant 0 : index
    %c0_58 = arith.constant 0 : index
    %161 = vector.load %arg15[%c0_57, %c0_58] : memref<64x288xbf16, #tpu.memory_space<vmem>>, vector<64x288xbf16>
    %c0_59 = arith.constant 0 : index
    %c0_60 = arith.constant 0 : index
    %162 = vector.load %arg6[%c0_59, %c0_60] : memref<288x64xbf16, #tpu.memory_space<vmem>>, vector<288x64xbf16>
    %cst_61 = arith.constant dense<0.000000e+00> : vector<64x64xf32>
    %163 = tpu.matmul %161, %162, %cst_61 {dimension_numbers = #tpu.dot_dimension_numbers<[1], [0], [0], [1], [0, 0, 1, 1], [], []>} : vector<64x288xbf16>, vector<288x64xbf16>, vector<64x64xf32> -> vector<64x64xf32>
    %c0_62 = arith.constant 0 : index
    %c0_63 = arith.constant 0 : index
    %164 = vector.load %arg7[%c0_62, %c0_63] : memref<1x64xf32, #tpu.memory_space<vmem>>, vector<1x64xf32>
    %165 = vector.broadcast %164 : vector<1x64xf32> to vector<64x64xf32>
    %166 = arith.addf %163, %165 : vector<64x64xf32>
    %cst_64 = arith.constant 0.000000e+00 : f32
    %167 = vector.broadcast %cst_64 : f32 to vector<64x64xf32>
    %168 = arith.maximumf %166, %167 : vector<64x64xf32>
    %169 = vector.shape_cast %168 : vector<64x64xf32> to vector<4x2x8x64xf32>
    %170 = vector.extract_strided_slice %169 {offsets = [0, 0, 0, 0], sizes = [4, 1, 8, 64], strides = [1, 1, 1, 1]} : vector<4x2x8x64xf32> to vector<4x1x8x64xf32>
    %171 = vector.shape_cast %170 : vector<4x1x8x64xf32> to vector<4x8x64xf32>
    %172 = vector.extract_strided_slice %169 {offsets = [0, 1, 0, 0], sizes = [4, 1, 8, 64], strides = [1, 1, 1, 1]} : vector<4x2x8x64xf32> to vector<4x1x8x64xf32>
    %173 = vector.shape_cast %172 : vector<4x1x8x64xf32> to vector<4x8x64xf32>
    %174 = arith.maximumf %171, %173 : vector<4x8x64xf32>
    %175 = vector.shape_cast %174 : vector<4x8x64xf32> to vector<32x64xf32>
    %176 = vector.shape_cast %175 : vector<32x64xf32> to vector<16x2x1x64xf32>
    %177 = vector.extract_strided_slice %176 {offsets = [0, 0, 0, 0], sizes = [16, 1, 1, 64], strides = [1, 1, 1, 1]} : vector<16x2x1x64xf32> to vector<16x1x1x64xf32>
    %178 = vector.shape_cast %177 : vector<16x1x1x64xf32> to vector<16x1x64xf32>
    %179 = vector.extract_strided_slice %176 {offsets = [0, 1, 0, 0], sizes = [16, 1, 1, 64], strides = [1, 1, 1, 1]} : vector<16x2x1x64xf32> to vector<16x1x1x64xf32>
    %180 = vector.shape_cast %179 : vector<16x1x1x64xf32> to vector<16x1x64xf32>
    %181 = arith.maximumf %178, %180 : vector<16x1x64xf32>
    %182 = vector.shape_cast %181 : vector<16x1x64xf32> to vector<16x64xf32>
    %183 = arith.truncf %182 : vector<16x64xf32> to vector<16x64xbf16>
    %c0_65 = arith.constant 0 : index
    %c0_66 = arith.constant 0 : index
    %184 = vector.load %arg8[%c0_65, %c0_66] : memref<64x128xbf16, #tpu.memory_space<vmem>>, vector<64x128xbf16>
    %cst_67 = arith.constant dense<0.000000e+00> : vector<16x128xf32>
    %185 = tpu.matmul %183, %184, %cst_67 {dimension_numbers = #tpu.dot_dimension_numbers<[1], [0], [0], [1], [0, 0, 1, 1], [], []>} : vector<16x64xbf16>, vector<64x128xbf16>, vector<16x128xf32> -> vector<16x128xf32>
    %c0_68 = arith.constant 0 : index
    %c0_69 = arith.constant 0 : index
    %186 = vector.load %arg9[%c0_68, %c0_69] : memref<1x128xf32, #tpu.memory_space<vmem>>, vector<1x128xf32>
    %187 = vector.broadcast %186 : vector<1x128xf32> to vector<16x128xf32>
    %188 = arith.addf %185, %187 : vector<16x128xf32>
    %cst_70 = arith.constant 0.000000e+00 : f32
    %189 = vector.broadcast %cst_70 : f32 to vector<16x128xf32>
    %190 = arith.maximumf %188, %189 : vector<16x128xf32>
    %191 = arith.truncf %190 : vector<16x128xf32> to vector<16x128xbf16>
    %c0_71 = arith.constant 0 : index
    %c0_72 = arith.constant 0 : index
    %192 = vector.load %arg10[%c0_71, %c0_72] : memref<128x16xbf16, #tpu.memory_space<vmem>>, vector<128x16xbf16>
    %cst_73 = arith.constant dense<0.000000e+00> : vector<16x16xf32>
    %193 = tpu.matmul %191, %192, %cst_73 {dimension_numbers = #tpu.dot_dimension_numbers<[1], [0], [0], [1], [0, 0, 1, 1], [], []>} : vector<16x128xbf16>, vector<128x16xbf16>, vector<16x16xf32> -> vector<16x16xf32>
    %c0_74 = arith.constant 0 : index
    %c0_75 = arith.constant 0 : index
    %194 = vector.load %arg11[%c0_74, %c0_75] : memref<1x16xf32, #tpu.memory_space<vmem>>, vector<1x16xf32>
    %195 = vector.broadcast %194 : vector<1x16xf32> to vector<16x16xf32>
    %196 = arith.addf %193, %195 : vector<16x16xf32>
    %197 = arith.negf %196 : vector<16x16xf32>
    %198 = math.exp %197 : vector<16x16xf32>
    %cst_76 = arith.constant 1.000000e+00 : f32
    %199 = vector.broadcast %cst_76 : f32 to vector<16x16xf32>
    %200 = arith.addf %199, %198 : vector<16x16xf32>
    %201 = arith.divf %199, %200 : vector<16x16xf32>
    %c0_77 = arith.constant 0 : index
    %c0_78 = arith.constant 0 : index
    %c0_79 = arith.constant 0 : index
    %202 = vector.load %arg12[%c0_77, %c0_78, %c0_79] : memref<1x16x16xf32, #tpu.memory_space<vmem>>, vector<1x16x16xf32>
    %203 = vector.shape_cast %202 : vector<1x16x16xf32> to vector<16x16xf32>
    %204 = vector.shape_cast %201 : vector<16x16xf32> to vector<1x16x16xf32>
    tpu.vector_store %arg12[%c0_77, %c0_78, %c0_79], %204 {strides = array<i32>} : memref<1x16x16xf32, #tpu.memory_space<vmem>>, vector<1x16x16xf32>,
    return
  }
  func.func @transform_0(%arg0: i32) -> (i32, i32, i32) {
    %c0_i32 = arith.constant 0 : i32
    %c0_i32_0 = arith.constant 0 : i32
    %c0_i32_1 = arith.constant 0 : i32
    return %arg0, %c0_i32, %c0_i32_0 : i32, i32, i32
  }
  func.func @transform_1(%arg0: i32) -> (i32, i32) {
    %c0_i32 = arith.constant 0 : i32
    %c0_i32_0 = arith.constant 0 : i32
    %c0_i32_1 = arith.constant 0 : i32
    return %c0_i32, %c0_i32_0 : i32, i32
  }
  func.func @transform_2(%arg0: i32) -> (i32, i32) {
    %c0_i32 = arith.constant 0 : i32
    %c0_i32_0 = arith.constant 0 : i32
    %c0_i32_1 = arith.constant 0 : i32
    return %c0_i32, %c0_i32_0 : i32, i32
  }
  func.func @transform_3(%arg0: i32) -> (i32, i32) {
    %c0_i32 = arith.constant 0 : i32
    %c0_i32_0 = arith.constant 0 : i32
    %c0_i32_1 = arith.constant 0 : i32
    return %c0_i32, %c0_i32_0 : i32, i32
  }
  func.func @transform_4(%arg0: i32) -> (i32, i32) {
    %c0_i32 = arith.constant 0 : i32
    %c0_i32_0 = arith.constant 0 : i32
    %c0_i32_1 = arith.constant 0 : i32
    return %c0_i32, %c0_i32_0 : i32, i32
  }
  func.func @transform_5(%arg0: i32) -> (i32, i32) {
    %c0_i32 = arith.constant 0 : i32
    %c0_i32_0 = arith.constant 0 : i32
    %c0_i32_1 = arith.constant 0 : i32
    return %c0_i32, %c0_i32_0 : i32, i32
  }
  func.func @transform_6(%arg0: i32) -> (i32, i32) {
    %c0_i32 = arith.constant 0 : i32
    %c0_i32_0 = arith.constant 0 : i32
    %c0_i32_1 = arith.constant 0 : i32
    return %c0_i32, %c0_i32_0 : i32, i32
  }
  func.func @transform_7(%arg0: i32) -> (i32, i32) {
    %c0_i32 = arith.constant 0 : i32
    %c0_i32_0 = arith.constant 0 : i32
    %c0_i32_1 = arith.constant 0 : i32
    return %c0_i32, %c0_i32_0 : i32, i32
  }
  func.func @transform_8(%arg0: i32) -> (i32, i32) {
    %c0_i32 = arith.constant 0 : i32
    %c0_i32_0 = arith.constant 0 : i32
    %c0_i32_1 = arith.constant 0 : i32
    return %c0_i32, %c0_i32_0 : i32, i32
  }
  func.func @transform_9(%arg0: i32) -> (i32, i32) {
    %c0_i32 = arith.constant 0 : i32
    %c0_i32_0 = arith.constant 0 : i32
    %c0_i32_1 = arith.constant 0 : i32
    return %c0_i32, %c0_i32_0 : i32, i32
  }
  func.func @transform_10(%arg0: i32) -> (i32, i32) {
    %c0_i32 = arith.constant 0 : i32
    %c0_i32_0 = arith.constant 0 : i32
    %c0_i32_1 = arith.constant 0 : i32
    return %c0_i32, %c0_i32_0 : i32, i32
  }
  func.func @transform_11(%arg0: i32) -> (i32, i32, i32) {
    %c0_i32 = arith.constant 0 : i32
    %c0_i32_0 = arith.constant 0 : i32
    %c0_i32_1 = arith.constant 0 : i32
    return %arg0, %c0_i32, %c0_i32_0 : i32, i32, i32
  }
}

</mosaic_0001>

<bundles_post_ra>
// kernel: tile.13
= control target key start
LH: loop header
LB: loop body
LE: loop exit
PB: predicated region body
PF: predicated region fallthrough
CT: control target
= control target key end

     0   :  { %s22_s0 = inlined_call_operand.vmem [shape: f32[32], index: 0, kind: input, shape index: {}]   ;;  %s23_s1 = inlined_call_operand.vmem [shape: f32[4,32], index: 1, kind: output, shape index: {}]  }
   0x1   :  { %v4_v0 = vld [vmem:[%s22_s0] ss:$0 sm:$0xff] }
   0x2   :  { %5 = vst [vmem:[%s23_s1] sm:$0xf] %v4_v0 }

// kernel: tile.14
= control target key start
LH: loop header
LB: loop body
LE: loop exit
PB: predicated region body
PF: predicated region fallthrough
CT: control target
= control target key end

     0   :  { %vm8_vm0 = vcmask 261120   ;;  %s40_s8 = smov 32   ;;  %s41_s9 = smov 64   ;;  %vm14_vm1 = vcmask 1048320   ;;  %vm20_vm2 = vcmask 785920   ;;  %vm26_vm3 = vcmask 523520   ;;  %s58_s0 = inlined_call_operand.vmem [shape: f32[4,32], index: 0, kind: input, shape index: {}]   ;;  %s59_s1 = inlined_call_operand.vmem [shape: f32[1,128], index: 1, kind: output, shape index: {}]  }
   0x1   :  { %v5_v0 = vld [vmem:[%s58_s0] sm:$0xf]  ;;  %s39_s0 = smov 96  }
   0x2   :  { %6 = vst [vmem:[#allocation1] sm:$0xf] %v5_v0 }
   0x9   :  { %v11_v1 = vld [vmem:[#allocation1 + $0x3] sm:$0x1]   ;;  %v23_v2 = vld [vmem:[#allocation1 + $0x1] sm:$0x1]   ;;  %v7_v3 = vld [vmem:[#allocation1] sm:$0x1]  }
   0xa   :  { %12 = vrot.lane.b32.xlu0 %v11_v1, %s39_s0  ;;  %24 = vrot.lane.b32.xlu1 %v23_v2, %s40_s8  ;;  %v17_v4 = vld [vmem:[#allocation1 + $0x2] sm:$0x1]   ;;  %9 = vst.msk [vmem:[#allocation0] sm:$0x1] %vm8_vm0, %v7_v3  }
   0xe   :  { %18 = vrot.lane.b32.xlu0 %v17_v4, %s41_s9 }
  0x7c   :  { %v13_v5 = vpop.permute.xlu0 %12   ;;  %v25_v6 = vpop.permute.xlu1 %24  }
  0x7d   :  { %15 = vst.msk [vmem:[#allocation0] sm:$0x1] %vm14_vm1, %v13_v5  }
  0x80   :  { %v19_v7 = vpop.permute.xlu0 %18  }
  0x81   :  { %21 = vst.msk [vmem:[#allocation0] sm:$0x1] %vm20_vm2, %v19_v7  }
  0x82   :  { %27 = vst.msk [vmem:[#allocation0] sm:$0x1] %vm26_vm3, %v25_v6  }
  0x89   :  { %v32_v8 = vld [vmem:[#allocation0] sm:$0x1] }
  0x8a   :  { %35 = vst [vmem:[%s59_s1] sm:$0x1] %v32_v8 }

// kernel: conv_autoencoder_forward.1
= control target key start
LH: loop header
LB: loop body
LE: loop exit
PB: predicated region body
PF: predicated region fallthrough
CT: control target
= control target key end

     0   :  { %s7983_s17 = smov 0   ;;  %s11933_s0 = inlined_call_operand.vmem [shape: f32[2,256,1], index: 0, kind: input, shape index: {}]   ;;  %s11934_s1 = inlined_call_operand.vmem [shape: f32[256,9], index: 1, kind: input, shape index: {}]   ;;  %s11935_s2 = inlined_call_operand.vmem [shape: f32[64,9], index: 2, kind: input, shape index: {}]   ;;  %s11936_s3 = inlined_call_operand.vmem [shape: f32[9,32], index: 3, kind: input, shape index: {}]   ;;  %s11937_s4 = inlined_call_operand.vmem [shape: f32[1,32], index: 4, kind: input, shape index: {}]   ;;  %s11938_s5 = inlined_call_operand.vmem [shape: bf16[288,64], index: 5, kind: input, shape index: {}]   ;;  %s11939_s6 = inlined_call_operand.vmem [shape: f32[1,64], index: 6, kind: input, shape index: {}]   ;;  %s11940_s7 = inlined_call_operand.vmem [shape: bf16[64,128], index: 7, kind: input, shape index: {}]   ;;  %s11941_s8 = inlined_call_operand.vmem [shape: f32[1,128], index: 8, kind: input, shape index: {}]   ;;  %s11942_s9 = inlined_call_operand.vmem [shape: bf16[128,16], index: 9, kind: input, shape index: {}]   ;;  %s11943_s10 = inlined_call_operand.vmem [shape: f32[1,16], index: 10, kind: input, shape index: {}]   ;;  %s11944_s11 = inlined_call_operand.vmem [shape: f32[2,16,16], index: 11, kind: output, shape index: {}]  }
   0x1 LB: > { %s7369_s18 = sadd.s32 4294967295, %s7898_s17   ;;  %p7373_p0 = scmp.ge.s32.totalorder %s7898_s17, 1  ;;  %s7898_s17 = sphi %s7983_s17, %s21_s17  }
   0x2   : > { %p337_p1 = scmp.lt.s32.totalorder %s7898_s17, 3 }
   0x4   : > { %p338_p2 = pnand %p7373_p0, %p337_p1 }
   0x6   : > { %341 = sbr.rel (%p338_p2) target bundleno = 2546 (0x9f2), region = 64 }
   0xb   : > { %vm420_vm0 = vcmask 7168   ;;  %p377_p3 = scmp.lt.s32.totalorder %s7369_s18, 1  ;;  %v11945_v0 = vmov 0   ;;  %v11947_v1 = vmov 0.0   ;;  %v8011_v2 = vld [vmem:[%s11934_s1] sm:$0xff]  ;;  %v8021_v3 = vld [vmem:[%s11934_s1 + $0x8] sm:$0xff] }
   0xc   : > { %7715 = vset.pattern.permute.xlu0 %v11945_v0  ;;  %422 = vst.msk [vmem:[#allocation2 + $0x8] sm:$0xff] %vm420_vm0, %v11947_v1  ;;  %423 = vst.msk [vmem:[#allocation2 + $0x10] sm:$0xff] %vm420_vm0, %v11947_v1  ;;  %7716 = vset.pattern.permute.xlu1 %v11945_v0  ;;  %v8057_v24 = vld [vmem:[%s11934_s1 + $0x10] sm:$0xff]  ;;  %v8062_v25 = vld [vmem:[%s11934_s1 + $0x20] sm:$0xff]  ;;  %s7902_s22 = smov 127   ;;  %s7903_s23 = smov 126  }
   0xd   : > { %424 = vst.msk [vmem:[#allocation2 + $0x18] sm:$0xff] %vm420_vm0, %v11947_v1  ;;  %425 = vst.msk [vmem:[#allocation2 + $0x120] sm:$0xff] %vm420_vm0, %v11947_v1  ;;  %s12481_s18 = smov (!%p377_p3, %s7369_s18), 1  ;;  %v8071_v27 = vld [vmem:[%s11934_s1 + $0x18] sm:$0xff]  ;;  %v8083_v35 = vld [vmem:[%s11934_s1 + $0x30] sm:$0xff]  ;;  %s7904_s27 = smov 125  }
   0xe   : > { %426 = vst.msk [vmem:[#allocation2 + $0x128] sm:$0xff] %vm420_vm0, %v11947_v1  ;;  %427 = vst.msk [vmem:[#allocation2 + $0x130] sm:$0xff] %vm420_vm0, %v11947_v1  ;;  %s7506_s19 = sshll.u32 %s12481_s18, 8  ;;  %v8091_v39 = vld [vmem:[%s11934_s1 + $0x28] sm:$0xff]  ;;  %v8097_v42 = vld [vmem:[%s11934_s1 + $0x40] sm:$0xff]  ;;  %s7907_s30 = smov 122  }
   0xf   : > { %s8016_s24 = scalar_lea.vmem %s11933_s0, %s7506_s19  ;;  %v8104_v46 = vld [vmem:[%s11934_s1 + $0x38] sm:$0xff]  ;;  %v8117_v53 = vld [vmem:[%s11934_s1 + $0x50] sm:$0xff]  ;;  %v8125_v56 = vld [vmem:[%s11934_s1 + $0x48] sm:$0xff]  ;;  %s7908_s26 = smov 121   ;;  %vm5002_vm1 = vcmask 261120   ;;  %vm5575_vm2 = vcmask 257024  }
  0x10   : > { %v388_v4 = vld [vmem:[%s8016_s24] sm:$0xff]  ;;  %v389_v5 = vld [vmem:[%s8016_s24 + $0x8] sm:$0xff]  ;;  %v390_v6 = vld [vmem:[%s8016_s24 + $0x10] sm:$0xff]  ;;  %s7909_s29 = smov 120   ;;  %vm5680_vm3 = vcmask 519424   ;;  %vm5785_vm4 = vcmask 781824  }
  0x11   : > { %429 = vst.msk [vmem:[#allocation2 + $0x20] sm:$0xff] %vm420_vm0, %v388_v4  ;;  %430 = vst.msk [vmem:[#allocation2 + $0x28] sm:$0xff] %vm420_vm0, %v389_v5  ;;  %v391_v7 = vld [vmem:[%s8016_s24 + $0x18] sm:$0xff]  ;;  %v392_v8 = vld [vmem:[%s8016_s24 + $0x20] sm:$0xff]  ;;  %vm5890_vm5 = vcmask 1044224   ;;  %vm7922_vm6 = vmmov 0  }
  0x12   : > { %431 = vst.msk [vmem:[#allocation2 + $0x30] sm:$0xff] %vm420_vm0, %v390_v6  ;;  %v393_v9 = vld [vmem:[%s8016_s24 + $0x28] sm:$0xff]  ;;  %432 = vst.msk [vmem:[#allocation2 + $0x38] sm:$0xff] %vm420_vm0, %v391_v7  ;;  %v394_v12 = vld [vmem:[%s8016_s24 + $0x30] sm:$0xff]  ;;  %vm7080_vm7 = vcmask 1041409   ;;  %vm7083_vm8 = vcmask 1042434  }
  0x13   : > { %v495_v10 = vld [vmem:[#allocation2 + $0xf] sm:$0xff]  ;;  %433 = vst.msk [vmem:[#allocation2 + $0x40] sm:$0xff] %vm420_vm0, %v392_v8  ;;  %434 = vst.msk [vmem:[#allocation2 + $0x48] sm:$0xff] %vm420_vm0, %v393_v9  ;;  %v395_v14 = vld [vmem:[%s8016_s24 + $0x38] sm:$0xff]  ;;  %vm7086_vm9 = vcmask 1043459   ;;  %vm7089_vm10 = vcmask 1044484  }
  0x14   : > { %v496_v11 = vld [vmem:[#allocation2 + $0x17] sm:$0xff]  ;;  %v527_v13 = vmul.f32 %v495_v10, %v8011_v2  ;;  %435 = vst.msk [vmem:[#allocation2 + $0x50] sm:$0xff] %vm420_vm0, %v394_v12  ;;  %v396_v15 = vld [vmem:[%s8016_s24 + $0x40] sm:$0xff]  ;;  %v397_v16 = vld [vmem:[%s8016_s24 + $0x48] sm:$0xff]  ;;  %vm7092_vm11 = vcmask 1045509   ;;  %vm7095_vm12 = vcmask 1046534  }
  0x15   : > { %436 = vst.msk [vmem:[#allocation2 + $0x58] sm:$0xff] %vm420_vm0, %v395_v14  ;;  %437 = vst.msk [vmem:[#allocation2 + $0x60] sm:$0xff] %vm420_vm0, %v396_v15  ;;  %v398_v17 = vld [vmem:[%s8016_s24 + $0x50] sm:$0xff]  ;;  %v399_v18 = vld [vmem:[%s8016_s24 + $0x58] sm:$0xff]  ;;  %v528_v20 = vmul.f32 %v496_v11, %v8021_v3  ;;  %vm7098_vm13 = vcmask 1047559   ;;  %vm7139_vm14 = vcmask 523264  }
  0x16   : > { %438 = vst.msk [vmem:[#allocation2 + $0x68] sm:$0xff] %vm420_vm0, %v397_v16  ;;  %v400_v19 = vld [vmem:[%s8016_s24 + $0x60] sm:$0xff]  ;;  %561 = vperm.xlu0 %7715, %v527_v13   ;;  %439 = vst.msk [vmem:[#allocation2 + $0x70] sm:$0xff] %vm420_vm0, %v398_v17  ;;  %v401_v21 = vld [vmem:[%s8016_s24 + $0x68] sm:$0xff]  ;;  %vm7311_vm15 = vcmask 130048  }
  0x17   : > { %440 = vst.msk [vmem:[#allocation2 + $0x78] sm:$0xff] %vm420_vm0, %v399_v18  ;;  %441 = vst.msk [vmem:[#allocation2 + $0x80] sm:$0xff] %vm420_vm0, %v400_v19  ;;  %v402_v22 = vld [vmem:[%s8016_s24 + $0x70] sm:$0xff]  ;;  %v403_v23 = vld [vmem:[%s8016_s24 + $0x78] sm:$0xff] }
  0x18   : > { %442 = vst.msk [vmem:[#allocation2 + $0x88] sm:$0xff] %vm420_vm0, %v401_v21  ;;  %443 = vst.msk [vmem:[#allocation2 + $0x90] sm:$0xff] %vm420_vm0, %v402_v22  ;;  %v404_v26 = vld [vmem:[%s8016_s24 + $0x80] sm:$0xff]  ;;  %v405_v28 = vld [vmem:[%s8016_s24 + $0x88] sm:$0xff] }
  0x19   : > { %444 = vst.msk [vmem:[#allocation2 + $0x98] sm:$0xff] %vm420_vm0, %v403_v23  ;;  %445 = vst.msk [vmem:[#allocation2 + $0xa0] sm:$0xff] %vm420_vm0, %v404_v26  ;;  %v406_v29 = vld [vmem:[%s8016_s24 + $0x90] sm:$0xff]  ;;  %v497_v30 = vld [vmem:[#allocation2 + $0x1f] sm:$0xff] }
  0x1a   : > { %v499_v31 = vld [vmem:[#allocation2 + $0x2f] sm:$0xff]  ;;  %v498_v32 = vld [vmem:[#allocation2 + $0x27] sm:$0xff]  ;;  %446 = vst.msk [vmem:[#allocation2 + $0xa8] sm:$0xff] %vm420_vm0, %v405_v28  ;;  %447 = vst.msk [vmem:[#allocation2 + $0xb0] sm:$0xff] %vm420_vm0, %v406_v29  ;;  %566 = vperm.xlu0 %7715, %v528_v20   ;;  %v529_v33 = vmul.f32 %v497_v30, %v8057_v24 }
  0x1b   : > { %v531_v34 = vmul.f32 %v499_v31, %v8062_v25  ;;  %v501_v36 = vld [vmem:[#allocation2 + $0x3f] sm:$0xff]  ;;  %v530_v38 = vmul.f32 %v498_v32, %v8071_v27  ;;  %v500_v40 = vld [vmem:[#allocation2 + $0x37] sm:$0xff]  ;;  %v503_v43 = vld [vmem:[#allocation2 + $0x4f] sm:$0xff] }
  0x1c   : > { %v407_v37 = vld [vmem:[%s8016_s24 + $0x98] sm:$0xff]  ;;  %571 = vperm.xlu1 %7716, %v529_v33   ;;  %v533_v41 = vmul.f32 %v501_v36, %v8083_v35  ;;  %v408_v44 = vld [vmem:[%s8016_s24 + $0xa0] sm:$0xff]  ;;  %v532_v45 = vmul.f32 %v500_v40, %v8091_v39  ;;  %v409_v48 = vld [vmem:[%s8016_s24 + $0xa8] sm:$0xff]  ;;  %v535_v50 = vmul.f32 %v503_v43, %v8097_v42 }
  0x1d   : > { %448 = vst.msk [vmem:[#allocation2 + $0xb8] sm:$0xff] %vm420_vm0, %v407_v37  ;;  %449 = vst.msk [vmem:[#allocation2 + $0xc0] sm:$0xff] %vm420_vm0, %v408_v44  ;;  %v502_v47 = vld [vmem:[#allocation2 + $0x47] sm:$0xff]  ;;  %v410_v49 = vld [vmem:[%s8016_s24 + $0xb0] sm:$0xff] }
  0x1e   : > { %581 = vperm.xlu0 %7715, %v531_v34   ;;  %450 = vst.msk [vmem:[#allocation2 + $0xc8] sm:$0xff] %vm420_vm0, %v409_v48  ;;  %451 = vst.msk [vmem:[#allocation2 + $0xd0] sm:$0xff] %vm420_vm0, %v410_v49  ;;  %v411_v51 = vld [vmem:[%s8016_s24 + $0xb8] sm:$0xff]  ;;  %v412_v52 = vld [vmem:[%s8016_s24 + $0xc0] sm:$0xff]  ;;  %v534_v55 = vmul.f32 %v502_v47, %v8104_v46 }
  0x1f   : > { %v505_v54 = vld [vmem:[#allocation2 + $0x5f] sm:$0xff]  ;;  %452 = vst.msk [vmem:[#allocation2 + $0xd8] sm:$0xff] %vm420_vm0, %v411_v51  ;;  %453 = vst.msk [vmem:[#allocation2 + $0xe0] sm:$0xff] %vm420_vm0, %v412_v52  ;;  %v413_v57 = vld [vmem:[%s8016_s24 + $0xc8] sm:$0xff] }
  0x20   : > { %576 = vperm.xlu1 %7716, %v530_v38   ;;  %v414_v58 = vld [vmem:[%s8016_s24 + $0xd0] sm:$0xff]  ;;  %454 = vst.msk [vmem:[#allocation2 + $0xe8] sm:$0xff] %vm420_vm0, %v413_v57  ;;  %v415_v60 = vld [vmem:[%s8016_s24 + $0xd8] sm:$0xff]  ;;  %v416_v61 = vld [vmem:[%s8016_s24 + $0xe0] sm:$0xff]  ;;  %v537_v62 = vmul.f32 %v505_v54, %v8117_v53 }
  0x21   : > { %v504_v59 = vld [vmem:[#allocation2 + $0x57] sm:$0xff]  ;;  %455 = vst.msk [vmem:[#allocation2 + $0xf0] sm:$0xff] %vm420_vm0, %v414_v58  ;;  %456 = vst.msk [vmem:[#allocation2 + $0xf8] sm:$0xff] %vm420_vm0, %v415_v60  ;;  %v417_v63 = vld [vmem:[%s8016_s24 + $0xe8] sm:$0xff] }
  0x22   : > { %591 = vperm.xlu0 %7715, %v533_v41   ;;  %457 = vst.msk [vmem:[#allocation2 + $0x100] sm:$0xff] %vm420_vm0, %v416_v61  ;;  %v8140_v4 = vld [vmem:[%s11934_s1 + $0x60] sm:$0xff]  ;;  %v507_v5 = vld [vmem:[#allocation2 + $0x6f] sm:$0xff]  ;;  %458 = vst.msk [vmem:[#allocation2 + $0x108] sm:$0xff] %vm420_vm0, %v417_v63  ;;  %v536_v6 = vmul.f32 %v504_v59, %v8125_v56 }
  0x23   : > { %v8147_v7 = vld [vmem:[%s11934_s1 + $0x58] sm:$0xff]  ;;  %v506_v8 = vld [vmem:[#allocation2 + $0x67] sm:$0xff]  ;;  %v539_v9 = vmul.f32 %v507_v5, %v8140_v4  ;;  %v8153_v10 = vld [vmem:[%s11934_s1 + $0x70] sm:$0xff] }
  0x24   : > { %586 = vperm.xlu1 %7716, %v532_v45   ;;  %v509_v11 = vld [vmem:[#allocation2 + $0x7f] sm:$0xff]  ;;  %v538_v12 = vmul.f32 %v506_v8, %v8147_v7  ;;  %v8159_v13 = vld [vmem:[%s11934_s1 + $0x68] sm:$0xff]  ;;  %v508_v14 = vld [vmem:[#allocation2 + $0x77] sm:$0xff] }
  0x25   : > { %v8164_v15 = vld [vmem:[%s11934_s1 + $0x80] sm:$0xff]  ;;  %v541_v16 = vmul.f32 %v509_v11, %v8153_v10  ;;  %v511_v17 = vld [vmem:[#allocation2 + $0x8f] sm:$0xff]  ;;  %v8170_v18 = vld [vmem:[%s11934_s1 + $0x78] sm:$0xff]  ;;  %v540_v20 = vmul.f32 %v508_v14, %v8159_v13 }
  0x26   : > { %601 = vperm.xlu0 %7715, %v535_v50   ;;  %v510_v19 = vld [vmem:[#allocation2 + $0x87] sm:$0xff]  ;;  %v8176_v21 = vld [vmem:[%s11934_s1 + $0x90] sm:$0xff]  ;;  %v513_v22 = vld [vmem:[#allocation2 + $0x9f] sm:$0xff]  ;;  %v543_v23 = vmul.f32 %v511_v17, %v8164_v15 }
  0x27   : > { %v8182_v26 = vld [vmem:[%s11934_s1 + $0x88] sm:$0xff]  ;;  %v512_v28 = vld [vmem:[#allocation2 + $0x97] sm:$0xff]  ;;  %v542_v29 = vmul.f32 %v510_v19, %v8170_v18  ;;  %v8188_v30 = vld [vmem:[%s11934_s1 + $0xa0] sm:$0xff]  ;;  %v545_v32 = vmul.f32 %v513_v22, %v8176_v21 }
  0x28   : > { %596 = vperm.xlu1 %7716, %v534_v55   ;;  %v515_v31 = vld [vmem:[#allocation2 + $0xaf] sm:$0xff]  ;;  %v8194_v33 = vld [vmem:[%s11934_s1 + $0x98] sm:$0xff]  ;;  %v514_v34 = vld [vmem:[#allocation2 + $0xa7] sm:$0xff]  ;;  %v544_v36 = vmul.f32 %v512_v28, %v8182_v26 }
  0x29   : > { %v8200_v37 = vld [vmem:[%s11934_s1 + $0xb0] sm:$0xff]  ;;  %v517_v38 = vld [vmem:[#allocation2 + $0xbf] sm:$0xff]  ;;  %v547_v40 = vmul.f32 %v515_v31, %v8188_v30  ;;  %v8206_v41 = vld [vmem:[%s11934_s1 + $0xa8] sm:$0xff]  ;;  %v546_v44 = vmul.f32 %v514_v34, %v8194_v33 }
  0x2a   : > { %611 = vperm.xlu0 %7715, %v537_v62   ;;  %v516_v43 = vld [vmem:[#allocation2 + $0xb7] sm:$0xff]  ;;  %v549_v45 = vmul.f32 %v517_v38, %v8200_v37  ;;  %v8213_v47 = vld [vmem:[%s11934_s1 + $0xc0] sm:$0xff]  ;;  %v519_v48 = vld [vmem:[#allocation2 + $0xcf] sm:$0xff] }
  0x2b   : > { %v548_v49 = vmul.f32 %v516_v43, %v8206_v41  ;;  %v8219_v50 = vld [vmem:[%s11934_s1 + $0xb8] sm:$0xff]  ;;  %v518_v51 = vld [vmem:[#allocation2 + $0xc7] sm:$0xff]  ;;  %v551_v52 = vmul.f32 %v519_v48, %v8213_v47  ;;  %v8225_v54 = vld [vmem:[%s11934_s1 + $0xd0] sm:$0xff] }
  0x2c   : > { %606 = vperm.xlu1 %7716, %v536_v6   ;;  %v521_v55 = vld [vmem:[#allocation2 + $0xdf] sm:$0xff]  ;;  %v550_v57 = vmul.f32 %v518_v51, %v8219_v50  ;;  %v8231_v58 = vld [vmem:[%s11934_s1 + $0xc8] sm:$0xff]  ;;  %v520_v59 = vld [vmem:[#allocation2 + $0xd7] sm:$0xff] }
  0x2d   : > { %v553_v60 = vmul.f32 %v521_v55, %v8225_v54  ;;  %v8237_v61 = vld [vmem:[%s11934_s1 + $0xe0] sm:$0xff]  ;;  %v523_v62 = vld [vmem:[#allocation2 + $0xef] sm:$0xff]  ;;  %v552_v63 = vmul.f32 %v520_v59, %v8231_v58  ;;  %v8243_v5 = vld [vmem:[%s11934_s1 + $0xd8] sm:$0xff] }
  0x2e   : > { %621 = vperm.xlu0 %7715, %v539_v9   ;;  %v522_v6 = vld [vmem:[#allocation2 + $0xe7] sm:$0xff]  ;;  %v555_v8 = vmul.f32 %v523_v62, %v8237_v61  ;;  %v8249_v9 = vld [vmem:[%s11934_s1 + $0xf0] sm:$0xff]  ;;  %v525_v11 = vld [vmem:[#allocation2 + $0xff] sm:$0xff] }
  0x2f   : > { %v8255_v14 = vld [vmem:[%s11934_s1 + $0xe8] sm:$0xff]  ;;  %v557_v17 = vmul.f32 %v525_v11, %v8249_v9  ;;  %v787_v1 = vld [vmem:[#allocation2 + $0x10] sm:$0xff] }
  0x30   : > { %616 = vperm.xlu1 %7716, %v538_v12   ;;  %v554_v12 = vmul.f32 %v522_v6, %v8243_v5  ;;  %v526_v22 = vld [vmem:[#allocation2 + $0x107] sm:$0xff] }
  0x32   : > { %631 = vperm.xlu0 %7715, %v541_v16   ;;  %v524_v16 = vld [vmem:[#allocation2 + $0xf7] sm:$0xff] }
  0x33   : > { %v556_v19 = vmul.f32 %v524_v16, %v8255_v14 }
  0x34   : > { %626 = vperm.xlu1 %7716, %v540_v20   ;;  %v8262_v20 = vld [vmem:[%s11934_s1 + $0xf8] sm:$0xff] }
  0x36   : > { %641 = vperm.xlu0 %7715, %v543_v23   ;;  %v558_v23 = vmul.f32 %v526_v22, %v8262_v20 }
  0x38   : > { %636 = vperm.xlu1 %7716, %v542_v29  }
  0x3a   : > { %651 = vperm.xlu0 %7715, %v545_v32  }
  0x3c   : > { %646 = vperm.xlu1 %7716, %v544_v36  }
  0x3e   : > { %661 = vperm.xlu0 %7715, %v547_v40  }
  0x40   : > { %656 = vperm.xlu1 %7716, %v546_v44  }
  0x42   : > { %671 = vperm.xlu0 %7715, %v549_v45  }
  0x44   : > { %666 = vperm.xlu1 %7716, %v548_v49  }
  0x46   : > { %681 = vperm.xlu0 %7715, %v551_v52  }
  0x48   : > { %676 = vperm.xlu1 %7716, %v550_v57  }
  0x4a   : > { %691 = vperm.xlu0 %7715, %v553_v60  }
  0x4c   : > { %686 = vperm.xlu1 %7716, %v552_v63  }
  0x4e   : > { %701 = vperm.xlu0 %7715, %v555_v8  }
  0x50   : > { %696 = vperm.xlu1 %7716, %v554_v12  }
  0x52   : > { %711 = vperm.xlu0 %7715, %v557_v17  }
  0x54   : > { %706 = vperm.xlu1 %7716, %v556_v19  }
  0x56   : > { %851 = vrot.lane.b32.xlu0 %v8011_v2, %s7902_s22 }
  0x58   : > { %716 = vperm.xlu1 %7716, %v558_v23  }
  0x5a   : > { %855 = vrot.lane.b32.xlu0 %v8057_v24, %s7902_s22 }
  0x5c   : > { %853 = vrot.lane.b32.xlu1 %v8021_v3, %s7902_s22 }
  0x5e   : > { %859 = vrot.lane.b32.xlu0 %v8062_v25, %s7902_s22 }
  0x60   : > { %857 = vrot.lane.b32.xlu1 %v8071_v27, %s7902_s22 }
  0x62   : > { %863 = vrot.lane.b32.xlu0 %v8083_v35, %s7902_s22 }
  0x64   : > { %861 = vrot.lane.b32.xlu1 %v8091_v39, %s7902_s22 }
  0x66   : > { %867 = vrot.lane.b32.xlu0 %v8097_v42, %s7902_s22 }
  0x68   : > { %865 = vrot.lane.b32.xlu1 %v8104_v46, %s7902_s22 }
  0x6a   : > { %871 = vrot.lane.b32.xlu0 %v8117_v53, %s7902_s22 }
  0x6c   : > { %869 = vrot.lane.b32.xlu1 %v8125_v56, %s7902_s22 }
  0x6e   : > { %875 = vrot.lane.b32.xlu0 %v8140_v4, %s7902_s22 }
  0x70   : > { %873 = vrot.lane.b32.xlu1 %v8147_v7, %s7902_s22 }
  0x72   : > { %879 = vrot.lane.b32.xlu0 %v8153_v10, %s7902_s22 }
  0x74   : > { %877 = vrot.lane.b32.xlu1 %v8159_v13, %s7902_s22 }
  0x76   : > { %883 = vrot.lane.b32.xlu0 %v8164_v15, %s7902_s22 }
  0x78   : > { %881 = vrot.lane.b32.xlu1 %v8170_v18, %s7902_s22 }
  0x7a   : > { %887 = vrot.lane.b32.xlu0 %v8176_v21, %s7902_s22 }
  0x7c   : > { %885 = vrot.lane.b32.xlu1 %v8182_v26, %s7902_s22 }
  0x7e   : > { %891 = vrot.lane.b32.xlu0 %v8188_v30, %s7902_s22 }
  0x80   : > { %889 = vrot.lane.b32.xlu1 %v8194_v33, %s7902_s22 }
  0x82   : > { %895 = vrot.lane.b32.xlu0 %v8200_v37, %s7902_s22 }
  0x84   : > { %893 = vrot.lane.b32.xlu1 %v8206_v41, %s7902_s22 }
  0x86   : > { %899 = vrot.lane.b32.xlu0 %v8213_v47, %s7902_s22 }
  0x88   : > { %897 = vrot.lane.b32.xlu1 %v8219_v50, %s7902_s22 }
  0x8a   : > { %903 = vrot.lane.b32.xlu0 %v8225_v54, %s7902_s22 }
  0x8c   : > { %901 = vrot.lane.b32.xlu1 %v8231_v58, %s7902_s22 }
  0x8e   : > { %907 = vrot.lane.b32.xlu0 %v8237_v61, %s7902_s22 }
  0x90   : > { %905 = vrot.lane.b32.xlu1 %v8243_v5, %s7902_s22 }
  0x91   : > { %v8323_v28 = vpop.permute.xlu0 %561 }
  0x92   : > { %911 = vrot.lane.b32.xlu0 %v8249_v9, %s7902_s22 }
  0x94   : > { %909 = vrot.lane.b32.xlu1 %v8255_v14, %s7902_s22 }
  0x95   : > { %v8329_v29 = vpop.permute.xlu0 %566 }
  0x97   : > { %v8331_v31 = vpop.permute.xlu1 %571 }
  0x98   : > { %913 = vrot.lane.b32.xlu1 %v8262_v20, %s7902_s22  ;;  %s7918_s22 = smov 32  }
  0x99   : > { %v8335_v32 = vpop.permute.xlu0 %581 }
  0x9b   : > { %v8337_v34 = vpop.permute.xlu1 %576 }
  0x9d   : > { %v8339_v36 = vpop.permute.xlu0 %591 }
  0x9f   : > { %v8341_v38 = vpop.permute.xlu1 %586 }
  0xa1   : > { %v8343_v40 = vpop.permute.xlu0 %601 }
  0xa3   : > { %v8345_v43 = vpop.permute.xlu1 %596 }
  0xa5   : > { %v8347_v44 = vpop.permute.xlu0 %611 }
  0xa6   : > { %11959 = vst [vmem:[#allocation5_spill] sm:$0xff] %v8347_v44 }
  0xa7   : > { %v8349_v45 = vpop.permute.xlu1 %606 }
  0xa8   : > { %11960 = vst [vmem:[#allocation6_spill] sm:$0xff] %v8349_v45  ;;  %v2764_v45 = vld [vmem:[#allocation2 + $0x57] sm:$0xff] }
  0xa9   : > { %v8351_v48 = vpop.permute.xlu0 %621 }
  0xaa   : > { %11961 = vst [vmem:[#allocation7_spill] sm:$0xff] %v8351_v48  ;;  %v2765_v48 = vld [vmem:[#allocation2 + $0x5f] sm:$0xff] }
  0xab   : > { %v8353_v49 = vpop.permute.xlu1 %616 }
  0xac   : > { %11962 = vst [vmem:[#allocation8_spill] sm:$0xff] %v8353_v49 }
  0xad   : > { %v8355_v51 = vpop.permute.xlu0 %631 }
  0xae   : > { %11963 = vst [vmem:[#allocation9_spill] sm:$0xff] %v8355_v51 }
  0xaf   : > { %v8357_v52 = vpop.permute.xlu1 %626 }
  0xb0   : > { %11964 = vst [vmem:[#allocation10_spill] sm:$0xff] %v8357_v52  ;;  %v795_v52 = vld [vmem:[#allocation2 + $0x50] sm:$0xff] }
  0xb1   : > { %v8359_v55 = vpop.permute.xlu0 %641 }
  0xb2   : > { %11965 = vst [vmem:[#allocation11_spill] sm:$0xff] %v8359_v55 }
  0xb3   : > { %v8361_v57 = vpop.permute.xlu1 %636 }
  0xb4   : > { %11966 = vst [vmem:[#allocation12_spill] sm:$0xff] %v8361_v57 }
  0xb5   : > { %v8363_v59 = vpop.permute.xlu0 %651 }
  0xb6   : > { %11967 = vst [vmem:[#allocation13_spill] sm:$0xff] %v8363_v59 }
  0xb7   : > { %v8365_v60 = vpop.permute.xlu1 %646 }
  0xb8   : > { %11968 = vst [vmem:[#allocation14_spill] sm:$0xff] %v8365_v60 }
  0xb9   : > { %v8367_v62 = vpop.permute.xlu0 %661 }
  0xba   : > { %11969 = vst [vmem:[#allocation15_spill] sm:$0xff] %v8367_v62  ;;  %v788_v62 = vld [vmem:[#allocation2 + $0x18] sm:$0xff] }
  0xbb   : > { %v8369_v63 = vpop.permute.xlu1 %656 }
  0xbc   : > { %11970 = vst [vmem:[#allocation16_spill] sm:$0xff] %v8369_v63 }
  0xbd   : > { %v8371_v6 = vpop.permute.xlu0 %671 }
  0xbe   : > { %11971 = vst [vmem:[#allocation17_spill] sm:$0xff] %v8371_v6 }
  0xbf   : > { %v8373_v8 = vpop.permute.xlu1 %666 }
  0xc0   : > { %11972 = vst [vmem:[#allocation18_spill] sm:$0xff] %v8373_v8 }
  0xc1   : > { %v8375_v11 = vpop.permute.xlu0 %681 }
  0xc2   : > { %11973 = vst [vmem:[#allocation19_spill] sm:$0xff] %v8375_v11  ;;  %v789_v11 = vld [vmem:[#allocation2 + $0x20] sm:$0xff] }
  0xc3   : > { %v8377_v12 = vpop.permute.xlu1 %676 }
  0xc4   : > { %11974 = vst [vmem:[#allocation20_spill] sm:$0xff] %v8377_v12 }
  0xc5   : > { %v8379_v16 = vpop.permute.xlu0 %691 }
  0xc6   : > { %11975 = vst [vmem:[#allocation21_spill] sm:$0xff] %v8379_v16 }
  0xc7   : > { %v8381_v17 = vpop.permute.xlu1 %686 }
  0xc8   : > { %11976 = vst [vmem:[#allocation22_spill] sm:$0xff] %v8381_v17  ;;  %v791_v17 = vld [vmem:[#allocation2 + $0x30] sm:$0xff] }
  0xc9   : > { %v8383_v19 = vpop.permute.xlu0 %701 }
  0xca   : > { %11977 = vst [vmem:[#allocation23_spill] sm:$0xff] %v8383_v19 }
  0xcb   : > { %v8385_v22 = vpop.permute.xlu1 %696 }
  0xcc   : > { %11978 = vst [vmem:[#allocation24_spill] sm:$0xff] %v8385_v22  ;;  %v790_v22 = vld [vmem:[#allocation2 + $0x28] sm:$0xff] }
  0xcd   : > { %v8387_v23 = vpop.permute.xlu0 %711 }
  0xce   : > { %11979 = vst [vmem:[#allocation25_spill] sm:$0xff] %v8387_v23 }
  0xcf   : > { %v8389_v0 = vpop.permute.xlu1 %706 }
  0xd0   : > { %11980 = vst [vmem:[#allocation26_spill] sm:$0xff] %v8389_v0  ;;  %v793_v0 = vld [vmem:[#allocation2 + $0x40] sm:$0xff] }
  0xd1   : > { %v852_v6 = vpop.permute.xlu0 %851 }
  0xd2   : > { %v947_v63 = vmul.f32 %v852_v6, %v787_v1  ;;  %v792_v6 = vld [vmem:[#allocation2 + $0x38] sm:$0xff] }
  0xd3   : > { %v8391_v8 = vpop.permute.xlu1 %716 }
  0xd4   : > { %11981 = vst [vmem:[#allocation27_spill] sm:$0xff] %v8391_v8  ;;  %981 = vperm.xlu0 %7715, %v947_v63  }
  0xd5   : > { %v856_v12 = vpop.permute.xlu0 %855 }
  0xd6   : > { %v949_v16 = vmul.f32 %v856_v12, %v789_v11  ;;  %v794_v12 = vld [vmem:[#allocation2 + $0x48] sm:$0xff] }
  0xd7   : > { %v854_v60 = vpop.permute.xlu1 %853 }
  0xd8   : > { %v948_v59 = vmul.f32 %v854_v60, %v788_v62  ;;  %991 = vperm.xlu0 %7715, %v949_v16   ;;  %v797_v16 = vld [vmem:[#allocation2 + $0x60] sm:$0xff] }
  0xd9   : > { %v860_v19 = vpop.permute.xlu0 %859 }
  0xda   : > { %v951_v57 = vmul.f32 %v860_v19, %v791_v17  ;;  %986 = vperm.xlu1 %7716, %v948_v59   ;;  %v796_v19 = vld [vmem:[#allocation2 + $0x58] sm:$0xff] }
  0xdb   : > { %v858_v23 = vpop.permute.xlu1 %857 }
  0xdc   : > { %v950_v55 = vmul.f32 %v858_v23, %v790_v22  ;;  %1001 = vperm.xlu0 %7715, %v951_v57   ;;  %v799_v23 = vld [vmem:[#allocation2 + $0x70] sm:$0xff] }
  0xdd   : > { %v864_v1 = vpop.permute.xlu0 %863 }
  0xde   : > { %v953_v8 = vmul.f32 %v864_v1, %v793_v0  ;;  %996 = vperm.xlu1 %7716, %v950_v55   ;;  %v798_v1 = vld [vmem:[#allocation2 + $0x68] sm:$0xff] }
  0xdf   : > { %v862_v63 = vpop.permute.xlu1 %861 }
  0xe0   : > { %v952_v51 = vmul.f32 %v862_v63, %v792_v6  ;;  %1011 = vperm.xlu0 %7715, %v953_v8   ;;  %v801_v63 = vld [vmem:[#allocation2 + $0x80] sm:$0xff] }
  0xe1   : > { %v868_v11 = vpop.permute.xlu0 %867 }
  0xe2   : > { %v955_v60 = vmul.f32 %v868_v11, %v795_v52  ;;  %1006 = vperm.xlu1 %7716, %v952_v51   ;;  %v800_v11 = vld [vmem:[#allocation2 + $0x78] sm:$0xff] }
  0xe3   : > { %v866_v62 = vpop.permute.xlu1 %865 }
  0xe4   : > { %v954_v17 = vmul.f32 %v866_v62, %v794_v12  ;;  %1021 = vperm.xlu0 %7715, %v955_v60   ;;  %v803_v62 = vld [vmem:[#allocation2 + $0x90] sm:$0xff] }
  0xe5   : > { %v872_v59 = vpop.permute.xlu0 %871 }
  0xe6   : > { %v957_v22 = vmul.f32 %v872_v59, %v797_v16  ;;  %1016 = vperm.xlu1 %7716, %v954_v17   ;;  %v802_v59 = vld [vmem:[#allocation2 + $0x88] sm:$0xff] }
  0xe7   : > { %v870_v57 = vpop.permute.xlu1 %869 }
  0xe8   : > { %v956_v0 = vmul.f32 %v870_v57, %v796_v19  ;;  %1031 = vperm.xlu0 %7715, %v957_v22   ;;  %v805_v57 = vld [vmem:[#allocation2 + $0xa0] sm:$0xff] }
  0xe9   : > { %v876_v55 = vpop.permute.xlu0 %875 }
  0xea   : > { %v959_v6 = vmul.f32 %v876_v55, %v799_v23  ;;  %1026 = vperm.xlu1 %7716, %v956_v0   ;;  %v804_v55 = vld [vmem:[#allocation2 + $0x98] sm:$0xff] }
  0xeb   : > { %v874_v8 = vpop.permute.xlu1 %873 }
  0xec   : > { %v958_v52 = vmul.f32 %v874_v8, %v798_v1  ;;  %1041 = vperm.xlu0 %7715, %v959_v6   ;;  %v807_v8 = vld [vmem:[#allocation2 + $0xb0] sm:$0xff] }
  0xed   : > { %v880_v51 = vpop.permute.xlu0 %879 }
  0xee   : > { %v961_v12 = vmul.f32 %v880_v51, %v801_v63  ;;  %1036 = vperm.xlu1 %7716, %v958_v52   ;;  %v806_v51 = vld [vmem:[#allocation2 + $0xa8] sm:$0xff] }
  0xef   : > { %v878_v60 = vpop.permute.xlu1 %877 }
  0xf0   : > { %v960_v16 = vmul.f32 %v878_v60, %v800_v11  ;;  %1051 = vperm.xlu0 %7715, %v961_v12   ;;  %v809_v60 = vld [vmem:[#allocation2 + $0xc0] sm:$0xff] }
  0xf1   : > { %v884_v17 = vpop.permute.xlu0 %883 }
  0xf2   : > { %v963_v19 = vmul.f32 %v884_v17, %v803_v62  ;;  %1046 = vperm.xlu1 %7716, %v960_v16   ;;  %v808_v17 = vld [vmem:[#allocation2 + $0xb8] sm:$0xff] }
  0xf3   : > { %v882_v22 = vpop.permute.xlu1 %881 }
  0xf4   : > { %v962_v23 = vmul.f32 %v882_v22, %v802_v59  ;;  %1061 = vperm.xlu0 %7715, %v963_v19   ;;  %v811_v22 = vld [vmem:[#allocation2 + $0xd0] sm:$0xff] }
  0xf5   : > { %v888_v0 = vpop.permute.xlu0 %887 }
  0xf6   : > { %v965_v1 = vmul.f32 %v888_v0, %v805_v57  ;;  %1056 = vperm.xlu1 %7716, %v962_v23   ;;  %v810_v0 = vld [vmem:[#allocation2 + $0xc8] sm:$0xff] }
  0xf7   : > { %v886_v6 = vpop.permute.xlu1 %885 }
  0xf8   : > { %v964_v63 = vmul.f32 %v886_v6, %v804_v55  ;;  %1071 = vperm.xlu0 %7715, %v965_v1   ;;  %v813_v6 = vld [vmem:[#allocation2 + $0xe0] sm:$0xff] }
  0xf9   : > { %v892_v52 = vpop.permute.xlu0 %891 }
  0xfa   : > { %v967_v11 = vmul.f32 %v892_v52, %v807_v8  ;;  %1066 = vperm.xlu1 %7716, %v964_v63   ;;  %v812_v52 = vld [vmem:[#allocation2 + $0xd8] sm:$0xff] }
  0xfb   : > { %v890_v12 = vpop.permute.xlu1 %889 }
  0xfc   : > { %v966_v62 = vmul.f32 %v890_v12, %v806_v51  ;;  %1081 = vperm.xlu0 %7715, %v967_v11   ;;  %v815_v12 = vld [vmem:[#allocation2 + $0xf0] sm:$0xff] }
  0xfd   : > { %v896_v16 = vpop.permute.xlu0 %895 }
  0xfe   : > { %v969_v59 = vmul.f32 %v896_v16, %v809_v60  ;;  %1076 = vperm.xlu1 %7716, %v966_v62   ;;  %v814_v16 = vld [vmem:[#allocation2 + $0xe8] sm:$0xff] }
  0xff   : > { %v894_v19 = vpop.permute.xlu1 %893 }
 0x100   : > { %v968_v57 = vmul.f32 %v894_v19, %v808_v17  ;;  %1091 = vperm.xlu0 %7715, %v969_v59   ;;  %v817_v19 = vld [vmem:[#allocation2 + $0x100] sm:$0xff] }
 0x101   : > { %v900_v23 = vpop.permute.xlu0 %899 }
 0x102   : > { %v971_v55 = vmul.f32 %v900_v23, %v811_v22  ;;  %1086 = vperm.xlu1 %7716, %v968_v57   ;;  %v816_v23 = vld [vmem:[#allocation2 + $0xf8] sm:$0xff] }
 0x103   : > { %v898_v1 = vpop.permute.xlu1 %897 }
 0x104   : > { %v970_v8 = vmul.f32 %v898_v1, %v810_v0  ;;  %1101 = vperm.xlu0 %7715, %v971_v55  }
 0x105   : > { %v904_v63 = vpop.permute.xlu0 %903 }
 0x106   : > { %v973_v51 = vmul.f32 %v904_v63, %v813_v6  ;;  %1096 = vperm.xlu1 %7716, %v970_v8   ;;  %v818_v6 = vld [vmem:[#allocation2 + $0x108] sm:$0xff] }
 0x107   : > { %v902_v11 = vpop.permute.xlu1 %901 }
 0x108   : > { %v972_v60 = vmul.f32 %v902_v11, %v812_v52  ;;  %1111 = vperm.xlu0 %7715, %v973_v51  }
 0x109   : > { %v908_v62 = vpop.permute.xlu0 %907 }
 0x10a   : > { %v975_v17 = vmul.f32 %v908_v62, %v815_v12  ;;  %1106 = vperm.xlu1 %7716, %v972_v60  }
 0x10b   : > { %v906_v59 = vpop.permute.xlu1 %905 }
 0x10c   : > { %v974_v22 = vmul.f32 %v906_v59, %v814_v16  ;;  %1121 = vperm.xlu0 %7715, %v975_v17  }
 0x10d   : > { %v912_v57 = vpop.permute.xlu0 %911 }
 0x10e   : > { %v977_v0 = vmul.f32 %v912_v57, %v817_v19  ;;  %1116 = vperm.xlu1 %7716, %v974_v22  }
 0x10f   : > { %v910_v55 = vpop.permute.xlu1 %909 }
 0x110   : > { %v976_v1 = vmul.f32 %v910_v55, %v816_v23  ;;  %1131 = vperm.xlu0 %7715, %v977_v0   ;;  %v1207_v55 = vld [vmem:[#allocation2 + $0x11] sm:$0xff] }
 0x112   : > { %1126 = vperm.xlu1 %7716, %v976_v1  }
 0x113   : > { %v914_v8 = vpop.permute.xlu1 %913 }
 0x114   : > { %v978_v63 = vmul.f32 %v914_v8, %v818_v6  ;;  %1239 = vrot.lane.b32.xlu0 %v8011_v2, %s7903_s23  ;;  %v418_v2 = vld [vmem:[%s8016_s24 + $0xf0] sm:$0xff] }
 0x115   : > { %459 = vst.msk [vmem:[#allocation2 + $0x110] sm:$0xff] %vm420_vm0, %v418_v2 }
 0x116   : > { %1136 = vperm.xlu1 %7716, %v978_v63   ;;  %v1209_v63 = vld [vmem:[#allocation2 + $0x21] sm:$0xff] }
 0x118   : > { %1243 = vrot.lane.b32.xlu0 %v8057_v24, %s7903_s23 }
 0x11a   : > { %1241 = vrot.lane.b32.xlu1 %v8021_v3, %s7903_s23 }
 0x11c   : > { %1247 = vrot.lane.b32.xlu0 %v8062_v25, %s7903_s23 }
 0x11e   : > { %1245 = vrot.lane.b32.xlu1 %v8071_v27, %s7903_s23 }
 0x120   : > { %1251 = vrot.lane.b32.xlu0 %v8083_v35, %s7903_s23 }
 0x122   : > { %1249 = vrot.lane.b32.xlu1 %v8091_v39, %s7903_s23 }
 0x124   : > { %1255 = vrot.lane.b32.xlu0 %v8097_v42, %s7903_s23 }
 0x126   : > { %1253 = vrot.lane.b32.xlu1 %v8104_v46, %s7903_s23 }
 0x128   : > { %1259 = vrot.lane.b32.xlu0 %v8117_v53, %s7903_s23 }
 0x12a   : > { %1257 = vrot.lane.b32.xlu1 %v8125_v56, %s7903_s23 }
 0x12c   : > { %1263 = vrot.lane.b32.xlu0 %v8140_v4, %s7903_s23 }
 0x12e   : > { %1261 = vrot.lane.b32.xlu1 %v8147_v7, %s7903_s23 }
 0x130   : > { %1267 = vrot.lane.b32.xlu0 %v8153_v10, %s7903_s23 }
 0x132   : > { %1265 = vrot.lane.b32.xlu1 %v8159_v13, %s7903_s23 }
 0x134   : > { %1271 = vrot.lane.b32.xlu0 %v8164_v15, %s7903_s23 }
 0x136   : > { %1269 = vrot.lane.b32.xlu1 %v8170_v18, %s7903_s23 }
 0x138   : > { %1275 = vrot.lane.b32.xlu0 %v8176_v21, %s7903_s23 }
 0x13a   : > { %1273 = vrot.lane.b32.xlu1 %v8182_v26, %s7903_s23 }
 0x13c   : > { %1279 = vrot.lane.b32.xlu0 %v8188_v30, %s7903_s23 }
 0x13e   : > { %1277 = vrot.lane.b32.xlu1 %v8194_v33, %s7903_s23 }
 0x140   : > { %1283 = vrot.lane.b32.xlu0 %v8200_v37, %s7903_s23 }
 0x142   : > { %1281 = vrot.lane.b32.xlu1 %v8206_v41, %s7903_s23 }
 0x144   : > { %1287 = vrot.lane.b32.xlu0 %v8213_v47, %s7903_s23 }
 0x146   : > { %1285 = vrot.lane.b32.xlu1 %v8219_v50, %s7903_s23 }
 0x148   : > { %1291 = vrot.lane.b32.xlu0 %v8225_v54, %s7903_s23 }
 0x14a   : > { %1289 = vrot.lane.b32.xlu1 %v8231_v58, %s7903_s23 }
 0x14c   : > { %1295 = vrot.lane.b32.xlu0 %v8237_v61, %s7903_s23 }
 0x14e   : > { %1293 = vrot.lane.b32.xlu1 %v8243_v5, %s7903_s23 }
 0x14f   : > { %v8453_v3 = vpop.permute.xlu0 %981 }
 0x150   : > { %11982 = vst [vmem:[#allocation28_spill] sm:$0xff] %v8453_v3  ;;  %1299 = vrot.lane.b32.xlu0 %v8249_v9, %s7903_s23 }
 0x152   : > { %1297 = vrot.lane.b32.xlu1 %v8255_v14, %s7903_s23 }
 0x153   : > { %v8459_v24 = vpop.permute.xlu0 %991 }
 0x154   : > { %11983 = vst [vmem:[#allocation29_spill] sm:$0xff] %v8459_v24  ;;  %v1991_v24 = vld [vmem:[#allocation2 + $0x60] sm:$0xff] }
 0x155   : > { %v8461_v25 = vpop.permute.xlu1 %986 }
 0x156   : > { %11984 = vst [vmem:[#allocation30_spill] sm:$0xff] %v8461_v25  ;;  %1301 = vrot.lane.b32.xlu1 %v8262_v20, %s7903_s23 }
 0x157   : > { %v8465_v27 = vpop.permute.xlu0 %1001 }
 0x158   : > { %11985 = vst [vmem:[#allocation31_spill] sm:$0xff] %v8465_v27 }
 0x159   : > { %v8467_v35 = vpop.permute.xlu1 %996 }
 0x15a   : > { %11986 = vst [vmem:[#allocation32_spill] sm:$0xff] %v8467_v35 }
 0x15b   : > { %v8469_v39 = vpop.permute.xlu0 %1011 }
 0x15c   : > { %11987 = vst [vmem:[#allocation33_spill] sm:$0xff] %v8469_v39 }
 0x15d   : > { %v8471_v42 = vpop.permute.xlu1 %1006 }
 0x15e   : > { %11988 = vst [vmem:[#allocation34_spill] sm:$0xff] %v8471_v42  ;;  %v1984_v42 = vld [vmem:[#allocation2 + $0x28] sm:$0xff] }
 0x15f   : > { %v8473_v46 = vpop.permute.xlu0 %1021 }
 0x160   : > { %11989 = vst [vmem:[#allocation35_spill] sm:$0xff] %v8473_v46 }
 0x161   : > { %v8475_v53 = vpop.permute.xlu1 %1016 }
 0x162   : > { %11990 = vst [vmem:[#allocation36_spill] sm:$0xff] %v8475_v53 }
 0x163   : > { %v8477_v56 = vpop.permute.xlu0 %1031 }
 0x164   : > { %11991 = vst [vmem:[#allocation37_spill] sm:$0xff] %v8477_v56 }
 0x165   : > { %v8479_v4 = vpop.permute.xlu1 %1026 }
 0x166   : > { %11992 = vst [vmem:[#allocation38_spill] sm:$0xff] %v8479_v4 }
 0x167   : > { %v8481_v7 = vpop.permute.xlu0 %1041 }
 0x168   : > { %11993 = vst [vmem:[#allocation39_spill] sm:$0xff] %v8481_v7 }
 0x169   : > { %v8483_v10 = vpop.permute.xlu1 %1036 }
 0x16a   : > { %11994 = vst [vmem:[#allocation40_spill] sm:$0xff] %v8483_v10 }
 0x16b   : > { %v8485_v13 = vpop.permute.xlu0 %1051 }
 0x16c   : > { %11995 = vst [vmem:[#allocation41_spill] sm:$0xff] %v8485_v13 }
 0x16d   : > { %v8487_v15 = vpop.permute.xlu1 %1046 }
 0x16e   : > { %11996 = vst [vmem:[#allocation42_spill] sm:$0xff] %v8487_v15 }
 0x16f   : > { %v8489_v18 = vpop.permute.xlu0 %1061 }
 0x170   : > { %11997 = vst [vmem:[#allocation43_spill] sm:$0xff] %v8489_v18  ;;  %v1603_v18 = vld [vmem:[#allocation2 + $0x5f] sm:$0xff] }
 0x171   : > { %v8491_v21 = vpop.permute.xlu1 %1056 }
 0x172   : > { %11998 = vst [vmem:[#allocation44_spill] sm:$0xff] %v8491_v21 }
 0x173   : > { %v8493_v52 = vpop.permute.xlu0 %1071 }
 0x174   : > { %11999 = vst [vmem:[#allocation45_spill] sm:$0xff] %v8493_v52 }
 0x175   : > { %v8495_v51 = vpop.permute.xlu1 %1066 }
 0x176   : > { %12000 = vst [vmem:[#allocation46_spill] sm:$0xff] %v8495_v51 }
 0x177   : > { %v8497_v11 = vpop.permute.xlu0 %1081 }
 0x178   : > { %12001 = vst [vmem:[#allocation47_spill] sm:$0xff] %v8497_v11  ;;  %v1215_v11 = vld [vmem:[#allocation2 + $0x51] sm:$0xff] }
 0x179   : > { %v8499_v12 = vpop.permute.xlu1 %1076 }
 0x17a   : > { %12002 = vst [vmem:[#allocation48_spill] sm:$0xff] %v8499_v12 }
 0x17b   : > { %v8501_v60 = vpop.permute.xlu0 %1091 }
 0x17c   : > { %12003 = vst [vmem:[#allocation49_spill] sm:$0xff] %v8501_v60 }
 0x17d   : > { %v8503_v62 = vpop.permute.xlu1 %1086 }
 0x17e   : > { %12004 = vst [vmem:[#allocation50_spill] sm:$0xff] %v8503_v62 }
 0x17f   : > { %v8505_v16 = vpop.permute.xlu0 %1101 }
 0x180   : > { %12005 = vst [vmem:[#allocation51_spill] sm:$0xff] %v8505_v16 }
 0x181   : > { %v8507_v17 = vpop.permute.xlu1 %1096 }
 0x182   : > { %12006 = vst [vmem:[#allocation52_spill] sm:$0xff] %v8507_v17  ;;  %v1208_v17 = vld [vmem:[#allocation2 + $0x19] sm:$0xff] }
 0x183   : > { %v8509_v59 = vpop.permute.xlu0 %1111 }
 0x184   : > { %12007 = vst [vmem:[#allocation53_spill] sm:$0xff] %v8509_v59 }
 0x185   : > { %v8511_v19 = vpop.permute.xlu1 %1106 }
 0x186   : > { %12008 = vst [vmem:[#allocation54_spill] sm:$0xff] %v8511_v19  ;;  %v1211_v19 = vld [vmem:[#allocation2 + $0x31] sm:$0xff] }
 0x187   : > { %v8513_v22 = vpop.permute.xlu0 %1121 }
 0x188   : > { %12009 = vst [vmem:[#allocation55_spill] sm:$0xff] %v8513_v22 }
 0x189   : > { %v8515_v57 = vpop.permute.xlu1 %1116 }
 0x18a   : > { %12010 = vst [vmem:[#allocation56_spill] sm:$0xff] %v8515_v57  ;;  %v1210_v57 = vld [vmem:[#allocation2 + $0x29] sm:$0xff] }
 0x18b   : > { %v8517_v23 = vpop.permute.xlu0 %1131 }
 0x18c   : > { %12011 = vst [vmem:[#allocation57_spill] sm:$0xff] %v8517_v23 }
 0x18d   : > { %v8519_v0 = vpop.permute.xlu1 %1126 }
 0x18e   : > { %12012 = vst [vmem:[#allocation58_spill] sm:$0xff] %v8519_v0  ;;  %v1213_v0 = vld [vmem:[#allocation2 + $0x41] sm:$0xff] }
 0x18f   : > { %v1240_v1 = vpop.permute.xlu0 %1239 }
 0x190   : > { %v1335_v6 = vmul.f32 %v1240_v1, %v1207_v55  ;;  %v1212_v1 = vld [vmem:[#allocation2 + $0x39] sm:$0xff] }
 0x191   : > { %v8521_v8 = vpop.permute.xlu1 %1136 }
 0x192   : > { %12013 = vst [vmem:[#allocation59_spill] sm:$0xff] %v8521_v8  ;;  %1369 = vperm.xlu0 %7715, %v1335_v6  }
 0x193   : > { %v1244_v2 = vpop.permute.xlu0 %1243 }
 0x194   : > { %v1337_v59 = vmul.f32 %v1244_v2, %v1209_v63  ;;  %v1214_v2 = vld [vmem:[#allocation2 + $0x49] sm:$0xff] }
 0x195   : > { %v1242_v16 = vpop.permute.xlu1 %1241 }
 0x196   : > { %v1336_v62 = vmul.f32 %v1242_v16, %v1208_v17  ;;  %1379 = vperm.xlu0 %7715, %v1337_v59   ;;  %v1217_v59 = vld [vmem:[#allocation2 + $0x61] sm:$0xff] }
 0x197   : > { %v1248_v22 = vpop.permute.xlu0 %1247 }
 0x198   : > { %v1339_v60 = vmul.f32 %v1248_v22, %v1211_v19  ;;  %1374 = vperm.xlu1 %7716, %v1336_v62   ;;  %v1216_v22 = vld [vmem:[#allocation2 + $0x59] sm:$0xff] }
 0x199   : > { %v1246_v23 = vpop.permute.xlu1 %1245 }
 0x19a   : > { %v1338_v12 = vmul.f32 %v1246_v23, %v1210_v57  ;;  %1389 = vperm.xlu0 %7715, %v1339_v60   ;;  %v1219_v23 = vld [vmem:[#allocation2 + $0x71] sm:$0xff] }
 0x19b   : > { %v1252_v55 = vpop.permute.xlu0 %1251 }
 0x19c   : > { %v1341_v8 = vmul.f32 %v1252_v55, %v1213_v0  ;;  %1384 = vperm.xlu1 %7716, %v1338_v12   ;;  %v1218_v55 = vld [vmem:[#allocation2 + $0x69] sm:$0xff] }
 0x19d   : > { %v1250_v6 = vpop.permute.xlu1 %1249 }
 0x19e   : > { %v1340_v51 = vmul.f32 %v1250_v6, %v1212_v1  ;;  %1399 = vperm.xlu0 %7715, %v1341_v8   ;;  %v1221_v6 = vld [vmem:[#allocation2 + $0x81] sm:$0xff] }
 0x19f   : > { %v1256_v63 = vpop.permute.xlu0 %1255 }
 0x1a0   : > { %v1343_v16 = vmul.f32 %v1256_v63, %v1215_v11  ;;  %1394 = vperm.xlu1 %7716, %v1340_v51   ;;  %v1220_v63 = vld [vmem:[#allocation2 + $0x79] sm:$0xff] }
 0x1a1   : > { %v1254_v17 = vpop.permute.xlu1 %1253 }
 0x1a2   : > { %v1342_v19 = vmul.f32 %v1254_v17, %v1214_v2  ;;  %1409 = vperm.xlu0 %7715, %v1343_v16   ;;  %v1223_v17 = vld [vmem:[#allocation2 + $0x91] sm:$0xff] }
 0x1a3   : > { %v1260_v62 = vpop.permute.xlu0 %1259 }
 0x1a4   : > { %v1345_v57 = vmul.f32 %v1260_v62, %v1217_v59  ;;  %1404 = vperm.xlu1 %7716, %v1342_v19   ;;  %v1222_v62 = vld [vmem:[#allocation2 + $0x89] sm:$0xff] }
 0x1a5   : > { %v1258_v60 = vpop.permute.xlu1 %1257 }
 0x1a6   : > { %v1344_v0 = vmul.f32 %v1258_v60, %v1216_v22  ;;  %1419 = vperm.xlu0 %7715, %v1345_v57   ;;  %v1225_v60 = vld [vmem:[#allocation2 + $0xa1] sm:$0xff] }
 0x1a7   : > { %v1264_v12 = vpop.permute.xlu0 %1263 }
 0x1a8   : > { %v1347_v1 = vmul.f32 %v1264_v12, %v1219_v23  ;;  %1414 = vperm.xlu1 %7716, %v1344_v0   ;;  %v1224_v12 = vld [vmem:[#allocation2 + $0x99] sm:$0xff] }
 0x1a9   : > { %v1262_v8 = vpop.permute.xlu1 %1261 }
 0x1aa   : > { %v1346_v11 = vmul.f32 %v1262_v8, %v1218_v55  ;;  %1429 = vperm.xlu0 %7715, %v1347_v1   ;;  %v1227_v8 = vld [vmem:[#allocation2 + $0xb1] sm:$0xff] }
 0x1ab   : > { %v1268_v51 = vpop.permute.xlu0 %1267 }
 0x1ac   : > { %v1349_v2 = vmul.f32 %v1268_v51, %v1221_v6  ;;  %1424 = vperm.xlu1 %7716, %v1346_v11   ;;  %v1226_v51 = vld [vmem:[#allocation2 + $0xa9] sm:$0xff] }
 0x1ad   : > { %v1266_v16 = vpop.permute.xlu1 %1265 }
 0x1ae   : > { %v1348_v59 = vmul.f32 %v1266_v16, %v1220_v63  ;;  %1439 = vperm.xlu0 %7715, %v1349_v2   ;;  %v1229_v16 = vld [vmem:[#allocation2 + $0xc1] sm:$0xff] }
 0x1af   : > { %v1272_v19 = vpop.permute.xlu0 %1271 }
 0x1b0   : > { %v1351_v22 = vmul.f32 %v1272_v19, %v1223_v17  ;;  %1434 = vperm.xlu1 %7716, %v1348_v59   ;;  %v1228_v19 = vld [vmem:[#allocation2 + $0xb9] sm:$0xff] }
 0x1b1   : > { %v1270_v57 = vpop.permute.xlu1 %1269 }
 0x1b2   : > { %v1350_v23 = vmul.f32 %v1270_v57, %v1222_v62  ;;  %1449 = vperm.xlu0 %7715, %v1351_v22   ;;  %v1231_v57 = vld [vmem:[#allocation2 + $0xd1] sm:$0xff] }
 0x1b3   : > { %v1276_v0 = vpop.permute.xlu0 %1275 }
 0x1b4   : > { %v1353_v55 = vmul.f32 %v1276_v0, %v1225_v60  ;;  %1444 = vperm.xlu1 %7716, %v1350_v23   ;;  %v1230_v0 = vld [vmem:[#allocation2 + $0xc9] sm:$0xff] }
 0x1b5   : > { %v1274_v1 = vpop.permute.xlu1 %1273 }
 0x1b6   : > { %v1352_v6 = vmul.f32 %v1274_v1, %v1224_v12  ;;  %1459 = vperm.xlu0 %7715, %v1353_v55   ;;  %v1233_v1 = vld [vmem:[#allocation2 + $0xe1] sm:$0xff] }
 0x1b7   : > { %v1280_v11 = vpop.permute.xlu0 %1279 }
 0x1b8   : > { %v1355_v63 = vmul.f32 %v1280_v11, %v1227_v8  ;;  %1454 = vperm.xlu1 %7716, %v1352_v6   ;;  %v1232_v11 = vld [vmem:[#allocation2 + $0xd9] sm:$0xff] }
 0x1b9   : > { %v1278_v2 = vpop.permute.xlu1 %1277 }
 0x1ba   : > { %v1354_v17 = vmul.f32 %v1278_v2, %v1226_v51  ;;  %1469 = vperm.xlu0 %7715, %v1355_v63   ;;  %v1235_v2 = vld [vmem:[#allocation2 + $0xf1] sm:$0xff] }
 0x1bb   : > { %v1284_v59 = vpop.permute.xlu0 %1283 }
 0x1bc   : > { %v1357_v62 = vmul.f32 %v1284_v59, %v1229_v16  ;;  %1464 = vperm.xlu1 %7716, %v1354_v17   ;;  %v1234_v59 = vld [vmem:[#allocation2 + $0xe9] sm:$0xff] }
 0x1bd   : > { %v1282_v22 = vpop.permute.xlu1 %1281 }
 0x1be   : > { %v1356_v60 = vmul.f32 %v1282_v22, %v1228_v19  ;;  %1479 = vperm.xlu0 %7715, %v1357_v62   ;;  %v1237_v22 = vld [vmem:[#allocation2 + $0x101] sm:$0xff] }
 0x1bf   : > { %v1288_v23 = vpop.permute.xlu0 %1287 }
 0x1c0   : > { %v1359_v12 = vmul.f32 %v1288_v23, %v1231_v57  ;;  %1474 = vperm.xlu1 %7716, %v1356_v60   ;;  %v1236_v23 = vld [vmem:[#allocation2 + $0xf9] sm:$0xff] }
 0x1c1   : > { %v1286_v55 = vpop.permute.xlu1 %1285 }
 0x1c2   : > { %v1358_v8 = vmul.f32 %v1286_v55, %v1230_v0  ;;  %1489 = vperm.xlu0 %7715, %v1359_v12  }
 0x1c3   : > { %v1292_v6 = vpop.permute.xlu0 %1291 }
 0x1c4   : > { %v1361_v51 = vmul.f32 %v1292_v6, %v1233_v1  ;;  %1484 = vperm.xlu1 %7716, %v1358_v8   ;;  %v1238_v1 = vld [vmem:[#allocation2 + $0x109] sm:$0xff] }
 0x1c5   : > { %v1290_v63 = vpop.permute.xlu1 %1289 }
 0x1c6   : > { %v1360_v16 = vmul.f32 %v1290_v63, %v1232_v11  ;;  %1499 = vperm.xlu0 %7715, %v1361_v51   ;;  %v8526_v11 = vld [vmem:[%s11934_s1] sm:$0xff]  ;;  %v8533_v51 = vld [vmem:[%s11934_s1 + $0x10] sm:$0xff]  ;;  %v8540_v63 = vld [vmem:[%s11934_s1 + $0x8] sm:$0xff] }
 0x1c7   : > { %v1296_v17 = vpop.permute.xlu0 %1295 }
 0x1c8   : > { %v1363_v19 = vmul.f32 %v1296_v17, %v1235_v2  ;;  %1494 = vperm.xlu1 %7716, %v1360_v16   ;;  %v8547_v2 = vld [vmem:[%s11934_s1 + $0x20] sm:$0xff]  ;;  %v8554_v16 = vld [vmem:[%s11934_s1 + $0x18] sm:$0xff]  ;;  %v8561_v17 = vld [vmem:[%s11934_s1 + $0x30] sm:$0xff] }
 0x1c9   : > { %v1294_v62 = vpop.permute.xlu1 %1293 }
 0x1ca   : > { %v1362_v57 = vmul.f32 %v1294_v62, %v1234_v59  ;;  %1509 = vperm.xlu0 %7715, %v1363_v19   ;;  %v8568_v59 = vld [vmem:[%s11934_s1 + $0x28] sm:$0xff]  ;;  %v8575_v19 = vld [vmem:[%s11934_s1 + $0x40] sm:$0xff]  ;;  %v8582_v62 = vld [vmem:[%s11934_s1 + $0x38] sm:$0xff] }
 0x1cb   : > { %v1300_v60 = vpop.permute.xlu0 %1299 }
 0x1cc   : > { %v1365_v0 = vmul.f32 %v1300_v60, %v1237_v22  ;;  %1504 = vperm.xlu1 %7716, %v1362_v57   ;;  %v8589_v22 = vld [vmem:[%s11934_s1 + $0x50] sm:$0xff]  ;;  %v8596_v57 = vld [vmem:[%s11934_s1 + $0x48] sm:$0xff]  ;;  %v8603_v60 = vld [vmem:[%s11934_s1 + $0x60] sm:$0xff] }
 0x1cd   : > { %v1298_v12 = vpop.permute.xlu1 %1297 }
 0x1ce   : > { %v1364_v55 = vmul.f32 %v1298_v12, %v1236_v23  ;;  %1519 = vperm.xlu0 %7715, %v1365_v0   ;;  %v8610_v23 = vld [vmem:[%s11934_s1 + $0x58] sm:$0xff]  ;;  %v8617_v0 = vld [vmem:[%s11934_s1 + $0x70] sm:$0xff]  ;;  %v8624_v12 = vld [vmem:[%s11934_s1 + $0x68] sm:$0xff] }
 0x1d0   : > { %1514 = vperm.xlu1 %7716, %v1364_v55   ;;  %v8631_v55 = vld [vmem:[%s11934_s1 + $0x80] sm:$0xff] }
 0x1d1   : > { %v1302_v8 = vpop.permute.xlu1 %1301 }
 0x1d2   : > { %v1366_v6 = vmul.f32 %v1302_v8, %v1238_v1  ;;  %1627 = vrot.lane.b32.xlu0 %v8526_v11, %s7904_s27  ;;  %v8638_v1 = vld [vmem:[%s11934_s1 + $0x78] sm:$0xff]  ;;  %v8645_v8 = vld [vmem:[%s11934_s1 + $0x90] sm:$0xff] }
 0x1d4   : > { %1524 = vperm.xlu1 %7716, %v1366_v6  }
 0x1d6   : > { %1631 = vrot.lane.b32.xlu0 %v8533_v51, %s7904_s27 }
 0x1d8   : > { %1629 = vrot.lane.b32.xlu1 %v8540_v63, %s7904_s27 }
 0x1da   : > { %1635 = vrot.lane.b32.xlu0 %v8547_v2, %s7904_s27 }
 0x1dc   : > { %1633 = vrot.lane.b32.xlu1 %v8554_v16, %s7904_s27 }
 0x1de   : > { %1639 = vrot.lane.b32.xlu0 %v8561_v17, %s7904_s27 }
 0x1e0   : > { %1637 = vrot.lane.b32.xlu1 %v8568_v59, %s7904_s27 }
 0x1e2   : > { %1643 = vrot.lane.b32.xlu0 %v8575_v19, %s7904_s27 }
 0x1e4   : > { %1641 = vrot.lane.b32.xlu1 %v8582_v62, %s7904_s27 }
 0x1e6   : > { %1647 = vrot.lane.b32.xlu0 %v8589_v22, %s7904_s27 }
 0x1e8   : > { %1645 = vrot.lane.b32.xlu1 %v8596_v57, %s7904_s27 }
 0x1ea   : > { %1651 = vrot.lane.b32.xlu0 %v8603_v60, %s7904_s27 }
 0x1ec   : > { %1649 = vrot.lane.b32.xlu1 %v8610_v23, %s7904_s27 }
 0x1ee   : > { %1655 = vrot.lane.b32.xlu0 %v8617_v0, %s7904_s27 }
 0x1f0   : > { %1653 = vrot.lane.b32.xlu1 %v8624_v12, %s7904_s27 }
 0x1f2   : > { %1659 = vrot.lane.b32.xlu0 %v8631_v55, %s7904_s27 }
 0x1f4   : > { %1657 = vrot.lane.b32.xlu1 %v8638_v1, %s7904_s27 }
 0x1f6   : > { %1663 = vrot.lane.b32.xlu0 %v8645_v8, %s7904_s27 }
 0x1f8   : > { %1661 = vrot.lane.b32.xlu1 %v8182_v26, %s7904_s27  ;;  %v419_v26 = vld [vmem:[%s8016_s24 + $0xf8] sm:$0xff]  ;;  %s7905_s24 = smov 124  }
 0x1f9   : > { %460 = vst.msk [vmem:[#allocation2 + $0x118] sm:$0xff] %vm420_vm0, %v419_v26 }
 0x1fa   : > { %1667 = vrot.lane.b32.xlu0 %v8188_v30, %s7904_s27 }
 0x1fc   : > { %1665 = vrot.lane.b32.xlu1 %v8194_v33, %s7904_s27 }
 0x1fe   : > { %1671 = vrot.lane.b32.xlu0 %v8200_v37, %s7904_s27 }
 0x200   : > { %1669 = vrot.lane.b32.xlu1 %v8206_v41, %s7904_s27 }
 0x202   : > { %1675 = vrot.lane.b32.xlu0 %v8213_v47, %s7904_s27 }
 0x204   : > { %1673 = vrot.lane.b32.xlu1 %v8219_v50, %s7904_s27 }
 0x206   : > { %1679 = vrot.lane.b32.xlu0 %v8225_v54, %s7904_s27 }
 0x208   : > { %1677 = vrot.lane.b32.xlu1 %v8231_v58, %s7904_s27 }
 0x20a   : > { %1683 = vrot.lane.b32.xlu0 %v8237_v61, %s7904_s27 }
 0x20c   : > { %1681 = vrot.lane.b32.xlu1 %v8243_v5, %s7904_s27 }
 0x20d   : > { %v8673_v30 = vpop.permute.xlu0 %1369 }
 0x20e   : > { %12014 = vst [vmem:[#allocation60_spill] sm:$0xff] %v8673_v30  ;;  %1687 = vrot.lane.b32.xlu0 %v8249_v9, %s7904_s27 }
 0x210   : > { %1685 = vrot.lane.b32.xlu1 %v8255_v14, %s7904_s27 }
 0x211   : > { %v8679_v33 = vpop.permute.xlu0 %1379 }
 0x212   : > { %12015 = vst [vmem:[#allocation61_spill] sm:$0xff] %v8679_v33 }
 0x213   : > { %v8681_v37 = vpop.permute.xlu1 %1374 }
 0x214   : > { %12016 = vst [vmem:[#allocation62_spill] sm:$0xff] %v8681_v37  ;;  %1689 = vrot.lane.b32.xlu1 %v8262_v20, %s7904_s27  ;;  %v1596_v37 = vld [vmem:[#allocation2 + $0x27] sm:$0xff]  ;;  %s7920_s27 = smov 96  }
 0x215   : > { %v8685_v41 = vpop.permute.xlu0 %1389 }
 0x216   : > { %12017 = vst [vmem:[#allocation63_spill] sm:$0xff] %v8685_v41 }
 0x217   : > { %v8687_v47 = vpop.permute.xlu1 %1384 }
 0x218   : > { %12018 = vst [vmem:[#allocation64_spill] sm:$0xff] %v8687_v47 }
 0x219   : > { %v8689_v50 = vpop.permute.xlu0 %1399 }
 0x21a   : > { %12019 = vst [vmem:[#allocation65_spill] sm:$0xff] %v8689_v50 }
 0x21b   : > { %v8691_v54 = vpop.permute.xlu1 %1394 }
 0x21c   : > { %12020 = vst [vmem:[#allocation66_spill] sm:$0xff] %v8691_v54 }
 0x21d   : > { %v8693_v58 = vpop.permute.xlu0 %1409 }
 0x21e   : > { %12021 = vst [vmem:[#allocation67_spill] sm:$0xff] %v8693_v58 }
 0x21f   : > { %v8695_v61 = vpop.permute.xlu1 %1404 }
 0x220   : > { %12022 = vst [vmem:[#allocation68_spill] sm:$0xff] %v8695_v61 }
 0x221   : > { %v8697_v5 = vpop.permute.xlu0 %1419 }
 0x222   : > { %12023 = vst [vmem:[#allocation69_spill] sm:$0xff] %v8697_v5 }
 0x223   : > { %v8699_v9 = vpop.permute.xlu1 %1414 }
 0x224   : > { %12024 = vst [vmem:[#allocation70_spill] sm:$0xff] %v8699_v9 }
 0x225   : > { %v8701_v14 = vpop.permute.xlu0 %1429 }
 0x226   : > { %12025 = vst [vmem:[#allocation71_spill] sm:$0xff] %v8701_v14 }
 0x227   : > { %v8703_v6 = vpop.permute.xlu1 %1424 }
 0x228   : > { %12026 = vst [vmem:[#allocation72_spill] sm:$0xff] %v8703_v6 }
 0x229   : > { %v8705_v20 = vpop.permute.xlu0 %1439 }
 0x22a   : > { %12027 = vst [vmem:[#allocation73_spill] sm:$0xff] %v8705_v20 }
 0x22b   : > { %v8707_v26 = vpop.permute.xlu1 %1434 }
 0x22c   : > { %12028 = vst [vmem:[#allocation74_spill] sm:$0xff] %v8707_v26 }
 0x22d   : > { %v8709_v47 = vpop.permute.xlu0 %1449 }
 0x22e   : > { %12029 = vst [vmem:[#allocation75_spill] sm:$0xff] %v8709_v47 }
 0x22f   : > { %v8711_v50 = vpop.permute.xlu1 %1444 }
 0x230   : > { %12030 = vst [vmem:[#allocation76_spill] sm:$0xff] %v8711_v50 }
 0x231   : > { %v8713_v54 = vpop.permute.xlu0 %1459 }
 0x232   : > { %12031 = vst [vmem:[#allocation77_spill] sm:$0xff] %v8713_v54 }
 0x233   : > { %v8715_v58 = vpop.permute.xlu1 %1454 }
 0x234   : > { %12032 = vst [vmem:[#allocation78_spill] sm:$0xff] %v8715_v58 }
 0x235   : > { %v8717_v61 = vpop.permute.xlu0 %1469 }
 0x236   : > { %12033 = vst [vmem:[#allocation79_spill] sm:$0xff] %v8717_v61 }
 0x237   : > { %v8719_v5 = vpop.permute.xlu1 %1464 }
 0x238   : > { %12034 = vst [vmem:[#allocation80_spill] sm:$0xff] %v8719_v5  ;;  %v1595_v5 = vld [vmem:[#allocation2 + $0x1f] sm:$0xff] }
 0x239   : > { %v8721_v9 = vpop.permute.xlu0 %1479 }
 0x23a   : > { %12035 = vst [vmem:[#allocation81_spill] sm:$0xff] %v8721_v9 }
 0x23b   : > { %v8723_v14 = vpop.permute.xlu1 %1474 }
 0x23c   : > { %12036 = vst [vmem:[#allocation82_spill] sm:$0xff] %v8723_v14 }
 0x23d   : > { %v8725_v6 = vpop.permute.xlu0 %1489 }
 0x23e   : > { %12037 = vst [vmem:[#allocation83_spill] sm:$0xff] %v8725_v6  ;;  %v1597_v6 = vld [vmem:[#allocation2 + $0x2f] sm:$0xff] }
 0x23f   : > { %v8727_v20 = vpop.permute.xlu1 %1484 }
 0x240   : > { %12038 = vst [vmem:[#allocation84_spill] sm:$0xff] %v8727_v20 }
 0x241   : > { %v8729_v26 = vpop.permute.xlu0 %1499 }
 0x242   : > { %12039 = vst [vmem:[#allocation85_spill] sm:$0xff] %v8729_v26 }
 0x243   : > { %v8731_v47 = vpop.permute.xlu1 %1494 }
 0x244   : > { %12040 = vst [vmem:[#allocation86_spill] sm:$0xff] %v8731_v47  ;;  %v1599_v47 = vld [vmem:[#allocation2 + $0x3f] sm:$0xff] }
 0x245   : > { %v8733_v50 = vpop.permute.xlu0 %1509 }
 0x246   : > { %12041 = vst [vmem:[#allocation87_spill] sm:$0xff] %v8733_v50 }
 0x247   : > { %v8735_v54 = vpop.permute.xlu1 %1504 }
 0x248   : > { %12042 = vst [vmem:[#allocation88_spill] sm:$0xff] %v8735_v54  ;;  %v1598_v54 = vld [vmem:[#allocation2 + $0x37] sm:$0xff] }
 0x249   : > { %v8737_v58 = vpop.permute.xlu0 %1519 }
 0x24a   : > { %12043 = vst [vmem:[#allocation89_spill] sm:$0xff] %v8737_v58 }
 0x24b   : > { %v8739_v61 = vpop.permute.xlu1 %1514 }
 0x24c   : > { %12044 = vst [vmem:[#allocation90_spill] sm:$0xff] %v8739_v61  ;;  %v1601_v61 = vld [vmem:[#allocation2 + $0x4f] sm:$0xff] }
 0x24d   : > { %v1628_v9 = vpop.permute.xlu0 %1627 }
 0x24e   : > { %v1723_v41 = vmul.f32 %v1628_v9, %v1595_v5  ;;  %v1600_v9 = vld [vmem:[#allocation2 + $0x47] sm:$0xff] }
 0x24f   : > { %v8741_v14 = vpop.permute.xlu1 %1524 }
 0x250   : > { %12045 = vst [vmem:[#allocation91_spill] sm:$0xff] %v8741_v14  ;;  %1757 = vperm.xlu0 %7715, %v1723_v41  }
 0x251   : > { %v1632_v20 = vpop.permute.xlu0 %1631 }
 0x252   : > { %v1725_v26 = vmul.f32 %v1632_v20, %v1597_v6  ;;  %v1602_v20 = vld [vmem:[#allocation2 + $0x57] sm:$0xff] }
 0x253   : > { %v1630_v33 = vpop.permute.xlu1 %1629 }
 0x254   : > { %v1724_v30 = vmul.f32 %v1630_v33, %v1596_v37  ;;  %1767 = vperm.xlu0 %7715, %v1725_v26   ;;  %v1605_v26 = vld [vmem:[#allocation2 + $0x6f] sm:$0xff] }
 0x255   : > { %v1636_v50 = vpop.permute.xlu0 %1635 }
 0x256   : > { %v1727_v52 = vmul.f32 %v1636_v50, %v1599_v47  ;;  %1762 = vperm.xlu1 %7716, %v1724_v30   ;;  %v1604_v50 = vld [vmem:[#allocation2 + $0x67] sm:$0xff] }
 0x257   : > { %v1634_v58 = vpop.permute.xlu1 %1633 }
 0x258   : > { %v1726_v21 = vmul.f32 %v1634_v58, %v1598_v54  ;;  %1777 = vperm.xlu0 %7715, %v1727_v52   ;;  %v1607_v58 = vld [vmem:[#allocation2 + $0x7f] sm:$0xff] }
 0x259   : > { %v1640_v5 = vpop.permute.xlu0 %1639 }
 0x25a   : > { %v1729_v14 = vmul.f32 %v1640_v5, %v1601_v61  ;;  %1772 = vperm.xlu1 %7716, %v1726_v21   ;;  %v1606_v5 = vld [vmem:[#allocation2 + $0x77] sm:$0xff] }
 0x25b   : > { %v1638_v41 = vpop.permute.xlu1 %1637 }
 0x25c   : > { %v1728_v15 = vmul.f32 %v1638_v41, %v1600_v9  ;;  %1787 = vperm.xlu0 %7715, %v1729_v14   ;;  %v1609_v41 = vld [vmem:[#allocation2 + $0x8f] sm:$0xff] }
 0x25d   : > { %v1644_v6 = vpop.permute.xlu0 %1643 }
 0x25e   : > { %v1731_v33 = vmul.f32 %v1644_v6, %v1603_v18  ;;  %1782 = vperm.xlu1 %7716, %v1728_v15   ;;  %v1608_v6 = vld [vmem:[#allocation2 + $0x87] sm:$0xff] }
 0x25f   : > { %v1642_v37 = vpop.permute.xlu1 %1641 }
 0x260   : > { %v1730_v47 = vmul.f32 %v1642_v37, %v1602_v20  ;;  %1797 = vperm.xlu0 %7715, %v1731_v33   ;;  %v1611_v37 = vld [vmem:[#allocation2 + $0x9f] sm:$0xff] }
 0x261   : > { %v1648_v30 = vpop.permute.xlu0 %1647 }
 0x262   : > { %v1733_v54 = vmul.f32 %v1648_v30, %v1605_v26  ;;  %1792 = vperm.xlu1 %7716, %v1730_v47   ;;  %v1610_v30 = vld [vmem:[#allocation2 + $0x97] sm:$0xff] }
 0x263   : > { %v1646_v52 = vpop.permute.xlu1 %1645 }
 0x264   : > { %v1732_v61 = vmul.f32 %v1646_v52, %v1604_v50  ;;  %1807 = vperm.xlu0 %7715, %v1733_v54   ;;  %v1613_v52 = vld [vmem:[#allocation2 + $0xaf] sm:$0xff] }
 0x265   : > { %v1652_v21 = vpop.permute.xlu0 %1651 }
 0x266   : > { %v1735_v9 = vmul.f32 %v1652_v21, %v1607_v58  ;;  %1802 = vperm.xlu1 %7716, %v1732_v61   ;;  %v1612_v21 = vld [vmem:[#allocation2 + $0xa7] sm:$0xff] }
 0x267   : > { %v1650_v14 = vpop.permute.xlu1 %1649 }
 0x268   : > { %v1734_v18 = vmul.f32 %v1650_v14, %v1606_v5  ;;  %1817 = vperm.xlu0 %7715, %v1735_v9   ;;  %v1615_v14 = vld [vmem:[#allocation2 + $0xbf] sm:$0xff] }
 0x269   : > { %v1656_v15 = vpop.permute.xlu0 %1655 }
 0x26a   : > { %v1737_v20 = vmul.f32 %v1656_v15, %v1609_v41  ;;  %1812 = vperm.xlu1 %7716, %v1734_v18   ;;  %v1614_v15 = vld [vmem:[#allocation2 + $0xb7] sm:$0xff] }
 0x26b   : > { %v1654_v33 = vpop.permute.xlu1 %1653 }
 0x26c   : > { %v1736_v26 = vmul.f32 %v1654_v33, %v1608_v6  ;;  %1827 = vperm.xlu0 %7715, %v1737_v20   ;;  %v1617_v33 = vld [vmem:[#allocation2 + $0xcf] sm:$0xff] }
 0x26d   : > { %v1660_v47 = vpop.permute.xlu0 %1659 }
 0x26e   : > { %v1739_v50 = vmul.f32 %v1660_v47, %v1611_v37  ;;  %1822 = vperm.xlu1 %7716, %v1736_v26   ;;  %v1616_v47 = vld [vmem:[#allocation2 + $0xc7] sm:$0xff] }
 0x26f   : > { %v1658_v54 = vpop.permute.xlu1 %1657 }
 0x270   : > { %v1738_v58 = vmul.f32 %v1658_v54, %v1610_v30  ;;  %1837 = vperm.xlu0 %7715, %v1739_v50   ;;  %v1619_v54 = vld [vmem:[#allocation2 + $0xdf] sm:$0xff] }
 0x271   : > { %v1664_v61 = vpop.permute.xlu0 %1663 }
 0x272   : > { %v1741_v5 = vmul.f32 %v1664_v61, %v1613_v52  ;;  %1832 = vperm.xlu1 %7716, %v1738_v58   ;;  %v1618_v61 = vld [vmem:[#allocation2 + $0xd7] sm:$0xff] }
 0x273   : > { %v1662_v9 = vpop.permute.xlu1 %1661 }
 0x274   : > { %v1740_v41 = vmul.f32 %v1662_v9, %v1612_v21  ;;  %1847 = vperm.xlu0 %7715, %v1741_v5   ;;  %v1621_v9 = vld [vmem:[#allocation2 + $0xef] sm:$0xff] }
 0x275   : > { %v1668_v18 = vpop.permute.xlu0 %1667 }
 0x276   : > { %v1743_v6 = vmul.f32 %v1668_v18, %v1615_v14  ;;  %1842 = vperm.xlu1 %7716, %v1740_v41   ;;  %v1620_v18 = vld [vmem:[#allocation2 + $0xe7] sm:$0xff] }
 0x277   : > { %v1666_v20 = vpop.permute.xlu1 %1665 }
 0x278   : > { %v1742_v37 = vmul.f32 %v1666_v20, %v1614_v15  ;;  %1857 = vperm.xlu0 %7715, %v1743_v6   ;;  %v1623_v20 = vld [vmem:[#allocation2 + $0xff] sm:$0xff] }
 0x279   : > { %v1672_v26 = vpop.permute.xlu0 %1671 }
 0x27a   : > { %v1745_v30 = vmul.f32 %v1672_v26, %v1617_v33  ;;  %1852 = vperm.xlu1 %7716, %v1742_v37   ;;  %v1622_v26 = vld [vmem:[#allocation2 + $0xf7] sm:$0xff] }
 0x27b   : > { %v1670_v50 = vpop.permute.xlu1 %1669 }
 0x27c   : > { %v1744_v52 = vmul.f32 %v1670_v50, %v1616_v47  ;;  %1867 = vperm.xlu0 %7715, %v1745_v30   ;;  %v1625_v50 = vld [vmem:[#allocation2 + $0x10f] sm:$0xff] }
 0x27d   : > { %v1676_v58 = vpop.permute.xlu0 %1675 }
 0x27e   : > { %v1747_v21 = vmul.f32 %v1676_v58, %v1619_v54  ;;  %1862 = vperm.xlu1 %7716, %v1744_v52   ;;  %v1624_v58 = vld [vmem:[#allocation2 + $0x107] sm:$0xff] }
 0x27f   : > { %v1674_v5 = vpop.permute.xlu1 %1673 }
 0x280   : > { %v1746_v14 = vmul.f32 %v1674_v5, %v1618_v61  ;;  %1877 = vperm.xlu0 %7715, %v1747_v21  }
 0x281   : > { %v1680_v41 = vpop.permute.xlu0 %1679 }
 0x282   : > { %v1749_v15 = vmul.f32 %v1680_v41, %v1621_v9  ;;  %1872 = vperm.xlu1 %7716, %v1746_v14   ;;  %v1626_v9 = vld [vmem:[#allocation2 + $0x117] sm:$0xff] }
 0x283   : > { %v1678_v6 = vpop.permute.xlu1 %1677 }
 0x284   : > { %v1748_v33 = vmul.f32 %v1678_v6, %v1620_v18  ;;  %1887 = vperm.xlu0 %7715, %v1749_v15   ;;  %v8782_v18 = vld [vmem:[%s11934_s1 + $0x88] sm:$0xff]  ;;  %v8789_v15 = vld [vmem:[%s11934_s1 + $0xa0] sm:$0xff]  ;;  %v8796_v6 = vld [vmem:[%s11934_s1 + $0x98] sm:$0xff] }
 0x285   : > { %v1684_v37 = vpop.permute.xlu0 %1683 }
 0x286   : > { %v1751_v47 = vmul.f32 %v1684_v37, %v1623_v20  ;;  %1882 = vperm.xlu1 %7716, %v1748_v33   ;;  %v8803_v20 = vld [vmem:[%s11934_s1 + $0xb0] sm:$0xff]  ;;  %v8810_v33 = vld [vmem:[%s11934_s1 + $0xa8] sm:$0xff]  ;;  %v8817_v37 = vld [vmem:[%s11934_s1 + $0xc0] sm:$0xff] }
 0x287   : > { %v1682_v30 = vpop.permute.xlu1 %1681 }
 0x288   : > { %v1750_v54 = vmul.f32 %v1682_v30, %v1622_v26  ;;  %1897 = vperm.xlu0 %7715, %v1751_v47   ;;  %v8824_v26 = vld [vmem:[%s11934_s1 + $0xb8] sm:$0xff]  ;;  %v8831_v47 = vld [vmem:[%s11934_s1 + $0xd0] sm:$0xff]  ;;  %v8838_v30 = vld [vmem:[%s11934_s1 + $0xc8] sm:$0xff] }
 0x289   : > { %v1688_v52 = vpop.permute.xlu0 %1687 }
 0x28a   : > { %v1753_v61 = vmul.f32 %v1688_v52, %v1625_v50  ;;  %1892 = vperm.xlu1 %7716, %v1750_v54   ;;  %v8845_v50 = vld [vmem:[%s11934_s1 + $0xe0] sm:$0xff]  ;;  %v8852_v54 = vld [vmem:[%s11934_s1 + $0xd8] sm:$0xff] }
 0x28b   : > { %v1686_v21 = vpop.permute.xlu1 %1685 }
 0x28c   : > { %v1752_v5 = vmul.f32 %v1686_v21, %v1624_v58  ;;  %1907 = vperm.xlu0 %7715, %v1753_v61   ;;  %v8861_v58 = vld [vmem:[%s11934_s1 + $0xf0] sm:$0xff]  ;;  %v8868_v61 = vld [vmem:[%s11934_s1 + $0xe8] sm:$0xff] }
 0x28e   : > { %1902 = vperm.xlu1 %7716, %v1752_v5  }
 0x28f   : > { %v1690_v14 = vpop.permute.xlu1 %1689 }
 0x290   : > { %v1754_v41 = vmul.f32 %v1690_v14, %v1626_v9  ;;  %2015 = vrot.lane.b32.xlu0 %v8526_v11, %s7905_s24  ;;  %v8879_v9 = vld [vmem:[%s11934_s1 + $0xf8] sm:$0xff] }
 0x292   : > { %1912 = vperm.xlu1 %7716, %v1754_v41  }
 0x294   : > { %2019 = vrot.lane.b32.xlu0 %v8533_v51, %s7905_s24 }
 0x296   : > { %2017 = vrot.lane.b32.xlu1 %v8540_v63, %s7905_s24 }
 0x298   : > { %2023 = vrot.lane.b32.xlu0 %v8547_v2, %s7905_s24 }
 0x29a   : > { %2021 = vrot.lane.b32.xlu1 %v8554_v16, %s7905_s24 }
 0x29c   : > { %2027 = vrot.lane.b32.xlu0 %v8561_v17, %s7905_s24 }
 0x29e   : > { %2025 = vrot.lane.b32.xlu1 %v8568_v59, %s7905_s24 }
 0x2a0   : > { %2031 = vrot.lane.b32.xlu0 %v8575_v19, %s7905_s24 }
 0x2a2   : > { %2029 = vrot.lane.b32.xlu1 %v8582_v62, %s7905_s24 }
 0x2a4   : > { %2035 = vrot.lane.b32.xlu0 %v8589_v22, %s7905_s24 }
 0x2a6   : > { %2033 = vrot.lane.b32.xlu1 %v8596_v57, %s7905_s24 }
 0x2a8   : > { %2039 = vrot.lane.b32.xlu0 %v8603_v60, %s7905_s24 }
 0x2aa   : > { %2037 = vrot.lane.b32.xlu1 %v8610_v23, %s7905_s24 }
 0x2ac   : > { %2043 = vrot.lane.b32.xlu0 %v8617_v0, %s7905_s24 }
 0x2ae   : > { %2041 = vrot.lane.b32.xlu1 %v8624_v12, %s7905_s24 }
 0x2b0   : > { %2047 = vrot.lane.b32.xlu0 %v8631_v55, %s7905_s24 }
 0x2b2   : > { %2045 = vrot.lane.b32.xlu1 %v8638_v1, %s7905_s24 }
 0x2b4   : > { %2051 = vrot.lane.b32.xlu0 %v8645_v8, %s7905_s24 }
 0x2b6   : > { %2049 = vrot.lane.b32.xlu1 %v8782_v18, %s7905_s24 }
 0x2b8   : > { %2055 = vrot.lane.b32.xlu0 %v8789_v15, %s7905_s24 }
 0x2ba   : > { %2053 = vrot.lane.b32.xlu1 %v8796_v6, %s7905_s24 }
 0x2bc   : > { %2059 = vrot.lane.b32.xlu0 %v8803_v20, %s7905_s24 }
 0x2be   : > { %2057 = vrot.lane.b32.xlu1 %v8810_v33, %s7905_s24 }
 0x2c0   : > { %2063 = vrot.lane.b32.xlu0 %v8817_v37, %s7905_s24 }
 0x2c2   : > { %2061 = vrot.lane.b32.xlu1 %v8824_v26, %s7905_s24 }
 0x2c4   : > { %2067 = vrot.lane.b32.xlu0 %v8831_v47, %s7905_s24 }
 0x2c6   : > { %2065 = vrot.lane.b32.xlu1 %v8838_v30, %s7905_s24 }
 0x2c8   : > { %2071 = vrot.lane.b32.xlu0 %v8845_v50, %s7905_s24 }
 0x2ca   : > { %2069 = vrot.lane.b32.xlu1 %v8852_v54, %s7905_s24 }
 0x2cb   : > { %v8856_v52 = vpop.permute.xlu0 %1757 }
 0x2cc   : > { %12046 = vst [vmem:[#allocation92_spill] sm:$0xff] %v8856_v52  ;;  %2075 = vrot.lane.b32.xlu0 %v8861_v58, %s7905_s24 }
 0x2ce   : > { %2073 = vrot.lane.b32.xlu1 %v8868_v61, %s7905_s24 }
 0x2cf   : > { %v8872_v21 = vpop.permute.xlu0 %1767 }
 0x2d0   : > { %12047 = vst [vmem:[#allocation93_spill] sm:$0xff] %v8872_v21 }
 0x2d1   : > { %v8874_v5 = vpop.permute.xlu1 %1762 }
 0x2d2   : > { %12048 = vst [vmem:[#allocation94_spill] sm:$0xff] %v8874_v5  ;;  %2077 = vrot.lane.b32.xlu1 %v8879_v9, %s7905_s24  ;;  %s7906_s24 = smov 123  }
 0x2d3   : > { %v8883_v14 = vpop.permute.xlu0 %1777 }
 0x2d4   : > { %12049 = vst [vmem:[#allocation95_spill] sm:$0xff] %v8883_v14 }
 0x2d5   : > { %v8885_v41 = vpop.permute.xlu1 %1772 }
 0x2d6   : > { %12050 = vst [vmem:[#allocation96_spill] sm:$0xff] %v8885_v41 }
 0x2d7   : > { %v8887_v52 = vpop.permute.xlu0 %1787 }
 0x2d8   : > { %12051 = vst [vmem:[#allocation97_spill] sm:$0xff] %v8887_v52 }
 0x2d9   : > { %v8889_v13 = vpop.permute.xlu1 %1782 }
 0x2da   : > { %12052 = vst [vmem:[#allocation98_spill] sm:$0xff] %v8889_v13 }
 0x2db   : > { %v8891_v10 = vpop.permute.xlu0 %1797 }
 0x2dc   : > { %12053 = vst [vmem:[#allocation99_spill] sm:$0xff] %v8891_v10 }
 0x2dd   : > { %v8893_v21 = vpop.permute.xlu1 %1792 }
 0x2de   : > { %12054 = vst [vmem:[#allocation100_spill] sm:$0xff] %v8893_v21 }
 0x2df   : > { %v8895_v5 = vpop.permute.xlu0 %1807 }
 0x2e0   : > { %12055 = vst [vmem:[#allocation101_spill] sm:$0xff] %v8895_v5 }
 0x2e1   : > { %v8897_v7 = vpop.permute.xlu1 %1802 }
 0x2e2   : > { %12056 = vst [vmem:[#allocation102_spill] sm:$0xff] %v8897_v7 }
 0x2e3   : > { %v8899_v4 = vpop.permute.xlu0 %1817 }
 0x2e4   : > { %12057 = vst [vmem:[#allocation103_spill] sm:$0xff] %v8899_v4 }
 0x2e5   : > { %v8901_v56 = vpop.permute.xlu1 %1812 }
 0x2e6   : > { %12058 = vst [vmem:[#allocation104_spill] sm:$0xff] %v8901_v56 }
 0x2e7   : > { %v8903_v53 = vpop.permute.xlu0 %1827 }
 0x2e8   : > { %12059 = vst [vmem:[#allocation105_spill] sm:$0xff] %v8903_v53 }
 0x2e9   : > { %v8905_v14 = vpop.permute.xlu1 %1822 }
 0x2ea   : > { %12060 = vst [vmem:[#allocation106_spill] sm:$0xff] %v8905_v14 }
 0x2eb   : > { %v8907_v41 = vpop.permute.xlu0 %1837 }
 0x2ec   : > { %12061 = vst [vmem:[#allocation107_spill] sm:$0xff] %v8907_v41 }
 0x2ed   : > { %v8909_v52 = vpop.permute.xlu1 %1832 }
 0x2ee   : > { %12062 = vst [vmem:[#allocation108_spill] sm:$0xff] %v8909_v52 }
 0x2ef   : > { %v8911_v13 = vpop.permute.xlu0 %1847 }
 0x2f0   : > { %12063 = vst [vmem:[#allocation109_spill] sm:$0xff] %v8911_v13 }
 0x2f1   : > { %v8913_v10 = vpop.permute.xlu1 %1842 }
 0x2f2   : > { %12064 = vst [vmem:[#allocation110_spill] sm:$0xff] %v8913_v10 }
 0x2f3   : > { %v8915_v21 = vpop.permute.xlu0 %1857 }
 0x2f4   : > { %12065 = vst [vmem:[#allocation111_spill] sm:$0xff] %v8915_v21 }
 0x2f5   : > { %v8917_v5 = vpop.permute.xlu1 %1852 }
 0x2f6   : > { %12066 = vst [vmem:[#allocation112_spill] sm:$0xff] %v8917_v5  ;;  %v1983_v5 = vld [vmem:[#allocation2 + $0x20] sm:$0xff] }
 0x2f7   : > { %v8919_v7 = vpop.permute.xlu0 %1867 }
 0x2f8   : > { %12067 = vst [vmem:[#allocation113_spill] sm:$0xff] %v8919_v7 }
 0x2f9   : > { %v8921_v4 = vpop.permute.xlu1 %1862 }
 0x2fa   : > { %12068 = vst [vmem:[#allocation114_spill] sm:$0xff] %v8921_v4 }
 0x2fb   : > { %v8923_v56 = vpop.permute.xlu0 %1877 }
 0x2fc   : > { %12069 = vst [vmem:[#allocation115_spill] sm:$0xff] %v8923_v56  ;;  %v1985_v56 = vld [vmem:[#allocation2 + $0x30] sm:$0xff] }
 0x2fd   : > { %v8925_v53 = vpop.permute.xlu1 %1872 }
 0x2fe   : > { %12070 = vst [vmem:[#allocation116_spill] sm:$0xff] %v8925_v53 }
 0x2ff   : > { %v8927_v14 = vpop.permute.xlu0 %1887 }
 0x300   : > { %12071 = vst [vmem:[#allocation117_spill] sm:$0xff] %v8927_v14 }
 0x301   : > { %v8929_v41 = vpop.permute.xlu1 %1882 }
 0x302   : > { %12072 = vst [vmem:[#allocation118_spill] sm:$0xff] %v8929_v41  ;;  %v1987_v41 = vld [vmem:[#allocation2 + $0x40] sm:$0xff] }
 0x303   : > { %v8931_v52 = vpop.permute.xlu0 %1897 }
 0x304   : > { %12073 = vst [vmem:[#allocation119_spill] sm:$0xff] %v8931_v52 }
 0x305   : > { %v8933_v13 = vpop.permute.xlu1 %1892 }
 0x306   : > { %12074 = vst [vmem:[#allocation120_spill] sm:$0xff] %v8933_v13  ;;  %v1986_v13 = vld [vmem:[#allocation2 + $0x38] sm:$0xff] }
 0x307   : > { %v8935_v10 = vpop.permute.xlu0 %1907 }
 0x308   : > { %12075 = vst [vmem:[#allocation121_spill] sm:$0xff] %v8935_v10 }
 0x309   : > { %v8937_v21 = vpop.permute.xlu1 %1902 }
 0x30a   : > { %12076 = vst [vmem:[#allocation122_spill] sm:$0xff] %v8937_v21  ;;  %v1989_v21 = vld [vmem:[#allocation2 + $0x50] sm:$0xff] }
 0x30b   : > { %v2016_v7 = vpop.permute.xlu0 %2015 }
 0x30c   : > { %v2111_v46 = vmul.f32 %v2016_v7, %v1983_v5  ;;  %v1988_v5 = vld [vmem:[#allocation2 + $0x48] sm:$0xff] }
 0x30d   : > { %v8939_v4 = vpop.permute.xlu1 %1912 }
 0x30e   : > { %12077 = vst [vmem:[#allocation123_spill] sm:$0xff] %v8939_v4  ;;  %2145 = vperm.xlu0 %7715, %v2111_v46  }
 0x30f   : > { %v2020_v53 = vpop.permute.xlu0 %2019 }
 0x310   : > { %v2113_v14 = vmul.f32 %v2020_v53, %v1985_v56  ;;  %v1990_v56 = vld [vmem:[#allocation2 + $0x58] sm:$0xff] }
 0x311   : > { %v2018_v39 = vpop.permute.xlu1 %2017 }
 0x312   : > { %v2112_v35 = vmul.f32 %v2018_v39, %v1984_v42  ;;  %2155 = vperm.xlu0 %7715, %v2113_v14   ;;  %v1993_v14 = vld [vmem:[#allocation2 + $0x70] sm:$0xff] }
 0x313   : > { %v2024_v52 = vpop.permute.xlu0 %2023 }
 0x314   : > { %v2115_v27 = vmul.f32 %v2024_v52, %v1987_v41  ;;  %2150 = vperm.xlu1 %7716, %v2112_v35   ;;  %v1992_v41 = vld [vmem:[#allocation2 + $0x68] sm:$0xff] }
 0x315   : > { %v2022_v10 = vpop.permute.xlu1 %2021 }
 0x316   : > { %v2114_v25 = vmul.f32 %v2022_v10, %v1986_v13  ;;  %2165 = vperm.xlu0 %7715, %v2115_v27   ;;  %v1995_v13 = vld [vmem:[#allocation2 + $0x80] sm:$0xff] }
 0x317   : > { %v2028_v7 = vpop.permute.xlu0 %2027 }
 0x318   : > { %v2117_v4 = vmul.f32 %v2028_v7, %v1989_v21  ;;  %2160 = vperm.xlu1 %7716, %v2114_v25   ;;  %v1994_v7 = vld [vmem:[#allocation2 + $0x78] sm:$0xff] }
 0x319   : > { %v2026_v46 = vpop.permute.xlu1 %2025 }
 0x31a   : > { %v2116_v3 = vmul.f32 %v2026_v46, %v1988_v5  ;;  %2175 = vperm.xlu0 %7715, %v2117_v4   ;;  %v1997_v46 = vld [vmem:[#allocation2 + $0x90] sm:$0xff] }
 0x31b   : > { %v2032_v53 = vpop.permute.xlu0 %2031 }
 0x31c   : > { %v2119_v39 = vmul.f32 %v2032_v53, %v1991_v24  ;;  %2170 = vperm.xlu1 %7716, %v2116_v3   ;;  %v1996_v53 = vld [vmem:[#allocation2 + $0x88] sm:$0xff] }
 0x31d   : > { %v2030_v42 = vpop.permute.xlu1 %2029 }
 0x31e   : > { %v2118_v52 = vmul.f32 %v2030_v42, %v1990_v56  ;;  %2185 = vperm.xlu0 %7715, %v2119_v39   ;;  %v1999_v42 = vld [vmem:[#allocation2 + $0xa0] sm:$0xff] }
 0x31f   : > { %v2036_v35 = vpop.permute.xlu0 %2035 }
 0x320   : > { %v2121_v10 = vmul.f32 %v2036_v35, %v1993_v14  ;;  %2180 = vperm.xlu1 %7716, %v2118_v52   ;;  %v1998_v35 = vld [vmem:[#allocation2 + $0x98] sm:$0xff] }
 0x321   : > { %v2034_v27 = vpop.permute.xlu1 %2033 }
 0x322   : > { %v2120_v21 = vmul.f32 %v2034_v27, %v1992_v41  ;;  %2195 = vperm.xlu0 %7715, %v2121_v10   ;;  %v2001_v27 = vld [vmem:[#allocation2 + $0xb0] sm:$0xff] }
 0x323   : > { %v2040_v25 = vpop.permute.xlu0 %2039 }
 0x324   : > { %v2123_v5 = vmul.f32 %v2040_v25, %v1995_v13  ;;  %2190 = vperm.xlu1 %7716, %v2120_v21   ;;  %v2000_v25 = vld [vmem:[#allocation2 + $0xa8] sm:$0xff] }
 0x325   : > { %v2038_v4 = vpop.permute.xlu1 %2037 }
 0x326   : > { %v2122_v24 = vmul.f32 %v2038_v4, %v1994_v7  ;;  %2205 = vperm.xlu0 %7715, %v2123_v5   ;;  %v2003_v4 = vld [vmem:[#allocation2 + $0xc0] sm:$0xff] }
 0x327   : > { %v2044_v3 = vpop.permute.xlu0 %2043 }
 0x328   : > { %v2125_v56 = vmul.f32 %v2044_v3, %v1997_v46  ;;  %2200 = vperm.xlu1 %7716, %v2122_v24   ;;  %v2002_v3 = vld [vmem:[#allocation2 + $0xb8] sm:$0xff] }
 0x329   : > { %v2042_v39 = vpop.permute.xlu1 %2041 }
 0x32a   : > { %v2124_v14 = vmul.f32 %v2042_v39, %v1996_v53  ;;  %2215 = vperm.xlu0 %7715, %v2125_v56   ;;  %v2005_v39 = vld [vmem:[#allocation2 + $0xd0] sm:$0xff] }
 0x32b   : > { %v2048_v52 = vpop.permute.xlu0 %2047 }
 0x32c   : > { %v2127_v41 = vmul.f32 %v2048_v52, %v1999_v42  ;;  %2210 = vperm.xlu1 %7716, %v2124_v14   ;;  %v2004_v52 = vld [vmem:[#allocation2 + $0xc8] sm:$0xff] }
 0x32d   : > { %v2046_v10 = vpop.permute.xlu1 %2045 }
 0x32e   : > { %v2126_v13 = vmul.f32 %v2046_v10, %v1998_v35  ;;  %2225 = vperm.xlu0 %7715, %v2127_v41   ;;  %v2007_v10 = vld [vmem:[#allocation2 + $0xe0] sm:$0xff] }
 0x32f   : > { %v2052_v21 = vpop.permute.xlu0 %2051 }
 0x330   : > { %v2129_v7 = vmul.f32 %v2052_v21, %v2001_v27  ;;  %2220 = vperm.xlu1 %7716, %v2126_v13   ;;  %v2006_v21 = vld [vmem:[#allocation2 + $0xd8] sm:$0xff] }
 0x331   : > { %v2050_v5 = vpop.permute.xlu1 %2049 }
 0x332   : > { %v2128_v46 = vmul.f32 %v2050_v5, %v2000_v25  ;;  %2235 = vperm.xlu0 %7715, %v2129_v7   ;;  %v2009_v5 = vld [vmem:[#allocation2 + $0xf0] sm:$0xff] }
 0x333   : > { %v2056_v24 = vpop.permute.xlu0 %2055 }
 0x334   : > { %v2131_v53 = vmul.f32 %v2056_v24, %v2003_v4  ;;  %2230 = vperm.xlu1 %7716, %v2128_v46   ;;  %v2008_v24 = vld [vmem:[#allocation2 + $0xe8] sm:$0xff] }
 0x335   : > { %v2054_v56 = vpop.permute.xlu1 %2053 }
 0x336   : > { %v2130_v42 = vmul.f32 %v2054_v56, %v2002_v3  ;;  %2245 = vperm.xlu0 %7715, %v2131_v53   ;;  %v2011_v56 = vld [vmem:[#allocation2 + $0x100] sm:$0xff] }
 0x337   : > { %v2060_v14 = vpop.permute.xlu0 %2059 }
 0x338   : > { %v2133_v35 = vmul.f32 %v2060_v14, %v2005_v39  ;;  %2240 = vperm.xlu1 %7716, %v2130_v42   ;;  %v2010_v14 = vld [vmem:[#allocation2 + $0xf8] sm:$0xff] }
 0x339   : > { %v2058_v41 = vpop.permute.xlu1 %2057 }
 0x33a   : > { %v2132_v27 = vmul.f32 %v2058_v41, %v2004_v52  ;;  %2255 = vperm.xlu0 %7715, %v2133_v35   ;;  %v2013_v41 = vld [vmem:[#allocation2 + $0x110] sm:$0xff] }
 0x33b   : > { %v2064_v13 = vpop.permute.xlu0 %2063 }
 0x33c   : > { %v2135_v25 = vmul.f32 %v2064_v13, %v2007_v10  ;;  %2250 = vperm.xlu1 %7716, %v2132_v27   ;;  %v2012_v13 = vld [vmem:[#allocation2 + $0x108] sm:$0xff] }
 0x33d   : > { %v2062_v7 = vpop.permute.xlu1 %2061 }
 0x33e   : > { %v2134_v4 = vmul.f32 %v2062_v7, %v2006_v21  ;;  %2265 = vperm.xlu0 %7715, %v2135_v25  }
 0x33f   : > { %v2068_v46 = vpop.permute.xlu0 %2067 }
 0x340   : > { %v2137_v3 = vmul.f32 %v2068_v46, %v2009_v5  ;;  %2260 = vperm.xlu1 %7716, %v2134_v4   ;;  %v2014_v5 = vld [vmem:[#allocation2 + $0x118] sm:$0xff] }
 0x341   : > { %v2066_v53 = vpop.permute.xlu1 %2065 }
 0x342   : > { %v2136_v39 = vmul.f32 %v2066_v53, %v2008_v24  ;;  %2275 = vperm.xlu0 %7715, %v2137_v3  }
 0x343   : > { %v2072_v42 = vpop.permute.xlu0 %2071 }
 0x344   : > { %v2139_v52 = vmul.f32 %v2072_v42, %v2011_v56  ;;  %2270 = vperm.xlu1 %7716, %v2136_v39  }
 0x345   : > { %v2070_v35 = vpop.permute.xlu1 %2069 }
 0x346   : > { %v2138_v10 = vmul.f32 %v2070_v35, %v2010_v14  ;;  %2285 = vperm.xlu0 %7715, %v2139_v52  }
 0x347   : > { %v2076_v27 = vpop.permute.xlu0 %2075 }
 0x348   : > { %v2141_v21 = vmul.f32 %v2076_v27, %v2013_v41  ;;  %2280 = vperm.xlu1 %7716, %v2138_v10  }
 0x349   : > { %v2074_v25 = vpop.permute.xlu1 %2073 }
 0x34a   : > { %v2140_v7 = vmul.f32 %v2074_v25, %v2012_v13  ;;  %2295 = vperm.xlu0 %7715, %v2141_v21   ;;  %v2371_v21 = vld [vmem:[#allocation2 + $0x21] sm:$0xff] }
 0x34c   : > { %2290 = vperm.xlu1 %7716, %v2140_v7  }
 0x34d   : > { %v2078_v4 = vpop.permute.xlu1 %2077 }
 0x34e   : > { %v2142_v46 = vmul.f32 %v2078_v4, %v2014_v5  ;;  %2403 = vrot.lane.b32.xlu0 %v8526_v11, %s7906_s24  ;;  %v9069_v4 = vld [vmem:[#allocation2 + $0x31] sm:$0xff] }
 0x350   : > { %2300 = vperm.xlu1 %7716, %v2142_v46  }
 0x352   : > { %2407 = vrot.lane.b32.xlu0 %v8533_v51, %s7906_s24 }
 0x354   : > { %2405 = vrot.lane.b32.xlu1 %v8540_v63, %s7906_s24 }
 0x356   : > { %2411 = vrot.lane.b32.xlu0 %v8547_v2, %s7906_s24 }
 0x358   : > { %2409 = vrot.lane.b32.xlu1 %v8554_v16, %s7906_s24 }
 0x35a   : > { %2415 = vrot.lane.b32.xlu0 %v8561_v17, %s7906_s24 }
 0x35c   : > { %2413 = vrot.lane.b32.xlu1 %v8568_v59, %s7906_s24 }
 0x35e   : > { %2419 = vrot.lane.b32.xlu0 %v8575_v19, %s7906_s24 }
 0x360   : > { %2417 = vrot.lane.b32.xlu1 %v8582_v62, %s7906_s24 }
 0x362   : > { %2423 = vrot.lane.b32.xlu0 %v8589_v22, %s7906_s24 }
 0x364   : > { %2421 = vrot.lane.b32.xlu1 %v8596_v57, %s7906_s24 }
 0x366   : > { %2427 = vrot.lane.b32.xlu0 %v8603_v60, %s7906_s24 }
 0x368   : > { %2425 = vrot.lane.b32.xlu1 %v8610_v23, %s7906_s24 }
 0x36a   : > { %2431 = vrot.lane.b32.xlu0 %v8617_v0, %s7906_s24 }
 0x36c   : > { %2429 = vrot.lane.b32.xlu1 %v8624_v12, %s7906_s24 }
 0x36e   : > { %2435 = vrot.lane.b32.xlu0 %v8631_v55, %s7906_s24 }
 0x370   : > { %2433 = vrot.lane.b32.xlu1 %v8638_v1, %s7906_s24 }
 0x372   : > { %2439 = vrot.lane.b32.xlu0 %v8645_v8, %s7906_s24 }
 0x374   : > { %2437 = vrot.lane.b32.xlu1 %v8782_v18, %s7906_s24 }
 0x376   : > { %2443 = vrot.lane.b32.xlu0 %v8789_v15, %s7906_s24 }
 0x378   : > { %2441 = vrot.lane.b32.xlu1 %v8796_v6, %s7906_s24 }
 0x37a   : > { %2447 = vrot.lane.b32.xlu0 %v8803_v20, %s7906_s24 }
 0x37c   : > { %2445 = vrot.lane.b32.xlu1 %v8810_v33, %s7906_s24 }
 0x37e   : > { %2451 = vrot.lane.b32.xlu0 %v8817_v37, %s7906_s24 }
 0x380   : > { %2449 = vrot.lane.b32.xlu1 %v8824_v26, %s7906_s24 }
 0x382   : > { %2455 = vrot.lane.b32.xlu0 %v8831_v47, %s7906_s24 }
 0x384   : > { %2453 = vrot.lane.b32.xlu1 %v8838_v30, %s7906_s24 }
 0x386   : > { %2459 = vrot.lane.b32.xlu0 %v8845_v50, %s7906_s24 }
 0x388   : > { %2457 = vrot.lane.b32.xlu1 %v8852_v54, %s7906_s24 }
 0x389   : > { %v8999_v11 = vpop.permute.xlu0 %2145 }
 0x38a   : > { %12078 = vst [vmem:[#allocation124_spill] sm:$0xff] %v8999_v11  ;;  %2463 = vrot.lane.b32.xlu0 %v8861_v58, %s7906_s24 }
 0x38c   : > { %2461 = vrot.lane.b32.xlu1 %v8868_v61, %s7906_s24 }
 0x38d   : > { %v9005_v51 = vpop.permute.xlu0 %2155 }
 0x38e   : > { %12079 = vst [vmem:[#allocation125_spill] sm:$0xff] %v9005_v51 }
 0x38f   : > { %v9007_v63 = vpop.permute.xlu1 %2150 }
 0x390   : > { %12080 = vst [vmem:[#allocation126_spill] sm:$0xff] %v9007_v63  ;;  %2465 = vrot.lane.b32.xlu1 %v8879_v9, %s7906_s24  ;;  %s7507_s24 = sshll.u32 %s12481_s18, 4 }
 0x391   : > { %v9011_v2 = vpop.permute.xlu0 %2165  ;;  %s386_s12 = scalar_lea.vmem %s11944_s11, %s7507_s24 }
 0x392   : > { %12081 = vst [vmem:[#allocation127_spill] sm:$0xff] %v9011_v2  ;;  %v2759_v2 = vld [vmem:[#allocation2 + $0x2f] sm:$0xff] }
 0x393   : > { %v9013_v16 = vpop.permute.xlu1 %2160 }
 0x394   : > { %12082 = vst [vmem:[#allocation128_spill] sm:$0xff] %v9013_v16 }
 0x395   : > { %v9015_v17 = vpop.permute.xlu0 %2175 }
 0x396   : > { %12083 = vst [vmem:[#allocation129_spill] sm:$0xff] %v9015_v17 }
 0x397   : > { %v9017_v59 = vpop.permute.xlu1 %2170 }
 0x398   : > { %12084 = vst [vmem:[#allocation130_spill] sm:$0xff] %v9017_v59  ;;  %v2393_v59 = vld [vmem:[#allocation2 + $0xd1] sm:$0xff] }
 0x399   : > { %v9019_v19 = vpop.permute.xlu0 %2185 }
 0x39a   : > { %12085 = vst [vmem:[#allocation131_spill] sm:$0xff] %v9019_v19  ;;  %v2390_v19 = vld [vmem:[#allocation2 + $0xb9] sm:$0xff] }
 0x39b   : > { %v9021_v62 = vpop.permute.xlu1 %2180 }
 0x39c   : > { %12086 = vst [vmem:[#allocation132_spill] sm:$0xff] %v9021_v62 }
 0x39d   : > { %v9023_v22 = vpop.permute.xlu0 %2195 }
 0x39e   : > { %12087 = vst [vmem:[#allocation133_spill] sm:$0xff] %v9023_v22 }
 0x39f   : > { %v9025_v57 = vpop.permute.xlu1 %2190 }
 0x3a0   : > { %12088 = vst [vmem:[#allocation134_spill] sm:$0xff] %v9025_v57 }
 0x3a1   : > { %v9027_v60 = vpop.permute.xlu0 %2205 }
 0x3a2   : > { %12089 = vst [vmem:[#allocation135_spill] sm:$0xff] %v9027_v60 }
 0x3a3   : > { %v9029_v23 = vpop.permute.xlu1 %2200 }
 0x3a4   : > { %12090 = vst [vmem:[#allocation136_spill] sm:$0xff] %v9029_v23  ;;  %v2386_v23 = vld [vmem:[#allocation2 + $0x99] sm:$0xff] }
 0x3a5   : > { %v9031_v0 = vpop.permute.xlu0 %2215 }
 0x3a6   : > { %12091 = vst [vmem:[#allocation137_spill] sm:$0xff] %v9031_v0  ;;  %v2387_v0 = vld [vmem:[#allocation2 + $0xa1] sm:$0xff] }
 0x3a7   : > { %v9033_v12 = vpop.permute.xlu1 %2210 }
 0x3a8   : > { %12092 = vst [vmem:[#allocation138_spill] sm:$0xff] %v9033_v12 }
 0x3a9   : > { %v9035_v55 = vpop.permute.xlu0 %2225 }
 0x3aa   : > { %12093 = vst [vmem:[#allocation139_spill] sm:$0xff] %v9035_v55 }
 0x3ab   : > { %v9037_v1 = vpop.permute.xlu1 %2220 }
 0x3ac   : > { %12094 = vst [vmem:[#allocation140_spill] sm:$0xff] %v9037_v1 }
 0x3ad   : > { %v9039_v8 = vpop.permute.xlu0 %2235 }
 0x3ae   : > { %12095 = vst [vmem:[#allocation141_spill] sm:$0xff] %v9039_v8 }
 0x3af   : > { %v9041_v24 = vpop.permute.xlu1 %2230 }
 0x3b0   : > { %12096 = vst [vmem:[#allocation142_spill] sm:$0xff] %v9041_v24 }
 0x3b1   : > { %v9043_v3 = vpop.permute.xlu0 %2245 }
 0x3b2   : > { %12097 = vst [vmem:[#allocation143_spill] sm:$0xff] %v9043_v3 }
 0x3b3   : > { %v9045_v53 = vpop.permute.xlu1 %2240 }
 0x3b4   : > { %12098 = vst [vmem:[#allocation144_spill] sm:$0xff] %v9045_v53 }
 0x3b5   : > { %v9047_v56 = vpop.permute.xlu0 %2255 }
 0x3b6   : > { %12099 = vst [vmem:[#allocation145_spill] sm:$0xff] %v9047_v56 }
 0x3b7   : > { %v9049_v39 = vpop.permute.xlu1 %2250 }
 0x3b8   : > { %12100 = vst [vmem:[#allocation146_spill] sm:$0xff] %v9049_v39  ;;  %v9080_v39 = vld [vmem:[#allocation2 + $0x49] sm:$0xff] }
 0x3b9   : > { %v9051_v42 = vpop.permute.xlu0 %2265 }
 0x3ba   : > { %12101 = vst [vmem:[#allocation147_spill] sm:$0xff] %v9051_v42  ;;  %v9074_v42 = vld [vmem:[#allocation2 + $0x39] sm:$0xff] }
 0x3bb   : > { %v9053_v14 = vpop.permute.xlu1 %2260 }
 0x3bc   : > { %12102 = vst [vmem:[#allocation148_spill] sm:$0xff] %v9053_v14 }
 0x3bd   : > { %v9055_v52 = vpop.permute.xlu0 %2275 }
 0x3be   : > { %12103 = vst [vmem:[#allocation149_spill] sm:$0xff] %v9055_v52  ;;  %v2372_v52 = vld [vmem:[#allocation2 + $0x29] sm:$0xff] }
 0x3bf   : > { %v9057_v35 = vpop.permute.xlu1 %2270 }
 0x3c0   : > { %12104 = vst [vmem:[#allocation150_spill] sm:$0xff] %v9057_v35 }
 0x3c1   : > { %v9059_v41 = vpop.permute.xlu0 %2285 }
 0x3c2   : > { %12105 = vst [vmem:[#allocation151_spill] sm:$0xff] %v9059_v41  ;;  %v9072_v41 = vld [vmem:[#allocation2 + $0x41] sm:$0xff] }
 0x3c3   : > { %v9061_v10 = vpop.permute.xlu1 %2280 }
 0x3c4   : > { %12106 = vst [vmem:[#allocation152_spill] sm:$0xff] %v9061_v10 }
 0x3c5   : > { %v9063_v27 = vpop.permute.xlu0 %2295 }
 0x3c6   : > { %12107 = vst [vmem:[#allocation153_spill] sm:$0xff] %v9063_v27 }
 0x3c7   : > { %v9065_v13 = vpop.permute.xlu1 %2290 }
 0x3c8   : > { %12108 = vst [vmem:[#allocation154_spill] sm:$0xff] %v9065_v13 }
 0x3c9   : > { %v2404_v25 = vpop.permute.xlu0 %2403 }
 0x3ca   : > { %v2499_v7 = vmul.f32 %v2404_v25, %v2371_v21  ;;  %v9077_v25 = vld [vmem:[#allocation2 + $0x51] sm:$0xff] }
 0x3cb   : > { %v9067_v5 = vpop.permute.xlu1 %2300 }
 0x3cc   : > { %12109 = vst [vmem:[#allocation155_spill] sm:$0xff] %v9067_v5  ;;  %2533 = vperm.xlu0 %7715, %v2499_v7  }
 0x3cd   : > { %v2408_v46 = vpop.permute.xlu0 %2407 }
 0x3ce   : > { %v2501_v35 = vmul.f32 %v2408_v46, %v9069_v4 }
 0x3cf   : > { %v2406_v14 = vpop.permute.xlu1 %2405 }
 0x3d0   : > { %v2500_v10 = vmul.f32 %v2406_v14, %v2372_v52  ;;  %2543 = vperm.xlu0 %7715, %v2501_v35   ;;  %v9083_v52 = vld [vmem:[#allocation2 + $0x61] sm:$0xff] }
 0x3d1   : > { %v2412_v27 = vpop.permute.xlu0 %2411 }
 0x3d2   : > { %v2503_v13 = vmul.f32 %v2412_v27, %v9072_v41  ;;  %2538 = vperm.xlu1 %7716, %v2500_v10   ;;  %v9086_v10 = vld [vmem:[#allocation2 + $0x59] sm:$0xff] }
 0x3d3   : > { %v2410_v21 = vpop.permute.xlu1 %2409 }
 0x3d4   : > { %v2502_v7 = vmul.f32 %v2410_v21, %v9074_v42  ;;  %2553 = vperm.xlu0 %7715, %v2503_v13   ;;  %v9089_v13 = vld [vmem:[#allocation2 + $0x71] sm:$0xff] }
 0x3d5   : > { %v2416_v5 = vpop.permute.xlu0 %2415 }
 0x3d6   : > { %v2505_v46 = vmul.f32 %v2416_v5, %v9077_v25  ;;  %2548 = vperm.xlu1 %7716, %v2502_v7   ;;  %v9092_v7 = vld [vmem:[#allocation2 + $0x69] sm:$0xff] }
 0x3d7   : > { %v2414_v14 = vpop.permute.xlu1 %2413 }
 0x3d8   : > { %v2504_v35 = vmul.f32 %v2414_v14, %v9080_v39  ;;  %2563 = vperm.xlu0 %7715, %v2505_v46   ;;  %v9095_v46 = vld [vmem:[#allocation2 + $0x81] sm:$0xff] }
 0x3d9   : > { %v2420_v27 = vpop.permute.xlu0 %2419 }
 0x3da   : > { %v2507_v56 = vmul.f32 %v2420_v27, %v9083_v52  ;;  %2558 = vperm.xlu1 %7716, %v2504_v35   ;;  %v9098_v35 = vld [vmem:[#allocation2 + $0x79] sm:$0xff] }
 0x3db   : > { %v2418_v21 = vpop.permute.xlu1 %2417 }
 0x3dc   : > { %v2506_v53 = vmul.f32 %v2418_v21, %v9086_v10  ;;  %2573 = vperm.xlu0 %7715, %v2507_v56   ;;  %v2385_v56 = vld [vmem:[#allocation2 + $0x91] sm:$0xff] }
 0x3dd   : > { %v2424_v5 = vpop.permute.xlu0 %2423 }
 0x3de   : > { %v2509_v3 = vmul.f32 %v2424_v5, %v9089_v13  ;;  %2568 = vperm.xlu1 %7716, %v2506_v53   ;;  %v9102_v5 = vld [vmem:[#allocation2 + $0x89] sm:$0xff] }
 0x3df   : > { %v2422_v14 = vpop.permute.xlu1 %2421  ;;  %12110 = vst [vmem:[#allocation156_spill] sm:$0xff] %v9102_v5 }
 0x3e0   : > { %v2508_v24 = vmul.f32 %v2422_v14, %v9092_v7  ;;  %2583 = vperm.xlu0 %7715, %v2509_v3  }
 0x3e1   : > { %v2428_v27 = vpop.permute.xlu0 %2427 }
 0x3e2   : > { %v2511_v8 = vmul.f32 %v2428_v27, %v9095_v46  ;;  %2578 = vperm.xlu1 %7716, %v2508_v24   ;;  %v2389_v27 = vld [vmem:[#allocation2 + $0xb1] sm:$0xff] }
 0x3e3   : > { %v2426_v21 = vpop.permute.xlu1 %2425 }
 0x3e4   : > { %v2510_v1 = vmul.f32 %v2426_v21, %v9098_v35  ;;  %2593 = vperm.xlu0 %7715, %v2511_v8   ;;  %v2388_v8 = vld [vmem:[#allocation2 + $0xa9] sm:$0xff] }
 0x3e5   : > { %v2432_v55 = vpop.permute.xlu0 %2431 }
 0x3e6   : > { %v2513_v53 = vmul.f32 %v2432_v55, %v2385_v56  ;;  %2588 = vperm.xlu1 %7716, %v2510_v1   ;;  %v2391_v55 = vld [vmem:[#allocation2 + $0xc1] sm:$0xff] }
 0x3e7   : > { %v2430_v12 = vpop.permute.xlu1 %2429 }
 0x3e8   : > { %v2512_v3 = vmul.f32 %v2430_v12, %v9102_v5  ;;  %2603 = vperm.xlu0 %7715, %v2513_v53   ;;  %v2762_v5 = vld [vmem:[#allocation2 + $0x47] sm:$0xff] }
 0x3e9   : > { %v2436_v14 = vpop.permute.xlu0 %2435 }
 0x3ea   : > { %v2515_v60 = vmul.f32 %v2436_v14, %v2387_v0  ;;  %2598 = vperm.xlu1 %7716, %v2512_v3   ;;  %v2392_v14 = vld [vmem:[#allocation2 + $0xc9] sm:$0xff] }
 0x3eb   : > { %v2434_v24 = vpop.permute.xlu1 %2433 }
 0x3ec   : > { %v2514_v57 = vmul.f32 %v2434_v24, %v2386_v23  ;;  %2613 = vperm.xlu0 %7715, %v2515_v60   ;;  %v2395_v24 = vld [vmem:[#allocation2 + $0xe1] sm:$0xff] }
 0x3ed   : > { %v2440_v21 = vpop.permute.xlu0 %2439 }
 0x3ee   : > { %v2517_v22 = vmul.f32 %v2440_v21, %v2389_v27  ;;  %2608 = vperm.xlu1 %7716, %v2514_v57   ;;  %v2394_v21 = vld [vmem:[#allocation2 + $0xd9] sm:$0xff] }
 0x3ef   : > { %v2438_v62 = vpop.permute.xlu1 %2437 }
 0x3f0   : > { %v2516_v1 = vmul.f32 %v2438_v62, %v2388_v8  ;;  %2623 = vperm.xlu0 %7715, %v2517_v22   ;;  %v2397_v8 = vld [vmem:[#allocation2 + $0xf1] sm:$0xff] }
 0x3f1   : > { %v2444_v56 = vpop.permute.xlu0 %2443 }
 0x3f2   : > { %v2519_v12 = vmul.f32 %v2444_v56, %v2391_v55  ;;  %2618 = vperm.xlu1 %7716, %v2516_v1   ;;  %v2396_v56 = vld [vmem:[#allocation2 + $0xe9] sm:$0xff] }
 0x3f3   : > { %v2442_v53 = vpop.permute.xlu1 %2441 }
 0x3f4   : > { %v2518_v0 = vmul.f32 %v2442_v53, %v2390_v19  ;;  %2633 = vperm.xlu0 %7715, %v2519_v12   ;;  %v2399_v53 = vld [vmem:[#allocation2 + $0x101] sm:$0xff] }
 0x3f5   : > { %v2448_v3 = vpop.permute.xlu0 %2447 }
 0x3f6   : > { %v2521_v23 = vmul.f32 %v2448_v3, %v2393_v59  ;;  %2628 = vperm.xlu1 %7716, %v2518_v0   ;;  %v2398_v3 = vld [vmem:[#allocation2 + $0xf9] sm:$0xff] }
 0x3f7   : > { %v2446_v60 = vpop.permute.xlu1 %2445 }
 0x3f8   : > { %v2520_v27 = vmul.f32 %v2446_v60, %v2392_v14  ;;  %2643 = vperm.xlu0 %7715, %v2521_v23   ;;  %v2401_v60 = vld [vmem:[#allocation2 + $0x111] sm:$0xff] }
 0x3f9   : > { %v2452_v57 = vpop.permute.xlu0 %2451 }
 0x3fa   : > { %v2523_v62 = vmul.f32 %v2452_v57, %v2395_v24  ;;  %2638 = vperm.xlu1 %7716, %v2520_v27   ;;  %v2400_v57 = vld [vmem:[#allocation2 + $0x109] sm:$0xff] }
 0x3fb   : > { %v2450_v22 = vpop.permute.xlu1 %2449 }
 0x3fc   : > { %v2522_v55 = vmul.f32 %v2450_v22, %v2394_v21  ;;  %2653 = vperm.xlu0 %7715, %v2523_v62  }
 0x3fd   : > { %v2456_v1 = vpop.permute.xlu0 %2455 }
 0x3fe   : > { %v2525_v19 = vmul.f32 %v2456_v1, %v2397_v8  ;;  %2648 = vperm.xlu1 %7716, %v2522_v55   ;;  %v2402_v8 = vld [vmem:[#allocation2 + $0x119] sm:$0xff] }
 0x3ff   : > { %v2454_v12 = vpop.permute.xlu1 %2453 }
 0x400   : > { %v2524_v59 = vmul.f32 %v2454_v12, %v2396_v56  ;;  %2663 = vperm.xlu0 %7715, %v2525_v19   ;;  %v7843_v56 = vld [vmem:[%s11934_s1] sm:$0xff]  ;;  %v7844_v19 = vld [vmem:[%s11934_s1 + $0x10] sm:$0xff]  ;;  %v7845_v12 = vld [vmem:[%s11934_s1 + $0x8] sm:$0xff] }
 0x401   : > { %v2460_v0 = vpop.permute.xlu0 %2459 }
 0x402   : > { %v2527_v14 = vmul.f32 %v2460_v0, %v2399_v53  ;;  %2658 = vperm.xlu1 %7716, %v2524_v59   ;;  %v7846_v53 = vld [vmem:[%s11934_s1 + $0x20] sm:$0xff]  ;;  %v7847_v59 = vld [vmem:[%s11934_s1 + $0x18] sm:$0xff]  ;;  %v7848_v0 = vld [vmem:[%s11934_s1 + $0x30] sm:$0xff] }
 0x403   : > { %v2458_v23 = vpop.permute.xlu1 %2457 }
 0x404   : > { %v2526_v24 = vmul.f32 %v2458_v23, %v2398_v3  ;;  %2673 = vperm.xlu0 %7715, %v2527_v14   ;;  %v7849_v3 = vld [vmem:[%s11934_s1 + $0x28] sm:$0xff]  ;;  %v7850_v14 = vld [vmem:[%s11934_s1 + $0x40] sm:$0xff]  ;;  %v7851_v23 = vld [vmem:[%s11934_s1 + $0x38] sm:$0xff] }
 0x405   : > { %v2464_v27 = vpop.permute.xlu0 %2463 }
 0x406   : > { %v2529_v21 = vmul.f32 %v2464_v27, %v2401_v60  ;;  %2668 = vperm.xlu1 %7716, %v2526_v24   ;;  %v7852_v60 = vld [vmem:[%s11934_s1 + $0x50] sm:$0xff]  ;;  %v7853_v24 = vld [vmem:[%s11934_s1 + $0x48] sm:$0xff]  ;;  %v9152_v27 = vld [vmem:[%s11934_s1 + $0x60] sm:$0xff] }
 0x407   : > { %v2462_v62 = vpop.permute.xlu1 %2461 }
 0x408   : > { %v2528_v22 = vmul.f32 %v2462_v62, %v2400_v57  ;;  %2683 = vperm.xlu0 %7715, %v2529_v21   ;;  %v7855_v57 = vld [vmem:[%s11934_s1 + $0x58] sm:$0xff]  ;;  %v9163_v21 = vld [vmem:[%s11934_s1 + $0x70] sm:$0xff]  ;;  %v9170_v62 = vld [vmem:[%s11934_s1 + $0x68] sm:$0xff] }
 0x40a   : > { %2678 = vperm.xlu1 %7716, %v2528_v22   ;;  %v9178_v22 = vld [vmem:[%s11934_s1 + $0x78] sm:$0xff] }
 0x40b   : > { %v2466_v55 = vpop.permute.xlu1 %2465 }
 0x40c   : > { %v2530_v1 = vmul.f32 %v2466_v55, %v2402_v8  ;;  %2791 = vrot.lane.b32.xlu0 %v7843_v56, %s7907_s30 }
 0x40e   : > { %2688 = vperm.xlu1 %7716, %v2530_v1  }
 0x410   : > { %2795 = vrot.lane.b32.xlu0 %v7844_v19, %s7907_s30 }
 0x412   : > { %2793 = vrot.lane.b32.xlu1 %v7845_v12, %s7907_s30 }
 0x414   : > { %2799 = vrot.lane.b32.xlu0 %v7846_v53, %s7907_s30 }
 0x416   : > { %2797 = vrot.lane.b32.xlu1 %v7847_v59, %s7907_s30 }
 0x418   : > { %2803 = vrot.lane.b32.xlu0 %v7848_v0, %s7907_s30 }
 0x41a   : > { %2801 = vrot.lane.b32.xlu1 %v7849_v3, %s7907_s30 }
 0x41c   : > { %2807 = vrot.lane.b32.xlu0 %v7850_v14, %s7907_s30 }
 0x41e   : > { %2805 = vrot.lane.b32.xlu1 %v7851_v23, %s7907_s30 }
 0x420   : > { %2811 = vrot.lane.b32.xlu0 %v7852_v60, %s7907_s30 }
 0x422   : > { %2809 = vrot.lane.b32.xlu1 %v7853_v24, %s7907_s30 }
 0x424   : > { %2815 = vrot.lane.b32.xlu0 %v9152_v27, %s7907_s30 }
 0x426   : > { %2813 = vrot.lane.b32.xlu1 %v7855_v57, %s7907_s30 }
 0x428   : > { %2819 = vrot.lane.b32.xlu0 %v9163_v21, %s7907_s30 }
 0x42a   : > { %2817 = vrot.lane.b32.xlu1 %v9170_v62, %s7907_s30 }
 0x42c   : > { %3179 = vrot.lane.b32.xlu0 %v7843_v56, %s7908_s26 }
 0x42e   : > { %2821 = vrot.lane.b32.xlu1 %v9178_v22, %s7907_s30 }
 0x430   : > { %3183 = vrot.lane.b32.xlu0 %v7844_v19, %s7908_s26 }
 0x432   : > { %3181 = vrot.lane.b32.xlu1 %v7845_v12, %s7908_s26 }
 0x434   : > { %3187 = vrot.lane.b32.xlu0 %v7846_v53, %s7908_s26 }
 0x436   : > { %3185 = vrot.lane.b32.xlu1 %v7847_v59, %s7908_s26 }
 0x438   : > { %3191 = vrot.lane.b32.xlu0 %v7848_v0, %s7908_s26 }
 0x43a   : > { %3189 = vrot.lane.b32.xlu1 %v7849_v3, %s7908_s26 }
 0x43c   : > { %3195 = vrot.lane.b32.xlu0 %v7850_v14, %s7908_s26 }
 0x43e   : > { %3193 = vrot.lane.b32.xlu1 %v7851_v23, %s7908_s26 }
 0x440   : > { %3199 = vrot.lane.b32.xlu0 %v7852_v60, %s7908_s26 }
 0x442   : > { %3197 = vrot.lane.b32.xlu1 %v7853_v24, %s7908_s26 }
 0x444   : > { %3567 = vrot.lane.b32.xlu0 %v7843_v56, %s7909_s29 }
 0x446   : > { %3201 = vrot.lane.b32.xlu1 %v7855_v57, %s7908_s26 }
 0x447   : > { %v9194_v8 = vpop.permute.xlu0 %2533 }
 0x448   : > { %12111 = vst [vmem:[#allocation157_spill] sm:$0xff] %v9194_v8  ;;  %3571 = vrot.lane.b32.xlu0 %v7844_v19, %s7909_s29 }
 0x44a   : > { %3569 = vrot.lane.b32.xlu1 %v7845_v12, %s7909_s29 }
 0x44b   : > { %v9198_v55 = vpop.permute.xlu0 %2543 }
 0x44c   : > { %12112 = vst [vmem:[#allocation158_spill] sm:$0xff] %v9198_v55  ;;  %3575 = vrot.lane.b32.xlu0 %v7846_v53, %s7909_s29 }
 0x44d   : > { %v9201_v1 = vpop.permute.xlu1 %2538 }
 0x44e   : > { %12113 = vst [vmem:[#allocation159_spill] sm:$0xff] %v9201_v1  ;;  %3573 = vrot.lane.b32.xlu1 %v7847_v59, %s7909_s29 }
 0x44f   : > { %v9204_v17 = vpop.permute.xlu0 %2553 }
 0x450   : > { %12114 = vst [vmem:[#allocation160_spill] sm:$0xff] %v9204_v17  ;;  %3579 = vrot.lane.b32.xlu0 %v7848_v0, %s7909_s29  ;;  %v7859_v0 = vld [vmem:[%s11934_s1 + $0x80] sm:$0xff] }
 0x451   : > { %v9207_v56 = vpop.permute.xlu1 %2548 }
 0x452   : > { %12115 = vst [vmem:[#allocation161_spill] sm:$0xff] %v9207_v56  ;;  %3577 = vrot.lane.b32.xlu1 %v7849_v3, %s7909_s29 }
 0x453   : > { %v9210_v8 = vpop.permute.xlu0 %2563 }
 0x454   : > { %12116 = vst [vmem:[#allocation162_spill] sm:$0xff] %v9210_v8  ;;  %3583 = vrot.lane.b32.xlu0 %v7850_v14, %s7909_s29 }
 0x455   : > { %v9213_v19 = vpop.permute.xlu1 %2558 }
 0x456   : > { %12117 = vst [vmem:[#allocation163_spill] sm:$0xff] %v9213_v19  ;;  %3581 = vrot.lane.b32.xlu1 %v7851_v23, %s7909_s29  ;;  %v7860_v23 = vld [vmem:[%s11934_s1 + $0x90] sm:$0xff] }
 0x457   : > { %v9216_v12 = vpop.permute.xlu0 %2573 }
 0x458   : > { %12118 = vst [vmem:[#allocation164_spill] sm:$0xff] %v9216_v12  ;;  %3587 = vrot.lane.b32.xlu0 %v7852_v60, %s7909_s29 }
 0x459   : > { %v9219_v53 = vpop.permute.xlu1 %2568 }
 0x45a   : > { %12119 = vst [vmem:[#allocation165_spill] sm:$0xff] %v9219_v53  ;;  %3585 = vrot.lane.b32.xlu1 %v7853_v24, %s7909_s29 }
 0x45b   : > { %v9222_v59 = vpop.permute.xlu0 %2583 }
 0x45c   : > { %12120 = vst [vmem:[#allocation166_spill] sm:$0xff] %v9222_v59  ;;  %2823 = vrot.lane.b32.xlu0 %v7859_v0, %s7907_s30 }
 0x45d   : > { %v9228_v3 = vpop.permute.xlu1 %2578 }
 0x45e   : > { %12121 = vst [vmem:[#allocation167_spill] sm:$0xff] %v9228_v3  ;;  %3589 = vrot.lane.b32.xlu1 %v7855_v57, %s7909_s29 }
 0x45f   : > { %v9231_v14 = vpop.permute.xlu0 %2593 }
 0x460   : > { %12122 = vst [vmem:[#allocation168_spill] sm:$0xff] %v9231_v14  ;;  %2827 = vrot.lane.b32.xlu0 %v7860_v23, %s7907_s30 }
 0x461   : > { %v9237_v60 = vpop.permute.xlu1 %2588 }
 0x462   : > { %12123 = vst [vmem:[#allocation169_spill] sm:$0xff] %v9237_v60  ;;  %2825 = vrot.lane.b32.xlu1 %v8782_v18, %s7907_s30 }
 0x463   : > { %v9241_v24 = vpop.permute.xlu0 %2603 }
 0x464   : > { %12124 = vst [vmem:[#allocation170_spill] sm:$0xff] %v9241_v24  ;;  %3203 = vrot.lane.b32.xlu0 %v9152_v27, %s7908_s26 }
 0x465   : > { %v9245_v3 = vpop.permute.xlu1 %2598 }
 0x466   : > { %12125 = vst [vmem:[#allocation171_spill] sm:$0xff] %v9245_v3  ;;  %2829 = vrot.lane.b32.xlu1 %v8796_v6, %s7907_s30 }
 0x467   : > { %v9249_v57 = vpop.permute.xlu0 %2613 }
 0x468   : > { %12126 = vst [vmem:[#allocation172_spill] sm:$0xff] %v9249_v57  ;;  %3207 = vrot.lane.b32.xlu0 %v9163_v21, %s7908_s26 }
 0x469   : > { %v9253_v14 = vpop.permute.xlu1 %2608 }
 0x46a   : > { %12127 = vst [vmem:[#allocation173_spill] sm:$0xff] %v9253_v14  ;;  %3205 = vrot.lane.b32.xlu1 %v9170_v62, %s7908_s26 }
 0x46b   : > { %v9257_v60 = vpop.permute.xlu0 %2623 }
 0x46c   : > { %12128 = vst [vmem:[#allocation174_spill] sm:$0xff] %v9257_v60  ;;  %3211 = vrot.lane.b32.xlu0 %v7859_v0, %s7908_s26 }
 0x46d   : > { %v9260_v24 = vpop.permute.xlu1 %2618 }
 0x46e   : > { %12129 = vst [vmem:[#allocation175_spill] sm:$0xff] %v9260_v24  ;;  %3209 = vrot.lane.b32.xlu1 %v9178_v22, %s7908_s26 }
 0x46f   : > { %v9264_v3 = vpop.permute.xlu0 %2633 }
 0x470   : > { %12130 = vst [vmem:[#allocation176_spill] sm:$0xff] %v9264_v3  ;;  %3215 = vrot.lane.b32.xlu0 %v7860_v23, %s7908_s26 }
 0x471   : > { %v9267_v57 = vpop.permute.xlu1 %2628 }
 0x472   : > { %12131 = vst [vmem:[#allocation177_spill] sm:$0xff] %v9267_v57  ;;  %3213 = vrot.lane.b32.xlu1 %v8782_v18, %s7908_s26 }
 0x473   : > { %v9271_v14 = vpop.permute.xlu0 %2643 }
 0x474   : > { %12132 = vst [vmem:[#allocation178_spill] sm:$0xff] %v9271_v14  ;;  %3591 = vrot.lane.b32.xlu0 %v9152_v27, %s7909_s29 }
 0x475   : > { %v9275_v60 = vpop.permute.xlu1 %2638 }
 0x476   : > { %12133 = vst [vmem:[#allocation179_spill] sm:$0xff] %v9275_v60  ;;  %3217 = vrot.lane.b32.xlu1 %v8796_v6, %s7908_s26 }
 0x477   : > { %v9279_v24 = vpop.permute.xlu0 %2653 }
 0x478   : > { %12134 = vst [vmem:[#allocation180_spill] sm:$0xff] %v9279_v24  ;;  %3595 = vrot.lane.b32.xlu0 %v9163_v21, %s7909_s29 }
 0x479   : > { %v9283_v3 = vpop.permute.xlu1 %2648 }
 0x47a   : > { %12135 = vst [vmem:[#allocation181_spill] sm:$0xff] %v9283_v3  ;;  %3593 = vrot.lane.b32.xlu1 %v9170_v62, %s7909_s29 }
 0x47b   : > { %v9287_v57 = vpop.permute.xlu0 %2663 }
 0x47c   : > { %12136 = vst [vmem:[#allocation182_spill] sm:$0xff] %v9287_v57  ;;  %3599 = vrot.lane.b32.xlu0 %v7859_v0, %s7909_s29 }
 0x47d   : > { %v9290_v27 = vpop.permute.xlu1 %2658 }
 0x47e   : > { %12137 = vst [vmem:[#allocation183_spill] sm:$0xff] %v9290_v27  ;;  %3597 = vrot.lane.b32.xlu1 %v9178_v22, %s7909_s29 }
 0x47f   : > { %v9294_v60 = vpop.permute.xlu0 %2673 }
 0x480   : > { %12138 = vst [vmem:[#allocation184_spill] sm:$0xff] %v9294_v60  ;;  %3603 = vrot.lane.b32.xlu0 %v7860_v23, %s7909_s29 }
 0x481   : > { %v9297_v24 = vpop.permute.xlu1 %2668 }
 0x482   : > { %12139 = vst [vmem:[#allocation185_spill] sm:$0xff] %v9297_v24  ;;  %3601 = vrot.lane.b32.xlu1 %v8782_v18, %s7909_s29 }
 0x483   : > { %v9301_v21 = vpop.permute.xlu0 %2683 }
 0x484   : > { %12140 = vst [vmem:[#allocation186_spill] sm:$0xff] %v9301_v21  ;;  %2831 = vrot.lane.b32.xlu0 %v8789_v15, %s7907_s30 }
 0x485   : > { %v9305_v62 = vpop.permute.xlu1 %2678 }
 0x486   : > { %12141 = vst [vmem:[#allocation187_spill] sm:$0xff] %v9305_v62  ;;  %3605 = vrot.lane.b32.xlu1 %v8796_v6, %s7909_s29 }
 0x487   : > { %v9309_v22 = vpop.permute.xlu0 %2791 }
 0x488   : > { %2835 = vrot.lane.b32.xlu0 %v8803_v20, %s7907_s30  ;;  %v2887_v51 = vmul.f32 %v9309_v22, %v2759_v2  ;;  %v2763_v2 = vld [vmem:[#allocation2 + $0x4f] sm:$0xff] }
 0x489   : > { %v9313_v0 = vpop.permute.xlu1 %2688 }
 0x48a   : > { %12142 = vst [vmem:[#allocation188_spill] sm:$0xff] %v9313_v0  ;;  %2833 = vrot.lane.b32.xlu1 %v8810_v33, %s7907_s30 }
 0x48b   : > { %v9317_v18 = vpop.permute.xlu0 %2795 }
 0x48c   : > { %2839 = vrot.lane.b32.xlu0 %v8817_v37, %s7907_s30 }
 0x48d   : > { %v9321_v23 = vpop.permute.xlu1 %2793 }
 0x48e   : > { %2837 = vrot.lane.b32.xlu1 %v8824_v26, %s7907_s30 }
 0x48f   : > { %v9325_v6 = vpop.permute.xlu0 %2799 }
 0x490   : > { %2843 = vrot.lane.b32.xlu0 %v8831_v47, %s7907_s30 }
 0x491   : > { %v9329_v62 = vpop.permute.xlu1 %2797 }
 0x492   : > { %2841 = vrot.lane.b32.xlu1 %v8838_v30, %s7907_s30 }
 0x493   : > { %v9333_v0 = vpop.permute.xlu0 %2803 }
 0x494   : > { %3219 = vrot.lane.b32.xlu0 %v8789_v15, %s7908_s26  ;;  %v2893_v44 = vmul.f32 %v9333_v0, %v2765_v48  ;;  %v2768_v48 = vld [vmem:[#allocation2 + $0x77] sm:$0xff] }
 0x495   : > { %v9337_v21 = vpop.permute.xlu1 %2801 }
 0x496   : > { %2845 = vrot.lane.b32.xlu1 %v8852_v54, %s7907_s30 }
 0x497   : > { %v9341_v24 = vpop.permute.xlu0 %2807 }
 0x498   : > { %3223 = vrot.lane.b32.xlu0 %v8803_v20, %s7908_s26 }
 0x499   : > { %v9345_v60 = vpop.permute.xlu1 %2805 }
 0x49a   : > { %3221 = vrot.lane.b32.xlu1 %v8810_v33, %s7908_s26 }
 0x49b   : > { %v9349_v27 = vpop.permute.xlu0 %2811 }
 0x49c   : > { %3227 = vrot.lane.b32.xlu0 %v8817_v37, %s7908_s26 }
 0x49d   : > { %v9353_v57 = vpop.permute.xlu1 %2809 }
 0x49e   : > { %3225 = vrot.lane.b32.xlu1 %v8824_v26, %s7908_s26 }
 0x49f   : > { %v9357_v3 = vpop.permute.xlu0 %2815 }
 0x4a0   : > { %3231 = vrot.lane.b32.xlu0 %v8831_v47, %s7908_s26 }
 0x4a1   : > { %v9361_v14 = vpop.permute.xlu1 %2813 }
 0x4a2   : > { %3229 = vrot.lane.b32.xlu1 %v8838_v30, %s7908_s26 }
 0x4a3   : > { %v9365_v59 = vpop.permute.xlu0 %2819 }
 0x4a4   : > { %12143 = vst [vmem:[#allocation189_spill] sm:$0xff] %v9365_v59  ;;  %3607 = vrot.lane.b32.xlu0 %v8789_v15, %s7909_s29 }
 0x4a5   : > { %v9369_v53 = vpop.permute.xlu1 %2817 }
 0x4a6   : > { %12144 = vst [vmem:[#allocation190_spill] sm:$0xff] %v9369_v53  ;;  %3233 = vrot.lane.b32.xlu1 %v8852_v54, %s7908_s26 }
 0x4a7   : > { %v9373_v12 = vpop.permute.xlu0 %3179 }
 0x4a8   : > { %3611 = vrot.lane.b32.xlu0 %v8803_v20, %s7909_s29 }
 0x4a9   : > { %v9377_v19 = vpop.permute.xlu1 %2821 }
 0x4aa   : > { %12145 = vst [vmem:[#allocation191_spill] sm:$0xff] %v9377_v19  ;;  %3609 = vrot.lane.b32.xlu1 %v8810_v33, %s7909_s29  ;;  %v2760_v19 = vld [vmem:[#allocation2 + $0x37] sm:$0xff] }
 0x4ab   : > { %v9381_v8 = vpop.permute.xlu0 %3183 }
 0x4ac   : > { %3615 = vrot.lane.b32.xlu0 %v8817_v37, %s7909_s29 }
 0x4ad   : > { %v9385_v15 = vpop.permute.xlu1 %3181 }
 0x4ae   : > { %3613 = vrot.lane.b32.xlu1 %v8824_v26, %s7909_s29 }
 0x4af   : > { %v9389_v56 = vpop.permute.xlu0 %3187 }
 0x4b0   : > { %3619 = vrot.lane.b32.xlu0 %v8831_v47, %s7909_s29 }
 0x4b1   : > { %v9393_v20 = vpop.permute.xlu1 %3185 }
 0x4b2   : > { %3617 = vrot.lane.b32.xlu1 %v8838_v30, %s7909_s29 }
 0x4b3   : > { %v9397_v33 = vpop.permute.xlu0 %3191 }
 0x4b4   : > { %2847 = vrot.lane.b32.xlu0 %v8845_v50, %s7907_s30 }
 0x4b5   : > { %v9401_v37 = vpop.permute.xlu1 %3189 }
 0x4b6   : > { %3621 = vrot.lane.b32.xlu1 %v8852_v54, %s7909_s29 }
 0x4b7   : > { %v9405_v26 = vpop.permute.xlu0 %3195 }
 0x4b8   : > { %2851 = vrot.lane.b32.xlu0 %v8861_v58, %s7907_s30 }
 0x4b9   : > { %v9409_v47 = vpop.permute.xlu1 %3193 }
 0x4ba   : > { %2849 = vrot.lane.b32.xlu1 %v8868_v61, %s7907_s30 }
 0x4bb   : > { %v9413_v30 = vpop.permute.xlu0 %3199 }
 0x4bc   : > { %3235 = vrot.lane.b32.xlu0 %v8845_v50, %s7908_s26  ;;  %v7861_v50 = vld [vmem:[%s11934_s1 + $0xe0] sm:$0xff] }
 0x4bd   : > { %v9417_v17 = vpop.permute.xlu1 %3197 }
 0x4be   : > { %2853 = vrot.lane.b32.xlu1 %v8879_v9, %s7907_s30 }
 0x4bf   : > { %v9421_v54 = vpop.permute.xlu0 %3567 }
 0x4c0   : > { %3239 = vrot.lane.b32.xlu0 %v8861_v58, %s7908_s26 }
 0x4c1   : > { %v9425_v1 = vpop.permute.xlu1 %3201 }
 0x4c2   : > { %3237 = vrot.lane.b32.xlu1 %v8868_v61, %s7908_s26  ;;  %v7862_v61 = vld [vmem:[%s11934_s1 + $0xf0] sm:$0xff] }
 0x4c3   : > { %v9429_v55 = vpop.permute.xlu0 %3571 }
 0x4c4   : > { %3623 = vrot.lane.b32.xlu0 %v7861_v50, %s7909_s29  ;;  %v7863_v50 = vld [vmem:[%s11934_s1 + $0xe8] sm:$0xff] }
 0x4c5   : > { %v9435_v16 = vpop.permute.xlu1 %3569 }
 0x4c6   : > { %3241 = vrot.lane.b32.xlu1 %v8879_v9, %s7908_s26  ;;  %v2761_v9 = vld [vmem:[#allocation2 + $0x3f] sm:$0xff]  ;;  %s7919_s26 = smov 64  }
 0x4c7   : > { %v9439_v58 = vpop.permute.xlu0 %3575  ;;  %v2889_v59 = vmul.f32 %v9317_v18, %v2761_v9  ;;  %v2890_v9 = vmul.f32 %v9329_v62, %v2762_v5  ;;  %v2769_v5 = vld [vmem:[#allocation2 + $0x7f] sm:$0xff] }
 0x4c8   : > { %3627 = vrot.lane.b32.xlu0 %v7862_v61, %s7909_s29  ;;  %v7864_v61 = vld [vmem:[%s11934_s1 + $0xf8] sm:$0xff] }
 0x4c9   : > { %v9445_v63 = vpop.permute.xlu1 %3573 }
 0x4ca   : > { %3625 = vrot.lane.b32.xlu1 %v7863_v50, %s7909_s29  ;;  %v2888_v50 = vmul.f32 %v9321_v23, %v2760_v19  ;;  %v2767_v19 = vld [vmem:[#allocation2 + $0x6f] sm:$0xff]  ;;  %v2892_v23 = vmul.f32 %v9337_v21, %v2764_v45  ;;  %v2896_v21 = vmul.f32 %v9353_v57, %v2768_v48 }
 0x4cb   : > { %v9452_v11 = vpop.permute.xlu0 %3579  ;;  %v3147_v45 = vld [vmem:[#allocation2 + $0x30] sm:$0xff] }
 0x4cc   : > { %2921 = vperm.xlu0 %7715, %v2887_v51   ;;  %v2891_v51 = vmul.f32 %v9325_v6, %v2763_v2  ;;  %v2766_v6 = vld [vmem:[#allocation2 + $0x67] sm:$0xff]  ;;  %v3151_v57 = vld [vmem:[#allocation2 + $0x50] sm:$0xff] }
 0x4cd   : > { %v9454_v53 = vpop.permute.xlu1 %3577 }
 0x4ce   : > { %3629 = vrot.lane.b32.xlu1 %v7864_v61, %s7909_s29 }
 0x4cf   : > { %v9461_v22 = vpop.permute.xlu0 %3583 }
 0x4d0   : > { %2931 = vperm.xlu0 %7715, %v2889_v59  }
 0x4d1   : > { %v9464_v49 = vpop.permute.xlu1 %3581 }
 0x4d2   : > { %2926 = vperm.xlu1 %7716, %v2888_v50   ;;  %v2895_v50 = vmul.f32 %v9341_v24, %v2767_v19  ;;  %v2770_v24 = vld [vmem:[#allocation2 + $0x87] sm:$0xff] }
 0x4d3   : > { %v9467_v18 = vpop.permute.xlu0 %3587 }
 0x4d4   : > { %2941 = vperm.xlu0 %7715, %v2891_v51   ;;  %v2894_v51 = vmul.f32 %v9345_v60, %v2766_v6  ;;  %v3149_v60 = vld [vmem:[#allocation2 + $0x40] sm:$0xff] }
 0x4d5   : > { %v9470_v61 = vpop.permute.xlu1 %3585 }
 0x4d6   : > { %2936 = vperm.xlu1 %7716, %v2890_v9   ;;  %v2897_v9 = vmul.f32 %v9349_v27, %v2769_v5  ;;  %v3148_v27 = vld [vmem:[#allocation2 + $0x38] sm:$0xff] }
 0x4d7   : > { %v9473_v59 = vpop.permute.xlu0 %2823 }
 0x4d8   : > { %2951 = vperm.xlu0 %7715, %v2893_v44  }
 0x4d9   : > { %v9476_v2 = vpop.permute.xlu1 %3589 }
 0x4da   : > { %2946 = vperm.xlu1 %7716, %v2892_v23   ;;  %v3275_v23 = vmul.f32 %v9373_v12, %v3147_v45  ;;  %v3150_v12 = vld [vmem:[#allocation2 + $0x48] sm:$0xff] }
 0x4db   : > { %v9479_v62 = vpop.permute.xlu0 %2827 }
 0x4dc   : > { %2961 = vperm.xlu0 %7715, %v2895_v50   ;;  %v2898_v50 = vmul.f32 %v9361_v14, %v2770_v24  ;;  %v3153_v14 = vld [vmem:[#allocation2 + $0x60] sm:$0xff] }
 0x4dd   : > { %v9482_v0 = vpop.permute.xlu1 %2825 }
 0x4de   : > { %2956 = vperm.xlu1 %7716, %v2894_v51   ;;  %v3277_v51 = vmul.f32 %v9381_v8, %v3149_v60  ;;  %v3152_v8 = vld [vmem:[#allocation2 + $0x58] sm:$0xff] }
 0x4df   : > { %v9485_v44 = vpop.permute.xlu0 %3203 }
 0x4e0   : > { %2971 = vperm.xlu0 %7715, %v2897_v9   ;;  %v3276_v9 = vmul.f32 %v9385_v15, %v3148_v27  ;;  %v3155_v15 = vld [vmem:[#allocation2 + $0x70] sm:$0xff] }
 0x4e1   : > { %v9488_v19 = vpop.permute.xlu1 %2829 }
 0x4e2   : > { %2966 = vperm.xlu1 %7716, %v2896_v21   ;;  %v3279_v21 = vmul.f32 %v9389_v56, %v3151_v57  ;;  %v3154_v56 = vld [vmem:[#allocation2 + $0x68] sm:$0xff] }
 0x4e3   : > { %v9491_v6 = vpop.permute.xlu0 %3207 }
 0x4e4   : > { %3309 = vperm.xlu0 %7715, %v3275_v23   ;;  %v3278_v23 = vmul.f32 %v9393_v20, %v3150_v12  ;;  %v3157_v20 = vld [vmem:[#allocation2 + $0x80] sm:$0xff] }
 0x4e5   : > { %v9494_v5 = vpop.permute.xlu1 %3205 }
 0x4e6   : > { %2976 = vperm.xlu1 %7716, %v2898_v50   ;;  %v3281_v50 = vmul.f32 %v9397_v33, %v3153_v14  ;;  %v3156_v33 = vld [vmem:[#allocation2 + $0x78] sm:$0xff] }
 0x4e7   : > { %v9497_v48 = vpop.permute.xlu0 %3211 }
 0x4e8   : > { %3319 = vperm.xlu0 %7715, %v3277_v51   ;;  %v3280_v51 = vmul.f32 %v9401_v37, %v3152_v8  ;;  %v3284_v8 = vmul.f32 %v9417_v17, %v3156_v33 }
 0x4e9   : > { %v9500_v45 = vpop.permute.xlu1 %3209 }
 0x4ea   : > { %3314 = vperm.xlu1 %7716, %v3276_v9   ;;  %v3283_v9 = vmul.f32 %v9405_v26, %v3155_v15  ;;  %v3663_v15 = vmul.f32 %v9421_v54, %v9069_v4  ;;  %v3667_v54 = vmul.f32 %v9439_v58, %v9077_v25  ;;  %v3668_v25 = vmul.f32 %v9454_v53, %v9086_v10 }
 0x4eb   : > { %v9503_v24 = vpop.permute.xlu0 %3215 }
 0x4ec   : > { %3329 = vperm.xlu0 %7715, %v3279_v21   ;;  %v3282_v21 = vmul.f32 %v9409_v47, %v3154_v56 }
 0x4ed   : > { %v9506_v60 = vpop.permute.xlu1 %3213 }
 0x4ee   : > { %12146 = vst [vmem:[#allocation192_spill] sm:$0xff] %v9506_v60  ;;  %3324 = vperm.xlu1 %7716, %v3278_v23   ;;  %v3285_v23 = vmul.f32 %v9413_v30, %v3157_v20  ;;  %v3665_v30 = vmul.f32 %v9429_v55, %v9072_v41  ;;  %v719_v20 = vlaneseq  ;;  %v12209_v60 = vld [vmem:[#allocation37_spill] sm:$0xff] }
 0x4ef   : > { %v9509_v27 = vpop.permute.xlu0 %3591 }
 0x4f0   : > { %12147 = vst [vmem:[#allocation193_spill] sm:$0xff] %v9509_v27  ;;  %3339 = vperm.xlu0 %7715, %v3281_v50   ;;  %v3158_v50 = vld [vmem:[#allocation2 + $0x88] sm:$0xff]  ;;  %v9547_v41 = vshrl.u32 %v719_v20, 7  ;;  %v12208_v27 = vld [vmem:[#allocation36_spill] sm:$0xff] }
 0x4f1   : > { %v9512_v57 = vpop.permute.xlu1 %3217 }
 0x4f2   : > { %12148 = vst [vmem:[#allocation194_spill] sm:$0xff] %v9512_v57  ;;  %3334 = vperm.xlu1 %7716, %v3280_v51   ;;  %v3286_v51 = vmul.f32 %v9425_v1, %v3158_v50  ;;  %v721_v58 = vsub.s32 0, %v9547_v41  ;;  %v2771_v50 = vld [vmem:[#allocation2 + $0x8f] sm:$0xff] }
 0x4f3   : > { %v9515_v12 = vpop.permute.xlu0 %3595 }
 0x4f4   : > { %12149 = vst [vmem:[#allocation195_spill] sm:$0xff] %v9515_v12  ;;  %3349 = vperm.xlu0 %7715, %v3283_v9   ;;  %v3664_v9 = vmul.f32 %v9435_v16, %v9074_v42  ;;  %v3669_v16 = vmul.f32 %v9452_v11, %v9083_v52  ;;  %v3670_v52 = vmul.f32 %v9464_v49, %v9092_v7 }
 0x4f5   : > { %v9518_v14 = vpop.permute.xlu1 %3593  ;;  %v3672_v49 = vmul.f32 %v9470_v61, %v9098_v35  ;;  %v12165_v61 = vld [vmem:[#allocation5_spill] sm:$0xff] }
 0x4f6   : > { %12150 = vst [vmem:[#allocation196_spill] sm:$0xff] %v9518_v14  ;;  %3344 = vperm.xlu1 %7716, %v3282_v21   ;;  %v3666_v21 = vmul.f32 %v9445_v63, %v9080_v39  ;;  %v9563_v63 = vld [vmem:[%s11936_s3] sm:$0xff]  ;;  %v3671_v39 = vmul.f32 %v9461_v22, %v9089_v13  ;;  %v12201_v14 = vld [vmem:[#allocation32_spill] sm:$0xff] }
 0x4f7   : > { %v9521_v37 = vpop.permute.xlu0 %3599  ;;  %v9572_v10 = vrot.slane %v9563_v63, %v721_v58 }
 0x4f8   : > { %12151 = vst [vmem:[#allocation197_spill] sm:$0xff] %v9521_v37  ;;  %3359 = vperm.xlu0 %7715, %v3285_v23   ;;  %v3673_v23 = vmul.f32 %v9467_v18, %v9095_v46 }
 0x4f9   : > { %v9524_v26 = vpop.permute.xlu1 %3597  ;;  %v723_v22 = vmul.f32 %v9572_v10, %v8323_v28  ;;  %v9587_v7 = vmul.f32 %v9572_v10, %v8329_v29  ;;  %v9591_v46 = vmul.f32 %v9572_v10, %v8331_v31  ;;  %v9595_v18 = vmul.f32 %v9572_v10, %v8335_v32 }
 0x4fa   : > { %12152 = vst [vmem:[#allocation198_spill] sm:$0xff] %v9524_v26  ;;  %3354 = vperm.xlu1 %7716, %v3284_v8   ;;  %v1141_v8 = vsub.s32 1, %v9547_v41  ;;  %v9605_v35 = vmul.f32 %v9572_v10, %v8339_v36  ;;  %v9609_v29 = vmul.f32 %v9572_v10, %v8341_v38  ;;  %v9613_v31 = vmul.f32 %v9572_v10, %v8343_v40  ;;  %v12166_v36 = vld [vmem:[#allocation6_spill] sm:$0xff]  ;;  %v2773_v40 = vld [vmem:[#allocation2 + $0x9f] sm:$0xff] }
 0x4fb   : > { %v9528_v47 = vpop.permute.xlu0 %3603  ;;  %v2899_v32 = vmul.f32 %v9357_v3, %v2771_v50  ;;  %v12168_v3 = vld [vmem:[#allocation7_spill] sm:$0xff]  ;;  %v12174_v50 = vld [vmem:[#allocation12_spill] sm:$0xff] }
 0x4fc   : > { %12153 = vst [vmem:[#allocation199_spill] sm:$0xff] %v9528_v47  ;;  %3697 = vperm.xlu0 %7715, %v3663_v15   ;;  %v9599_v15 = vmul.f32 %v9572_v10, %v8337_v34  ;;  %v9618_v34 = vmul.f32 %v9572_v10, %v8345_v43  ;;  %v9629_v38 = vrot.slane %v9563_v63, %v1141_v8  ;;  %v12169_v43 = vld [vmem:[#allocation8_spill] sm:$0xff]  ;;  %v12198_v47 = vld [vmem:[#allocation27_spill] sm:$0xff] }
 0x4fd   : > { %v9531_v56 = vpop.permute.xlu1 %3601  ;;  %v9635_v20 = vmul.f32 %v9572_v10, %v12168_v3  ;;  %v2772_v3 = vld [vmem:[#allocation2 + $0x97] sm:$0xff]  ;;  %v9740_v26 = vmul.f32 %v9572_v10, %v12198_v47 }
 0x4fe   : > { %12154 = vst [vmem:[#allocation200_spill] sm:$0xff] %v9531_v56  ;;  %3364 = vperm.xlu1 %7716, %v3286_v51   ;;  %v9622_v51 = vmul.f32 %v9572_v10, %v12165_v61  ;;  %v12175_v61 = vld [vmem:[#allocation13_spill] sm:$0xff]  ;;  %v1146_v12 = vmul.f32 %v9629_v38, %v12201_v14  ;;  %v1150_v14 = vmul.f32 %v9629_v38, %v12208_v27 }
 0x4ff   : > { %v9535_v17 = vpop.permute.xlu0 %2831 }
 0x500   : > { %12155 = vst [vmem:[#allocation201_spill] sm:$0xff] %v9535_v17  ;;  %3707 = vperm.xlu0 %7715, %v3665_v30   ;;  %v9626_v30 = vmul.f32 %v9572_v10, %v12166_v36  ;;  %v9661_v36 = vmul.f32 %v9572_v10, %v12175_v61  ;;  %v12181_v61 = vld [vmem:[#allocation17_spill] sm:$0xff] }
 0x501   : > { %v9539_v4 = vpop.permute.xlu1 %3605 }
 0x502   : > { %12156 = vst [vmem:[#allocation202_spill] sm:$0xff] %v9539_v4  ;;  %3702 = vperm.xlu1 %7716, %v3664_v9  }
 0x503   : > { %v9543_v1 = vpop.permute.xlu0 %2835 }
 0x504   : > { %12157 = vst [vmem:[#allocation203_spill] sm:$0xff] %v9543_v1  ;;  %3717 = vperm.xlu0 %7715, %v3667_v54   ;;  %v9639_v54 = vmul.f32 %v9572_v10, %v12169_v43  ;;  %v12190_v1 = vld [vmem:[#allocation22_spill] sm:$0xff] }
 0x505   : > { %v9549_v55 = vpop.permute.xlu1 %2833 }
 0x506   : > { %12158 = vst [vmem:[#allocation204_spill] sm:$0xff] %v9549_v55  ;;  %3712 = vperm.xlu1 %7716, %v3666_v21   ;;  %v12170_v21 = vld [vmem:[#allocation9_spill] sm:$0xff] }
 0x507   : > { %v9553_v42 = vpop.permute.xlu0 %2839  ;;  %v12189_v55 = vld [vmem:[#allocation21_spill] sm:$0xff] }
 0x508   : > { %12159 = vst [vmem:[#allocation205_spill] sm:$0xff] %v9553_v42  ;;  %3727 = vperm.xlu0 %7715, %v3669_v16   ;;  %v9643_v16 = vmul.f32 %v9572_v10, %v12170_v21  ;;  %v12178_v21 = vld [vmem:[#allocation15_spill] sm:$0xff]  ;;  %v12188_v42 = vld [vmem:[#allocation190_spill] sm:$0xff] }
 0x509   : > { %v9558_v33 = vpop.permute.xlu1 %2837 }
 0x50a   : > { %12160 = vst [vmem:[#allocation206_spill] sm:$0xff] %v9558_v33  ;;  %3722 = vperm.xlu1 %7716, %v3668_v25   ;;  %v12171_v25 = vld [vmem:[#allocation156_spill] sm:$0xff] }
 0x50b   : > { %v9567_v11 = vpop.permute.xlu0 %2843  ;;  %v3674_v58 = vmul.f32 %v9476_v2, %v12171_v25  ;;  %v12177_v2 = vld [vmem:[#allocation14_spill] sm:$0xff]  ;;  %v9671_v25 = vmul.f32 %v9572_v10, %v12178_v21  ;;  %v12184_v21 = vld [vmem:[#allocation28_spill] sm:$0xff] }
 0x50c   : > { %12161 = vst [vmem:[#allocation207_spill] sm:$0xff] %v9567_v11  ;;  %3737 = vperm.xlu0 %7715, %v3671_v39   ;;  %v12172_v39 = vld [vmem:[#allocation10_spill] sm:$0xff]  ;;  %v1143_v11 = vmul.f32 %v9629_v38, %v12184_v21  ;;  %v9707_v21 = vmul.f32 %v9572_v10, %v12190_v1  ;;  %v12195_v1 = vld [vmem:[#allocation25_spill] sm:$0xff] }
 0x50d   : > { %v9574_v53 = vpop.permute.xlu1 %2841 }
 0x50e   : > { %12162 = vst [vmem:[#allocation208_spill] sm:$0xff] %v9574_v53  ;;  %3732 = vperm.xlu1 %7716, %v3670_v52   ;;  %v9649_v52 = vmul.f32 %v9572_v10, %v12172_v39  ;;  %v12179_v39 = vld [vmem:[#allocation16_spill] sm:$0xff]  ;;  %v9742_v37 = vadd.f32 %v1143_v11, %v723_v22  ;;  %v12206_v11 = vld [vmem:[#allocation191_spill] sm:$0xff] }
 0x50f   : > { %v9579_v13 = vpop.permute.xlu0 %3219  ;;  %v12207_v22 = vld [vmem:[#allocation35_spill] sm:$0xff] }
 0x510   : > { %12163 = vst [vmem:[#allocation209_spill] sm:$0xff] %v9579_v13  ;;  %3747 = vperm.xlu0 %7715, %v3673_v23   ;;  %v12173_v23 = vld [vmem:[#allocation11_spill] sm:$0xff]  ;;  %12199 = vst [vmem:[#allocation9_spill] sm:$0xff] %v9742_v37  ;;  %v12215_v37 = vld [vmem:[#allocation41_spill] sm:$0xff] }
 0x511   : > { %v9601_v28 = vpop.permute.xlu1 %2845  ;;  %v9653_v8 = vmul.f32 %v9572_v10, %v12173_v23  ;;  %v9675_v23 = vmul.f32 %v9572_v10, %v12179_v39  ;;  %v2775_v39 = vld [vmem:[#allocation2 + $0xaf] sm:$0xff] }
 0x512   : > { %12164 = vst [vmem:[#allocation210_spill] sm:$0xff] %v9601_v28  ;;  %3742 = vperm.xlu1 %7716, %v3672_v49   ;;  %v9657_v49 = vmul.f32 %v9572_v10, %v12174_v50  ;;  %v12180_v50 = vld [vmem:[#allocation189_spill] sm:$0xff]  ;;  %v9680_v28 = vmul.f32 %v9572_v10, %v12181_v61  ;;  %v2903_v56 = vmul.f32 %v9473_v59, %v2775_v39 }
 0x513   : > { %v9631_v9 = vpop.permute.xlu0 %3223  ;;  %v12204_v59 = vld [vmem:[#allocation33_spill] sm:$0xff] }
 0x514   : > { %12167 = vst [vmem:[#allocation5_spill] sm:$0xff] %v9631_v9  ;;  %2981 = vperm.xlu0 %7715, %v2899_v32   ;;  %v9667_v32 = vmul.f32 %v9572_v10, %v12177_v2  ;;  %v2901_v9 = vmul.f32 %v12180_v50, %v2773_v40  ;;  %v12183_v2 = vld [vmem:[#allocation19_spill] sm:$0xff]  ;;  %v12186_v40 = vld [vmem:[#allocation20_spill] sm:$0xff]  ;;  %v12187_v50 = vld [vmem:[#allocation29_spill] sm:$0xff]  ;;  %v1149_v39 = vmul.f32 %v9629_v38, %v12204_v59 }
 0x515   : > { %v9663_v43 = vpop.permute.xlu1 %3221  ;;  %v9688_v53 = vmul.f32 %v9572_v10, %v12183_v2  ;;  %v1145_v61 = vmul.f32 %v9629_v38, %v12187_v50  ;;  %v9703_v2 = vmul.f32 %v9572_v10, %v12189_v55  ;;  %v2774_v50 = vld [vmem:[#allocation2 + $0xa7] sm:$0xff]  ;;  %v9729_v55 = vmul.f32 %v9572_v10, %v12195_v1 }
 0x516   : > { %12176 = vst [vmem:[#allocation6_spill] sm:$0xff] %v9663_v43  ;;  %3752 = vperm.xlu1 %7716, %v3674_v58   ;;  %v12182_v43 = vld [vmem:[#allocation18_spill] sm:$0xff]  ;;  %v9696_v58 = vmul.f32 %v9572_v10, %v12186_v40  ;;  %v12192_v40 = vld [vmem:[#allocation24_spill] sm:$0xff] }
 0x517   : > { %v9684_v13 = vmul.f32 %v9572_v10, %v12182_v43  ;;  %v9692_v33 = vpop.permute.xlu0 %3227  ;;  %v2900_v43 = vmul.f32 %v12188_v42, %v2772_v3  ;;  %v9715_v17 = vmul.f32 %v9572_v10, %v12192_v40  ;;  %v12197_v40 = vld [vmem:[#allocation30_spill] sm:$0xff] }
 0x518   : > { %12185 = vst [vmem:[#allocation7_spill] sm:$0xff] %v9692_v33  ;;  %2991 = vperm.xlu0 %7715, %v2901_v9   ;;  %v12191_v33 = vld [vmem:[#allocation23_spill] sm:$0xff]  ;;  %v12194_v9 = vmov 0.0  }
 0x519   : > { %v9711_v4 = vmul.f32 %v9572_v10, %v12191_v33  ;;  %v9717_v42 = vpop.permute.xlu1 %3225  ;;  %5003 = vst.msk [vmem:[#allocation3] sm:$0xff] %vm5002_vm1, %v12194_v9  ;;  %5004 = vst.msk [vmem:[#allocation3 + $0x8] sm:$0xff] %vm5002_vm1, %v12194_v9  ;;  %v12196_v33 = vld [vmem:[#allocation26_spill] sm:$0xff] }
 0x51a   : > { %12193 = vst [vmem:[#allocation8_spill] sm:$0xff] %v9717_v42  ;;  %5005 = vst.msk [vmem:[#allocation3 + $0x50] sm:$0xff] %vm5002_vm1, %v12194_v9  ;;  %v9733_v3 = vmul.f32 %v9572_v10, %v12196_v33  ;;  %v1144_v42 = vmul.f32 %v9629_v38, %v12197_v40  ;;  %2986 = vperm.xlu1 %7716, %v2900_v43   ;;  %v2777_v33 = vld [vmem:[#allocation2 + $0xbf] sm:$0xff]  ;;  %v9751_v40 = vadd.f32 %v1145_v61, %v9591_v46  ;;  %v12205_v43 = vld [vmem:[#allocation34_spill] sm:$0xff] }
 0x51b   : > { %5006 = vst.msk [vmem:[#allocation3 + $0x58] sm:$0xff] %vm5002_vm1, %v12194_v9  ;;  %v12200_v9 = vld [vmem:[#allocation31_spill] sm:$0xff]  ;;  %v9748_v57 = vpop.permute.xlu0 %3231  ;;  %v1148_v47 = vmul.f32 %v9629_v38, %v12205_v43  ;;  %v2902_v10 = vmul.f32 %v12206_v11, %v2774_v50  ;;  %v12210_v46 = vld [vmem:[#allocation38_spill] sm:$0xff]  ;;  %v12214_v11 = vld [vmem:[#allocation40_spill] sm:$0xff]  ;;  %v2905_v27 = vmul.f32 %v9479_v62, %v2777_v33 }
 0x51c   : > { %v1147_v1 = vmul.f32 %v9629_v38, %v12200_v9  ;;  %12202 = vst [vmem:[#allocation156_spill] sm:$0xff] %v9748_v57  ;;  %12203 = vst [vmem:[#allocation10_spill] sm:$0xff] %v9751_v40  ;;  %3001 = vperm.xlu0 %7715, %v2903_v56   ;;  %v1151_v9 = vmul.f32 %v9629_v38, %v12207_v22  ;;  %v1153_v57 = vmul.f32 %v9629_v38, %v12209_v60  ;;  %v2776_v40 = vld [vmem:[#allocation2 + $0xb7] sm:$0xff] }
 0x51d   : > { %v1152_v61 = vmul.f32 %v9629_v38, %v12210_v46  ;;  %v9766_v59 = vpop.permute.xlu1 %3229  ;;  %v9769_v43 = vadd.f32 %v1144_v42, %v9587_v7  ;;  %v12213_v50 = vld [vmem:[#allocation39_spill] sm:$0xff]  ;;  %v1154_v22 = vmul.f32 %v9629_v38, %v12214_v11  ;;  %v9780_v46 = vadd.f32 %v1146_v12, %v9599_v15  ;;  %v12216_v7 = vld [vmem:[#allocation42_spill] sm:$0xff] }
 0x51e   : > { %12211 = vst [vmem:[#allocation11_spill] sm:$0xff] %v9766_v59  ;;  %v1155_v56 = vmul.f32 %v9629_v38, %v12213_v50  ;;  %2996 = vperm.xlu1 %7716, %v2902_v10   ;;  %v9777_v60 = vadd.f32 %v1147_v1, %v9595_v18  ;;  %v1157_v59 = vmul.f32 %v9629_v38, %v12215_v37  ;;  %v12217_v18 = vld [vmem:[#allocation43_spill] sm:$0xff] }
 0x51f   : > { %12212 = vst [vmem:[#allocation12_spill] sm:$0xff] %v9769_v43  ;;  %v1156_v42 = vmul.f32 %v9629_v38, %v12216_v7  ;;  %v3159_v43 = vld [vmem:[#allocation2 + $0x90] sm:$0xff]  ;;  %v9786_v50 = vpop.permute.xlu0 %3607  ;;  %v9789_v11 = vadd.f32 %v1149_v39, %v9605_v35  ;;  %v9792_v62 = vadd.f32 %v1148_v47, %v9609_v29  ;;  %v1159_v1 = vmul.f32 %v9629_v38, %v12217_v18  ;;  %v2778_v29 = vld [vmem:[#allocation2 + $0xc7] sm:$0xff] }
 0x520   : > { %v2904_v12 = vmul.f32 %v9482_v0, %v2776_v40  ;;  %3011 = vperm.xlu0 %7715, %v2905_v27   ;;  %v9798_v37 = vadd.f32 %v1151_v9, %v9613_v31  ;;  %v9801_v15 = vadd.f32 %v1150_v14, %v9618_v34  ;;  %v9804_v33 = vadd.f32 %v1153_v57, %v9622_v51  ;;  %v12218_v31 = vld [vmem:[#allocation44_spill] sm:$0xff]  ;;  %v12224_v7 = vld [vmem:[#allocation50_spill] sm:$0xff]  ;;  %v12225_v18 = vld [vmem:[#allocation51_spill] sm:$0xff] }
 0x521   : > { %v9807_v35 = vadd.f32 %v1152_v61, %v9626_v30  ;;  %v9809_v39 = vpop.permute.xlu1 %3233  ;;  %v9812_v47 = vadd.f32 %v1155_v56, %v9635_v20  ;;  %v9815_v0 = vadd.f32 %v1154_v22, %v9639_v54  ;;  %v1158_v40 = vmul.f32 %v9629_v38, %v12218_v31  ;;  %v12219_v30 = vld [vmem:[#allocation45_spill] sm:$0xff]  ;;  %v12220_v20 = vld [vmem:[#allocation46_spill] sm:$0xff] }
 0x522   : > { %v3287_v34 = vmul.f32 %v9485_v44, %v3159_v43  ;;  %3006 = vperm.xlu1 %7716, %v2904_v12   ;;  %v9821_v57 = vadd.f32 %v1157_v59, %v9643_v16  ;;  %v9824_v51 = vadd.f32 %v1156_v42, %v9649_v52  ;;  %v1161_v10 = vmul.f32 %v9629_v38, %v12219_v30  ;;  %v3161_v54 = vld [vmem:[#allocation2 + $0xa0] sm:$0xff]  ;;  %v12221_v44 = vld [vmem:[#allocation47_spill] sm:$0xff]  ;;  %v12222_v59 = vld [vmem:[#allocation48_spill] sm:$0xff] }
 0x523   : > { %v1160_v9 = vmul.f32 %v9629_v38, %v12220_v20  ;;  %v9830_v14 = vpop.permute.xlu0 %3611  ;;  %v9833_v61 = vadd.f32 %v1159_v1, %v9653_v8  ;;  %v1163_v43 = vmul.f32 %v9629_v38, %v12221_v44  ;;  %v1529_v16 = vsub.s32 2, %v9547_v41  ;;  %v12223_v22 = vld [vmem:[#allocation49_spill] sm:$0xff]  ;;  %v3160_v1 = vld [vmem:[#allocation2 + $0x98] sm:$0xff] }
 0x524   : > { %v2906_v52 = vmul.f32 %v9488_v19, %v2778_v29  ;;  %3369 = vperm.xlu0 %7715, %v3287_v34   ;;  %v1162_v56 = vmul.f32 %v9629_v38, %v12222_v59  ;;  %v1165_v27 = vmul.f32 %v9629_v38, %v12223_v22  ;;  %v1164_v42 = vmul.f32 %v9629_v38, %v12224_v7  ;;  %v12226_v19 = vld [vmem:[#allocation52_spill] sm:$0xff]  ;;  %v12227_v34 = vld [vmem:[#allocation53_spill] sm:$0xff]  ;;  %v12228_v22 = vld [vmem:[#allocation54_spill] sm:$0xff] }
 0x525   : > { %v1167_v8 = vmul.f32 %v9629_v38, %v12225_v18  ;;  %v9847_v12 = vpop.permute.xlu1 %3609  ;;  %v9850_v31 = vadd.f32 %v1158_v40, %v9657_v49  ;;  %v1166_v29 = vmul.f32 %v9629_v38, %v12226_v19  ;;  %v1169_v30 = vmul.f32 %v9629_v38, %v12227_v34  ;;  %v12229_v49 = vld [vmem:[#allocation55_spill] sm:$0xff] }
 0x526   : > { %v3289_v20 = vmul.f32 %v9491_v6, %v3161_v54  ;;  %3016 = vperm.xlu1 %7716, %v2906_v52   ;;  %v9858_v44 = vadd.f32 %v1161_v10, %v9661_v36  ;;  %v9861_v59 = vadd.f32 %v1160_v9, %v9667_v32  ;;  %v1168_v7 = vmul.f32 %v9629_v38, %v12228_v22  ;;  %v3163_v18 = vld [vmem:[#allocation2 + $0xb0] sm:$0xff]  ;;  %v12231_v6 = vld [vmem:[#allocation56_spill] sm:$0xff] }
 0x527   : > { %v1171_v40 = vmul.f32 %v9629_v38, %v12229_v49  ;;  %v9867_v19 = vpop.permute.xlu0 %3615  ;;  %v9870_v34 = vadd.f32 %v1163_v43, %v9671_v25  ;;  %v1170_v54 = vmul.f32 %v9629_v38, %v12231_v6  ;;  %v9875_v36 = vrot.slane %v9563_v63, %v1529_v16  ;;  %v3162_v43 = vld [vmem:[#allocation2 + $0xa8] sm:$0xff] }
 0x528   : > { %12230 = vst [vmem:[#allocation13_spill] sm:$0xff] %v9867_v19  ;;  %v3288_v32 = vmul.f32 %v9494_v5, %v3160_v1  ;;  %3379 = vperm.xlu0 %7715, %v3289_v20   ;;  %v9879_v10 = vadd.f32 %v1162_v56, %v9675_v23  ;;  %v9882_v9 = vadd.f32 %v1165_v27, %v9680_v28  ;;  %v12233_v23 = vld [vmem:[#allocation57_spill] sm:$0xff]  ;;  %v12234_v27 = vld [vmem:[#allocation58_spill] sm:$0xff]  ;;  %v3167_v19 = vld [vmem:[#allocation2 + $0xd0] sm:$0xff] }
 0x529   : > { %v9885_v52 = vadd.f32 %v1164_v42, %v9684_v13  ;;  %v9888_v25 = vadd.f32 %v1167_v8, %v9688_v53  ;;  %v9890_v22 = vpop.permute.xlu1 %3613  ;;  %v9893_v16 = vadd.f32 %v1166_v29, %v9696_v58  ;;  %v9896_v5 = vadd.f32 %v1169_v30, %v9703_v2  ;;  %v12235_v58 = vld [vmem:[#allocation59_spill] sm:$0xff]  ;;  %v3165_v2 = vld [vmem:[#allocation2 + $0xc0] sm:$0xff] }
 0x52a   : > { %12232 = vst [vmem:[#allocation14_spill] sm:$0xff] %v9890_v22  ;;  %v1173_v56 = vmul.f32 %v9629_v38, %v12233_v23  ;;  %v3291_v28 = vmul.f32 %v9497_v48, %v3163_v18  ;;  %3374 = vperm.xlu1 %7716, %v3288_v32   ;;  %v9902_v13 = vadd.f32 %v1168_v7, %v9707_v21  ;;  %v12237_v48 = vld [vmem:[#allocation60_spill] sm:$0xff]  ;;  %v12238_v21 = vld [vmem:[#allocation61_spill] sm:$0xff]  ;;  %v12239_v7 = vld [vmem:[#allocation62_spill] sm:$0xff] }
 0x52b   : > { %v9905_v53 = vadd.f32 %v1171_v40, %v9711_v4  ;;  %v1172_v42 = vmul.f32 %v9629_v38, %v12234_v27  ;;  %v1174_v8 = vmul.f32 %v9629_v38, %v12235_v58  ;;  %v9911_v1 = vpop.permute.xlu0 %3619  ;;  %v9914_v29 = vadd.f32 %v1170_v54, %v9715_v17  ;;  %v12240_v40 = vld [vmem:[#allocation63_spill] sm:$0xff]  ;;  %v12241_v18 = vld [vmem:[#allocation64_spill] sm:$0xff]  ;;  %v12242_v17 = vld [vmem:[#allocation65_spill] sm:$0xff] }
 0x52c   : > { %12236 = vst [vmem:[#allocation15_spill] sm:$0xff] %v9911_v1  ;;  %v1531_v30 = vmul.f32 %v9875_v36, %v12237_v48  ;;  %v1533_v20 = vmul.f32 %v9875_v36, %v12238_v21  ;;  %v3290_v4 = vmul.f32 %v9500_v45, %v3162_v43  ;;  %3389 = vperm.xlu0 %7715, %v3291_v28   ;;  %v3164_v32 = vld [vmem:[#allocation2 + $0xb8] sm:$0xff]  ;;  %v12244_v45 = vld [vmem:[#allocation66_spill] sm:$0xff]  ;;  %v12245_v28 = vld [vmem:[#allocation67_spill] sm:$0xff] }
 0x52d   : > { %v1532_v49 = vmul.f32 %v9875_v36, %v12239_v7  ;;  %v1535_v38 = vmul.f32 %v9875_v36, %v12240_v40  ;;  %v1534_v6 = vmul.f32 %v9875_v36, %v12241_v18  ;;  %v1537_v54 = vmul.f32 %v9875_v36, %v12242_v17  ;;  %v9929_v23 = vpop.permute.xlu1 %3617  ;;  %v12246_v40 = vld [vmem:[#allocation68_spill] sm:$0xff]  ;;  %v2783_v22 = vld [vmem:[#allocation2 + $0xef] sm:$0xff] }
 0x52e   : > { %12243 = vst [vmem:[#allocation16_spill] sm:$0xff] %v9929_v23  ;;  %v9932_v27 = vadd.f32 %v1173_v56, %v9729_v55  ;;  %v1536_v43 = vmul.f32 %v9875_v36, %v12244_v45  ;;  %v1539_v58 = vmul.f32 %v9875_v36, %v12245_v28  ;;  %v3293_v48 = vmul.f32 %v9503_v24, %v3165_v2  ;;  %v12247_v55 = vld [vmem:[#allocation69_spill] sm:$0xff]  ;;  %v12250_v28 = vld [vmem:[#allocation10_spill] sm:$0xff] }
 0x52f   : > { %3384 = vperm.xlu1 %7716, %v3290_v4   ;;  %v9940_v21 = vadd.f32 %v1172_v42, %v9733_v3  ;;  %v9943_v7 = vadd.f32 %v1174_v8, %v9740_v26  ;;  %v1538_v18 = vmul.f32 %v9875_v36, %v12246_v40  ;;  %v1541_v56 = vmul.f32 %v9875_v36, %v12247_v55  ;;  %v9949_v17 = vpop.permute.xlu0 %2847  ;;  %v12249_v45 = vld [vmem:[#allocation9_spill] sm:$0xff]  ;;  %v12251_v2 = vld [vmem:[#allocation70_spill] sm:$0xff]  ;;  %v12252_v42 = vld [vmem:[#allocation192_spill] sm:$0xff] }
 0x530   : > { %12248 = vst [vmem:[#allocation189_spill] sm:$0xff] %v9949_v17  ;;  %v9952_v23 = vadd.f32 %v1531_v30, %v12249_v45  ;;  %v9955_v24 = vadd.f32 %v1533_v20, %v12250_v28  ;;  %v1540_v3 = vmul.f32 %v9875_v36, %v12251_v2  ;;  %v3292_v26 = vmul.f32 %v12252_v42, %v3164_v32  ;;  %v12253_v8 = vld [vmem:[#allocation12_spill] sm:$0xff]  ;;  %v3166_v20 = vld [vmem:[#allocation2 + $0xc8] sm:$0xff] }
 0x531   : > { %3399 = vperm.xlu0 %7715, %v3293_v48   ;;  %v9961_v4 = vadd.f32 %v1532_v49, %v12253_v8  ;;  %v9964_v40 = vadd.f32 %v1535_v38, %v9777_v60  ;;  %v9967_v55 = vadd.f32 %v1534_v6, %v9780_v46  ;;  %v9970_v30 = vadd.f32 %v1537_v54, %v9789_v11  ;;  %v9972_v45 = vpop.permute.xlu1 %3621  ;;  %v12255_v49 = vld [vmem:[#allocation71_spill] sm:$0xff]  ;;  %v12256_v38 = vld [vmem:[#allocation193_spill] sm:$0xff]  ;;  %v12257_v6 = vld [vmem:[#allocation72_spill] sm:$0xff] }
 0x532   : > { %12254 = vst [vmem:[#allocation17_spill] sm:$0xff] %v9972_v45  ;;  %v9975_v28 = vadd.f32 %v1536_v43, %v9792_v62  ;;  %v9978_v32 = vadd.f32 %v1539_v58, %v9798_v37  ;;  %v1543_v48 = vmul.f32 %v9875_v36, %v12255_v49  ;;  %v7865_v60 = vld [vmem:[#allocation2 + $0x91] sm:$0xff]  ;;  %v9984_v46 = vadd.f32 %v1538_v18, %v9801_v15  ;;  %v12258_v54 = vld [vmem:[#allocation73_spill] sm:$0xff]  ;;  %v12260_v42 = vld [vmem:[#allocation74_spill] sm:$0xff] }
 0x533   : > { %v3675_v2 = vmul.f32 %v7865_v60, %v12256_v38  ;;  %3394 = vperm.xlu1 %7716, %v3292_v26   ;;  %v9987_v11 = vadd.f32 %v1541_v56, %v9804_v33  ;;  %v1542_v62 = vmul.f32 %v9875_v36, %v12257_v6  ;;  %v1545_v37 = vmul.f32 %v9875_v36, %v12258_v54  ;;  %v9993_v43 = vpop.permute.xlu0 %2851  ;;  %v12261_v8 = vld [vmem:[#allocation75_spill] sm:$0xff]  ;;  %v12262_v18 = vld [vmem:[#allocation194_spill] sm:$0xff]  ;;  %v12263_v56 = vld [vmem:[#allocation76_spill] sm:$0xff] }
 0x534   : > { %12259 = vst [vmem:[#allocation18_spill] sm:$0xff] %v9993_v43  ;;  %v9996_v58 = vadd.f32 %v1540_v3, %v9807_v35  ;;  %v1544_v26 = vmul.f32 %v9875_v36, %v12260_v42  ;;  %v1547_v15 = vmul.f32 %v9875_v36, %v12261_v8  ;;  %v3294_v33 = vmul.f32 %v12262_v18, %v3166_v20  ;;  %v12264_v60 = vld [vmem:[#allocation77_spill] sm:$0xff]  ;;  %v12265_v6 = vld [vmem:[#allocation78_spill] sm:$0xff]  ;;  %v12267_v8 = vld [vmem:[#allocation79_spill] sm:$0xff] }
 0x535   : > { %3757 = vperm.xlu0 %7715, %v3675_v2   ;;  %v1546_v49 = vmul.f32 %v9875_v36, %v12263_v56  ;;  %v1549_v38 = vmul.f32 %v9875_v36, %v12264_v60  ;;  %v1548_v54 = vmul.f32 %v9875_v36, %v12265_v6  ;;  %v1917_v35 = vsub.s32 3, %v9547_v41  ;;  %v10010_v3 = vpop.permute.xlu1 %2849  ;;  %v12268_v2 = vld [vmem:[#allocation80_spill] sm:$0xff]  ;;  %v7866_v56 = vld [vmem:[#allocation2 + $0xa1] sm:$0xff]  ;;  %v12269_v43 = vld [vmem:[#allocation195_spill] sm:$0xff] }
 0x536   : > { %12266 = vst [vmem:[#allocation19_spill] sm:$0xff] %v10010_v3  ;;  %v10013_v42 = vadd.f32 %v1543_v48, %v9812_v47  ;;  %v1551_v20 = vmul.f32 %v9875_v36, %v12267_v8  ;;  %v1550_v18 = vmul.f32 %v9875_v36, %v12268_v2  ;;  %v3677_v45 = vmul.f32 %v7866_v56, %v12269_v43  ;;  %v12270_v3 = vld [vmem:[#allocation81_spill] sm:$0xff]  ;;  %v12271_v48 = vld [vmem:[#allocation82_spill] sm:$0xff] }
 0x537   : > { %3404 = vperm.xlu1 %7716, %v3294_v33   ;;  %v10021_v60 = vadd.f32 %v1542_v62, %v9815_v0  ;;  %v10024_v6 = vadd.f32 %v1545_v37, %v9821_v57  ;;  %v1553_v47 = vmul.f32 %v9875_v36, %v12270_v3  ;;  %v1552_v17 = vmul.f32 %v9875_v36, %v12271_v48  ;;  %v10030_v8 = vpop.permute.xlu0 %3235  ;;  %v12273_v33 = vld [vmem:[#allocation83_spill] sm:$0xff]  ;;  %v7867_v62 = vld [vmem:[#allocation2 + $0x99] sm:$0xff] }
 0x538   : > { %12272 = vst [vmem:[#allocation28_spill] sm:$0xff] %v10030_v8  ;;  %v10033_v2 = vadd.f32 %v1544_v26, %v9824_v51  ;;  %v10036_v43 = vadd.f32 %v1547_v15, %v9833_v61  ;;  %v1555_v0 = vmul.f32 %v9875_v36, %v12273_v33  ;;  %v12274_v57 = vld [vmem:[#allocation196_spill] sm:$0xff]  ;;  %v10042_v3 = vadd.f32 %v1546_v49, %v9850_v31  ;;  %v12291_v8 = vld [vmem:[#allocation199_spill] sm:$0xff] }
 0x539   : > { %v3676_v37 = vmul.f32 %v7867_v62, %v12274_v57  ;;  %3767 = vperm.xlu0 %7715, %v3677_v45   ;;  %v10045_v56 = vadd.f32 %v1549_v38, %v9858_v44  ;;  %v10048_v48 = vadd.f32 %v1548_v54, %v9861_v59  ;;  %v10051_v51 = vrot.slane %v9563_v63, %v1917_v35  ;;  %v10053_v61 = vpop.permute.xlu1 %2853  ;;  %v12276_v45 = vld [vmem:[#allocation84_spill] sm:$0xff]  ;;  %v12277_v44 = vld [vmem:[#allocation197_spill] sm:$0xff]  ;;  %v12281_v62 = vld [vmem:[#allocation87_spill] sm:$0xff] }
 0x53a   : > { %12275 = vst [vmem:[#allocation20_spill] sm:$0xff] %v10053_v61  ;;  %v10056_v26 = vadd.f32 %v1551_v20, %v9870_v34  ;;  %v10059_v15 = vadd.f32 %v1550_v18, %v9879_v10  ;;  %v1554_v31 = vmul.f32 %v9875_v36, %v12276_v45  ;;  %v7868_v49 = vld [vmem:[#allocation2 + $0xb1] sm:$0xff]  ;;  %v10065_v59 = vadd.f32 %v1553_v47, %v9882_v9  ;;  %v12278_v35 = vld [vmem:[#allocation85_spill] sm:$0xff]  ;;  %v12279_v20 = vld [vmem:[#allocation86_spill] sm:$0xff] }
 0x53b   : > { %v3679_v38 = vmul.f32 %v7868_v49, %v12277_v44  ;;  %3762 = vperm.xlu1 %7716, %v3676_v37   ;;  %v10068_v54 = vadd.f32 %v1552_v17, %v9885_v52  ;;  %v1557_v34 = vmul.f32 %v9875_v36, %v12278_v35  ;;  %v1556_v10 = vmul.f32 %v9875_v36, %v12279_v20  ;;  %v10074_v18 = vpop.permute.xlu0 %3239  ;;  %v12282_v37 = vld [vmem:[#allocation88_spill] sm:$0xff]  ;;  %v7869_v47 = vld [vmem:[#allocation2 + $0xa9] sm:$0xff]  ;;  %v12284_v45 = vld [vmem:[#allocation89_spill] sm:$0xff] }
 0x53c   : > { %12280 = vst [vmem:[#allocation29_spill] sm:$0xff] %v10074_v18  ;;  %v10077_v33 = vadd.f32 %v1555_v0, %v9888_v25  ;;  %v1559_v57 = vmul.f32 %v9875_v36, %v12281_v62  ;;  %v1558_v9 = vmul.f32 %v9875_v36, %v12282_v37  ;;  %v12283_v52 = vld [vmem:[#allocation198_spill] sm:$0xff]  ;;  %v1561_v49 = vmul.f32 %v9875_v36, %v12284_v45  ;;  %v12286_v20 = vld [vmem:[#allocation91_spill] sm:$0xff]  ;;  %v12287_v0 = vld [vmem:[#allocation92_spill] sm:$0xff] }
 0x53d   : > { %v3678_v17 = vmul.f32 %v7869_v47, %v12283_v52  ;;  %3777 = vperm.xlu0 %7715, %v3679_v38   ;;  %v12285_v44 = vld [vmem:[#allocation90_spill] sm:$0xff]  ;;  %v1562_v25 = vmul.f32 %v9875_v36, %v12286_v20  ;;  %v1919_v18 = vmul.f32 %v10051_v51, %v12287_v0  ;;  %v10092_v62 = vpop.permute.xlu1 %3237  ;;  %v10095_v37 = vadd.f32 %v1554_v31, %v9893_v16  ;;  %v12289_v61 = vld [vmem:[#allocation93_spill] sm:$0xff]  ;;  %v12292_v0 = vld [vmem:[#allocation95_spill] sm:$0xff] }
 0x53e   : > { %v1560_v35 = vmul.f32 %v9875_v36, %v12285_v44  ;;  %12288 = vst [vmem:[#allocation190_spill] sm:$0xff] %v10092_v62  ;;  %v1921_v38 = vmul.f32 %v10051_v51, %v12289_v61  ;;  %v12290_v47 = vld [vmem:[#allocation94_spill] sm:$0xff]  ;;  %v10103_v36 = vadd.f32 %v1557_v34, %v9896_v5  ;;  %v10106_v20 = vadd.f32 %v1556_v10, %v9902_v13  ;;  %v12293_v31 = vld [vmem:[#allocation96_spill] sm:$0xff]  ;;  %v12295_v5 = vld [vmem:[#allocation97_spill] sm:$0xff] }
 0x53f   : > { %v1920_v52 = vmul.f32 %v10051_v51, %v12290_v47  ;;  %v7870_v45 = vld [vmem:[#allocation2 + $0xc1] sm:$0xff]  ;;  %3772 = vperm.xlu1 %7716, %v3678_v17   ;;  %v1923_v16 = vmul.f32 %v10051_v51, %v12292_v0  ;;  %v1922_v62 = vmul.f32 %v10051_v51, %v12293_v31  ;;  %v2779_v61 = vld [vmem:[#allocation2 + $0xcf] sm:$0xff]  ;;  %v10112_v1 = vpop.permute.xlu0 %3623  ;;  %v10115_v47 = vadd.f32 %v1559_v57, %v9905_v53  ;;  %v7871_v13 = vld [vmem:[#allocation2 + $0xb9] sm:$0xff] }
 0x540   : > { %v3681_v44 = vmul.f32 %v7870_v45, %v12291_v8  ;;  %12294 = vst [vmem:[#allocation21_spill] sm:$0xff] %v10112_v1  ;;  %v10118_v8 = vadd.f32 %v1558_v9, %v9914_v29  ;;  %v1925_v34 = vmul.f32 %v10051_v51, %v12295_v5  ;;  %v12296_v10 = vld [vmem:[#allocation200_spill] sm:$0xff]  ;;  %v10124_v45 = vadd.f32 %v1561_v49, %v9932_v27  ;;  %v12299_v49 = vld [vmem:[#allocation201_spill] sm:$0xff] }
 0x541   : > { %v3680_v17 = vmul.f32 %v7871_v13, %v12296_v10  ;;  %v10127_v0 = vadd.f32 %v1560_v35, %v9940_v21  ;;  %v10130_v31 = vadd.f32 %v1562_v25, %v9943_v7  ;;  %v10133_v53 = vadd.f32 %v1919_v18, %v9952_v23  ;;  %v10135_v29 = vpop.permute.xlu1 %3241  ;;  %v12300_v18 = vld [vmem:[#allocation99_spill] sm:$0xff]  ;;  %v12314_v1 = vld [vmem:[#allocation109_spill] sm:$0xff] }
 0x542   : > { %3787 = vperm.xlu0 %7715, %v3681_v44   ;;  %12297 = vst [vmem:[#allocation22_spill] sm:$0xff] %v10135_v29  ;;  %v10138_v57 = vadd.f32 %v1921_v38, %v9955_v24  ;;  %v10141_v9 = vadd.f32 %v1920_v52, %v9961_v4  ;;  %v12298_v44 = vld [vmem:[#allocation98_spill] sm:$0xff]  ;;  %v2907_v21 = vmul.f32 %v12299_v49, %v2779_v61  ;;  %v12301_v24 = vld [vmem:[#allocation100_spill] sm:$0xff]  ;;  %v12303_v61 = vld [vmem:[#allocation101_spill] sm:$0xff] }
 0x543   : > { %v1924_v27 = vmul.f32 %v10051_v51, %v12298_v44  ;;  %3782 = vperm.xlu1 %7716, %v3680_v17   ;;  %v10147_v7 = vadd.f32 %v1923_v16, %v9964_v40  ;;  %v10150_v23 = vadd.f32 %v1922_v62, %v9967_v55  ;;  %v1927_v35 = vmul.f32 %v10051_v51, %v12300_v18  ;;  %v2781_v4 = vld [vmem:[#allocation2 + $0xdf] sm:$0xff]  ;;  %v10156_v38 = vpop.permute.xlu0 %3627  ;;  %v12304_v40 = vld [vmem:[#allocation102_spill] sm:$0xff]  ;;  %v12306_v10 = vld [vmem:[#allocation103_spill] sm:$0xff] }
 0x544   : > { %v1926_v25 = vmul.f32 %v10051_v51, %v12301_v24  ;;  %12302 = vst [vmem:[#allocation23_spill] sm:$0xff] %v10156_v38  ;;  %v10159_v52 = vadd.f32 %v1925_v34, %v9970_v30  ;;  %v1929_v5 = vmul.f32 %v10051_v51, %v12303_v61  ;;  %v1928_v16 = vmul.f32 %v10051_v51, %v12304_v40  ;;  %v7872_v55 = vld [vmem:[#allocation2 + $0xc9] sm:$0xff]  ;;  %v12307_v44 = vld [vmem:[#allocation104_spill] sm:$0xff]  ;;  %v12308_v18 = vld [vmem:[#allocation105_spill] sm:$0xff] }
 0x545   : > { %v12305_v62 = vld [vmem:[#allocation202_spill] sm:$0xff]  ;;  %v1931_v17 = vmul.f32 %v10051_v51, %v12306_v10  ;;  %v1930_v49 = vmul.f32 %v10051_v51, %v12307_v44  ;;  %v1933_v30 = vmul.f32 %v10051_v51, %v12308_v18  ;;  %v2780_v61 = vld [vmem:[#allocation2 + $0xd7] sm:$0xff]  ;;  %v10174_v38 = vpop.permute.xlu1 %3625  ;;  %v10177_v40 = vadd.f32 %v1924_v27, %v9975_v28 }
 0x546   : > { %v3682_v13 = vmul.f32 %v7872_v55, %v12305_v62  ;;  %3021 = vperm.xlu0 %7715, %v2907_v21   ;;  %v12309_v34 = vld [vmem:[#allocation106_spill] sm:$0xff]  ;;  %12310 = vst [vmem:[#allocation24_spill] sm:$0xff] %v10174_v38  ;;  %v12311_v55 = vld [vmem:[#allocation107_spill] sm:$0xff]  ;;  %v12312_v62 = vld [vmem:[#allocation108_spill] sm:$0xff]  ;;  %v10185_v18 = vadd.f32 %v1927_v35, %v9978_v32  ;;  %v1937_v38 = vmul.f32 %v10051_v51, %v12314_v1  ;;  %v2305_v32 = vsub.s32 4, %v9547_v41 }
 0x547   : > { %v1932_v24 = vmul.f32 %v10051_v51, %v12309_v34  ;;  %v1935_v21 = vmul.f32 %v10051_v51, %v12311_v55  ;;  %v1934_v10 = vmul.f32 %v10051_v51, %v12312_v62  ;;  %v12313_v29 = vld [vmem:[#allocation203_spill] sm:$0xff]  ;;  %v10188_v34 = vadd.f32 %v1926_v25, %v9984_v46  ;;  %v12315_v28 = vld [vmem:[#allocation110_spill] sm:$0xff]  ;;  %v10194_v55 = vpop.permute.xlu0 %2921  ;;  %v12317_v35 = vld [vmem:[#allocation204_spill] sm:$0xff] }
 0x548   : > { %v2909_v44 = vmul.f32 %v12313_v29, %v2781_v4  ;;  %3792 = vperm.xlu1 %7716, %v3682_v13   ;;  %v1936_v27 = vmul.f32 %v10051_v51, %v12315_v28  ;;  %12316 = vst [vmem:[#allocation25_spill] sm:$0xff] %v10194_v55  ;;  %v10197_v62 = vadd.f32 %v1929_v5, %v9987_v11  ;;  %v2782_v5 = vld [vmem:[#allocation2 + $0xe7] sm:$0xff] }
 0x549   : > { %v10200_v29 = vadd.f32 %v1928_v16, %v9996_v58  ;;  %v2908_v46 = vmul.f32 %v12317_v35, %v2780_v61  ;;  %v10205_v25 = vadd.f32 %v1931_v17, %v10013_v42  ;;  %v10208_v1 = vadd.f32 %v1930_v49, %v10021_v60  ;;  %v10216_v58 = vpop.permute.xlu1 %3629  ;;  %v12319_v42 = vld [vmem:[#allocation111_spill] sm:$0xff]  ;;  %v12320_v60 = vld [vmem:[#allocation205_spill] sm:$0xff]  ;;  %v12335_v55 = vld [vmem:[#allocation122_spill] sm:$0xff] }
 0x54a   : > { %3031 = vperm.xlu0 %7715, %v2909_v44   ;;  %v10211_v4 = vadd.f32 %v1933_v30, %v10024_v6  ;;  %v10214_v11 = vadd.f32 %v1932_v24, %v10033_v2  ;;  %12318 = vst [vmem:[#allocation26_spill] sm:$0xff] %v10216_v58  ;;  %v10219_v16 = vadd.f32 %v1935_v21, %v10036_v43  ;;  %v12321_v30 = vld [vmem:[#allocation112_spill] sm:$0xff]  ;;  %v12322_v43 = vld [vmem:[#allocation113_spill] sm:$0xff] }
 0x54b   : > { %v10222_v13 = vadd.f32 %v1934_v10, %v10042_v3  ;;  %v1939_v17 = vmul.f32 %v10051_v51, %v12319_v42  ;;  %v2911_v49 = vmul.f32 %v12320_v60, %v2783_v22  ;;  %v10228_v6 = vadd.f32 %v1937_v38, %v10045_v56  ;;  %v2785_v3 = vld [vmem:[#allocation2 + $0xff] sm:$0xff]  ;;  %v10237_v21 = vpop.permute.xlu0 %2931  ;;  %v12324_v10 = vld [vmem:[#allocation114_spill] sm:$0xff]  ;;  %v12325_v22 = vld [vmem:[#allocation115_spill] sm:$0xff] }
 0x54c   : > { %3026 = vperm.xlu1 %7716, %v2908_v46   ;;  %v10231_v2 = vadd.f32 %v1936_v27, %v10048_v48  ;;  %v1938_v24 = vmul.f32 %v10051_v51, %v12321_v30  ;;  %v1941_v61 = vmul.f32 %v10051_v51, %v12322_v43  ;;  %12323 = vst [vmem:[#allocation30_spill] sm:$0xff] %v10237_v21  ;;  %v12326_v48 = vld [vmem:[#allocation206_spill] sm:$0xff]  ;;  %v12327_v27 = vld [vmem:[#allocation116_spill] sm:$0xff]  ;;  %v12328_v46 = vld [vmem:[#allocation117_spill] sm:$0xff] }
 0x54d   : > { %v1940_v44 = vmul.f32 %v10051_v51, %v12324_v10  ;;  %v1943_v28 = vmul.f32 %v10051_v51, %v12325_v22  ;;  %v10244_v56 = vrot.slane %v9563_v63, %v2305_v32  ;;  %v2910_v38 = vmul.f32 %v12326_v48, %v2782_v5  ;;  %v12329_v60 = vld [vmem:[#allocation118_spill] sm:$0xff]  ;;  %v12330_v43 = vld [vmem:[#allocation119_spill] sm:$0xff]  ;;  %v10255_v22 = vpop.permute.xlu1 %2926  ;;  %v12332_v5 = vld [vmem:[#allocation120_spill] sm:$0xff] }
 0x54e   : > { %3041 = vperm.xlu0 %7715, %v2911_v49   ;;  %v1942_v35 = vmul.f32 %v10051_v51, %v12327_v27  ;;  %v1945_v42 = vmul.f32 %v10051_v51, %v12328_v46  ;;  %v1944_v30 = vmul.f32 %v10051_v51, %v12329_v60  ;;  %v1947_v10 = vmul.f32 %v10051_v51, %v12330_v43  ;;  %v2784_v58 = vld [vmem:[#allocation2 + $0xf7] sm:$0xff]  ;;  %v12333_v48 = vld [vmem:[#allocation121_spill] sm:$0xff] }
 0x54f   : > { %12331 = vst [vmem:[#allocation27_spill] sm:$0xff] %v10255_v22  ;;  %v10258_v32 = vadd.f32 %v1939_v17, %v10056_v26  ;;  %v1946_v49 = vmul.f32 %v10051_v51, %v12332_v5  ;;  %v1949_v27 = vmul.f32 %v10051_v51, %v12333_v48  ;;  %v12334_v21 = vld [vmem:[#allocation207_spill] sm:$0xff]  ;;  %v10266_v60 = vadd.f32 %v1938_v24, %v10059_v15  ;;  %v10275_v5 = vpop.permute.xlu0 %2941  ;;  %v12337_v15 = vld [vmem:[#allocation124_spill] sm:$0xff] }
 0x550   : > { %v2913_v46 = vmul.f32 %v12334_v21, %v2785_v3  ;;  %3036 = vperm.xlu1 %7716, %v2910_v38   ;;  %v10269_v43 = vadd.f32 %v1941_v61, %v10065_v59  ;;  %v1948_v22 = vmul.f32 %v10051_v51, %v12335_v55  ;;  %v12336_v26 = vld [vmem:[#allocation123_spill] sm:$0xff]  ;;  %v10278_v48 = vadd.f32 %v1940_v44, %v10068_v54  ;;  %v12338_v59 = vld [vmem:[#allocation208_spill] sm:$0xff] }
 0x551   : > { %v1950_v17 = vmul.f32 %v10051_v51, %v12336_v26  ;;  %v10281_v3 = vadd.f32 %v1943_v28, %v10077_v33  ;;  %v2307_v24 = vmul.f32 %v10244_v56, %v12337_v15  ;;  %v2912_v61 = vmul.f32 %v12338_v59, %v2784_v58  ;;  %v2786_v33 = vld [vmem:[#allocation2 + $0x107] sm:$0xff]  ;;  %v10298_v44 = vpop.permute.xlu1 %2936  ;;  %v12349_v59 = vld [vmem:[#allocation131_spill] sm:$0xff] }
 0x552   : > { %3051 = vperm.xlu0 %7715, %v2913_v46   ;;  %v10287_v55 = vadd.f32 %v1942_v35, %v10095_v37  ;;  %v10290_v51 = vadd.f32 %v1945_v42, %v10103_v36  ;;  %v10293_v21 = vadd.f32 %v1944_v30, %v10106_v20  ;;  %v10296_v54 = vadd.f32 %v1947_v10, %v10115_v47  ;;  %v12339_v37 = vld [vmem:[#allocation125_spill] sm:$0xff]  ;;  %v12342_v42 = vld [vmem:[#allocation126_spill] sm:$0xff] }
 0x553   : > { %v10301_v28 = vadd.f32 %v1946_v49, %v10118_v8  ;;  %v10304_v58 = vadd.f32 %v1949_v27, %v10124_v45  ;;  %v2309_v38 = vmul.f32 %v10244_v56, %v12339_v37  ;;  %v12340_v36 = vld [vmem:[#allocation209_spill] sm:$0xff]  ;;  %v10310_v20 = vadd.f32 %v1948_v22, %v10127_v0  ;;  %v12343_v8 = vld [vmem:[#allocation127_spill] sm:$0xff]  ;;  %v10319_v49 = vpop.permute.xlu0 %2951  ;;  %v12350_v37 = vld [vmem:[#allocation132_spill] sm:$0xff] }
 0x554   : > { %v3295_v35 = vmul.f32 %v12340_v36, %v3167_v19  ;;  %3046 = vperm.xlu1 %7716, %v2912_v61   ;;  %v10313_v47 = vadd.f32 %v1950_v17, %v10130_v31  ;;  %v2308_v30 = vmul.f32 %v10244_v56, %v12342_v42  ;;  %v2311_v10 = vmul.f32 %v10244_v56, %v12343_v8  ;;  %v3169_v45 = vld [vmem:[#allocation2 + $0xe0] sm:$0xff]  ;;  %v12345_v19 = vld [vmem:[#allocation128_spill] sm:$0xff]  ;;  %v12347_v31 = vld [vmem:[#allocation210_spill] sm:$0xff] }
 0x555   : > { %12344 = vst [vmem:[#allocation32_spill] sm:$0xff] %v10319_v49  ;;  %v10322_v27 = vadd.f32 %v2307_v24, %v10133_v53  ;;  %v2310_v46 = vmul.f32 %v10244_v56, %v12345_v19  ;;  %v12346_v0 = vld [vmem:[#allocation129_spill] sm:$0xff]  ;;  %v2914_v26 = vmul.f32 %v12347_v31, %v2786_v33  ;;  %v12348_v17 = vld [vmem:[#allocation130_spill] sm:$0xff]  ;;  %v2315_v61 = vmul.f32 %v10244_v56, %v12349_v59  ;;  %v3168_v42 = vld [vmem:[#allocation2 + $0xd8] sm:$0xff]  ;;  %v10337_v8 = vpop.permute.xlu1 %2946 }
 0x556   : > { %12341 = vst [vmem:[#allocation31_spill] sm:$0xff] %v10313_v47  ;;  %v2313_v22 = vmul.f32 %v10244_v56, %v12346_v0  ;;  %3409 = vperm.xlu0 %7715, %v3295_v35   ;;  %v2312_v15 = vmul.f32 %v10244_v56, %v12348_v17  ;;  %v2314_v36 = vmul.f32 %v10244_v56, %v12350_v37  ;;  %v12351_v53 = vld [vmem:[#allocation133_spill] sm:$0xff]  ;;  %12352 = vst [vmem:[#allocation33_spill] sm:$0xff] %v10337_v8  ;;  %v12353_v33 = vld [vmem:[#allocation134_spill] sm:$0xff] }
 0x557   : > { %v2317_v24 = vmul.f32 %v10244_v56, %v12351_v53  ;;  %v10340_v19 = vadd.f32 %v2309_v38, %v10138_v57  ;;  %v2316_v35 = vmul.f32 %v10244_v56, %v12353_v33  ;;  %v12354_v0 = vld [vmem:[#allocation135_spill] sm:$0xff]  ;;  %v12355_v17 = vld [vmem:[#allocation5_spill] sm:$0xff]  ;;  %v10348_v37 = vadd.f32 %v2308_v30, %v10141_v9  ;;  %v12356_v47 = vld [vmem:[#allocation136_spill] sm:$0xff]  ;;  %v10357_v33 = vpop.permute.xlu0 %2961 }
 0x558   : > { %v2319_v31 = vmul.f32 %v10244_v56, %v12354_v0  ;;  %v3297_v59 = vmul.f32 %v12355_v17, %v3169_v45  ;;  %3056 = vperm.xlu1 %7716, %v2914_v26   ;;  %v10351_v53 = vadd.f32 %v2311_v10, %v10147_v7  ;;  %v2318_v8 = vmul.f32 %v10244_v56, %v12356_v47  ;;  %v12357_v57 = vld [vmem:[#allocation137_spill] sm:$0xff]  ;;  %v3171_v49 = vld [vmem:[#allocation2 + $0xf0] sm:$0xff]  ;;  %v12359_v9 = vld [vmem:[#allocation138_spill] sm:$0xff] }
 0x559   : > { %v2321_v38 = vmul.f32 %v10244_v56, %v12357_v57  ;;  %12358 = vst [vmem:[#allocation34_spill] sm:$0xff] %v10357_v33  ;;  %v10360_v0 = vadd.f32 %v2310_v46, %v10150_v23  ;;  %v10363_v45 = vadd.f32 %v2313_v22, %v10159_v52  ;;  %v2320_v30 = vmul.f32 %v10244_v56, %v12359_v9  ;;  %v12360_v7 = vld [vmem:[#allocation6_spill] sm:$0xff]  ;;  %v10380_v46 = vpop.permute.xlu1 %2956 }
 0x55a   : > { %v3296_v10 = vmul.f32 %v12360_v7, %v3168_v42  ;;  %3419 = vperm.xlu0 %7715, %v3297_v59   ;;  %v10369_v47 = vadd.f32 %v2312_v15, %v10177_v40  ;;  %v10372_v26 = vadd.f32 %v2315_v61, %v10185_v18  ;;  %v10375_v17 = vadd.f32 %v2314_v36, %v10188_v34  ;;  %v3170_v52 = vld [vmem:[#allocation2 + $0xe8] sm:$0xff]  ;;  %v12362_v40 = vld [vmem:[#allocation139_spill] sm:$0xff]  ;;  %v12364_v36 = vld [vmem:[#allocation140_spill] sm:$0xff] }
 0x55b   : > { %v10378_v23 = vadd.f32 %v2317_v24, %v10197_v62  ;;  %12361 = vst [vmem:[#allocation191_spill] sm:$0xff] %v10380_v46  ;;  %v10383_v22 = vadd.f32 %v2316_v35, %v10200_v29  ;;  %v10386_v42 = vadd.f32 %v2319_v31, %v10205_v25  ;;  %v2323_v15 = vmul.f32 %v10244_v56, %v12362_v40  ;;  %v12363_v18 = vld [vmem:[#allocation7_spill] sm:$0xff]  ;;  %v12365_v29 = vld [vmem:[#allocation141_spill] sm:$0xff]  ;;  %v10401_v31 = vpop.permute.xlu0 %2971  ;;  %v12370_v7 = vld [vmem:[#allocation144_spill] sm:$0xff] }
 0x55c   : > { %v3299_v61 = vmul.f32 %v12363_v18, %v3171_v49  ;;  %3414 = vperm.xlu1 %7716, %v3296_v10   ;;  %v10392_v34 = vadd.f32 %v2318_v8, %v10208_v1  ;;  %v10395_v62 = vadd.f32 %v2321_v38, %v10211_v4  ;;  %v2322_v24 = vmul.f32 %v10244_v56, %v12364_v36  ;;  %v3173_v25 = vld [vmem:[#allocation2 + $0x100] sm:$0xff]  ;;  %v12367_v49 = vld [vmem:[#allocation142_spill] sm:$0xff]  ;;  %v12368_v8 = vld [vmem:[#allocation8_spill] sm:$0xff] }
 0x55d   : > { %v2325_v35 = vmul.f32 %v10244_v56, %v12365_v29  ;;  %12366 = vst [vmem:[#allocation35_spill] sm:$0xff] %v10401_v31  ;;  %v10404_v59 = vadd.f32 %v2320_v30, %v10214_v11  ;;  %v2324_v57 = vmul.f32 %v10244_v56, %v12367_v49  ;;  %v2693_v1 = vsub.s32 5, %v9547_v41  ;;  %v12369_v38 = vld [vmem:[#allocation143_spill] sm:$0xff]  ;;  %v12371_v40 = vld [vmem:[#allocation145_spill] sm:$0xff]  ;;  %v12372_v36 = vld [vmem:[#allocation146_spill] sm:$0xff]  ;;  %v10418_v29 = vpop.permute.xlu1 %2966 }
 0x55e   : > { %v3298_v4 = vmul.f32 %v12368_v8, %v3170_v52  ;;  %3429 = vperm.xlu0 %7715, %v3299_v61   ;;  %v2327_v9 = vmul.f32 %v10244_v56, %v12369_v38  ;;  %v2326_v10 = vmul.f32 %v10244_v56, %v12370_v7  ;;  %v2329_v18 = vmul.f32 %v10244_v56, %v12371_v40  ;;  %v3172_v30 = vld [vmem:[#allocation2 + $0xf8] sm:$0xff]  ;;  %v12374_v52 = vld [vmem:[#allocation147_spill] sm:$0xff]  ;;  %v12377_v46 = vld [vmem:[#allocation149_spill] sm:$0xff] }
 0x55f   : > { %v2328_v11 = vmul.f32 %v10244_v56, %v12372_v36  ;;  %12373 = vst [vmem:[#allocation36_spill] sm:$0xff] %v10418_v29  ;;  %v10421_v49 = vadd.f32 %v2323_v15, %v10219_v16  ;;  %v2331_v61 = vmul.f32 %v10244_v56, %v12374_v52  ;;  %v12375_v8 = vld [vmem:[#allocation148_spill] sm:$0xff]  ;;  %v10429_v40 = vadd.f32 %v2322_v24, %v10222_v13  ;;  %v12378_v16 = vld [vmem:[#allocation150_spill] sm:$0xff]  ;;  %v10438_v33 = vpop.permute.xlu0 %3309  ;;  %v12380_v24 = vld [vmem:[#allocation11_spill] sm:$0xff] }
 0x560   : > { %v2330_v38 = vmul.f32 %v10244_v56, %v12375_v8  ;;  %v12376_v31 = vld [vmem:[#allocation156_spill] sm:$0xff]  ;;  %3424 = vperm.xlu1 %7716, %v3298_v4   ;;  %v10432_v36 = vadd.f32 %v2325_v35, %v10228_v6  ;;  %v2333_v29 = vmul.f32 %v10244_v56, %v12377_v46  ;;  %v2332_v15 = vmul.f32 %v10244_v56, %v12378_v16  ;;  %v12379_v8 = vld [vmem:[#allocation151_spill] sm:$0xff] }
 0x561   : > { %v3301_v7 = vmul.f32 %v12376_v31, %v3173_v25  ;;  %v10441_v52 = vadd.f32 %v2324_v57, %v10231_v2  ;;  %v2335_v25 = vmul.f32 %v10244_v56, %v12379_v8  ;;  %v10446_v13 = vrot.slane %v9563_v63, %v2693_v1  ;;  %v3174_v57 = vld [vmem:[#allocation2 + $0x108] sm:$0xff]  ;;  %v10461_v4 = vpop.permute.xlu1 %2976 }
 0x562   : > { %v3300_v6 = vmul.f32 %v12380_v24, %v3172_v30  ;;  %v10450_v35 = vadd.f32 %v2327_v9, %v10258_v32  ;;  %v10453_v46 = vadd.f32 %v2326_v10, %v10266_v60  ;;  %v10456_v31 = vadd.f32 %v2329_v18, %v10269_v43  ;;  %v12386_v32 = vld [vmem:[#allocation152_spill] sm:$0xff]  ;;  %v12389_v18 = vld [vmem:[#allocation153_spill] sm:$0xff] }
 0x563   : > { %3439 = vperm.xlu0 %7715, %v3301_v7   ;;  %v10459_v2 = vadd.f32 %v2328_v11, %v10278_v48  ;;  %v10464_v63 = vadd.f32 %v2331_v61, %v10281_v3  ;;  %v10467_v1 = vadd.f32 %v2330_v38, %v10287_v55  ;;  %v2334_v9 = vmul.f32 %v10244_v56, %v12386_v32  ;;  %v7873_v60 = vld [vmem:[#allocation2 + $0xd1] sm:$0xff]  ;;  %v12390_v11 = vld [vmem:[#allocation154_spill] sm:$0xff]  ;;  %v10482_v30 = vpop.permute.xlu0 %3319  ;;  %v12392_v38 = vld [vmem:[#allocation157_spill] sm:$0xff] }
 0x564   : > { %12381 = vst [vmem:[#allocation37_spill] sm:$0xff] %v10450_v35  ;;  %12382 = vst [vmem:[#allocation38_spill] sm:$0xff] %v10456_v31  ;;  %v3683_v10 = vmul.f32 %v7873_v60, %v9786_v50  ;;  %3434 = vperm.xlu1 %7716, %v3300_v6   ;;  %v10473_v43 = vadd.f32 %v2333_v29, %v10290_v51  ;;  %v10476_v48 = vadd.f32 %v2332_v15, %v10293_v21  ;;  %v12393_v7 = vld [vmem:[#allocation158_spill] sm:$0xff]  ;;  %v12394_v29 = vld [vmem:[#allocation159_spill] sm:$0xff] }
 0x565   : > { %12383 = vst [vmem:[#allocation39_spill] sm:$0xff] %v10459_v2  ;;  %12384 = vst [vmem:[#allocation40_spill] sm:$0xff] %v10464_v63  ;;  %v2337_v3 = vmul.f32 %v10244_v56, %v12389_v18  ;;  %v2336_v55 = vmul.f32 %v10244_v56, %v12390_v11  ;;  %v10485_v61 = vadd.f32 %v2335_v25, %v10296_v54  ;;  %v12395_v15 = vld [vmem:[#allocation160_spill] sm:$0xff]  ;;  %v12396_v24 = vld [vmem:[#allocation161_spill] sm:$0xff]  ;;  %v10500_v32 = vpop.permute.xlu1 %3314 }
 0x566   : > { %12385 = vst [vmem:[#allocation41_spill] sm:$0xff] %v10467_v1  ;;  %12387 = vst [vmem:[#allocation42_spill] sm:$0xff] %v10473_v43  ;;  %v2695_v50 = vmul.f32 %v10446_v13, %v12392_v38  ;;  %v2697_v51 = vmul.f32 %v10446_v13, %v12393_v7  ;;  %v3302_v21 = vmul.f32 %v9809_v39, %v3174_v57  ;;  %v12397_v54 = vld [vmem:[#allocation162_spill] sm:$0xff]  ;;  %v12399_v18 = vld [vmem:[#allocation163_spill] sm:$0xff] }
 0x567   : > { %12388 = vst [vmem:[#allocation43_spill] sm:$0xff] %v10476_v48  ;;  %12391 = vst [vmem:[#allocation44_spill] sm:$0xff] %v10485_v61  ;;  %3797 = vperm.xlu0 %7715, %v3683_v10   ;;  %v2696_v16 = vmul.f32 %v10446_v13, %v12394_v29  ;;  %v2699_v8 = vmul.f32 %v10446_v13, %v12395_v15  ;;  %v2698_v6 = vmul.f32 %v10446_v13, %v12396_v24  ;;  %v12400_v57 = vld [vmem:[#allocation164_spill] sm:$0xff]  ;;  %v7874_v11 = vld [vmem:[#allocation2 + $0xe1] sm:$0xff] }
 0x568   : > { %v2701_v25 = vmul.f32 %v10446_v13, %v12397_v54  ;;  %v10503_v60 = vadd.f32 %v2334_v9, %v10301_v28  ;;  %v2700_v39 = vmul.f32 %v10446_v13, %v12399_v18  ;;  %v2703_v10 = vmul.f32 %v10446_v13, %v12400_v57  ;;  %3444 = vperm.xlu1 %7716, %v3302_v21   ;;  %v12403_v15 = vld [vmem:[#allocation155_spill] sm:$0xff]  ;;  %v12405_v9 = vld [vmem:[#allocation165_spill] sm:$0xff]  ;;  %v10522_v54 = vpop.permute.xlu0 %3329  ;;  %v12420_v43 = vld [vmem:[#allocation16_spill] sm:$0xff] }
 0x569   : > { %v3685_v38 = vmul.f32 %v7874_v11, %v9830_v14  ;;  %v10511_v7 = vadd.f32 %v2337_v3, %v10304_v58  ;;  %v10514_v29 = vadd.f32 %v2336_v55, %v10310_v20  ;;  %v10518_v28 = vmul.f32 %v10244_v56, %v12403_v15  ;;  %v7875_v58 = vld [vmem:[#allocation2 + $0xd9] sm:$0xff]  ;;  %v12411_v15 = vld [vmem:[#allocation14_spill] sm:$0xff]  ;;  %v12439_v35 = vld [vmem:[#allocation23_spill] sm:$0xff] }
 0x56a   : > { %12398 = vst [vmem:[#allocation45_spill] sm:$0xff] %v10503_v60  ;;  %v2702_v24 = vmul.f32 %v10446_v13, %v12405_v9  ;;  %v10525_v18 = vadd.f32 %v2695_v50, %v10322_v27  ;;  %v10528_v14 = vadd.f32 %v2697_v51, %v10340_v19  ;;  %v3684_v3 = vmul.f32 %v7875_v58, %v9847_v12  ;;  %v10543_v27 = vpop.permute.xlu1 %3324  ;;  %v7876_v50 = vld [vmem:[#allocation2 + $0xf1] sm:$0xff] }
 0x56b   : > { %12401 = vst [vmem:[#allocation46_spill] sm:$0xff] %v10511_v7  ;;  %12402 = vst [vmem:[#allocation47_spill] sm:$0xff] %v10514_v29  ;;  %3807 = vperm.xlu0 %7715, %v3685_v38   ;;  %v10532_v20 = vadd.f32 %v2696_v16, %v10348_v37  ;;  %v10535_v56 = vadd.f32 %v2699_v8, %v10351_v53  ;;  %v10538_v55 = vadd.f32 %v2698_v6, %v10360_v0  ;;  %v12406_v37 = vld [vmem:[#allocation13_spill] sm:$0xff]  ;;  %v12407_v16 = vld [vmem:[#allocation166_spill] sm:$0xff] }
 0x56c   : > { %12404 = vst [vmem:[#allocation48_spill] sm:$0xff] %v10518_v28  ;;  %v10541_v21 = vadd.f32 %v2701_v25, %v10363_v45  ;;  %v10546_v19 = vadd.f32 %v2700_v39, %v10369_v47  ;;  %v10549_v12 = vadd.f32 %v2703_v10, %v10372_v26  ;;  %v3687_v51 = vmul.f32 %v7876_v50, %v12406_v37  ;;  %v12408_v8 = vld [vmem:[#allocation167_spill] sm:$0xff]  ;;  %v10560_v47 = vpop.permute.xlu0 %3339  ;;  %v12409_v39 = vld [vmem:[#allocation168_spill] sm:$0xff]  ;;  %v12410_v10 = vld [vmem:[#allocation169_spill] sm:$0xff] }
 0x56d   : > { %v3081_v53 = vsub.s32 6, %v9547_v41  ;;  %3802 = vperm.xlu1 %7716, %v3684_v3   ;;  %v10554_v0 = vadd.f32 %v2702_v24, %v10375_v17  ;;  %v2705_v45 = vmul.f32 %v10446_v13, %v12407_v16  ;;  %v2704_v6 = vmul.f32 %v10446_v13, %v12408_v8  ;;  %v7877_v38 = vld [vmem:[#allocation2 + $0xe9] sm:$0xff]  ;;  %v12414_v37 = vld [vmem:[#allocation172_spill] sm:$0xff]  ;;  %v12415_v8 = vld [vmem:[#allocation173_spill] sm:$0xff] }
 0x56e   : > { %v7910_v25 = vmov 1966171168   ;;  %v2707_v57 = vmul.f32 %v10446_v13, %v12409_v39  ;;  %v2706_v11 = vmul.f32 %v10446_v13, %v12410_v10  ;;  %v3686_v17 = vmul.f32 %v7877_v38, %v12411_v15  ;;  %v12412_v24 = vld [vmem:[#allocation170_spill] sm:$0xff]  ;;  %v12413_v3 = vld [vmem:[#allocation171_spill] sm:$0xff]  ;;  %v10576_v39 = vpop.permute.xlu1 %3334  ;;  %v12431_v63 = vld [vmem:[#allocation20_spill] sm:$0xff] }
 0x56f   : > { %v4028_v26 = vunpack.c.l.s4 %v7910_v25  ;;  %v3469_v9 = vsub.s32 7, %v9547_v41  ;;  %3817 = vperm.xlu0 %7715, %v3687_v51   ;;  %v2709_v58 = vmul.f32 %v10446_v13, %v12412_v24  ;;  %v2708_v50 = vmul.f32 %v10446_v13, %v12413_v3  ;;  %v12416_v10 = vld [vmem:[#allocation174_spill] sm:$0xff]  ;;  %v12417_v15 = vld [vmem:[#allocation175_spill] sm:$0xff]  ;;  %v7879_v3 = vld [vmem:[%s11936_s3] sm:$0xff] }
 0x570   : > { %v2711_v16 = vmul.f32 %v10446_v13, %v12414_v37  ;;  %v2710_v25 = vmul.f32 %v10446_v13, %v12415_v8  ;;  %v2713_v38 = vmul.f32 %v10446_v13, %v12416_v10  ;;  %v2712_v51 = vmul.f32 %v10446_v13, %v12417_v15  ;;  %v7878_v29 = vld [vmem:[#allocation2 + $0x101] sm:$0xff]  ;;  %v12418_v7 = vld [vmem:[#allocation15_spill] sm:$0xff]  ;;  %v10596_v48 = vpop.permute.xlu0 %3349 }
 0x571   : > { %v3689_v24 = vmul.f32 %v7878_v29, %v12418_v7  ;;  %v10586_v60 = vrot.slane %v7879_v3, %v3081_v53  ;;  %3812 = vperm.xlu1 %7716, %v3686_v17   ;;  %v10589_v37 = vadd.f32 %v2705_v45, %v10378_v23  ;;  %v10592_v8 = vadd.f32 %v2704_v6, %v10383_v22  ;;  %v12419_v10 = vld [vmem:[#allocation177_spill] sm:$0xff]  ;;  %v2787_v15 = vld [vmem:[#allocation2 + $0x10f] sm:$0xff] }
 0x572   : > { %v2714_v61 = vmul.f32 %v10446_v13, %v12419_v10  ;;  %v4029_v7 = vunpack.c.0.s8 %v4028_v26  ;;  %v10599_v29 = vadd.f32 %v2707_v57, %v10386_v42  ;;  %v10602_v53 = vadd.f32 %v2706_v11, %v10392_v34  ;;  %v7880_v17 = vld [vmem:[#allocation2 + $0xf9] sm:$0xff]  ;;  %v10619_v57 = vpop.permute.xlu1 %3344 }
 0x573   : > { %v3688_v23 = vmul.f32 %v7880_v17, %v12420_v43  ;;  %v10605_v45 = vrot.slane %v7879_v3, %v3469_v9  ;;  %3827 = vperm.xlu0 %7715, %v3689_v24   ;;  %v10608_v22 = vadd.f32 %v2709_v58, %v10395_v62  ;;  %v10611_v6 = vadd.f32 %v2708_v50, %v10404_v59  ;;  %v2789_v34 = vld [vmem:[#allocation2 + $0x11f] sm:$0xff]  ;;  %v2788_v58 = vld [vmem:[#allocation2 + $0x117] sm:$0xff]  ;;  %v2790_v50 = vld [vmem:[#allocation2 + $0x127] sm:$0xff] }
 0x574   : > { %v10614_v26 = vadd.f32 %v2711_v16, %v10421_v49  ;;  %v10617_v42 = vadd.f32 %v2710_v25, %v10429_v40  ;;  %v10622_v43 = vadd.f32 %v2713_v38, %v10432_v36  ;;  %v10625_v11 = vadd.f32 %v2712_v51, %v10441_v52  ;;  %v12422_v62 = vld [vmem:[#allocation189_spill] sm:$0xff]  ;;  %v3175_v59 = vld [vmem:[#allocation2 + $0x110] sm:$0xff]  ;;  %v12424_v40 = vld [vmem:[#allocation176_spill] sm:$0xff]  ;;  %v10637_v52 = vpop.permute.xlu0 %3359 }
 0x575   : > { %v2915_v9 = vmul.f32 %v12422_v62, %v2787_v15  ;;  %v12423_v24 = vld [vmem:[#allocation25_spill] sm:$0xff]  ;;  %3822 = vperm.xlu1 %7716, %v3688_v23   ;;  %v10632_v16 = vmul.f32 %v10446_v13, %v12424_v40  ;;  %v10635_v25 = vadd.f32 %v2714_v61, %v10453_v46  ;;  %v3176_v38 = vld [vmem:[#allocation2 + $0x118] sm:$0xff]  ;;  %v10640_v51 = vsub.s32 %v4029_v7, %v9547_v41  ;;  %v7881_v3 = vld [vmem:[#allocation2 + $0x109] sm:$0xff] }
 0x576   : > { %12421 = vst [vmem:[#allocation49_spill] sm:$0xff] %v10625_v11  ;;  %v3083_v49 = vmul.f32 %v10586_v60, %v12423_v24  ;;  %v3177_v36 = vld [vmem:[#allocation2 + $0x120] sm:$0xff]  ;;  %v3563_v17 = vld [vmem:[#allocation2 + $0x111] sm:$0xff]  ;;  %v3471_v23 = vmul.f32 %v10605_v45, %v10438_v33  ;;  %v12428_v62 = vld [vmem:[#allocation18_spill] sm:$0xff]  ;;  %v2918_v2 = vmul.f32 %v12431_v63, %v2790_v50  ;;  %v10649_v31 = vpop.permute.xlu1 %3354 }
 0x577   : > { %12425 = vst [vmem:[#allocation50_spill] sm:$0xff] %v10632_v16  ;;  %12426 = vst [vmem:[#allocation51_spill] sm:$0xff] %v10635_v25  ;;  %v12427_v10 = vld [vmem:[#allocation17_spill] sm:$0xff]  ;;  %3061 = vperm.xlu0 %7715, %v2915_v9   ;;  %v2917_v24 = vmul.f32 %v12428_v62, %v2789_v34  ;;  %v12429_v40 = vld [vmem:[#allocation19_spill] sm:$0xff] }
 0x578   : > { %v3690_v15 = vmul.f32 %v7881_v3, %v12427_v10  ;;  %v2916_v46 = vmul.f32 %v12429_v40, %v2788_v58  ;;  %v12430_v61 = vld [vmem:[#allocation28_spill] sm:$0xff]  ;;  %v10654_v41 = vld [vmem:[%s11936_s3 + $0x8] ss:$0 sm:$0xff]  ;;  %v12432_v7 = vld [vmem:[#allocation29_spill] sm:$0xff]  ;;  %v3115_v58 = vadd.f32 %v3083_v49, %v10525_v18 }
 0x579   : > { %v3303_v1 = vmul.f32 %v12430_v61, %v3175_v59  ;;  %v3305_v3 = vmul.f32 %v12432_v7, %v3177_v36  ;;  %v12433_v10 = vld [vmem:[#allocation190_spill] sm:$0xff]  ;;  %v12435_v63 = vld [vmem:[#allocation21_spill] sm:$0xff]  ;;  %v12436_v61 = vld [vmem:[#allocation27_spill] sm:$0xff]  ;;  %v3087_v36 = vmul.f32 %v10586_v60, %v10275_v5  ;;  %v3698_v7 = vpop.permute.xlu0 %3697 }
 0x57a   : > { %v10658_v33 = vmul.f32 %v12433_v10, %v3176_v38  ;;  %v3178_v9 = vld [vmem:[#allocation2 + $0x128] sm:$0xff]  ;;  %3832 = vperm.xlu1 %7716, %v3690_v15   ;;  %v10664_v50 = vmul.f32 %v12435_v63, %v3563_v17  ;;  %v3564_v40 = vld [vmem:[#allocation2 + $0x119] sm:$0xff]  ;;  %v3084_v16 = vmul.f32 %v10586_v60, %v12436_v61  ;;  %v3086_v38 = vmul.f32 %v10586_v60, %v10298_v44 }
 0x57b   : > { %v3565_v34 = vld [vmem:[#allocation2 + $0x121] sm:$0xff]  ;;  %v3566_v10 = vld [vmem:[#allocation2 + $0x129] sm:$0xff]  ;;  %v12437_v18 = vld [vmem:[#allocation32_spill] sm:$0xff]  ;;  %v3473_v15 = vmul.f32 %v10605_v45, %v10482_v30  ;;  %v3859_v17 = vmul.f32 %v10654_v41, %v3698_v7  ;;  %3071 = vperm.xlu0 %7715, %v2917_v24  }
 0x57c   : > { %v12434_v62 = vld [vmem:[#allocation30_spill] sm:$0xff]  ;;  %v3089_v49 = vmul.f32 %v10586_v60, %v12437_v18  ;;  %v10681_v5 = vmul.f32 %v12439_v35, %v3565_v34  ;;  %v12440_v28 = vld [vmem:[#allocation33_spill] sm:$0xff]  ;;  %v10687_v18 = vpop.permute.xlu1 %3364  ;;  %v12443_v24 = vld [vmem:[#allocation191_spill] sm:$0xff] }
 0x57d   : > { %v3085_v59 = vmul.f32 %v10586_v60, %v12434_v62  ;;  %v3503_v62 = vadd.f32 %v3471_v23, %v3115_v58  ;;  %v12438_v63 = vld [vmem:[#allocation22_spill] sm:$0xff]  ;;  %v3088_v44 = vmul.f32 %v10586_v60, %v12440_v28  ;;  %v12442_v23 = vld [vmem:[#allocation24_spill] sm:$0xff]  ;;  %v3116_v28 = vadd.f32 %v3084_v16, %v10532_v20 }
 0x57e   : > { %v10678_v61 = vmul.f32 %v12438_v63, %v3178_v9  ;;  %v12441_v25 = vld [vmem:[#allocation34_spill] sm:$0xff]  ;;  %v10690_v58 = vmul.f32 %v12442_v23, %v3564_v40  ;;  %v3090_v9 = vmul.f32 %v10586_v60, %v12443_v24  ;;  %3066 = vperm.xlu1 %7716, %v2916_v46   ;;  %v3119_v63 = vadd.f32 %v3087_v36, %v10535_v56  ;;  %v10705_v40 = vld [vmem:[%s11937_s4] ss:$0 sm:$0xff] }
 0x57f   : > { %v3091_v11 = vmul.f32 %v10586_v60, %v12441_v25  ;;  %v3117_v30 = vadd.f32 %v3085_v59, %v10528_v14  ;;  %v3891_v7 = vadd.f32 %v3859_v17, %v3503_v62  ;;  %v12444_v35 = vld [vmem:[#allocation26_spill] sm:$0xff]  ;;  %v3472_v25 = vmul.f32 %v10605_v45, %v10500_v32  ;;  %v3708_v14 = vpop.permute.xlu0 %3707  ;;  %3449 = vperm.xlu0 %7715, %v3303_v1   ;;  %v12445_v1 = vld [vmem:[#allocation35_spill] sm:$0xff] }
 0x580   : > { %v10696_v34 = vmul.f32 %v12444_v35, %v3566_v10  ;;  %v3118_v59 = vadd.f32 %v3086_v38, %v10538_v55  ;;  %v3121_v46 = vadd.f32 %v3089_v49, %v10541_v21  ;;  %v3861_v10 = vmul.f32 %v10654_v41, %v3708_v14  ;;  %v3703_v36 = vpop.permute.xlu1 %3702  ;;  %v12446_v49 = vld [vmem:[#allocation36_spill] sm:$0xff] }
 0x581   : > { %v3505_v62 = vadd.f32 %v3473_v15, %v3117_v30  ;;  %v3120_v20 = vadd.f32 %v3088_v44, %v10546_v19  ;;  %v3123_v56 = vadd.f32 %v3091_v11, %v10549_v12  ;;  %v3475_v32 = vmul.f32 %v10605_v45, %v10522_v54 }
 0x582   : > { %v3474_v16 = vmul.f32 %v10605_v45, %v10543_v27  ;;  %v3122_v17 = vadd.f32 %v3090_v9, %v10554_v0  ;;  %v3930_v55 = vadd.f32 %v10705_v40, %v3891_v7  ;;  %v3860_v38 = vmul.f32 %v10654_v41, %v3703_v36  ;;  %3076 = vperm.xlu1 %7716, %v2918_v2  }
 0x583   : > { %v3893_v21 = vadd.f32 %v3861_v10, %v3505_v62  ;;  %v3093_v19 = vmul.f32 %v10586_v60, %v12445_v1  ;;  %v3092_v12 = vmul.f32 %v10586_v60, %v12446_v49  ;;  %v3094_v54 = vmul.f32 %v10586_v60, %v10461_v4  ;;  %v3718_v27 = vpop.permute.xlu0 %3717  ;;  %3459 = vperm.xlu0 %7715, %v3305_v3  }
 0x584   : > { %v3504_v11 = vadd.f32 %v3472_v25, %v3116_v28  ;;  %v3477_v0 = vmul.f32 %v10605_v45, %v10560_v47  ;;  %v3476_v15 = vmul.f32 %v10605_v45, %v10576_v39  ;;  %v3863_v2 = vmul.f32 %v10654_v41, %v3718_v27  ;;  %v3713_v4 = vpop.permute.xlu1 %3712 }
 0x585   : > { %v3932_v44 = vadd.f32 %v10705_v40, %v3893_v21  ;;  %v3507_v23 = vadd.f32 %v3475_v32, %v3119_v63  ;;  %v3506_v30 = vadd.f32 %v3474_v16, %v3118_v59  ;;  %v3479_v24 = vmul.f32 %v10605_v45, %v10596_v48 }
 0x586   : > { %v3892_v9 = vadd.f32 %v3860_v38, %v3504_v11  ;;  %v3478_v7 = vmul.f32 %v10605_v45, %v10619_v57  ;;  %v3962_v35 = vmax.f32 %v3930_v55, 0.0  ;;  %v3862_v28 = vmul.f32 %v10654_v41, %v3713_v4  ;;  %3454 = vperm.xlu1 %7716, %v10658_v33  }
 0x587   : > { %v3964_v47 = vmax.f32 %v3932_v44, 0.0  ;;  %v3125_v39 = vadd.f32 %v3093_v19, %v10589_v37  ;;  %v3124_v3 = vadd.f32 %v3092_v12, %v10592_v8  ;;  %v10740_v63 = vadd.f32 %v3094_v54, %v10602_v53  ;;  %v3728_v48 = vpop.permute.xlu0 %3727  ;;  %3837 = vperm.xlu0 %7715, %v10664_v50  }
 0x588   : > { %v3895_v25 = vadd.f32 %v3863_v2, %v3507_v23  ;;  %v3509_v14 = vadd.f32 %v3477_v0, %v3121_v46  ;;  %v3508_v59 = vadd.f32 %v3476_v15, %v3120_v20  ;;  %v3894_v10 = vadd.f32 %v3862_v28, %v3506_v30  ;;  %v3723_v8 = vpop.permute.xlu1 %3722 }
 0x589   : > { %v3994_v62 = vmax.f32 %v3962_v35, %v3964_v47  ;;  %v3511_v57 = vadd.f32 %v3479_v24, %v3123_v56  ;;  %v3481_v32 = vmul.f32 %v10605_v45, %v10637_v52  ;;  %v3931_v33 = vadd.f32 %v10705_v40, %v3892_v9 }
 0x58a   : > { %v3865_v37 = vmul.f32 %v10654_v41, %v3728_v48  ;;  %v10747_v16 = vadd.f32 %v3478_v7, %v3122_v17  ;;  %v3933_v46 = vadd.f32 %v10705_v40, %v3894_v10  ;;  %3464 = vperm.xlu1 %7716, %v10678_v61   ;;  %v3480_v50 = vmul.f32 %v10605_v45, %v10649_v31 }
 0x58b   : > { %v4026_v53 = vcombine.high %v3994_v62, %v3994_v62  ;;  %v4033_v36 = vrot.slane %v3994_v62, %v10640_v51  ;;  %v3934_v20 = vadd.f32 %v10705_v40, %v3895_v25  ;;  %v3864_v56 = vmul.f32 %v10654_v41, %v3723_v8  ;;  %v3738_v55 = vpop.permute.xlu0 %3737  ;;  %3847 = vperm.xlu0 %7715, %v10681_v5   ;;  %v10771_v5 = vld [vmem:[%s11935_s2] sm:$0xff] }
 0x58c   : > { %v3897_v52 = vadd.f32 %v3865_v37, %v3509_v14  ;;  %v3965_v1 = vmax.f32 %v3933_v46, 0.0  ;;  %v10759_v19 = vadd.f32 %v3481_v32, %v3125_v39  ;;  %v3963_v61 = vmax.f32 %v3931_v33, 0.0  ;;  %v10763_v12 = vpop.permute.xlu1 %3732 }
 0x58d   : > { %v4040_v21 = vrot.slane %v4026_v53, %v10640_v51  ;;  %v4041_v17 = vcombine.high %v4033_v36, %v4033_v36  ;;  %v4049_v38 = vrot.slane %v4033_v36, %v10640_v51  ;;  %v3867_v31 = vmul.f32 %v10654_v41, %v3738_v55 }
 0x58e   : > { %v3936_v49 = vadd.f32 %v10705_v40, %v3897_v52  ;;  %v3896_v0 = vadd.f32 %v3864_v56, %v3508_v59  ;;  %3842 = vperm.xlu1 %7716, %v10690_v58   ;;  %v10773_v15 = vadd.f32 %v3480_v50, %v3124_v3  ;;  %v3966_v44 = vmax.f32 %v3934_v20, 0.0  ;;  %v10792_v59 = vld [vmem:[%s11935_s2 + $0x10] sm:$0xff] }
 0x58f   : > { %v4042_v54 = vcombine.high %v4040_v21, %v4040_v21  ;;  %v4056_v11 = vrot.slane %v4040_v21, %v10640_v51  ;;  %v4063_v27 = vrot.slane %v4041_v17, %v10640_v51  ;;  %v3995_v2 = vmax.f32 %v3963_v61, %v3965_v1  ;;  %v10775_v30 = vpop.permute.xlu0 %3747  ;;  %v10815_v1 = vld [vmem:[%s11935_s2 + $0x20] sm:$0xff] }
 0x590   : > { %v3968_v23 = vmax.f32 %v3936_v49, 0.0  ;;  %v3482_v24 = vmul.f32 %v10605_v45, %v10687_v18  ;;  %v4071_v4 = vcombine.high %v4049_v38, %v4049_v38  ;;  %v11955_v58 = vmov 1   ;;  %v10783_v3 = vpop.permute.xlu1 %3742 }
 0x591   : > { %v4070_v9 = vrot.slane %v4042_v54, %v10640_v51  ;;  %v4073_v7 = vcombine.high %v4063_v27, %v4063_v27  ;;  %7717 = vset.pattern.permute.xlu0 %v11955_v58  ;;  %v4075_v35 = vcombine.high %v3995_v2, %v3995_v2  ;;  %v4082_v47 = vrot.slane %v3995_v2, %v10640_v51 }
 0x592   : > { %v3996_v28 = vmax.f32 %v3966_v44, %v3968_v23  ;;  %v3899_v39 = vadd.f32 %v3867_v31, %v3511_v57  ;;  %5593 = vperm.xlu0 %7717, %v10771_v5   ;;  %v4072_v25 = vcombine.high %v4056_v11, %v4056_v11  ;;  %v10786_v18 = vadd.f32 %v10705_v40, %v3896_v0 }
 0x593   : > { %v4074_v48 = vcombine.high %v4070_v9, %v4070_v9  ;;  %v4939_v14 = vmax.f32 %v4071_v4, %v4073_v7  ;;  %3852 = vperm.xlu1 %7716, %v10696_v34   ;;  %v4089_v62 = vrot.slane %v4075_v35, %v10640_v51  ;;  %v4090_v10 = vcombine.high %v4082_v47, %v4082_v47  ;;  %v10796_v33 = vpop.permute.xlu0 %2981  ;;  %v10802_v34 = vld [vmem:[%s11935_s2 + $0x8] sm:$0xff] }
 0x594   : > { %v4098_v57 = vrot.slane %v4082_v47, %v10640_v51  ;;  %v4124_v32 = vcombine.high %v3996_v28, %v3996_v28  ;;  %v4938_v37 = vmax.f32 %v4049_v38, %v4063_v27  ;;  %v4940_v8 = vmax.f32 %v4056_v11, %v4070_v9  ;;  %v3753_v56 = vpop.permute.xlu1 %3752 }
 0x595   : > { %v4941_v53 = vmax.f32 %v4072_v25, %v4074_v48  ;;  %v4131_v36 = vrot.slane %v3996_v28, %v10640_v51  ;;  %v4091_v46 = vcombine.high %v4089_v62, %v4089_v62  ;;  %v4105_v50 = vrot.slane %v4089_v62, %v10640_v51  ;;  %v10835_v48 = vld [vmem:[%s11935_s2 + $0x30] sm:$0xff] }
 0x596   : > { %v4112_v20 = vrot.slane %v4090_v10, %v10640_v51  ;;  %v10807_v52 = vadd.f32 %v10705_v40, %v3899_v39  ;;  %5601 = vperm.xlu0 %7717, %v10792_v59   ;;  %v5071_v55 = vcombine.low %v4938_v37, %v4939_v14  ;;  %v4138_v17 = vrot.slane %v4124_v32, %v10640_v51 }
 0x597   : > { %v5072_v21 = vcombine.low %v4940_v8, %v4941_v53  ;;  %v4139_v38 = vcombine.high %v4131_v36, %v4131_v36  ;;  %7718 = vset.pattern.permute.xlu1 %v11955_v58  ;;  %v4119_v61 = vrot.slane %v4091_v46, %v10640_v51  ;;  %v4120_v49 = vcombine.high %v4098_v57, %v4098_v57  ;;  %v10818_v11 = vpop.permute.xlu0 %2991 }
 0x598   : > { %v4121_v31 = vcombine.high %v4105_v50, %v4105_v50  ;;  %v4122_v54 = vcombine.high %v4112_v20, %v4112_v20  ;;  %5597 = vperm.xlu1 %7718, %v10802_v34   ;;  %v4942_v0 = vmax.f32 %v4098_v57, %v4112_v20  ;;  %v4140_v44 = vcombine.high %v4138_v17, %v4138_v17  ;;  %v10826_v35 = vpop.permute.xlu1 %2986 }
 0x599   : > { %v5088_v27 = vrot.slane %v5072_v21, %v10640_v51  ;;  %v4147_v2 = vrot.slane %v4131_v36, %v10640_v51  ;;  %v4123_v23 = vcombine.high %v4119_v61, %v4119_v61  ;;  %v4154_v4 = vrot.slane %v4138_v17, %v10640_v51 }
 0x59a   : > { %v4943_v9 = vmax.f32 %v4120_v49, %v4122_v54  ;;  %v4161_v7 = vrot.slane %v4139_v38, %v10640_v51  ;;  %5609 = vperm.xlu0 %7717, %v10815_v1   ;;  %v3514_v47 = vadd.f32 %v3482_v24, %v10740_v63  ;;  %v5081_v28 = vrot.slane %v5071_v55, %v10640_v51 }
 0x59b   : > { %v4168_v39 = vrot.slane %v4140_v44, %v10640_v51  ;;  %v3967_v25 = vmax.f32 %v10786_v18, 0.0  ;;  %v4944_v14 = vmax.f32 %v4105_v50, %v4119_v61  ;;  %v4945_v62 = vmax.f32 %v4121_v31, %v4123_v23  ;;  %v10837_v32 = vpop.permute.xlu0 %3001 }
 0x59c   : > { %v5073_v10 = vcombine.low %v4942_v0, %v4943_v9  ;;  %v4171_v57 = vcombine.high %v4161_v7, %v4161_v7  ;;  %v11953_v37 = vmov 5   ;;  %v5103_v63 = vcombine.low %v5081_v28, %v5088_v27  ;;  %v10847_v20 = vpop.permute.xlu1 %2996 }
 0x59d   : > { %7719 = vset.pattern.permute.xlu1 %v11953_v37  ;;  %v4169_v24 = vcombine.high %v4147_v2, %v4147_v2  ;;  %v4172_v8 = vcombine.high %v4168_v39, %v4168_v39  ;;  %v3866_v18 = vmul.f32 %v10654_v41, %v10763_v12  ;;  %v5074_v53 = vcombine.low %v4944_v14, %v4945_v62 }
 0x59e   : > { %5996 = vperm.xlu1 %7719, %v10771_v5   ;;  %v4170_v36 = vcombine.high %v4154_v4, %v4154_v4  ;;  %v3970_v46 = vmax.f32 %v10807_v52, 0.0  ;;  %v3869_v50 = vmul.f32 %v10654_v41, %v10775_v30  ;;  %5617 = vperm.xlu0 %7717, %v10835_v48   ;;  %v5095_v55 = vrot.slane %v5073_v10, %v10640_v51  ;;  %v10882_v10 = vld [vmem:[%s11935_s2 + $0x18] sm:$0xff] }
 0x59f   : > { %v4947_v21 = vmax.f32 %v4169_v24, %v4171_v57  ;;  %v3898_v17 = vadd.f32 %v3866_v18, %v10747_v16  ;;  %v3868_v12 = vmul.f32 %v10654_v41, %v10783_v3  ;;  %v5102_v38 = vrot.slane %v5074_v53, %v10640_v51  ;;  %v10856_v30 = vpop.permute.xlu0 %3011 }
 0x5a0   : > { %v4949_v61 = vmax.f32 %v4170_v36, %v4172_v8  ;;  %v3901_v52 = vadd.f32 %v3869_v50, %v10759_v19  ;;  %v3870_v49 = vmul.f32 %v10654_v41, %v3753_v56  ;;  %v5111_v31 = vrot.slane %v5103_v63, %v10640_v51  ;;  %v10864_v19 = vpop.permute.xlu1 %3006 }
 0x5a1   : > { %v4946_v54 = vmax.f32 %v4147_v2, %v4161_v7  ;;  %v3937_v27 = vadd.f32 %v10705_v40, %v3898_v17  ;;  %v3900_v0 = vadd.f32 %v3868_v12, %v10773_v15  ;;  %v11951_v16 = vmov 2  }
 0x5a2   : > { %7720 = vset.pattern.permute.xlu1 %v11951_v16  ;;  %v5104_v3 = vcombine.low %v5095_v55, %v5102_v38  ;;  %v4948_v44 = vmax.f32 %v4154_v4, %v4168_v39  ;;  %v3940_v23 = vadd.f32 %v10705_v40, %v3901_v52  ;;  %v3902_v9 = vadd.f32 %v3870_v49, %v3514_v47  ;;  %v10907_v52 = vld [vmem:[%s11935_s2 + $0x28] sm:$0xff] }
 0x5a3   : > { %7736 = vset.pattern.permute.xlu0 %v11953_v37  ;;  %v10866_v56 = vcombine.low %v4946_v54, %v4947_v21  ;;  %v3969_v28 = vmax.f32 %v3937_v27, 0.0  ;;  %v3939_v2 = vadd.f32 %v10705_v40, %v3900_v0  ;;  %v3095_v15 = vmul.f32 %v10586_v60, %v10796_v33  ;;  %5698 = vperm.xlu1 %7720, %v10771_v5   ;;  %v10877_v14 = vpop.permute.xlu0 %3369 }
 0x5a4   : > { %6000 = vperm.xlu0 %7736, %v10802_v34   ;;  %v5118_v4 = vrot.slane %v5104_v3, %v10640_v51  ;;  %v10874_v7 = vcombine.low %v4948_v44, %v4949_v61  ;;  %v3972_v47 = vmax.f32 %v3940_v23, 0.0  ;;  %v3941_v39 = vadd.f32 %v10705_v40, %v3902_v9  ;;  %v10884_v8 = vpop.permute.xlu1 %3016 }
 0x5a5   : > { %v3997_v62 = vmax.f32 %v3967_v25, %v3969_v28  ;;  %v3971_v63 = vmax.f32 %v3939_v2, 0.0  ;;  %v5130_v18 = vrot.slane %v10866_v56, %v10640_v51  ;;  %v10890_v50 = vadd.f32 %v3095_v15, %v10599_v29 }
 0x5a6   : > { %v5119_v33 = vcombine.low %v5111_v31, %v5118_v4  ;;  %v3998_v57 = vmax.f32 %v3970_v46, %v3972_v47  ;;  %v3973_v24 = vmax.f32 %v3941_v39, 0.0  ;;  %v5137_v25 = vrot.slane %v10874_v7, %v10640_v51 }
 0x5a7   : > { %v4173_v53 = vcombine.high %v3997_v62, %v3997_v62  ;;  %v4180_v36 = vrot.slane %v3997_v62, %v10640_v51  ;;  %5702 = vperm.xlu1 %7720, %v10802_v34   ;;  %v10898_v17 = vpop.permute.xlu0 %3379  ;;  %v3097_v61 = vmul.f32 %v10586_v60, %v10818_v11  ;;  %v10913_v27 = vmul.f32 %v10586_v60, %v10826_v35 }
 0x5a8   : > { %5471 = vst.msk [vmem:[#allocation3 + $0x10] sm:$0xff] %vm5002_vm1, %v5119_v33  ;;  %v4222_v46 = vcombine.high %v3998_v57, %v3998_v57  ;;  %v4229_v55 = vrot.slane %v3998_v57, %v10640_v51  ;;  %v3999_v21 = vmax.f32 %v3971_v63, %v3973_v24  ;;  %6008 = vperm.xlu0 %7736, %v10882_v10   ;;  %v10915_v0 = vpop.permute.xlu1 %3374  ;;  %v11957_v9 = vmov 6   ;;  %v10930_v33 = vld [vmem:[%s11935_s2 + $0x38] sm:$0xff] }
 0x5a9   : > { %v4187_v12 = vrot.slane %v4173_v53, %v10640_v51  ;;  %v4188_v38 = vcombine.high %v4180_v36, %v4180_v36  ;;  %v4196_v29 = vrot.slane %v4180_v36, %v10640_v51 }
 0x5aa   : > { %v4236_v49 = vrot.slane %v4222_v46, %v10640_v51  ;;  %v4237_v31 = vcombine.high %v4229_v55, %v4229_v55  ;;  %v4245_v54 = vrot.slane %v4229_v55, %v10640_v51  ;;  %v4271_v23 = vcombine.high %v3999_v21, %v3999_v21 }
 0x5ab   : > { %v4189_v3 = vcombine.high %v4187_v12, %v4187_v12  ;;  %v4203_v44 = vrot.slane %v4187_v12, %v10640_v51  ;;  %v4210_v11 = vrot.slane %v4188_v38, %v10640_v51  ;;  %7721 = vset.pattern.permute.xlu1 %v11957_v9  ;;  %v4218_v28 = vcombine.high %v4196_v29, %v4196_v29  ;;  %v10923_v35 = vpop.permute.xlu0 %3389 }
 0x5ac   : > { %v4238_v2 = vcombine.high %v4236_v49, %v4236_v49  ;;  %v4252_v15 = vrot.slane %v4236_v49, %v10640_v51  ;;  %v4259_v4 = vrot.slane %v4237_v31, %v10640_v51  ;;  %6016 = vperm.xlu0 %7736, %v10907_v52   ;;  %v4267_v62 = vcombine.high %v4245_v54, %v4245_v54  ;;  %v10933_v36 = vpop.permute.xlu1 %3384 }
 0x5ad   : > { %v4217_v7 = vrot.slane %v4189_v3, %v10640_v51  ;;  %v4219_v47 = vcombine.high %v4203_v44, %v4203_v44  ;;  %v4220_v39 = vcombine.high %v4210_v11, %v4210_v11  ;;  %6104 = vperm.xlu1 %7721, %v10802_v34   ;;  %v4950_v57 = vmax.f32 %v4196_v29, %v4210_v11 }
 0x5ae   : > { %v4266_v63 = vrot.slane %v4238_v2, %v10640_v51  ;;  %v4268_v24 = vcombine.high %v4252_v15, %v4252_v15  ;;  %v4269_v53 = vcombine.high %v4259_v4, %v4259_v4  ;;  %v4954_v12 = vmax.f32 %v4245_v54, %v4259_v4 }
 0x5af   : > { %v4221_v46 = vcombine.high %v4217_v7, %v4217_v7  ;;  %v4951_v55 = vmax.f32 %v4218_v28, %v4220_v39  ;;  %v4278_v38 = vrot.slane %v3999_v21, %v10640_v51  ;;  %v4952_v49 = vmax.f32 %v4203_v44, %v4217_v7  ;;  %v10938_v37 = vpop.permute.xlu0 %3399 }
 0x5b0   : > { %v4270_v31 = vcombine.high %v4266_v63, %v4266_v63  ;;  %v4955_v3 = vmax.f32 %v4267_v62, %v4269_v53  ;;  %v4285_v16 = vrot.slane %v4271_v23, %v10640_v51  ;;  %6024 = vperm.xlu0 %7736, %v10930_v33   ;;  %v7915_v9 = vmov 3   ;;  %v10944_v23 = vpop.permute.xlu1 %3394 }
 0x5b1   : > { %v4953_v29 = vmax.f32 %v4219_v47, %v4221_v46  ;;  %v5122_v11 = vcombine.low %v4950_v57, %v4951_v55  ;;  %v4286_v2 = vcombine.high %v4278_v38, %v4278_v38  ;;  %v4294_v58 = vrot.slane %v4278_v38, %v10640_v51  ;;  %7722 = vset.pattern.permute.xlu1 %v7915_v9 }
 0x5b2   : > { %v4956_v54 = vmax.f32 %v4252_v15, %v4266_v63  ;;  %v4957_v28 = vmax.f32 %v4268_v24, %v4270_v31  ;;  %v4287_v21 = vcombine.high %v4285_v16, %v4285_v16  ;;  %v4301_v44 = vrot.slane %v4285_v16, %v10640_v51  ;;  %5803 = vperm.xlu1 %7722, %v10771_v5  }
 0x5b3   : > { %v5152_v4 = vcombine.low %v5130_v18, %v5137_v25  ;;  %v5123_v7 = vcombine.low %v4952_v49, %v4953_v29  ;;  %v5169_v47 = vcombine.low %v4954_v12, %v4955_v3  ;;  %v4308_v39 = vrot.slane %v4286_v2, %v10640_v51  ;;  %v3758_v24 = vpop.permute.xlu0 %3757 }
 0x5b4   : > { %v5170_v62 = vcombine.low %v4956_v54, %v4957_v28  ;;  %v4315_v57 = vrot.slane %v4287_v21, %v10640_v51  ;;  %v3129_v15 = vadd.f32 %v3097_v61, %v10608_v22  ;;  %v3099_v16 = vmul.f32 %v10586_v60, %v10837_v32  ;;  %v10962_v32 = vpop.permute.xlu1 %3404 }
 0x5b5   : > { %v12447_v63 = vmov 6   ;;  %v5144_v53 = vrot.slane %v5122_v11, %v10640_v51  ;;  %v5151_v56 = vrot.slane %v5123_v7, %v10640_v51  ;;  %v4316_v18 = vcombine.high %v4294_v58, %v4294_v58 }
 0x5b6   : > { %7739 = vset.pattern.permute.xlu0 %v12447_v63  ;;  %v4318_v25 = vcombine.high %v4308_v39, %v4308_v39  ;;  %v5186_v46 = vrot.slane %v5170_v62, %v10640_v51  ;;  %v4317_v55 = vcombine.high %v4301_v44, %v4301_v44  ;;  %v4319_v12 = vcombine.high %v4315_v57, %v4315_v57 }
 0x5b7   : > { %6100 = vperm.xlu0 %7739, %v10771_v5   ;;  %v3098_v22 = vmul.f32 %v10586_v60, %v10847_v20  ;;  %v7916_v61 = vmov 7   ;;  %v5153_v38 = vcombine.low %v5144_v53, %v5151_v56  ;;  %v5179_v49 = vrot.slane %v5169_v47, %v10640_v51  ;;  %v3768_v20 = vpop.permute.xlu0 %3767 }
 0x5b8   : > { %7723 = vset.pattern.permute.xlu1 %v7916_v61  ;;  %v4958_v31 = vmax.f32 %v4294_v58, %v4308_v39  ;;  %v4959_v3 = vmax.f32 %v4316_v18, %v4318_v25  ;;  %v5160_v29 = vrot.slane %v5152_v4, %v10640_v51  ;;  %v4960_v11 = vmax.f32 %v4301_v44, %v4315_v57 }
 0x5b9   : > { %6204 = vperm.xlu1 %7723, %v10771_v5   ;;  %v4961_v2 = vmax.f32 %v4317_v55, %v4319_v12  ;;  %v3101_v54 = vmul.f32 %v10586_v60, %v10856_v30  ;;  %v5167_v28 = vrot.slane %v5153_v38, %v10640_v51  ;;  %v5201_v21 = vcombine.low %v5179_v49, %v5186_v46  ;;  %v3763_v30 = vpop.permute.xlu1 %3762 }
 0x5ba   : > { %v5171_v7 = vcombine.low %v4958_v31, %v4959_v3  ;;  %v3483_v62 = vmul.f32 %v10605_v45, %v10877_v14  ;;  %v3128_v5 = vadd.f32 %v10913_v27, %v10611_v6  ;;  %v3131_v44 = vadd.f32 %v3099_v16, %v10614_v26 }
 0x5bb   : > { %6108 = vperm.xlu0 %7739, %v10792_v59   ;;  %v5172_v58 = vcombine.low %v4960_v11, %v4961_v2  ;;  %v3485_v4 = vmul.f32 %v10605_v45, %v10898_v17  ;;  %v5168_v47 = vcombine.low %v5160_v29, %v5167_v28  ;;  %v3130_v39 = vadd.f32 %v3098_v22, %v10617_v42  ;;  %v3778_v27 = vpop.permute.xlu0 %3777 }
 0x5bc   : > { %v3484_v57 = vmul.f32 %v10605_v45, %v10915_v0  ;;  %v3487_v14 = vmul.f32 %v10605_v45, %v10923_v35  ;;  %v5193_v53 = vrot.slane %v5171_v7, %v10640_v51  ;;  %v3486_v26 = vmul.f32 %v10605_v45, %v10933_v36  ;;  %v12449_v7 = vld [vmem:[#allocation178_spill] sm:$0xff] }
 0x5bd   : > { %6208 = vperm.xlu1 %7723, %v10802_v34   ;;  %v5200_v6 = vrot.slane %v5172_v58, %v10640_v51  ;;  %v3489_v17 = vmul.f32 %v10605_v45, %v10938_v37  ;;  %5472 = vst.msk [vmem:[#allocation3 + $0x18] sm:$0xff] %vm5002_vm1, %v5168_v47  ;;  %v5209_v42 = vrot.slane %v5201_v21, %v10640_v51  ;;  %v3773_v46 = vpop.permute.xlu1 %3772  ;;  %v12448_v38 = vmov 1  }
 0x5be   : > { %v3133_v0 = vadd.f32 %v3101_v54, %v10622_v43  ;;  %v3515_v35 = vadd.f32 %v3483_v62, %v10890_v50  ;;  %v3871_v16 = vmul.f32 %v10654_v41, %v3758_v24  ;;  %v3517_v18 = vadd.f32 %v3485_v4, %v3129_v15  ;;  %v12450_v4 = vld [vmem:[#allocation179_spill] sm:$0xff] }
 0x5bf   : > { %6116 = vperm.xlu0 %7739, %v10815_v1   ;;  %v5202_v56 = vcombine.low %v5193_v53, %v5200_v6  ;;  %v3516_v25 = vadd.f32 %v3484_v57, %v3128_v5  ;;  %v3519_v36 = vadd.f32 %v3487_v14, %v3131_v44  ;;  %v3518_v55 = vadd.f32 %v3486_v26, %v3130_v39  ;;  %v3788_v49 = vpop.permute.xlu0 %3787 }
 0x5c0   : > { %v3903_v37 = vadd.f32 %v3871_v16, %v3515_v35  ;;  %v3873_v12 = vmul.f32 %v10654_v41, %v3768_v20  ;;  %v3872_v22 = vmul.f32 %v10654_v41, %v3763_v30  ;;  %v3521_v50 = vadd.f32 %v3489_v17, %v3133_v0 }
 0x5c1   : > { %7724 = vset.pattern.permute.xlu1 %v12448_v38  ;;  %v5216_v43 = vrot.slane %v5202_v56, %v10640_v51  ;;  %v3875_v24 = vmul.f32 %v10654_v41, %v3778_v27  ;;  %v3874_v15 = vmul.f32 %v10654_v41, %v3773_v46  ;;  %v3877_v11 = vmul.f32 %v10654_v41, %v3788_v49  ;;  %v3783_v21 = vpop.permute.xlu1 %3782  ;;  %v12453_v27 = vld [vmem:[#allocation49_spill] sm:$0xff] }
 0x5c2   : > { %5605 = vperm.xlu1 %7724, %v10882_v10   ;;  %v3942_v31 = vadd.f32 %v10705_v40, %v3903_v37  ;;  %v3905_v3 = vadd.f32 %v3873_v12, %v3517_v18  ;;  %v3904_v29 = vadd.f32 %v3872_v22, %v3516_v25  ;;  %v3100_v54 = vmul.f32 %v10586_v60, %v10864_v19 }
 0x5c3   : > { %6124 = vperm.xlu0 %7739, %v10835_v48   ;;  %v5217_v2 = vcombine.low %v5209_v42, %v5216_v43  ;;  %v3907_v20 = vadd.f32 %v3875_v24, %v3519_v36  ;;  %v3906_v28 = vadd.f32 %v3874_v15, %v3518_v55  ;;  %v11010_v62 = vmul.f32 %v10446_v13, %v12449_v7  ;;  %v11024_v57 = vpop.permute.xlu0 %3021  ;;  %v12454_v36 = vld [vmem:[#allocation181_spill] sm:$0xff]  ;;  %v12455_v55 = vld [vmem:[#allocation51_spill] sm:$0xff] }
 0x5c4   : > { %v3944_v58 = vadd.f32 %v10705_v40, %v3905_v3  ;;  %v3943_v5 = vadd.f32 %v10705_v40, %v3904_v29  ;;  %v3909_v44 = vadd.f32 %v3877_v11, %v3521_v50  ;;  %v11016_v48 = vmul.f32 %v10446_v13, %v12450_v4 }
 0x5c5   : > { %5473 = vst.msk [vmem:[#allocation3 + $0x20] sm:$0xff] %vm5002_vm1, %v5217_v2  ;;  %v3102_v19 = vmul.f32 %v10586_v60, %v10884_v8  ;;  %v3946_v30 = vadd.f32 %v10705_v40, %v3907_v20  ;;  %v3945_v47 = vadd.f32 %v10705_v40, %v3906_v28  ;;  %v12451_v39 = vmov 5   ;;  %v12452_v8 = vld [vmem:[#allocation180_spill] sm:$0xff]  ;;  %v3793_v16 = vpop.permute.xlu1 %3792 }
 0x5c6   : > { %7725 = vset.pattern.permute.xlu1 %v12451_v39  ;;  %v3488_v14 = vmul.f32 %v10605_v45, %v10944_v23  ;;  %v3974_v53 = vmax.f32 %v3942_v31, 0.0  ;;  %v3976_v6 = vmax.f32 %v3944_v58, 0.0  ;;  %v3948_v26 = vadd.f32 %v10705_v40, %v3909_v44 }
 0x5c7   : > { %6004 = vperm.xlu1 %7725, %v10792_v59   ;;  %7741 = vset.pattern.permute.xlu0 %v7915_v9  ;;  %v11033_v17 = vmul.f32 %v10446_v13, %v12452_v8  ;;  %v3132_v42 = vadd.f32 %v3100_v54, %v12453_v27  ;;  %v3975_v0 = vmax.f32 %v3943_v5, 0.0  ;;  %v3977_v35 = vmax.f32 %v3945_v47, 0.0  ;;  %v11045_v43 = vpop.permute.xlu0 %3031 }
 0x5c8   : > { %5807 = vperm.xlu0 %7741, %v10802_v34   ;;  %v3490_v23 = vmul.f32 %v10605_v45, %v10962_v32  ;;  %v4000_v56 = vmax.f32 %v3974_v53, %v3976_v6  ;;  %v3978_v18 = vmax.f32 %v3946_v30, 0.0  ;;  %v3980_v25 = vmax.f32 %v3948_v26, 0.0 }
 0x5c9   : > { %v11041_v46 = vmul.f32 %v10446_v13, %v12454_v36  ;;  %v3134_v37 = vadd.f32 %v3102_v19, %v12455_v55  ;;  %v4001_v12 = vmax.f32 %v3975_v0, %v3977_v35  ;;  %v3876_v22 = vmul.f32 %v10654_v41, %v3783_v21  ;;  %v11053_v11 = vpop.permute.xlu1 %3026 }
 0x5ca   : > { %v3520_v50 = vadd.f32 %v3488_v14, %v3132_v42  ;;  %v4320_v24 = vcombine.high %v4000_v56, %v4000_v56  ;;  %v4327_v15 = vrot.slane %v4000_v56, %v10640_v51  ;;  %v4002_v49 = vmax.f32 %v3978_v18, %v3980_v25 }
 0x5cb   : > { %v12456_v32 = vmov 2   ;;  %v4369_v31 = vcombine.high %v4001_v12, %v4001_v12  ;;  %v4376_v3 = vrot.slane %v4001_v12, %v10640_v51  ;;  %v3878_v29 = vmul.f32 %v10654_v41, %v3793_v16  ;;  %v11059_v44 = vpop.permute.xlu0 %3041 }
 0x5cc   : > { %7726 = vset.pattern.permute.xlu1 %v12456_v32  ;;  %5815 = vperm.xlu0 %7741, %v10882_v10   ;;  %v3522_v2 = vadd.f32 %v3490_v23, %v3134_v37  ;;  %v4334_v54 = vrot.slane %v4320_v24, %v10640_v51  ;;  %v4335_v20 = vcombine.high %v4327_v15, %v4327_v15 }
 0x5cd   : > { %5706 = vperm.xlu1 %7726, %v10792_v59   ;;  %v4343_v28 = vrot.slane %v4327_v15, %v10640_v51  ;;  %v4383_v21 = vrot.slane %v4369_v31, %v10640_v51  ;;  %v4384_v7 = vcombine.high %v4376_v3, %v4376_v3  ;;  %v4392_v58 = vrot.slane %v4376_v3, %v10640_v51  ;;  %v11066_v26 = vpop.permute.xlu1 %3036 }
 0x5ce   : > { %v3908_v5 = vadd.f32 %v3876_v22, %v3520_v50  ;;  %v4336_v41 = vcombine.high %v4334_v54, %v4334_v54  ;;  %v4350_v4 = vrot.slane %v4334_v54, %v10640_v51  ;;  %v4357_v19 = vrot.slane %v4335_v20, %v10640_v51 }
 0x5cf   : > { %v4418_v30 = vcombine.high %v4002_v49, %v4002_v49  ;;  %v4385_v47 = vcombine.high %v4383_v21, %v4383_v21  ;;  %v4399_v14 = vrot.slane %v4383_v21, %v10640_v51  ;;  %v4406_v53 = vrot.slane %v4384_v7, %v10640_v51  ;;  %v11072_v18 = vpop.permute.xlu0 %3051  ;;  %v12457_v7 = vld [vmem:[#allocation31_spill] sm:$0xff] }
 0x5d0   : > { %v3910_v6 = vadd.f32 %v3878_v29, %v3522_v2  ;;  %v4364_v8 = vrot.slane %v4336_v41, %v10640_v51  ;;  %v4365_v27 = vcombine.high %v4343_v28, %v4343_v28  ;;  %v4367_v42 = vcombine.high %v4357_v19, %v4357_v19  ;;  %5823 = vperm.xlu0 %7741, %v10907_v52  }
 0x5d1   : > { %5710 = vperm.xlu1 %7726, %v10882_v10   ;;  %v4425_v0 = vrot.slane %v4002_v49, %v10640_v51  ;;  %v4366_v35 = vcombine.high %v4350_v4, %v4350_v4  ;;  %v4413_v16 = vrot.slane %v4385_v47, %v10640_v51  ;;  %v4414_v23 = vcombine.high %v4392_v58, %v4392_v58  ;;  %v11076_v15 = vpop.permute.xlu1 %3046  ;;  %v12461_v47 = vld [vmem:[#allocation38_spill] sm:$0xff] }
 0x5d2   : > { %v4416_v56 = vcombine.high %v4406_v53, %v4406_v53  ;;  %v4368_v25 = vcombine.high %v4364_v8, %v4364_v8  ;;  %v4962_v36 = vmax.f32 %v4343_v28, %v4357_v19  ;;  %v4963_v55 = vmax.f32 %v4365_v27, %v4367_v42  ;;  %v12459_v19 = vld [vmem:[#allocation37_spill] sm:$0xff]  ;;  %v12463_v42 = vld [vmem:[#allocation40_spill] sm:$0xff] }
 0x5d3   : > { %v4432_v37 = vrot.slane %v4418_v30, %v10640_v51  ;;  %v4415_v12 = vcombine.high %v4399_v14, %v4399_v14  ;;  %v4417_v22 = vcombine.high %v4413_v16, %v4413_v16  ;;  %v4966_v50 = vmax.f32 %v4392_v58, %v4406_v53  ;;  %v11080_v21 = vpop.permute.xlu0 %3409  ;;  %v12458_v58 = vld [vmem:[#allocation48_spill] sm:$0xff]  ;;  %v12460_v30 = vld [vmem:[#allocation50_spill] sm:$0xff] }
 0x5d4   : > { %v4967_v24 = vmax.f32 %v4414_v23, %v4416_v56  ;;  %v4964_v49 = vmax.f32 %v4350_v4, %v4364_v8  ;;  %v4965_v31 = vmax.f32 %v4366_v35, %v4368_v25  ;;  %v5218_v3 = vcombine.low %v4962_v36, %v4963_v55  ;;  %5831 = vperm.xlu0 %7741, %v10930_v33   ;;  %v12462_v8 = vld [vmem:[#allocation39_spill] sm:$0xff]  ;;  %v12464_v25 = vld [vmem:[#allocation41_spill] sm:$0xff] }
 0x5d5   : > { %7727 = vset.pattern.permute.xlu1 %v12447_v63  ;;  %v4434_v29 = vcombine.high %v4432_v37, %v4432_v37  ;;  %v4968_v2 = vmax.f32 %v4399_v14, %v4413_v16  ;;  %v4969_v54 = vmax.f32 %v4415_v12, %v4417_v22  ;;  %v4433_v28 = vcombine.high %v4425_v0, %v4425_v0  ;;  %v11103_v56 = vpop.permute.xlu1 %3056 }
 0x5d6   : > { %v5220_v20 = vcombine.low %v4966_v50, %v4967_v24  ;;  %6112 = vperm.xlu1 %7727, %v10882_v10   ;;  %v11084_v41 = vadd.f32 %v12458_v58, %v12457_v7  ;;  %v11088_v4 = vadd.f32 %v12460_v30, %v12459_v19  ;;  %v11092_v53 = vadd.f32 %v11010_v62, %v12461_v47  ;;  %v12465_v24 = vld [vmem:[#allocation182_spill] sm:$0xff]  ;;  %v12467_v7 = vld [vmem:[#allocation184_spill] sm:$0xff]  ;;  %v12468_v19 = vld [vmem:[#allocation185_spill] sm:$0xff] }
 0x5d7   : > { %v5219_v14 = vcombine.low %v4964_v49, %v4965_v31  ;;  %v11096_v27 = vadd.f32 %v11016_v48, %v12462_v8  ;;  %v11100_v35 = vadd.f32 %v11033_v17, %v12463_v42  ;;  %v5221_v16 = vcombine.low %v4968_v2, %v4969_v54  ;;  %v12466_v31 = vld [vmem:[#allocation183_spill] sm:$0xff]  ;;  %v12469_v47 = vld [vmem:[#allocation186_spill] sm:$0xff] }
 0x5d8   : > { %v3947_v23 = vadd.f32 %v10705_v40, %v3908_v5  ;;  %v11107_v36 = vadd.f32 %v11041_v46, %v12464_v25  ;;  %v5228_v62 = vrot.slane %v5218_v3, %v10640_v51  ;;  %v4462_v48 = vrot.slane %v4434_v29, %v10640_v51  ;;  %v11118_v46 = vpop.permute.xlu0 %3419 }
 0x5d9   : > { %v5235_v55 = vrot.slane %v5219_v14, %v10640_v51  ;;  %v7917_v12 = vmov 4   ;;  %v5242_v17 = vrot.slane %v5220_v20, %v10640_v51  ;;  %v5249_v22 = vrot.slane %v5221_v16, %v10640_v51 }
 0x5da   : > { %7747 = vset.pattern.permute.xlu0 %v7917_v12  ;;  %v4455_v5 = vrot.slane %v4433_v28, %v10640_v51  ;;  %v3949_v50 = vadd.f32 %v10705_v40, %v3910_v6  ;;  %7728 = vset.pattern.permute.xlu1 %v7915_v9  ;;  %v2721_v49 = vmul.f32 %v10446_v13, %v12465_v24  ;;  %v3979_v28 = vmax.f32 %v3947_v23, 0.0  ;;  %v11128_v6 = vpop.permute.xlu1 %3414  ;;  %v12470_v23 = vld [vmem:[#allocation42_spill] sm:$0xff] }
 0x5db   : > { %v2720_v3 = vmul.f32 %v10446_v13, %v12466_v31  ;;  %v5250_v29 = vcombine.low %v5228_v62, %v5235_v55  ;;  %v4448_v2 = vrot.slane %v4432_v37, %v10640_v51  ;;  %5912 = vperm.xlu0 %7747, %v10802_v34   ;;  %v5251_v54 = vcombine.low %v5242_v17, %v5249_v22  ;;  %v12471_v62 = vld [vmem:[#allocation43_spill] sm:$0xff] }
 0x5dc   : > { %v4441_v20 = vrot.slane %v4425_v0, %v10640_v51  ;;  %v3981_v40 = vmax.f32 %v3949_v50, 0.0  ;;  %5811 = vperm.xlu1 %7728, %v10792_v59   ;;  %v2723_v58 = vmul.f32 %v10446_v13, %v12467_v7  ;;  %v2722_v30 = vmul.f32 %v10446_v13, %v12468_v19  ;;  %v11138_v16 = vpop.permute.xlu0 %3429  ;;  %v12474_v7 = vld [vmem:[#allocation46_spill] sm:$0xff] }
 0x5dd   : > { %v2725_v37 = vmul.f32 %v10446_v13, %v12469_v47  ;;  %v4466_v14 = vcombine.high %v4462_v48, %v4462_v48  ;;  %v5258_v34 = vrot.slane %v5250_v29, %v10640_v51  ;;  %v5265_v0 = vrot.slane %v5251_v54, %v10640_v51 }
 0x5de   : > { %v4465_v8 = vcombine.high %v4455_v5, %v4455_v5  ;;  %v4003_v42 = vmax.f32 %v3979_v28, %v3981_v40  ;;  %v11141_v25 = vadd.f32 %v2721_v49, %v12470_v23  ;;  %v11144_v55 = vadd.f32 %v2720_v3, %v12471_v62  ;;  %v3425_v54 = vpop.permute.xlu1 %3424  ;;  %v12472_v28 = vld [vmem:[#allocation44_spill] sm:$0xff]  ;;  %v12473_v40 = vld [vmem:[#allocation45_spill] sm:$0xff] }
 0x5df   : > { %v4464_v17 = vcombine.high %v4448_v2, %v4448_v2  ;;  %v3103_v22 = vmul.f32 %v10586_v60, %v11024_v57  ;;  %5916 = vperm.xlu0 %7747, %v10792_v59   ;;  %v5266_v50 = vcombine.low %v5258_v34, %v5265_v0  ;;  %v4463_v24 = vcombine.high %v4441_v20, %v4441_v20 }
 0x5e0   : > { %v4467_v31 = vcombine.high %v4003_v42, %v4003_v42  ;;  %v4474_v29 = vrot.slane %v4003_v42, %v10640_v51  ;;  %7729 = vset.pattern.permute.xlu1 %v7916_v61  ;;  %v11152_v49 = vadd.f32 %v2723_v58, %v12472_v28  ;;  %v11155_v3 = vadd.f32 %v2722_v30, %v12473_v40  ;;  %v11164_v23 = vpop.permute.xlu0 %3439  ;;  %v12475_v58 = vld [vmem:[#allocation187_spill] sm:$0xff] }
 0x5e1   : > { %v11158_v19 = vadd.f32 %v2725_v37, %v12474_v7  ;;  %v4973_v57 = vmax.f32 %v4464_v17, %v4466_v14  ;;  %6212 = vperm.xlu1 %7729, %v10792_v59   ;;  %5474 = vst.msk [vmem:[#allocation3 + $0x28] sm:$0xff] %vm5002_vm1, %v5266_v50  ;;  %v4971_v47 = vmax.f32 %v4463_v24, %v4465_v8 }
 0x5e2   : > { %v4481_v34 = vrot.slane %v4467_v31, %v10640_v51  ;;  %v4482_v0 = vcombine.high %v4474_v29, %v4474_v29  ;;  %v4490_v42 = vrot.slane %v4474_v29, %v10640_v51  ;;  %v11168_v30 = vmul.f32 %v10446_v13, %v12475_v58  ;;  %v11175_v24 = vpop.permute.xlu1 %3434 }
 0x5e3   : > { %v4972_v62 = vmax.f32 %v4448_v2, %v4462_v48  ;;  %v3135_v37 = vadd.f32 %v3103_v22, %v11088_v4  ;;  %v3491_v59 = vmul.f32 %v10605_v45, %v11080_v21  ;;  %v4970_v14 = vmax.f32 %v4441_v20, %v4455_v5 }
 0x5e4   : > { %v4483_v17 = vcombine.high %v4481_v34, %v4481_v34  ;;  %v4497_v8 = vrot.slane %v4481_v34, %v10640_v51  ;;  %v4504_v50 = vrot.slane %v4482_v0, %v10640_v51  ;;  %v3105_v29 = vmul.f32 %v10586_v60, %v11045_v43  ;;  %v3798_v22 = vpop.permute.xlu0 %3797 }
 0x5e5   : > { %v5268_v31 = vcombine.low %v4972_v62, %v4973_v57  ;;  %v3104_v48 = vmul.f32 %v10586_v60, %v11053_v11  ;;  %v3107_v4 = vmul.f32 %v10586_v60, %v11059_v44  ;;  %6216 = vperm.xlu1 %7729, %v10882_v10   ;;  %v5267_v21 = vcombine.low %v4970_v14, %v4971_v47  ;;  %v11192_v11 = vld [vmem:[%s11936_s3 + $0x8] ss:$0 sm:$0xff] }
 0x5e6   : > { %v4511_v5 = vrot.slane %v4483_v17, %v10640_v51  ;;  %v4512_v2 = vcombine.high %v4490_v42, %v4490_v42  ;;  %v4514_v20 = vcombine.high %v4504_v50, %v4504_v50  ;;  %v3106_v28 = vmul.f32 %v10586_v60, %v11066_v26  ;;  %v3445_v34 = vpop.permute.xlu1 %3444 }
 0x5e7   : > { %v3523_v40 = vadd.f32 %v3491_v59, %v3135_v37  ;;  %v3493_v43 = vmul.f32 %v10605_v45, %v11118_v46  ;;  %v3879_v10 = vmul.f32 %v11192_v11, %v3798_v22  ;;  %v4513_v44 = vcombine.high %v4497_v8, %v4497_v8 }
 0x5e8   : > { %v4515_v7 = vcombine.high %v4511_v5, %v4511_v5  ;;  %v4974_v57 = vmax.f32 %v4490_v42, %v4504_v50  ;;  %v4975_v47 = vmax.f32 %v4512_v2, %v4514_v20  ;;  %v5284_v0 = vrot.slane %v5268_v31, %v10640_v51  ;;  %v3808_v42 = vpop.permute.xlu0 %3807 }
 0x5e9   : > { %v3137_v26 = vadd.f32 %v3105_v29, %v11092_v53  ;;  %v3136_v58 = vadd.f32 %v3104_v48, %v11096_v27  ;;  %7730 = vset.pattern.permute.xlu1 %v12448_v38  ;;  %v3911_v46 = vadd.f32 %v3879_v10, %v3523_v40  ;;  %v4976_v62 = vmax.f32 %v4497_v8, %v4511_v5 }
 0x5ea   : > { %v4977_v37 = vmax.f32 %v4513_v44, %v4515_v7  ;;  %v5269_v59 = vcombine.low %v4974_v57, %v4975_v47  ;;  %v3492_v14 = vmul.f32 %v10605_v45, %v11128_v6  ;;  %5613 = vperm.xlu1 %7730, %v10907_v52   ;;  %v5277_v17 = vrot.slane %v5267_v21, %v10640_v51  ;;  %v3803_v6 = vpop.permute.xlu1 %3802  ;;  %v11214_v21 = vld [vmem:[%s11937_s4] ss:$0 sm:$0xff] }
 0x5eb   : > { %v3139_v50 = vadd.f32 %v3107_v4, %v11100_v35  ;;  %v3525_v31 = vadd.f32 %v3493_v43, %v3137_v26  ;;  %v3881_v53 = vmul.f32 %v11192_v11, %v3808_v42  ;;  %v3138_v29 = vadd.f32 %v3106_v28, %v11107_v36 }
 0x5ec   : > { %v5270_v27 = vcombine.low %v4976_v62, %v4977_v37  ;;  %v3109_v8 = vmul.f32 %v10586_v60, %v11072_v18  ;;  %v3495_v48 = vmul.f32 %v10605_v45, %v11138_v16  ;;  %v3494_v5 = vmul.f32 %v10605_v45, %v3425_v54  ;;  %v3818_v16 = vpop.permute.xlu0 %3817 }
 0x5ed   : > { %v3950_v35 = vadd.f32 %v11214_v21, %v3911_v46  ;;  %v3913_v4 = vadd.f32 %v3881_v53, %v3525_v31  ;;  %v3880_v2 = vmul.f32 %v11192_v11, %v3803_v6  ;;  %v5299_v36 = vcombine.low %v5277_v17, %v5284_v0 }
 0x5ee   : > { %v5291_v20 = vrot.slane %v5269_v59, %v10640_v51  ;;  %v5298_v18 = vrot.slane %v5270_v27, %v10640_v51  ;;  %v3524_v22 = vadd.f32 %v3492_v14, %v3136_v58  ;;  %7731 = vset.pattern.permute.xlu1 %v12451_v39  ;;  %v3108_v54 = vmul.f32 %v10586_v60, %v11076_v15  ;;  %v3813_v47 = vpop.permute.xlu1 %3812 }
 0x5ef   : > { %v3110_v28 = vmul.f32 %v10586_v60, %v11103_v56  ;;  %v3952_v40 = vadd.f32 %v11214_v21, %v3913_v4  ;;  %6012 = vperm.xlu1 %7731, %v10815_v1   ;;  %v3883_v43 = vmul.f32 %v11192_v11, %v3818_v16  ;;  %v3527_v44 = vadd.f32 %v3495_v48, %v3139_v50 }
 0x5f0   : > { %v5300_v10 = vcombine.low %v5291_v20, %v5298_v18  ;;  %v3497_v7 = vmul.f32 %v10605_v45, %v11164_v23  ;;  %v3912_v57 = vadd.f32 %v3880_v2, %v3524_v22  ;;  %v3526_v0 = vadd.f32 %v3494_v5, %v3138_v29  ;;  %v3828_v59 = vpop.permute.xlu0 %3827  ;;  %v12476_v20 = vld [vmem:[#allocation188_spill] sm:$0xff] }
 0x5f1   : > { %v3982_v26 = vmax.f32 %v3950_v35, 0.0  ;;  %v3984_v58 = vmax.f32 %v3952_v40, 0.0  ;;  %v3882_v15 = vmul.f32 %v11192_v11, %v3813_v47  ;;  %v5307_v56 = vrot.slane %v5299_v36, %v10640_v51 }
 0x5f2   : > { %v5314_v46 = vrot.slane %v5300_v10, %v10640_v51  ;;  %v3141_v62 = vadd.f32 %v3109_v8, %v11141_v25  ;;  %v3915_v37 = vadd.f32 %v3883_v43, %v3527_v44  ;;  %v3140_v14 = vadd.f32 %v3108_v54, %v11144_v55  ;;  %v3823_v25 = vpop.permute.xlu1 %3822 }
 0x5f3   : > { %v3496_v23 = vmul.f32 %v10605_v45, %v11175_v24  ;;  %v4004_v42 = vmax.f32 %v3982_v26, %v3984_v58  ;;  %7732 = vset.pattern.permute.xlu1 %v12456_v32  ;;  %v3914_v17 = vadd.f32 %v3882_v15, %v3526_v0  ;;  %v3951_v53 = vadd.f32 %v11214_v21, %v3912_v57 }
 0x5f4   : > { %v5315_v50 = vcombine.low %v5307_v56, %v5314_v46  ;;  %v3529_v31 = vadd.f32 %v3497_v7, %v3141_v62  ;;  %5714 = vperm.xlu1 %7732, %v10815_v1   ;;  %v3885_v27 = vmul.f32 %v11192_v11, %v3828_v59  ;;  %v3498_v29 = vmul.f32 %v10605_v45, %v3445_v34  ;;  %v3062_v1 = vpop.permute.xlu0 %3061 }
 0x5f5   : > { %v4516_v8 = vcombine.high %v4004_v42, %v4004_v42  ;;  %v4523_v55 = vrot.slane %v4004_v42, %v10640_v51  ;;  %v3953_v24 = vadd.f32 %v11214_v21, %v3914_v17  ;;  %v3142_v48 = vadd.f32 %v3110_v28, %v11155_v3 }
 0x5f6   : > { %5475 = vst.msk [vmem:[#allocation3 + $0x30] sm:$0xff] %vm5002_vm1, %v5315_v50  ;;  %v3954_v6 = vadd.f32 %v11214_v21, %v3915_v37  ;;  %v3917_v5 = vadd.f32 %v3885_v27, %v3529_v31  ;;  %v3884_v35 = vmul.f32 %v11192_v11, %v3823_v25  ;;  %v11252_v18 = vmul.f32 %v10446_v13, %v12476_v20  ;;  %v3833_v54 = vpop.permute.xlu1 %3832 }
 0x5f7   : > { %v4530_v4 = vrot.slane %v4516_v8, %v10640_v51  ;;  %v4531_v2 = vcombine.high %v4523_v55, %v4523_v55  ;;  %v4539_v34 = vrot.slane %v4523_v55, %v10640_v51  ;;  %v3985_v36 = vmax.f32 %v3953_v24, 0.0 }
 0x5f8   : > { %v3528_v22 = vadd.f32 %v3496_v23, %v3140_v14  ;;  %v3983_v16 = vmax.f32 %v3951_v53, 0.0  ;;  %v3956_v3 = vadd.f32 %v11214_v21, %v3917_v5  ;;  %5718 = vperm.xlu1 %7732, %v10907_v52   ;;  %v3530_v28 = vadd.f32 %v3498_v29, %v3142_v48  ;;  %v11258_v0 = vpop.permute.xlu0 %3071 }
 0x5f9   : > { %v4532_v40 = vcombine.high %v4530_v4, %v4530_v4  ;;  %v4546_v43 = vrot.slane %v4530_v4, %v10640_v51  ;;  %v4553_v10 = vrot.slane %v4531_v2, %v10640_v51  ;;  %v3986_v44 = vmax.f32 %v3954_v6, 0.0 }
 0x5fa   : > { %v4005_v7 = vmax.f32 %v3983_v16, %v3985_v36  ;;  %v3988_v57 = vmax.f32 %v3956_v3, 0.0  ;;  %v3916_v47 = vadd.f32 %v3884_v35, %v3528_v22  ;;  %v4561_v26 = vcombine.high %v4539_v34, %v4539_v34  ;;  %v11266_v59 = vpop.permute.xlu1 %3066 }
 0x5fb   : > { %v4560_v13 = vrot.slane %v4532_v40, %v10640_v51  ;;  %v4563_v58 = vcombine.high %v4553_v10, %v4553_v10  ;;  %v11262_v15 = vmul.f32 %v10586_v60, %v3062_v1  ;;  %v4562_v56 = vcombine.high %v4546_v43, %v4546_v43 }
 0x5fc   : > { %v4565_v46 = vcombine.high %v4005_v7, %v4005_v7  ;;  %v4572_v62 = vrot.slane %v4005_v7, %v10640_v51  ;;  %v4006_v37 = vmax.f32 %v3986_v44, %v3988_v57  ;;  %7733 = vset.pattern.permute.xlu1 %v12447_v63  ;;  %v4978_v23 = vmax.f32 %v4539_v34, %v4553_v10  ;;  %v3450_v25 = vpop.permute.xlu0 %3449 }
 0x5fd   : > { %v4564_v14 = vcombine.high %v4560_v13, %v4560_v13  ;;  %v4979_v42 = vmax.f32 %v4561_v26, %v4563_v58  ;;  %v3886_v17 = vmul.f32 %v11192_v11, %v3833_v54  ;;  %6120 = vperm.xlu1 %7733, %v10907_v52   ;;  %v4980_v29 = vmax.f32 %v4546_v43, %v4560_v13  ;;  %v11283_v54 = vld [vmem:[%s11935_s2 + $0x20] sm:$0xff] }
 0x5fe   : > { %v4579_v50 = vrot.slane %v4565_v46, %v10640_v51  ;;  %v4580_v31 = vcombine.high %v4572_v62, %v4572_v62  ;;  %v4588_v53 = vrot.slane %v4572_v62, %v10640_v51  ;;  %v4614_v27 = vcombine.high %v4006_v37, %v4006_v37  ;;  %v3077_v1 = vpop.permute.xlu1 %3076 }
 0x5ff   : > { %v4981_v8 = vmax.f32 %v4562_v56, %v4564_v14  ;;  %v5316_v55 = vcombine.low %v4978_v23, %v4979_v42  ;;  %v4621_v24 = vrot.slane %v4006_v37, %v10640_v51  ;;  %v3955_v35 = vadd.f32 %v11214_v21, %v3916_v47 }
 0x600   : > { %v4581_v48 = vcombine.high %v4579_v50, %v4579_v50  ;;  %v4595_v6 = vrot.slane %v4579_v50, %v10640_v51  ;;  %v4602_v5 = vrot.slane %v4580_v31, %v10640_v51  ;;  %v4628_v2 = vrot.slane %v4614_v27, %v10640_v51  ;;  %v3460_v40 = vpop.permute.xlu0 %3459  ;;  %v12477_v50 = vld [vmem:[#allocation47_spill] sm:$0xff] }
 0x601   : > { %v5317_v4 = vcombine.low %v4980_v29, %v4981_v8  ;;  %v4629_v34 = vcombine.high %v4621_v24, %v4621_v24  ;;  %v3918_v36 = vadd.f32 %v3886_v17, %v3530_v28  ;;  %7734 = vset.pattern.permute.xlu1 %v7915_v9  ;;  %v5326_v20 = vrot.slane %v5316_v55, %v10640_v51 }
 0x602   : > { %v4609_v22 = vrot.slane %v4581_v48, %v10640_v51  ;;  %v4610_v16 = vcombine.high %v4588_v53, %v4588_v53  ;;  %v4612_v3 = vcombine.high %v4602_v5, %v4602_v5  ;;  %5819 = vperm.xlu1 %7734, %v11283_v54   ;;  %v4611_v10 = vcombine.high %v4595_v6, %v4595_v6  ;;  %v3455_v26 = vpop.permute.xlu1 %3454 }
 0x603   : > { %v5333_v43 = vrot.slane %v5317_v4, %v10640_v51  ;;  %v4630_v28 = vcombine.high %v4628_v2, %v4628_v2  ;;  %v4637_v44 = vrot.slane %v4621_v24, %v10640_v51  ;;  %v4982_v57 = vmax.f32 %v4588_v53, %v4602_v5 }
 0x604   : > { %v4613_v7 = vcombine.high %v4609_v22, %v4609_v22  ;;  %v4983_v47 = vmax.f32 %v4610_v16, %v4612_v3  ;;  %v4651_v13 = vrot.slane %v4629_v34, %v10640_v51  ;;  %v4984_v56 = vmax.f32 %v4595_v6, %v4609_v22  ;;  %v3838_v17 = vpop.permute.xlu0 %3837 }
 0x605   : > { %v5348_v58 = vcombine.low %v5326_v20, %v5333_v43  ;;  %v4644_v46 = vrot.slane %v4628_v2, %v10640_v51  ;;  %v4658_v62 = vrot.slane %v4630_v28, %v10640_v51  ;;  %v4659_v23 = vcombine.high %v4637_v44, %v4637_v44 }
 0x606   : > { %v4985_v37 = vmax.f32 %v4611_v10, %v4613_v7  ;;  %v5318_v14 = vcombine.low %v4982_v57, %v4983_v47  ;;  %v4661_v42 = vcombine.high %v4651_v13, %v4651_v13  ;;  %7735 = vset.pattern.permute.xlu1 %v7916_v61  ;;  %v2756_v31 = vadd.f32 %v11168_v30, %v12477_v50  ;;  %v3465_v6 = vpop.permute.xlu1 %3464 }
 0x607   : > { %v2758_v53 = vadd.f32 %v11252_v18, %v11084_v41  ;;  %v4662_v27 = vcombine.high %v4658_v62, %v4658_v62  ;;  %v3957_v29 = vadd.f32 %v11214_v21, %v3918_v36  ;;  %6220 = vperm.xlu1 %7735, %v11283_v54   ;;  %v3143_v24 = vadd.f32 %v11262_v15, %v11152_v49 }
 0x608   : > { %v5319_v8 = vcombine.low %v4984_v56, %v4985_v37  ;;  %v4987_v55 = vmax.f32 %v4659_v23, %v4661_v42  ;;  %v3113_v48 = vmul.f32 %v10586_v60, %v11258_v0  ;;  %v4660_v5 = vcombine.high %v4644_v46, %v4644_v46  ;;  %v3848_v20 = vpop.permute.xlu0 %3847  ;;  %v5584_v42 = vld [vmem:[#allocation3 + $0x8] sm:$0xff] }
 0x609   : > { %v3987_v4 = vmax.f32 %v3955_v35, 0.0  ;;  %v3989_v30 = vmax.f32 %v3957_v29, 0.0  ;;  %v3499_v2 = vmul.f32 %v10605_v45, %v3450_v25  ;;  %v5356_v41 = vrot.slane %v5348_v58, %v10640_v51 }
 0x60a   : > { %v5340_v18 = vrot.slane %v5318_v14, %v10640_v51  ;;  %v5347_v34 = vrot.slane %v5319_v8, %v10640_v51  ;;  %v4986_v36 = vmax.f32 %v4637_v44, %v4651_v13  ;;  %v4988_v22 = vmax.f32 %v4644_v46, %v4658_v62  ;;  %v3843_v43 = vpop.permute.xlu1 %3842 }
 0x60b   : > { %v4989_v16 = vmax.f32 %v4660_v5, %v4662_v27  ;;  %v4007_v49 = vmax.f32 %v3987_v4, %v3989_v30  ;;  %v3112_v0 = vmul.f32 %v10586_v60, %v11266_v59  ;;  %6224 = vperm.xlu1 %7735, %v10907_v52   ;;  %v3145_v25 = vadd.f32 %v3113_v48, %v11158_v19 }
 0x60c   : > { %v5349_v15 = vcombine.low %v5340_v18, %v5347_v34  ;;  %v11309_v35 = vcombine.low %v4986_v36, %v4987_v55  ;;  %v3114_v3 = vmul.f32 %v10586_v60, %v3077_v1  ;;  %v3531_v44 = vadd.f32 %v3499_v2, %v3143_v24 }
 0x60d   : > { %v4663_v10 = vcombine.high %v4007_v49, %v4007_v49  ;;  %v4670_v28 = vrot.slane %v4007_v49, %v10640_v51  ;;  %v3501_v7 = vmul.f32 %v10605_v45, %v3460_v40  ;;  %v3500_v59 = vmul.f32 %v10605_v45, %v3455_v26  ;;  %v5594_v1 = vpop.permute.xlu0 %5593 }
 0x60e   : > { %v5363_v57 = vrot.slane %v5349_v15, %v10640_v51  ;;  %v3887_v52 = vmul.f32 %v11192_v11, %v3838_v17  ;;  %v3502_v47 = vmul.f32 %v10605_v45, %v3465_v6  ;;  %v5366_v13 = vcombine.low %v4988_v22, %v4989_v16  ;;  %v3853_v26 = vpop.permute.xlu1 %3852 }
 0x60f   : > { %v4677_v19 = vrot.slane %v4663_v10, %v10640_v51  ;;  %v4678_v58 = vcombine.high %v4670_v28, %v4670_v28  ;;  %v4686_v60 = vrot.slane %v4670_v28, %v10640_v51  ;;  %7737 = vset.pattern.permute.xlu1 %v12448_v38  ;;  %v3144_v46 = vadd.f32 %v3112_v0, %v2756_v31 }
 0x610   : > { %v5364_v56 = vcombine.low %v5356_v41, %v5363_v57  ;;  %v3146_v40 = vadd.f32 %v3114_v3, %v2758_v53  ;;  %v3919_v62 = vadd.f32 %v3887_v52, %v3531_v44  ;;  %5621 = vperm.xlu1 %7737, %v10930_v33   ;;  %v3533_v23 = vadd.f32 %v3501_v7, %v3145_v25  ;;  %v11337_v41 = vld [vmem:[%s11935_s2 + $0x30] sm:$0xff] }
 0x611   : > { %v4679_v37 = vcombine.high %v4677_v19, %v4677_v19  ;;  %v4693_v14 = vrot.slane %v4677_v19, %v10640_v51  ;;  %v4700_v45 = vrot.slane %v4678_v58, %v10640_v51  ;;  %v3532_v17 = vadd.f32 %v3500_v59, %v3144_v46  ;;  %v11330_v8 = vpop.permute.xlu0 %5601  ;;  %v11353_v57 = vld [vmem:[#allocation3 + $0x11] sm:$0xff] }
 0x612   : > { %5476 = vst.msk [vmem:[#allocation3 + $0x38] sm:$0xff] %vm5002_vm1, %v5364_v56  ;;  %v3534_v50 = vadd.f32 %v3502_v47, %v3146_v40  ;;  %v3889_v38 = vmul.f32 %v11192_v11, %v3848_v20  ;;  %v3888_v31 = vmul.f32 %v11192_v11, %v3843_v43  ;;  %v4708_v27 = vcombine.high %v4686_v60, %v4686_v60 }
 0x613   : > { %v4707_v53 = vrot.slane %v4679_v37, %v10640_v51  ;;  %v4710_v33 = vcombine.high %v4700_v45, %v4700_v45  ;;  %v3958_v29 = vadd.f32 %v11214_v21, %v3919_v62  ;;  %v4709_v55 = vcombine.high %v4693_v14, %v4693_v14  ;;  %v11340_v18 = vpop.permute.xlu1 %5597  ;;  %v11366_v62 = vld [vmem:[%s11935_s2 + $0x38] sm:$0xff] }
 0x614   : > { %v3921_v24 = vadd.f32 %v3889_v38, %v3533_v23  ;;  %v3920_v48 = vadd.f32 %v3888_v31, %v3532_v17  ;;  %v5624_v6 = vmul.f32 %v5594_v1, %v5584_v42  ;;  %7738 = vset.pattern.permute.xlu1 %v12451_v39  ;;  %v4990_v4 = vmax.f32 %v4686_v60, %v4700_v45 }
 0x615   : > { %v4711_v5 = vcombine.high %v4707_v53, %v4707_v53  ;;  %v4991_v30 = vmax.f32 %v4708_v27, %v4710_v33  ;;  %v3890_v2 = vmul.f32 %v11192_v11, %v3853_v26  ;;  %6020 = vperm.xlu1 %7738, %v11337_v41   ;;  %v5382_v34 = vrot.slane %v5366_v13, %v10640_v51  ;;  %v11345_v0 = vpop.permute.xlu0 %5609 }
 0x616   : > { %v3960_v36 = vadd.f32 %v11214_v21, %v3921_v24  ;;  %v3959_v39 = vadd.f32 %v11214_v21, %v3920_v48  ;;  %v7516_v20 = vpack.c.bf16 %v5624_v6, %v5624_v6  ;;  %v4992_v22 = vmax.f32 %v4693_v14, %v4707_v53 }
 0x617   : > { %v4993_v16 = vmax.f32 %v4709_v55, %v4711_v5  ;;  %v5367_v49 = vcombine.low %v4990_v4, %v4991_v30  ;;  %v3922_v11 = vadd.f32 %v3890_v2, %v3534_v50  ;;  %v5375_v15 = vrot.slane %v11309_v35, %v10640_v51  ;;  %v5689_v4 = vld [vmem:[#allocation3 + $0x9] sm:$0xff] }
 0x618   : > { %v3990_v25 = vmax.f32 %v3958_v29, 0.0  ;;  %v3992_v3 = vmax.f32 %v3960_v36, 0.0  ;;  %5656 = vrot.lane.b32.xlu0 %v7516_v20, %s7918_s22  ;;  %v3991_v7 = vmax.f32 %v3959_v39, 0.0 }
 0x619   : > { %v5368_v43 = vcombine.low %v4992_v22, %v4993_v16  ;;  %v3961_v10 = vadd.f32 %v11214_v21, %v3922_v11  ;;  %7740 = vset.pattern.permute.xlu1 %v12456_v32  ;;  %v5397_v28 = vcombine.low %v5375_v15, %v5382_v34  ;;  %v5997_v59 = vpop.permute.xlu1 %5996  ;;  %v5389_v35 = vrot.slane %v5367_v49, %v10640_v51  ;;  %v11358_v19 = vpop.permute.xlu0 %5617 }
 0x61a   : > { %v4008_v44 = vmax.f32 %v3990_v25, %v3992_v3  ;;  %5722 = vperm.xlu1 %7740, %v11337_v41   ;;  %v6027_v13 = vmul.f32 %v5997_v59, %v11353_v57 }
 0x61b   : > { %v5396_v52 = vrot.slane %v5368_v43, %v10640_v51  ;;  %v3993_v47 = vmax.f32 %v3961_v10, 0.0  ;;  %v5405_v26 = vrot.slane %v5397_v28, %v10640_v51 }
 0x61c   : > { %v4712_v21 = vcombine.high %v4008_v44, %v4008_v44  ;;  %v4719_v32 = vrot.slane %v4008_v44, %v10640_v51  ;;  %v7548_v1 = vpack.c.bf16 %v6027_v13, %v6027_v13 }
 0x61d   : > { %v5398_v58 = vcombine.low %v5389_v35, %v5396_v52  ;;  %v4009_v60 = vmax.f32 %v3991_v7, %v3993_v47 }
 0x61e   : > { %v4726_v56 = vrot.slane %v4712_v21, %v10640_v51  ;;  %v4727_v46 = vcombine.high %v4719_v32, %v4719_v32  ;;  %v4735_v40 = vrot.slane %v4719_v32, %v10640_v51  ;;  %5726 = vperm.xlu1 %7740, %v11366_v62   ;;  %6059 = vrot.lane.b32.xlu0 %v7548_v1, %s7918_s22  ;;  %v5699_v50 = vpop.permute.xlu1 %5698 }
 0x61f   : > { %v5412_v37 = vrot.slane %v5398_v58, %v10640_v51  ;;  %v4761_v14 = vcombine.high %v4009_v60, %v4009_v60  ;;  %v4768_v45 = vrot.slane %v4009_v60, %v10640_v51  ;;  %v11375_v38 = vpop.permute.xlu0 %6000  ;;  %v5729_v36 = vmul.f32 %v5699_v50, %v5689_v4 }
 0x620   : > { %v4728_v23 = vcombine.high %v4726_v56, %v4726_v56  ;;  %v4742_v42 = vrot.slane %v4726_v56, %v10640_v51  ;;  %v4749_v17 = vrot.slane %v4727_v46, %v10640_v51  ;;  %v4757_v55 = vcombine.high %v4735_v40, %v4735_v40 }
 0x621   : > { %v5413_v31 = vcombine.low %v5405_v26, %v5412_v37  ;;  %v4775_v53 = vrot.slane %v4761_v14, %v10640_v51  ;;  %v4776_v27 = vcombine.high %v4768_v45, %v4768_v45  ;;  %v4784_v33 = vrot.slane %v4768_v45, %v10640_v51  ;;  %v11408_v45 = vld [vmem:[#allocation3 + $0x17] sm:$0xff] }
 0x622   : > { %v4756_v29 = vrot.slane %v4728_v23, %v10640_v51  ;;  %v4759_v24 = vcombine.high %v4749_v17, %v4749_v17  ;;  %7742 = vset.pattern.permute.xlu1 %v12447_v63  ;;  %v4758_v30 = vcombine.high %v4742_v42, %v4742_v42  ;;  %v11385_v39 = vpop.permute.xlu1 %5702  ;;  %v4994_v20 = vmax.f32 %v4735_v40, %v4749_v17 }
 0x623   : > { %5477 = vst.msk [vmem:[#allocation3 + $0x40] sm:$0xff] %vm5002_vm1, %v5413_v31  ;;  %v4777_v48 = vcombine.high %v4775_v53, %v4775_v53  ;;  %v4791_v6 = vrot.slane %v4775_v53, %v10640_v51  ;;  %v4798_v5 = vrot.slane %v4776_v27, %v10640_v51  ;;  %6128 = vperm.xlu1 %7742, %v11366_v62   ;;  %v11388_v49 = vpop.permute.xlu0 %6008  ;;  %v12478_v53 = vmov 0   ;;  %v11419_v27 = vld [vmem:[%s11935_s2 + $0x8] sm:$0xff] }
 0x624   : > { %v4760_v2 = vcombine.high %v4756_v29, %v4756_v29  ;;  %v4995_v34 = vmax.f32 %v4757_v55, %v4759_v24  ;;  %v4806_v63 = vcombine.high %v4784_v33, %v4784_v33  ;;  %v4996_v11 = vmax.f32 %v4742_v42, %v4756_v29  ;;  %v11411_v42 = vld [vmem:[#allocation3 + $0xf] sm:$0xff]  ;;  %v11423_v29 = vld [vmem:[#allocation3 + $0x18] sm:$0xff] }
 0x625   : > { %v4805_v22 = vrot.slane %v4777_v48, %v10640_v51  ;;  %v4808_v16 = vcombine.high %v4798_v5, %v4798_v5  ;;  %v4807_v25 = vcombine.high %v4791_v6, %v4791_v6  ;;  %v7524_v3 = vpack.c.bf16 %v5729_v36, %v5729_v36 }
 0x626   : > { %v4997_v15 = vmax.f32 %v4758_v30, %v4760_v2  ;;  %v5414_v43 = vcombine.low %v4994_v20, %v4995_v34  ;;  %v4998_v28 = vmax.f32 %v4784_v33, %v4798_v5  ;;  %v11434_v5 = vld [vmem:[%s11935_s2] sm:$0xff]  ;;  %v11447_v34 = vld [vmem:[%s11935_s2 + $0x10] sm:$0xff] }
 0x627   : > { %v4809_v10 = vcombine.high %v4805_v22, %v4805_v22  ;;  %v4999_v44 = vmax.f32 %v4806_v63, %v4808_v16  ;;  %7743 = vset.pattern.permute.xlu1 %v7915_v9  ;;  %v5000_v59 = vmax.f32 %v4791_v6, %v4805_v22  ;;  %5761 = vrot.lane.b32.xlu0 %v7524_v3, %s7919_s26  ;;  %v11393_v47 = vpop.permute.xlu0 %6016  ;;  %v11453_v22 = vld [vmem:[%s11935_s2 + $0x28] sm:$0xff]  ;;  %v11459_v63 = vld [vmem:[%s11935_s2 + $0x18] sm:$0xff]  ;;  %v11462_v16 = vld [vmem:[#allocation3 + $0x10] sm:$0xff] }
 0x628   : > { %v5415_v7 = vcombine.low %v4996_v11, %v4997_v15  ;;  %5827 = vperm.xlu1 %7743, %v11337_v41   ;;  %v11396_v21 = vpop.permute.xlu1 %6104  ;;  %v5424_v32 = vrot.slane %v5414_v43, %v10640_v51  ;;  %v5625_v11 = vmul.f32 %v11340_v18, %v11462_v16  ;;  %v11469_v3 = vld [vmem:[#allocation3 + $0x21] sm:$0xff]  ;;  %v11472_v43 = vld [vmem:[#allocation3 + $0x19] sm:$0xff] }
 0x629   : > { %v5001_v35 = vmax.f32 %v4807_v25, %v4809_v10  ;;  %v5416_v52 = vcombine.low %v4998_v28, %v4999_v44  ;;  %v6028_v18 = vmul.f32 %v11375_v38, %v11472_v43 }
 0x62a   : > { %v5431_v13 = vrot.slane %v5415_v7, %v10640_v51  ;;  %v7517_v28 = vpack.c.bf16 %v5625_v11, %v5625_v11  ;;  %v7758_v7 = vld [vmem:[%s11938_s5 + $0x78] sm:$0xff]  }
 0x62b   : > { %v5417_v58 = vcombine.low %v5000_v59, %v5001_v35  ;;  %v5438_v60 = vrot.slane %v5416_v52, %v10640_v51  ;;  %v11403_v56 = vpop.permute.xlu0 %6024  ;;  %v7759_v59 = vld [vmem:[%s11938_s5 + $0x38] sm:$0xff]   ;;  %v7760_v52 = vld [vmem:[%s11938_s5 + $0x70] sm:$0xff]   ;;  %7580 = vmatprep.subr.bf16.mxu0 %v7758_v7 }
 0x62c   : > { %7744 = vset.pattern.permute.xlu1 %v7916_v61  ;;  %v5446_v9 = vcombine.low %v5424_v32, %v5431_v13  ;;  %7581 = vmatpush3.bf16.msra.mxu0 %v7759_v59  ;;  %v7761_v32 = vld [vmem:[%s11938_s5 + $0x30] sm:$0xff]  }
 0x62d   : > { %v5445_v1 = vrot.slane %v5417_v58, %v10640_v51  ;;  %6228 = vperm.xlu1 %7744, %v11337_v41   ;;  %v5804_v40 = vpop.permute.xlu1 %5803  ;;  %v7549_v58 = vpack.c.bf16 %v6028_v18, %v6028_v18  ;;  %7582 = vmatprep.subr.bf16.mxu0 %v7760_v52  ;;  %v7768_v59 = vld [vmem:[%s11938_s5 + $0x50] sm:$0xff]  }
 0x62e   : > { %v5454_v26 = vrot.slane %v5446_v9, %v10640_v51  ;;  %v5834_v50 = vmul.f32 %v5804_v40, %v11411_v42  ;;  %v5730_v9 = vmul.f32 %v11353_v57, %v11385_v39  ;;  %v7763_v39 = vld [vmem:[%s11938_s5 + $0x28] sm:$0xff]  }
 0x62f   : > { %v5447_v46 = vcombine.low %v5438_v60, %v5445_v1  ;;  %v7762_v60 = vld [vmem:[%s11938_s5 + $0x68] sm:$0xff]  }
 0x630   : > { %v7532_v24 = vpack.c.bf16 %v5834_v50, %v5834_v50  ;;  %7583 = vmatpush3.bf16.msra.mxu0 %v7761_v32  ;;  %v7770_v32 = vld [vmem:[%s11938_s5 + $0x48] sm:$0xff]  }
 0x631   : > { %v5461_v37 = vrot.slane %v5447_v46, %v10640_v51  ;;  %6232 = vperm.xlu1 %7744, %v11366_v62   ;;  %v11505_v46 = vld [vmem:[#allocation3 + $0x27] sm:$0xff]  ;;  %7584 = vmatprep.subr.bf16.mxu0 %v7762_v60 }
 0x632   : > { %v6101_v14 = vpop.permute.xlu0 %6100 }
 0x633   : > { %v5462_v61 = vcombine.low %v5454_v26, %v5461_v37  ;;  %v6131_v23 = vmul.f32 %v6101_v14, %v11408_v45  ;;  %v11510_v26 = vld [vmem:[#allocation3 + $0x1f] sm:$0xff]  ;;  %v7525_v14 = vpack.c.bf16 %v5730_v9, %v5730_v9 }
 0x634   : > { %v6205_v17 = vpop.permute.xlu1 %6204  ;;  %7585 = vmatpush3.bf16.msra.mxu0 %v7763_v39  ;;  %v7771_v39 = vld [vmem:[%s11938_s5 + $0x8] sm:$0xff]  }
 0x635   : > { %5478 = vst.msk [vmem:[#allocation3 + $0x48] sm:$0xff] %vm5002_vm1, %v5462_v61  ;;  %v7556_v31 = vpack.c.bf16 %v6131_v23, %v6131_v23  ;;  %7745 = vset.pattern.permute.xlu1 %v12478_v53  ;;  %v6235_v48 = vmul.f32 %v6205_v17, %v11423_v29  ;;  %v6132_v61 = vmul.f32 %v11396_v21, %v11510_v26  ;;  %v7764_v23 = vld [vmem:[%s11938_s5 + $0x60] sm:$0xff]  }
 0x636   : > { %5502 = vperm.xlu1 %7745, %v11419_v27   ;;  %v6109_v33 = vpop.permute.xlu0 %6108  ;;  %7586 = vmatprep.subr.bf16.mxu0 %v7764_v23  ;;  %v7773_v23 = vld [vmem:[%s11938_s5] sm:$0xff]  }
 0x637   : > { %6163 = vrot.lane.b32.xlu0 %v7556_v31, %s7919_s26  ;;  %v7564_v4 = vpack.c.bf16 %v6235_v48, %v6235_v48  ;;  %v6133_v37 = vmul.f32 %v6109_v33, %v11505_v46  ;;  %v7765_v33 = vld [vmem:[%s11938_s5 + $0x20] sm:$0xff]  }
 0x638   : > { %v11425_v55 = vpop.permute.xlu1 %6208  ;;  %7587 = vmatpush3.bf16.msra.mxu0 %v7765_v33  ;;  %v7921_v33 = vmov 8  }
 0x639   : > { %v7558_v17 = vpack.c.bf16 %v6133_v37, %v6133_v37 }
 0x63a   : > { %7746 = vset.pattern.permute.xlu1 %v7917_v12  ;;  %v11429_v6 = vpop.permute.xlu0 %6116 }
 0x63b   : > { %5908 = vperm.xlu1 %7746, %v11434_v5   ;;  %5866 = vrot.lane.b32.xlu0 %v7532_v24, %s7920_s27  ;;  %v7557_v24 = vpack.c.bf16 %v6132_v61, %v6132_v61  ;;  %v5626_v61 = vmul.f32 %v11330_v8, %v11423_v29  ;;  %v11581_v8 = vld [vmem:[#allocation3 + $0x28] sm:$0xff] }
 0x63d   : > { %v11438_v30 = vpop.permute.xlu1 %5605 }
 0x63e   : > { %v11440_v2 = vpop.permute.xlu0 %6124 }
 0x63f   : > { %7748 = vset.pattern.permute.xlu1 %v12478_v53  ;;  %6267 = vrot.lane.b32.xlu0 %v7564_v4, %s7920_s27 }
 0x640   : > { %5507 = vperm.xlu1 %7748, %v11447_v34  }
 0x642   : > { %v6005_v36 = vpop.permute.xlu1 %6004 }
 0x643   : > { %v5808_v20 = vpop.permute.xlu0 %5807  ;;  %5928 = vperm.xlu0 %7747, %v11453_v22   ;;  %v6029_v10 = vmul.f32 %v6005_v36, %v11469_v3  ;;  %v7766_v36 = vld [vmem:[%s11938_s5 + $0x58] sm:$0xff]  }
 0x644   : > { %5512 = vperm.xlu1 %7748, %v11459_v63   ;;  %v5835_v21 = vmul.f32 %v11408_v45, %v5808_v20  ;;  %v7767_v20 = vld [vmem:[%s11938_s5 + $0x18] sm:$0xff]   ;;  %7588 = vmatprep.subr.bf16.mxu0 %v7766_v36 }
 0x645   : > { %v7550_v38 = vpack.c.bf16 %v6029_v10, %v6029_v10  ;;  %7589 = vmatpush3.bf16.msra.mxu0 %v7767_v20  ;;  %v11592_v36 = vld [vmem:[#allocation3 + $0x31] sm:$0xff] }
 0x646   : > { %v7533_v18 = vpack.c.bf16 %v5835_v21, %v5835_v21  ;;  %7590 = vmatprep.subr.bf16.mxu0 %v7768_v59  ;;  %v5628_v21 = vmul.f32 %v11345_v0, %v11581_v8  ;;  %v11601_v0 = vld [vmem:[#allocation3 + $0x2f] sm:$0xff] }
 0x647   : > { %v5816_v25 = vpop.permute.xlu0 %5815  ;;  %7752 = vset.pattern.permute.xlu0 %v12478_v53 }
 0x648   : > { %v5707_v15 = vpop.permute.xlu1 %5706  ;;  %7749 = vset.pattern.permute.xlu1 %v7917_v12  ;;  %5497 = vperm.xlu0 %7752, %v11434_v5   ;;  %v5837_v50 = vmul.f32 %v11505_v46, %v5816_v25 }
 0x649   : > { %5920 = vperm.xlu1 %7749, %v11459_v63   ;;  %v5731_v13 = vmul.f32 %v11472_v43, %v5707_v15  ;;  %v6196_v15 = vld [vmem:[#allocation3 + $0x20] sm:$0xff] }
 0x64a   : > { %v7535_v25 = vpack.c.bf16 %v5837_v50, %v5837_v50  ;;  %v7518_v50 = vpack.c.bf16 %v5626_v61, %v5626_v61 }
 0x64b   : > { %v11485_v35 = vpop.permute.xlu0 %5823  ;;  %v7526_v57 = vpack.c.bf16 %v5731_v13, %v5731_v13 }
 0x64c   : > { %v11477_v44 = vpop.permute.xlu1 %5710  ;;  %5517 = vperm.xlu0 %7752, %v11283_v54  }
 0x64d   : > { %5658 = vrot.lane.b32.xlu1 %v7517_v28, %s7918_s22  ;;  %v6236_v28 = vmul.f32 %v11425_v55, %v6196_v15  ;;  %v7769_v55 = vld [vmem:[%s11938_s5 + $0x10] sm:$0xff]  }
 0x64e   : > { %7750 = vset.pattern.permute.xlu1 %v12478_v53  ;;  %7591 = vmatpush3.bf16.msra.mxu0 %v7769_v55 }
 0x64f   : > { %v11502_v1 = vpop.permute.xlu0 %5831  ;;  %v7565_v13 = vpack.c.bf16 %v6236_v28, %v6236_v28  ;;  %7592 = vmatprep.subr.bf16.mxu0 %v7770_v32 }
 0x650   : > { %6063 = vrot.lane.b32.xlu0 %v7550_v38, %s7918_s22 }
 0x651   : > { %6061 = vrot.lane.b32.xlu1 %v7549_v58, %s7918_s22  ;;  %v11508_v40 = vpop.permute.xlu1 %6112  ;;  %v11555_v58 = vld [vmem:[#allocation3 + $0x30] sm:$0xff] }
 0x652   : > { %7593 = vmatpush3.bf16.msra.mxu0 %v7771_v39  ;;  %v11630_v39 = vld [vmem:[#allocation3 + $0x40] sm:$0xff] }
 0x654   : > { %5765 = vrot.lane.b32.xlu0 %v7526_v57, %s7919_s26 }
 0x655   : > { %5763 = vrot.lane.b32.xlu1 %v7525_v14, %s7919_s26  ;;  %v7772_v14 = vld [vmem:[%s11938_s5 + $0x40] sm:$0xff]  }
 0x656   : > { %v5913_v31 = vpop.permute.xlu0 %5912  ;;  %7594 = vmatprep.subr.bf16.mxu0 %v7772_v14 }
 0x657   : > { %v5940_v48 = vmul.f32 %v5913_v31, %v11423_v29  ;;  %v11529_v4 = vpop.permute.xlu1 %5811  ;;  %7595 = vmatpush3.bf16.msra.mxu0 %v7773_v23  ;;  %v5627_v31 = vmul.f32 %v6196_v15, %v11438_v30  ;;  %v11583_v29 = vld [vmem:[#allocation3 + $0x29] sm:$0xff] }
 0x658   : > { %6167 = vrot.lane.b32.xlu0 %v7558_v17, %s7919_s26  ;;  %v6030_v30 = vmul.f32 %v11388_v49, %v11583_v29  ;;  %v5994_v23 = vld [vmem:[#allocation3 + $0x49] sm:$0xff] }
 0x659   : > { %v7541_v11 = vpack.c.bf16 %v5940_v48, %v5940_v48  ;;  %6165 = vrot.lane.b32.xlu1 %v7557_v24, %s7919_s26  ;;  %v7519_v48 = vpack.c.bf16 %v5627_v31, %v5627_v31 }
 0x65a   : > { %v5917_v10 = vpop.permute.xlu0 %5916 }
 0x65b   : > { %5980 = vst.msk [vmem:[#allocation4 + $0x10] sm:$0xf] %vm5575_vm2, %v7541_v11  ;;  %v5941_v7 = vmul.f32 %v6196_v15, %v5917_v10  ;;  %v7520_v11 = vpack.c.bf16 %v5628_v21, %v5628_v21  ;;  %v7551_v15 = vpack.c.bf16 %v6030_v30, %v6030_v30  ;;  %v11655_v21 = vld [vmem:[#allocation3 + $0x41] sm:$0xff] }
 0x65c   : > { %v11544_v52 = vpop.permute.xlu1 %6212  ;;  %5872 = vrot.lane.b32.xlu0 %v7535_v25, %s7920_s27  ;;  %v5732_v25 = vmul.f32 %v11469_v3, %v11477_v44  ;;  %v11610_v44 = vld [vmem:[#allocation3 + $0x37] sm:$0xff] }
 0x65d   : > { %v7542_v38 = vpack.c.bf16 %v5941_v7, %v5941_v7  ;;  %5868 = vrot.lane.b32.xlu1 %v7533_v18, %s7920_s27  ;;  %v6135_v7 = vmul.f32 %v11429_v6, %v11610_v44  ;;  %v5839_v6 = vmul.f32 %v11610_v44, %v11485_v35 }
 0x65e   : > { %v7527_v49 = vpack.c.bf16 %v5732_v25, %v5732_v25 }
 0x65f   : > { %5981 = vst.msk [vmem:[#allocation4 + $0x1c] sm:$0xf] %vm5575_vm2, %v7542_v38 }
 0x660   : > { %v6217_v9 = vpop.permute.xlu1 %6216 }
 0x661   : > { %v6238_v60 = vmul.f32 %v6217_v9, %v11555_v58  ;;  %6269 = vrot.lane.b32.xlu1 %v7565_v13, %s7920_s27  ;;  %v5836_v13 = vmul.f32 %v11510_v26, %v11529_v4  ;;  %v7537_v4 = vpack.c.bf16 %v5839_v6, %v5839_v6  ;;  %v11682_v6 = vld [vmem:[#allocation3 + $0x3f] sm:$0xff] }
 0x663   : > { %v7567_v37 = vpack.c.bf16 %v6238_v60, %v6238_v60  ;;  %v7534_v9 = vpack.c.bf16 %v5836_v13, %v5836_v13  ;;  %v6237_v60 = vmul.f32 %v11544_v52, %v11581_v8 }
 0x665   : > { %5522 = vperm.xlu1 %7750, %v11453_v22   ;;  %6273 = vrot.lane.b32.xlu0 %v7567_v37, %s7920_s27  ;;  %v11561_v57 = vpop.permute.xlu1 %5613 }
 0x669   : > { %7751 = vset.pattern.permute.xlu1 %v7917_v12  ;;  %5532 = vperm.xlu0 %7752, %v11366_v62  }
 0x66a   : > { %5924 = vperm.xlu1 %7751, %v11283_v54   ;;  %v6013_v17 = vpop.permute.xlu1 %6012 }
 0x66b   : > { %v6031_v10 = vmul.f32 %v6013_v17, %v11592_v36  ;;  %v7780_v17 = vld [vmem:[%s11938_s5 + $0x88] sm:$0xff]  }
 0x66c   : > { %7640 = vmatprep.subr.bf16.mxu1 %v7780_v17 }
 0x66d   : > { %7755 = vset.pattern.permute.xlu0 %v7921_v33  ;;  %v7552_v20 = vpack.c.bf16 %v6031_v10, %v6031_v10  ;;  %7641 = vmatpush3.bf16.msra.mxu1 %v7780_v17 }
 0x66e   : > { %5660 = vrot.lane.b32.xlu1 %v7518_v50, %s7918_s22  ;;  %6308 = vperm.xlu0 %7755, %v11434_v5   ;;  %v6034_v50 = vmul.f32 %v11403_v56, %v5994_v23  ;;  %v5629_v56 = vmul.f32 %v11555_v58, %v11561_v57  ;;  %v6098_v57 = vld [vmem:[#allocation3 + $0x4f] sm:$0xff] }
 0x66f   : > { %v5715_v24 = vpop.permute.xlu1 %5714  ;;  %7753 = vset.pattern.permute.xlu1 %v7921_v33 }
 0x670   : > { %v5733_v28 = vmul.f32 %v11583_v29, %v5715_v24  ;;  %v7781_v24 = vld [vmem:[%s11938_s5 + $0x80] sm:$0xff]   ;;  %v7521_v10 = vpack.c.bf16 %v5629_v56, %v5629_v56 }
 0x671   : > { %7642 = vmatprep.subr.bf16.mxu1 %v7781_v24 }
 0x672   : > { %5662 = vrot.lane.b32.xlu1 %v7519_v48, %s7918_s22  ;;  %6320 = vperm.xlu0 %7755, %v11459_v63   ;;  %v6134_v63 = vmul.f32 %v11508_v40, %v11601_v0  ;;  %v7528_v38 = vpack.c.bf16 %v5733_v28, %v5733_v28  ;;  %v7560_v40 = vpack.c.bf16 %v6135_v7, %v6135_v7  ;;  %v11670_v28 = vld [vmem:[#allocation3 + $0x47] sm:$0xff] }
 0x673   : > { %v11594_v5 = vpop.permute.xlu1 %5718  ;;  %7643 = vmatpush3.bf16.msra.mxu1 %v7781_v24 }
 0x674   : > { %v7559_v59 = vpack.c.bf16 %v6134_v63, %v6134_v63 }
 0x676   : > { %6065 = vrot.lane.b32.xlu1 %v7551_v15, %s7918_s22  ;;  %5664 = vrot.lane.b32.xlu0 %v7520_v11, %s7918_s22  ;;  %v12479_v11 = vmov 0.0   ;;  %v11663_v15 = vld [vmem:[#allocation3 + $0x39] sm:$0xff] }
 0x677   : > { %7652 = vmatprep.subr.bf16.mxu1 %v12479_v11  ;;  %v6032_v25 = vmul.f32 %v11393_v47, %v11663_v15  ;;  %v5734_v47 = vmul.f32 %v11592_v36, %v11594_v5 }
 0x678   : > { %v11606_v18 = vpop.permute.xlu1 %6120 }
 0x67a   : > { %5767 = vrot.lane.b32.xlu1 %v7527_v49, %s7919_s26  ;;  %6067 = vrot.lane.b32.xlu0 %v7552_v20, %s7918_s22 }
 0x67d   : > { %v11614_v55 = vpop.permute.xlu1 %5819 }
 0x67e   : > { %6169 = vrot.lane.b32.xlu1 %v7559_v59, %s7919_s26  ;;  %5769 = vrot.lane.b32.xlu0 %v7528_v38, %s7919_s26  ;;  %v7553_v59 = vpack.c.bf16 %v6032_v25, %v6032_v25 }
 0x682   : > { %6312 = vperm.xlu1 %7753, %v11419_v27   ;;  %6171 = vrot.lane.b32.xlu0 %v7560_v40, %s7919_s26  ;;  %v11622_v32 = vpop.permute.xlu1 %6220  ;;  %v7566_v27 = vpack.c.bf16 %v6237_v60, %v6237_v60 }
 0x686   : > { %5870 = vrot.lane.b32.xlu1 %v7534_v9, %s7920_s27  ;;  %6324 = vperm.xlu0 %7755, %v11283_v54   ;;  %v6225_v37 = vpop.permute.xlu1 %6224  ;;  %v7529_v9 = vpack.c.bf16 %v5734_v47, %v5734_v47 }
 0x687   : > { %v6240_v14 = vmul.f32 %v6225_v37, %v11630_v39  ;;  %v6202_v37 = vld [vmem:[#allocation3 + $0x50] sm:$0xff] }
 0x689   : > { %v7569_v61 = vpack.c.bf16 %v6240_v14, %v6240_v14  ;;  %v5838_v14 = vmul.f32 %v11601_v0, %v11614_v55 }
 0x68a   : > { %6271 = vrot.lane.b32.xlu1 %v7566_v27, %s7920_s27  ;;  %5876 = vrot.lane.b32.xlu0 %v7537_v4, %s7920_s27  ;;  %v11667_v49 = vpop.permute.xlu0 %5656 }
 0x68b   : > { %v5622_v35 = vpop.permute.xlu1 %5621  ;;  %v7536_v23 = vpack.c.bf16 %v5838_v14, %v5838_v14 }
 0x68c   : > { %v5631_v52 = vmul.f32 %v11630_v39, %v5622_v35 }
 0x68e   : > { %6316 = vperm.xlu1 %7753, %v11447_v34   ;;  %6277 = vrot.lane.b32.xlu0 %v7569_v61, %s7920_s27  ;;  %v7523_v34 = vpack.c.bf16 %v5631_v52, %v5631_v52 }
 0x690   : > { %v11638_v54 = vpop.permute.xlu1 %6020  ;;  %v6060_v40 = vpop.permute.xlu0 %6059 }
 0x692   : > { %7754 = vset.pattern.permute.xlu1 %v12478_v53  ;;  %6336 = vperm.xlu0 %7755, %v11366_v62   ;;  %v7555_v53 = vpack.c.bf16 %v6034_v50, %v6034_v50 }
 0x693   : > { %5527 = vperm.xlu1 %7754, %v11337_v41  }
 0x695   : > { %v11647_v31 = vpop.permute.xlu1 %5722 }
 0x696   : > { %5670 = vrot.lane.b32.xlu0 %v7523_v34, %s7918_s22 }
 0x697   : > { %7756 = vset.pattern.permute.xlu1 %v7917_v12 }
 0x698   : > { %5932 = vperm.xlu1 %7756, %v11337_v41  }
 0x699   : > { %v5727_v30 = vpop.permute.xlu1 %5726  ;;  %v11690_v60 = vpop.permute.xlu0 %5761 }
 0x69a   : > { %v5736_v48 = vmul.f32 %v11655_v21, %v5727_v30  ;;  %6073 = vrot.lane.b32.xlu0 %v7555_v53, %s7918_s22 }
 0x69c   : > { %v7531_v12 = vpack.c.bf16 %v5736_v48, %v5736_v48  ;;  %5936 = vperm.xlu1 %7756, %v11366_v62   ;;  %v5841_v62 = vmul.f32 %v11670_v28, %v11502_v1  ;;  %v6136_v1 = vmul.f32 %v11606_v18, %v11682_v6  ;;  %v5590_v18 = vld [vmem:[#allocation3 + $0x38] sm:$0xff] }
 0x69d   : > { %v6239_v17 = vmul.f32 %v11622_v32, %v5590_v18  ;;  %v5630_v56 = vmul.f32 %v11358_v19, %v5590_v18 }
 0x69e   : > { %5775 = vrot.lane.b32.xlu0 %v7531_v12, %s7919_s26  ;;  %v6129_v63 = vpop.permute.xlu1 %6128  ;;  %v7539_v13 = vpack.c.bf16 %v5841_v62, %v5841_v62  ;;  %v7561_v5 = vpack.c.bf16 %v6136_v1, %v6136_v1  ;;  %v6033_v12 = vmul.f32 %v11638_v54, %v11655_v21  ;;  %v5735_v62 = vmul.f32 %v11663_v15, %v11647_v31 }
 0x69f   : > { %v6138_v20 = vmul.f32 %v6129_v63, %v6098_v57  ;;  %v7568_v24 = vpack.c.bf16 %v6239_v17, %v6239_v17 }
 0x6a0   : > { %5666 = vrot.lane.b32.xlu1 %v7521_v10, %s7918_s22 }
 0x6a1   : > { %v7563_v7 = vpack.c.bf16 %v6138_v20, %v6138_v20  ;;  %7757 = vset.pattern.permute.xlu1 %v7921_v33  ;;  %v7554_v20 = vpack.c.bf16 %v6033_v12, %v6033_v12 }
 0x6a3   : > { %6177 = vrot.lane.b32.xlu0 %v7563_v7, %s7919_s26  ;;  %v11679_v38 = vpop.permute.xlu1 %5827 }
 0x6a4   : > { %6069 = vrot.lane.b32.xlu1 %v7553_v59, %s7918_s22 }
 0x6a7   : > { %5880 = vrot.lane.b32.xlu0 %v7539_v13, %s7920_s27  ;;  %v7530_v13 = vpack.c.bf16 %v5735_v62, %v5735_v62 }
 0x6a8   : > { %5771 = vrot.lane.b32.xlu1 %v7529_v9, %s7919_s26  ;;  %v11688_v33 = vpop.permute.xlu1 %6228 }
 0x6a9   : > { %v6164_v35 = vpop.permute.xlu0 %6163 }
 0x6ac   : > { %6173 = vrot.lane.b32.xlu1 %v7561_v5, %s7919_s26  ;;  %v6233_v4 = vpop.permute.xlu1 %6232 }
 0x6ad   : > { %v6242_v27 = vmul.f32 %v6233_v4, %v6202_v37  ;;  %v5867_v34 = vpop.permute.xlu0 %5866 }
 0x6af   : > { %v7571_v61 = vpack.c.bf16 %v6242_v27, %v6242_v27 }
 0x6b0   : > { %6328 = vperm.xlu1 %7757, %v11453_v22  }
 0x6b1   : > { %6281 = vrot.lane.b32.xlu0 %v7571_v61, %s7920_s27  ;;  %v5503_v52 = vpop.permute.xlu1 %5502  ;;  %v6268_v48 = vpop.permute.xlu0 %6267 }
 0x6b2   : > { %v5536_v50 = vmul.f32 %v11411_v42, %v5503_v52 }
 0x6b4   : > { %v7509_v53 = vpack.c.bf16 %v5536_v50, %v5536_v50  ;;  %5874 = vrot.lane.b32.xlu1 %v7536_v23, %s7920_s27 }
 0x6b6   : > { %5577 = vst.msk [vmem:[#allocation4 + $0xc] sm:$0xf] %vm5575_vm2, %v7509_v53  ;;  %v5909_v55 = vpop.permute.xlu1 %5908 }
 0x6b7   : > { %v5939_v30 = vmul.f32 %v5909_v55, %v11462_v16  ;;  %v7522_v16 = vpack.c.bf16 %v5630_v56, %v5630_v56 }
 0x6b8   : > { %6275 = vrot.lane.b32.xlu1 %v7568_v24, %s7920_s27 }
 0x6b9   : > { %v7540_v22 = vpack.c.bf16 %v5939_v30, %v5939_v30 }
 0x6bb   : > { %5979 = vst.msk [vmem:[#allocation4 + $0x4] sm:$0xf] %vm5575_vm2, %v7540_v22  ;;  %v5508_v42 = vpop.permute.xlu1 %5507 }
 0x6bc   : > { %6083 = vst.msk [vmem:[#allocation4 + $0x4] sm:$0xf] %vm5680_vm3, %v6060_v40  ;;  %v5537_v32 = vmul.f32 %v11408_v45, %v5508_v42  ;;  %6332 = vperm.xlu1 %7757, %v11337_v41   ;;  %v5487_v41 = vld [vmem:[#allocation3 + $0x7] sm:$0xff]  ;;  %v6137_v40 = vmul.f32 %v11440_v2, %v11670_v28  ;;  %v5840_v2 = vmul.f32 %v11682_v6, %v11679_v38 }
 0x6bd   : > { %6187 = vst.msk [vmem:[#allocation4 + $0x4] sm:$0xf] %vm5785_vm4, %v6164_v35 }
 0x6be   : > { %6291 = vst.msk [vmem:[#allocation4 + $0x4] sm:$0xf] %vm5890_vm5, %v6268_v48  ;;  %v7510_v19 = vpack.c.bf16 %v5537_v32, %v5537_v32  ;;  %v5929_v25 = vpop.permute.xlu0 %5928  ;;  %v7538_v27 = vpack.c.bf16 %v5840_v2, %v5840_v2 }
 0x6bf   : > { %v5513_v10 = vpop.permute.xlu1 %5512  ;;  %v5944_v57 = vmul.f32 %v5929_v25, %v5590_v18 }
 0x6c0   : > { %5578 = vst.msk [vmem:[#allocation4 + $0x18] sm:$0xf] %vm5575_vm2, %v7510_v19  ;;  %v5538_v63 = vmul.f32 %v11510_v26, %v5513_v10  ;;  %5668 = vrot.lane.b32.xlu1 %v7522_v16, %s7918_s22 }
 0x6c1   : > { %v7545_v45 = vpack.c.bf16 %v5944_v57, %v5944_v57 }
 0x6c2   : > { %v7511_v7 = vpack.c.bf16 %v5538_v63, %v5538_v63 }
 0x6c3   : > { %5984 = vst.msk [vmem:[#allocation4 + $0x40] sm:$0xf] %vm5575_vm2, %v7545_v45  ;;  %v5498_v54 = vpop.permute.xlu0 %5497 }
 0x6c4   : > { %5579 = vst.msk [vmem:[#allocation4 + $0x24] sm:$0xf] %vm5575_vm2, %v7511_v7  ;;  %6071 = vrot.lane.b32.xlu1 %v7554_v20, %s7918_s22  ;;  %v5921_v59 = vpop.permute.xlu1 %5920  ;;  %v5535_v47 = vmul.f32 %v5498_v54, %v5487_v41 }
 0x6c5   : > { %v5942_v26 = vmul.f32 %v5921_v59, %v11581_v8  ;;  %v7562_v8 = vpack.c.bf16 %v6137_v40, %v6137_v40 }
 0x6c6   : > { %v7508_v9 = vpack.c.bf16 %v5535_v47, %v5535_v47 }
 0x6c7   : > { %v7543_v1 = vpack.c.bf16 %v5942_v26, %v5942_v26  ;;  %v5518_v5 = vpop.permute.xlu0 %5517 }
 0x6c8   : > { %5576 = vst.msk [vmem:[#allocation4] sm:$0xf] %vm5575_vm2, %v7508_v9  ;;  %5773 = vrot.lane.b32.xlu1 %v7530_v13, %s7919_s26  ;;  %v5659_v31 = vpop.permute.xlu1 %5658  ;;  %v5539_v37 = vmul.f32 %v11505_v46, %v5518_v5 }
 0x6c9   : > { %5982 = vst.msk [vmem:[#allocation4 + $0x28] sm:$0xf] %vm5575_vm2, %v7543_v1 }
 0x6ca   : > { %5681 = vst.msk [vmem:[#allocation4] sm:$0xf] %vm5680_vm3, %v11667_v49  ;;  %5682 = vst.msk [vmem:[#allocation4 + $0xc] sm:$0xf] %vm5680_vm3, %v5659_v31  ;;  %v7512_v28 = vpack.c.bf16 %v5539_v37, %v5539_v37  ;;  %v11738_v49 = vld [vmem:[#allocation3 + $0x48] sm:$0xff]  ;;  %v6306_v37 = vld [vmem:[#allocation3 + $0x51] sm:$0xff] }
 0x6cb   : > { %5786 = vst.msk [vmem:[#allocation4] sm:$0xf] %vm5785_vm4, %v11690_v60  ;;  %v6064_v4 = vpop.permute.xlu0 %6063  ;;  %v6241_v38 = vmul.f32 %v11688_v33, %v11738_v49 }
 0x6cc   : > { %5891 = vst.msk [vmem:[#allocation4] sm:$0xf] %vm5890_vm5, %v5867_v34  ;;  %6175 = vrot.lane.b32.xlu1 %v7562_v8, %s7919_s26  ;;  %v6062_v46 = vpop.permute.xlu1 %6061 }
 0x6cd   : > { %5580 = vst.msk [vmem:[#allocation4 + $0x30] sm:$0xf] %vm5575_vm2, %v7512_v28  ;;  %v7570_v35 = vpack.c.bf16 %v6241_v38, %v6241_v38 }
 0x6ce   : > { %6085 = vst.msk [vmem:[#allocation4 + $0x1c] sm:$0xf] %vm5680_vm3, %v6064_v4  ;;  %6084 = vst.msk [vmem:[#allocation4 + $0x10] sm:$0xf] %vm5680_vm3, %v6062_v46 }
 0x6cf   : > { %v5766_v60 = vpop.permute.xlu0 %5765 }
 0x6d0   : > { %5878 = vrot.lane.b32.xlu1 %v7538_v27, %s7920_s27  ;;  %v5764_v14 = vpop.permute.xlu1 %5763 }
 0x6d1   : > { %5787 = vst.msk [vmem:[#allocation4 + $0xc] sm:$0xf] %vm5785_vm4, %v5764_v14 }
 0x6d3   : > { %v6168_v61 = vpop.permute.xlu0 %6167 }
 0x6d4   : > { %6279 = vrot.lane.b32.xlu1 %v7570_v35, %s7920_s27  ;;  %v6166_v18 = vpop.permute.xlu1 %6165  ;;  %6189 = vst.msk [vmem:[#allocation4 + $0x1c] sm:$0xf] %vm5785_vm4, %v6168_v61 }
 0x6d5   : > { %6188 = vst.msk [vmem:[#allocation4 + $0x10] sm:$0xf] %vm5785_vm4, %v6166_v18 }
 0x6d7   : > { %v5873_v23 = vpop.permute.xlu0 %5872 }
 0x6d8   : > { %v5869_v52 = vpop.permute.xlu1 %5868 }
 0x6d9   : > { %5892 = vst.msk [vmem:[#allocation4 + $0xc] sm:$0xf] %vm5890_vm5, %v5869_v52 }
 0x6db   : > { %v6274_v17 = vpop.permute.xlu0 %6273 }
 0x6dc   : > { %v6270_v33 = vpop.permute.xlu1 %6269 }
 0x6dd   : > { %6292 = vst.msk [vmem:[#allocation4 + $0x10] sm:$0xf] %vm5890_vm5, %v6270_v33 }
 0x6e0   : > { %v5523_v50 = vpop.permute.xlu1 %5522  ;;  %v7774_v55 = vld [vmem:[#allocation4] ss:$12 sps:$4 sm:$0xff]  }
 0x6e1   : > { %v5540_v34 = vmul.f32 %v11601_v0, %v5523_v50 }
 0x6e3   : > { %v7513_v53 = vpack.c.bf16 %v5540_v34, %v5540_v34 }
 0x6e4   : > { %v5533_v24 = vpop.permute.xlu0 %5532  ;;  %v7776_v30 = vld [vmem:[#allocation4 + $0x4] ss:$12 sps:$4 sm:$0xff]  }
 0x6e5   : > { %5581 = vst.msk [vmem:[#allocation4 + $0x3c] sm:$0xf] %vm5575_vm2, %v7513_v53  ;;  %v5542_v22 = vmul.f32 %v11682_v6, %v5533_v24  ;;  %v5925_v56 = vpop.permute.xlu1 %5924  ;;  %6658 = vmatprep.mubr.bf16.mxu0 %v7776_v30 }
 0x6e6   : > { %v5943_v48 = vmul.f32 %v11555_v58, %v5925_v56  ;;  %6659 = vmatmul.mubr.bf16.vlgmr.msra.gmra.mxu0 %v7774_v55 }
 0x6e7   : > { %v7515_v42 = vpack.c.bf16 %v5542_v22, %v5542_v22 }
 0x6e8   : > { %v7544_v32 = vpack.c.bf16 %v5943_v48, %v5943_v48 }
 0x6e9   : > { %5583 = vst.msk [vmem:[#allocation4 + $0x54] sm:$0xf] %vm5575_vm2, %v7515_v42  ;;  %v6309_v16 = vpop.permute.xlu0 %6308  ;;  %v5661_v12 = vpop.permute.xlu1 %5660 }
 0x6ea   : > { %5983 = vst.msk [vmem:[#allocation4 + $0x34] sm:$0xf] %vm5575_vm2, %v7544_v32  ;;  %v6339_v0 = vmul.f32 %v6309_v16, %v11472_v43 }
 0x6eb   : > { %5683 = vst.msk [vmem:[#allocation4 + $0x18] sm:$0xf] %vm5680_vm3, %v5661_v12  ;;  %v6305_v12 = vld [vmem:[#allocation3 + $0x49] sm:$0xff] }
 0x6ec   : > { %5788 = vst.msk [vmem:[#allocation4 + $0x18] sm:$0xf] %vm5785_vm4, %v5766_v60  ;;  %v7572_v6 = vpack.c.bf16 %v6339_v0, %v6339_v0 }
 0x6ed   : > { %v6321_v19 = vpop.permute.xlu0 %6320  ;;  %v5663_v25 = vpop.permute.xlu1 %5662 }
 0x6ee   : > { %6379 = vst.msk [vmem:[#allocation4 + $0x8] sm:$0xf] %vm5575_vm2, %v7572_v6  ;;  %v6342_v58 = vmul.f32 %v6321_v19, %v11592_v36 }
 0x6ef   : > { %5684 = vst.msk [vmem:[#allocation4 + $0x24] sm:$0xf] %vm5680_vm3, %v5663_v25 }
 0x6f0   : > { %v7575_v10 = vpack.c.bf16 %v6342_v58, %v6342_v58 }
 0x6f1   : > { %v5665_v57 = vpop.permute.xlu0 %5664  ;;  %v6066_v63 = vpop.permute.xlu1 %6065 }
 0x6f2   : > { %6382 = vst.msk [vmem:[#allocation4 + $0x2c] sm:$0xf] %vm5575_vm2, %v7575_v10 }
 0x6f3   : > { %5685 = vst.msk [vmem:[#allocation4 + $0x30] sm:$0xf] %vm5680_vm3, %v5665_v57  ;;  %6086 = vst.msk [vmem:[#allocation4 + $0x28] sm:$0xf] %vm5680_vm3, %v6066_v63 }
 0x6f5   : > { %v6068_v43 = vpop.permute.xlu0 %6067  ;;  %v5768_v45 = vpop.permute.xlu1 %5767 }
 0x6f6   : > { %6087 = vst.msk [vmem:[#allocation4 + $0x34] sm:$0xf] %vm5680_vm3, %v6068_v43 }
 0x6f7   : > { %5789 = vst.msk [vmem:[#allocation4 + $0x24] sm:$0xf] %vm5785_vm4, %v5768_v45 }
 0x6f8   : > { %5894 = vst.msk [vmem:[#allocation4 + $0x24] sm:$0xf] %vm5890_vm5, %v5873_v23 }
 0x6f9   : > { %v5770_v36 = vpop.permute.xlu0 %5769  ;;  %v6170_v41 = vpop.permute.xlu1 %6169 }
 0x6fa   : > { %5790 = vst.msk [vmem:[#allocation4 + $0x30] sm:$0xf] %vm5785_vm4, %v5770_v36  ;;  %6190 = vst.msk [vmem:[#allocation4 + $0x28] sm:$0xf] %vm5785_vm4, %v6170_v41 }
 0x6fb   : > { %6294 = vst.msk [vmem:[#allocation4 + $0x28] sm:$0xf] %vm5890_vm5, %v6274_v17 }
 0x6fd   : > { %v6172_v20 = vpop.permute.xlu0 %6171  ;;  %v6313_v62 = vpop.permute.xlu1 %6312 }
 0x6fe   : > { %6191 = vst.msk [vmem:[#allocation4 + $0x34] sm:$0xf] %vm5785_vm4, %v6172_v20  ;;  %v6340_v7 = vmul.f32 %v6313_v62, %v11469_v3 }
 0x700   : > { %v7573_v54 = vpack.c.bf16 %v6340_v7, %v6340_v7  ;;  %v7791_v7 = vld [vmem:[%s11940_s7 + $0x18] sm:$0xff]  }
 0x701   : > { %v6325_v59 = vpop.permute.xlu0 %6324  ;;  %v5871_v47 = vpop.permute.xlu1 %5870 }
 0x702   : > { %6380 = vst.msk [vmem:[#allocation4 + $0x14] sm:$0xf] %vm5575_vm2, %v7573_v54  ;;  %v6343_v26 = vmul.f32 %v6325_v59, %v11663_v15  ;;  %v6393_v2 = vld [vmem:[#allocation4 + $0x24] sm:$0xff]  ;;  %v7792_v54 = vld [vmem:[%s11940_s7 + $0x10] sm:$0xff]  }
 0x703   : > { %5893 = vst.msk [vmem:[#allocation4 + $0x18] sm:$0xf] %vm5890_vm5, %v5871_v47  ;;  %v7793_v59 = vld [vmem:[%s11940_s7 + $0x8] sm:$0xff]   ;;  %v7794_v47 = vld [vmem:[%s11940_s7] sm:$0xff]  }
 0x704   : > { %v7576_v40 = vpack.c.bf16 %v6343_v26, %v6343_v26 }
 0x705   : > { %v5877_v13 = vpop.permute.xlu0 %5876  ;;  %v6272_v9 = vpop.permute.xlu1 %6271 }
 0x706   : > { %6383 = vst.msk [vmem:[#allocation4 + $0x38] sm:$0xf] %vm5575_vm2, %v7576_v40 }
 0x707   : > { %6293 = vst.msk [vmem:[#allocation4 + $0x1c] sm:$0xf] %vm5890_vm5, %v6272_v9 }
 0x709   : > { %v6278_v1 = vpop.permute.xlu0 %6277  ;;  %v6317_v5 = vpop.permute.xlu1 %6316  ;;  %v7777_v31 = vld [vmem:[#allocation4 + $0x8] ss:$12 sps:$4 sm:$0xff]  }
 0x70a   : > { %v6341_v3 = vmul.f32 %v6317_v5, %v11583_v29  ;;  %7644 = vmatprep.mubr.msk.bf16.mxu1 %vm5002_vm1, %v7777_v31 }
 0x70c   : > { %v7574_v8 = vpack.c.bf16 %v6341_v3, %v6341_v3 }
 0x70d   : > { %v6337_v15 = vpop.permute.xlu0 %6336 }
 0x70e   : > { %v6391_v28 = vld [vmem:[#allocation4 + $0x18] sm:$0xff]  ;;  %6381 = vst.msk [vmem:[#allocation4 + $0x20] sm:$0xf] %vm5575_vm2, %v7574_v8  ;;  %v6346_v46 = vmul.f32 %v6337_v15, %v6306_v37  ;;  %v5528_v27 = vpop.permute.xlu1 %5527 }
 0x70f   : > { %v7778_v4 = vld [vmem:[#allocation4 + $0x1c] ss:$12 sps:$4 sm:$0xff]   ;;  %v7456_v38 = vcombine.low %v6391_v28, %v6393_v2  ;;  %v5541_v60 = vmul.f32 %v11610_v44, %v5528_v27  ;;  %v11835_v28 = vld [vmem:[%s11939_s6] ss:$0 sm:$0xff] }
 0x710   : > { %6666 = vmatprep.mubr.bf16.mxu0 %v7778_v4  ;;  %v7579_v14 = vpack.c.bf16 %v6346_v46, %v6346_v46 }
 0x711   : > { %6667 = vmatmul.mubr.bf16.gmra.mxu0 %v7456_v38  ;;  %v7514_v35 = vpack.c.bf16 %v5541_v60, %v5541_v60  ;;  %v5671_v29 = vpop.permute.xlu0 %5670 }
 0x712   : > { %6386 = vst.msk [vmem:[#allocation4 + $0x5c] sm:$0xf] %vm5575_vm2, %v7579_v14 }
 0x713   : > { %5688 = vst.msk [vmem:[#allocation4 + $0x54] sm:$0xf] %vm5680_vm3, %v5671_v29  ;;  %v5933_v61 = vpop.permute.xlu1 %5932 }
 0x714   : > { %5582 = vst.msk [vmem:[#allocation4 + $0x48] sm:$0xf] %vm5575_vm2, %v7514_v35  ;;  %v5945_v18 = vmul.f32 %v11630_v39, %v5933_v61 }
 0x715   : > { %v6074_v52 = vpop.permute.xlu0 %6073  ;;  %v7782_v23 = vld [vmem:[#allocation4 + $0x20] ss:$12 sps:$4 sm:$0xff]  }
 0x716   : > { %v7546_v33 = vpack.c.bf16 %v5945_v18, %v5945_v18  ;;  %7645 = vmatmul.mubr.msk.bf16.vlgmr.msra.gmra.mxu1 %vm5002_vm1, %v7782_v23 }
 0x717   : > { %v5937_v17 = vpop.permute.xlu1 %5936  ;;  %7653 = vmatpush3.bf16.msra.mxu1 %v7791_v7 }
 0x718   : > { %5985 = vst.msk [vmem:[#allocation4 + $0x4c] sm:$0xf] %vm5575_vm2, %v7546_v33  ;;  %v5946_v44 = vmul.f32 %v11738_v49, %v5937_v17  ;;  %7654 = vmatprep.subr.bf16.mxu1 %v12479_v11 }
 0x719   : > { %v5776_v50 = vpop.permute.xlu0 %5775 }
 0x71a   : > { %v7547_v34 = vpack.c.bf16 %v5946_v44, %v5946_v44  ;;  %5793 = vst.msk [vmem:[#allocation4 + $0x54] sm:$0xf] %vm5785_vm4, %v5776_v50 }
 0x71b   : > { %v5667_v53 = vpop.permute.xlu1 %5666  ;;  %7655 = vmatpush3.bf16.msra.mxu1 %v7792_v54 }
 0x71c   : > { %5986 = vst.msk [vmem:[#allocation4 + $0x58] sm:$0xf] %vm5575_vm2, %v7547_v34  ;;  %7656 = vmatprep.subr.bf16.mxu1 %v12479_v11 }
 0x71d   : > { %5686 = vst.msk [vmem:[#allocation4 + $0x3c] sm:$0xf] %vm5680_vm3, %v5667_v53  ;;  %6090 = vst.msk [vmem:[#allocation4 + $0x58] sm:$0xf] %vm5680_vm3, %v6074_v52  ;;  %v6178_v39 = vpop.permute.xlu0 %6177 }
 0x71e   : > { %6194 = vst.msk [vmem:[#allocation4 + $0x58] sm:$0xf] %vm5785_vm4, %v6178_v39 }
 0x71f   : > { %v6070_v24 = vpop.permute.xlu1 %6069  ;;  %7657 = vmatpush3.bf16.msra.mxu1 %v7793_v59 }
 0x720   : > { %6088 = vst.msk [vmem:[#allocation4 + $0x40] sm:$0xf] %vm5680_vm3, %v6070_v24  ;;  %7658 = vmatprep.subr.bf16.mxu1 %v12479_v11 }
 0x721   : > { %v5881_v55 = vpop.permute.xlu0 %5880 }
 0x722   : > { %5898 = vst.msk [vmem:[#allocation4 + $0x54] sm:$0xf] %vm5890_vm5, %v5881_v55 }
 0x723   : > { %v5772_v49 = vpop.permute.xlu1 %5771  ;;  %7659 = vmatpush3.bf16.msra.mxu1 %v7794_v47 }
 0x724   : > { %5791 = vst.msk [vmem:[#allocation4 + $0x3c] sm:$0xf] %vm5785_vm4, %v5772_v49  ;;  %7664 = vmatprep.subr.bf16.mxu1 %v12479_v11 }
 0x725   : > { %5896 = vst.msk [vmem:[#allocation4 + $0x3c] sm:$0xf] %vm5890_vm5, %v5877_v13  ;;  %v6282_v30 = vpop.permute.xlu0 %6281 }
 0x726   : > { %6298 = vst.msk [vmem:[#allocation4 + $0x58] sm:$0xf] %vm5890_vm5, %v6282_v30 }
 0x727   : > { %v6174_v22 = vpop.permute.xlu1 %6173 }
 0x728   : > { %6192 = vst.msk [vmem:[#allocation4 + $0x40] sm:$0xf] %vm5785_vm4, %v6174_v22 }
 0x729   : > { %6296 = vst.msk [vmem:[#allocation4 + $0x40] sm:$0xf] %vm5890_vm5, %v6278_v1 }
 0x72b   : > { %v6329_v56 = vpop.permute.xlu1 %6328 }
 0x72c   : > { %v6344_v48 = vmul.f32 %v6329_v56, %v11655_v21 }
 0x72e   : > { %v7577_v42 = vpack.c.bf16 %v6344_v48, %v6344_v48 }
 0x72f   : > { %v5875_v32 = vpop.permute.xlu1 %5874 }
 0x730   : > { %6384 = vst.msk [vmem:[#allocation4 + $0x44] sm:$0xf] %vm5575_vm2, %v7577_v42 }
 0x731   : > { %5895 = vst.msk [vmem:[#allocation4 + $0x30] sm:$0xf] %vm5890_vm5, %v5875_v32 }
 0x733   : > { %v6276_v16 = vpop.permute.xlu1 %6275 }
 0x734   : > { %6295 = vst.msk [vmem:[#allocation4 + $0x34] sm:$0xf] %vm5890_vm5, %v6276_v16 }
 0x737   : > { %v6333_v0 = vpop.permute.xlu1 %6332  ;;  %v7783_v6 = vld [vmem:[#allocation4 + $0x38] ss:$12 sps:$4 sm:$0xff]  }
 0x738   : > { %v6345_v19 = vmul.f32 %v6333_v0, %v6305_v12  ;;  %7648 = vmatprep.mubr.msk.bf16.mxu1 %vm5002_vm1, %v7783_v6  ;;  %v7786_v57 = vld [vmem:[#allocation4 + $0x30] ss:$12 sps:$4 sm:$0xff]  }
 0x73a   : > { %v7578_v25 = vpack.c.bf16 %v6345_v19, %v6345_v19 }
 0x73b   : > { %v5669_v58 = vpop.permute.xlu1 %5668  ;;  %v7784_v10 = vld [vmem:[#allocation4 + $0x34] ss:$12 sps:$4 sm:$0xff]  }
 0x73c   : > { %6385 = vst.msk [vmem:[#allocation4 + $0x50] sm:$0xf] %vm5575_vm2, %v7578_v25  ;;  %6674 = vmatprep.mubr.bf16.mxu0 %v7784_v10 }
 0x73d   : > { %5687 = vst.msk [vmem:[#allocation4 + $0x48] sm:$0xf] %vm5680_vm3, %v5669_v58  ;;  %6675 = vmatmul.mubr.bf16.gmra.mxu0 %v7786_v57 }
 0x73f   : > { %v6072_v21 = vpop.permute.xlu1 %6071 }
 0x740   : > { %6089 = vst.msk [vmem:[#allocation4 + $0x4c] sm:$0xf] %vm5680_vm3, %v6072_v21 }
 0x743   : > { %v5774_v63 = vpop.permute.xlu1 %5773  ;;  %v7787_v43 = vld [vmem:[#allocation4 + $0x50] ss:$12 sps:$4 sm:$0xff]  }
 0x744   : > { %5792 = vst.msk [vmem:[#allocation4 + $0x48] sm:$0xf] %vm5785_vm4, %v5774_v63  ;;  %7649 = vmatmul.mubr.msk.bf16.gmra.mxu1 %vm5002_vm1, %v7787_v43 }
 0x745   : > { %7660 = vmatprep.mubr.msk.bf16.mxu1 %vm7922_vm6, %v12479_v11 }
 0x747   : > { %v6176_v45 = vpop.permute.xlu1 %6175 }
 0x748   : > { %6193 = vst.msk [vmem:[#allocation4 + $0x4c] sm:$0xf] %vm5785_vm4, %v6176_v45 }
 0x74b   : > { %v5879_v36 = vpop.permute.xlu1 %5878 }
 0x74c   : > { %5897 = vst.msk [vmem:[#allocation4 + $0x48] sm:$0xf] %vm5890_vm5, %v5879_v36 }
 0x74f   : > { %v6280_v41 = vpop.permute.xlu1 %6279 }
 0x750   : > { %6297 = vst.msk [vmem:[#allocation4 + $0x4c] sm:$0xf] %vm5890_vm5, %v6280_v41 }
 0x753   : > { %v7790_v62 = vld [vmem:[#allocation4 + $0x48] ss:$12 sps:$4 sm:$0xff]  }
 0x757   : > { %v7788_v20 = vld [vmem:[#allocation4 + $0x4c] ss:$12 sps:$4 sm:$0xff]  }
 0x758   : > { %6682 = vmatprep.mubr.bf16.mxu0 %v7788_v20 }
 0x759   : > { %6683 = vmatmul.mubr.bf16.gmra.mxu0 %v7790_v62 }
 0x7a6   : > { %v7596_v26 = vpop.f32.mrf.mxu0 }
 0x7a8   : > { %v7597_v40 = vpop.f32.mrf.mxu0 }
 0x7a9   : > { %v7598_v15 = vadd.f32 %v7597_v40, %v7596_v26 }
 0x7aa   : > { %v7599_v13 = vpop.f32.mrf.mxu0 }
 0x7ab   : > { %v6661_v38 = vadd.f32 %v7598_v15, %v11835_v28 }
 0x7ac   : > { %v7600_v9 = vpop.f32.mrf.mxu0 }
 0x7ad   : > { %v7601_v8 = vadd.f32 %v7600_v9, %v7599_v13 }
 0x7af   : > { %v6664_v46 = vadd.f32 %v7601_v8, %v11835_v28 }
 0x7d1   : > { %v7602_v5 = vpop.f32.mrf.mxu0 }
 0x7d3   : > { %v7603_v3 = vpop.f32.mrf.mxu0 }
 0x7d4   : > { %v7604_v33 = vadd.f32 %v7603_v3, %v7602_v5 }
 0x7d5   : > { %v7605_v2 = vpop.f32.mrf.mxu0 }
 0x7d6   : > { %v7646_v1 = vpop.f32.mrf.mxu1  ;;  %v6669_v55 = vadd.f32 %v7604_v33, %v11835_v28 }
 0x7d7   : > { %v7606_v27 = vpop.f32.mrf.mxu0 }
 0x7d8   : > { %v6725_v31 = vpop.f32.mrf.mxu1  ;;  %v7607_v18 = vadd.f32 %v7606_v27, %v7605_v2  ;;  %v6734_v12 = vadd.f32 %v7646_v1, %v6669_v55 }
 0x7d9   : > { %v6726_v35 = vadd.f32 %v6725_v31, %v6661_v38 }
 0x7da   : > { %v7647_v37 = vpop.f32.mrf.mxu1  ;;  %v6672_v53 = vadd.f32 %v7607_v18, %v11835_v28  ;;  %v6758_v57 = vmax.f32 %v6734_v12, 0.0 }
 0x7db   : > { %v6756_v23 = vmax.f32 %v6726_v35, 0.0 }
 0x7dc   : > { %v6728_v4 = vpop.f32.mrf.mxu1  ;;  %v6737_v56 = vadd.f32 %v7647_v37, %v6672_v53 }
 0x7dd   : > { %v6729_v60 = vadd.f32 %v6728_v4, %v6664_v46 }
 0x7de   : > { %v6759_v19 = vmax.f32 %v6737_v56, 0.0 }
 0x7df   : > { %v6757_v61 = vmax.f32 %v6729_v60, 0.0 }
 0x7e0   : > { %v6765_v43 = vmax.f32 %v6758_v57, %v6759_v19 }
 0x7e1   : > { %v6764_v50 = vmax.f32 %v6756_v23, %v6757_v61 }
 0x7e2   : > { %v6828_v54 = vrot.slane %v6765_v43, %v10640_v51  ;;  %v6821_v13 = vcombine.high %v6765_v43, %v6765_v43 }
 0x7e3   : > { %v6779_v30 = vrot.slane %v6764_v50, %v10640_v51  ;;  %v6772_v32 = vcombine.high %v6764_v50, %v6764_v50 }
 0x7e4   : > { %v6836_v5 = vcombine.high %v6828_v54, %v6828_v54  ;;  %v6835_v46 = vrot.slane %v6821_v13, %v10640_v51 }
 0x7e5   : > { %v6787_v6 = vcombine.high %v6779_v30, %v6779_v30  ;;  %v6786_v10 = vrot.slane %v6772_v32, %v10640_v51  ;;  %v6795_v41 = vrot.slane %v6779_v30, %v10640_v51 }
 0x7e6   : > { %v6858_v35 = vrot.slane %v6836_v5, %v10640_v51  ;;  %v6837_v53 = vcombine.high %v6835_v46, %v6835_v46 }
 0x7e7   : > { %v6809_v63 = vrot.slane %v6787_v6, %v10640_v51  ;;  %v6788_v36 = vcombine.high %v6786_v10, %v6786_v10  ;;  %v6817_v47 = vcombine.high %v6795_v41, %v6795_v41  ;;  %v6802_v9 = vrot.slane %v6786_v10, %v10640_v51 }
 0x7e9   : > { %v6819_v7 = vcombine.high %v6809_v63, %v6809_v63  ;;  %v6816_v59 = vrot.slane %v6788_v36, %v10640_v51  ;;  %v6818_v27 = vcombine.high %v6802_v9, %v6802_v9  ;;  %v7000_v18 = vmax.f32 %v6795_v41, %v6809_v63 }
 0x7eb   : > { %v7001_v1 = vmax.f32 %v6817_v47, %v6819_v7  ;;  %v6820_v37 = vcombine.high %v6816_v59, %v6816_v59  ;;  %v7002_v8 = vmax.f32 %v6802_v9, %v6816_v59 }
 0x7ed   : > { %v7017_v38 = vpack.c.bf16 %v7001_v1, %v7001_v1  ;;  %v7018_v33 = vpack.c.bf16 %v7002_v8, %v7002_v8 }
 0x7ef   : > { %v7065_v12 = vunpack.c.l.b16 %v7018_v33 }
 0x7fd   : > { %v7608_v14 = vpop.f32.mrf.mxu0 }
 0x7ff   : > { %v7609_v29 = vpop.f32.mrf.mxu0 }
 0x800   : > { %v7610_v17 = vadd.f32 %v7609_v29, %v7608_v14  ;;  %v6844_v14 = vrot.slane %v6828_v54, %v10640_v51 }
 0x801   : > { %v7611_v52 = vpop.f32.mrf.mxu0 }
 0x802   : > { %v6677_v49 = vadd.f32 %v7610_v17, %v11835_v28  ;;  %v6866_v55 = vcombine.high %v6844_v14, %v6844_v14  ;;  %v7004_v30 = vmax.f32 %v6844_v14, %v6858_v35 }
 0x803   : > { %v7612_v44 = vpop.f32.mrf.mxu0 }
 0x804   : > { %v11839_v34 = vpop.f32.mrf.mxu1  ;;  %v7613_v39 = vadd.f32 %v7612_v44, %v7611_v52  ;;  %v7003_v52 = vmax.f32 %v6818_v27, %v6820_v37  ;;  %v7020_v63 = vpack.c.bf16 %v7004_v30, %v7004_v30 }
 0x806   : > { %v6741_v24 = vpop.f32.mrf.mxu1  ;;  %v6680_v42 = vadd.f32 %v7613_v39, %v11835_v28  ;;  %v7064_v39 = vunpack.c.l.b16 %v7017_v38  ;;  %v7067_v5 = vunpack.c.l.b16 %v7020_v63 }
 0x807   : > { %v6742_v48 = vadd.f32 %v6741_v24, %v6677_v49  ;;  %v6868_v49 = vcombine.high %v6858_v35, %v6858_v35 }
 0x808   : > { %v11845_v22 = vpop.f32.mrf.mxu1  ;;  %v7079_v10 = vrot.slane %v7064_v39, 7 }
 0x809   : > { %v6760_v25 = vmax.f32 %v6742_v48, 0.0  ;;  %v7016_v48 = vpack.c.bf16 %v7000_v18, %v7000_v18 }
 0x80a   : > { %v6744_v16 = vpop.f32.mrf.mxu1 }
 0x80b   : > { %v6745_v0 = vadd.f32 %v6744_v16, %v6680_v42  ;;  %v7019_v42 = vpack.c.bf16 %v7003_v52, %v7003_v52  ;;  %v7063_v36 = vunpack.c.l.b16 %v7016_v48 }
 0x80d   : > { %v6761_v58 = vmax.f32 %v6745_v0, 0.0  ;;  %v7066_v41 = vunpack.c.l.b16 %v7019_v42  ;;  %v7081_v47 = vsel %vm7080_vm7, %v7079_v10, %v7063_v36 }
 0x80f   : > { %v6766_v21 = vmax.f32 %v6760_v25, %v6761_v58  ;;  %v6851_v25 = vrot.slane %v6835_v46, %v10640_v51  ;;  %v6865_v58 = vrot.slane %v6837_v53, %v10640_v51 }
 0x811   : > { %v6877_v45 = vrot.slane %v6766_v21, %v10640_v51  ;;  %v6870_v20 = vcombine.high %v6766_v21, %v6766_v21  ;;  %v7005_v21 = vmax.f32 %v6866_v55, %v6868_v49  ;;  %v6867_v59 = vcombine.high %v6851_v25, %v6851_v25 }
 0x812   : > { %v6869_v13 = vcombine.high %v6865_v58, %v6865_v58  ;;  %v7006_v9 = vmax.f32 %v6851_v25, %v6865_v58 }
 0x813   : > { %v6885_v62 = vcombine.high %v6877_v45, %v6877_v45  ;;  %v6884_v26 = vrot.slane %v6870_v20, %v10640_v51  ;;  %v6893_v31 = vrot.slane %v6877_v45, %v10640_v51 }
 0x814   : > { %v7007_v38 = vmax.f32 %v6867_v59, %v6869_v13 }
 0x815   : > { %v6907_v40 = vrot.slane %v6885_v62, %v10640_v51  ;;  %v6886_v2 = vcombine.high %v6884_v26, %v6884_v26  ;;  %v6915_v29 = vcombine.high %v6893_v31, %v6893_v31  ;;  %v6900_v56 = vrot.slane %v6884_v26, %v10640_v51 }
 0x816   : > { %v7023_v55 = vpack.c.bf16 %v7007_v38, %v7007_v38 }
 0x817   : > { %v6917_v15 = vcombine.high %v6907_v40, %v6907_v40  ;;  %v6914_v17 = vrot.slane %v6886_v2, %v10640_v51  ;;  %v6916_v43 = vcombine.high %v6900_v56, %v6900_v56  ;;  %v7008_v45 = vmax.f32 %v6893_v31, %v6907_v40 }
 0x818   : > { %v7070_v10 = vunpack.c.l.b16 %v7023_v55 }
 0x819   : > { %v7614_v3 = vpop.f32.mrf.mxu0  ;;  %v7009_v44 = vmax.f32 %v6915_v29, %v6917_v15  ;;  %v6918_v0 = vcombine.high %v6914_v17, %v6914_v17  ;;  %v7010_v6 = vmax.f32 %v6900_v56, %v6914_v17  ;;  %v7024_v1 = vpack.c.bf16 %v7008_v45, %v7008_v45 }
 0x81b   : > { %v7615_v4 = vpop.f32.mrf.mxu0  ;;  %v7025_v19 = vpack.c.bf16 %v7009_v44, %v7009_v44  ;;  %v7011_v62 = vmax.f32 %v6916_v43, %v6918_v0  ;;  %v7026_v7 = vpack.c.bf16 %v7010_v6, %v7010_v6  ;;  %v7071_v35 = vunpack.c.l.b16 %v7024_v1 }
 0x81c   : > { %v7616_v60 = vadd.f32 %v7615_v4, %v7614_v3  ;;  %v7085_v3 = vrot.slane %v7066_v41, 5 }
 0x81d   : > { %v7617_v61 = vpop.f32.mrf.mxu0  ;;  %v7072_v54 = vunpack.c.l.b16 %v7025_v19  ;;  %v7027_v8 = vpack.c.bf16 %v7011_v62, %v7011_v62  ;;  %v7073_v2 = vunpack.c.l.b16 %v7026_v7 }
 0x81e   : > { %v6685_v23 = vadd.f32 %v7616_v60, %v11835_v28  ;;  %v7022_v60 = vpack.c.bf16 %v7006_v9, %v7006_v9 }
 0x81f   : > { %v7618_v50 = vpop.f32.mrf.mxu0  ;;  %v7100_v15 = vrot.slane %v7072_v54, 7  ;;  %v7074_v33 = vunpack.c.l.b16 %v7027_v8  ;;  %v7102_v44 = vrot.slane %v7073_v2, 6  ;;  %v7097_v54 = vrot.slane %v7070_v10, 1  ;;  %v7801_v8 = vld [vmem:[%s11942_s9 + $0x8] sm:$0xff]   ;;  %v7802_v2 = vld [vmem:[%s11942_s9] sm:$0xff]  }
 0x820   : > { %v7619_v24 = vadd.f32 %v7618_v50, %v7617_v61  ;;  %v6750_v32 = vadd.f32 %v11839_v34, %v6685_v23  ;;  %v7088_v23 = vrot.slane %v7067_v5, 4  ;;  %v7796_v5 = vld [vmem:[%s11942_s9 + $0x30] sm:$0xff]  }
 0x821   : > { %v7101_v17 = vsel %vm7080_vm7, %v7100_v15, %v7071_v35  ;;  %v7104_v6 = vrot.slane %v7074_v33, 5  ;;  %v7487_v15 = vld [vmem:[%s11941_s8] ss:$0 sm:$0xff] }
 0x822   : > { %v6688_v16 = vadd.f32 %v7619_v24, %v11835_v28  ;;  %v6762_v34 = vmax.f32 %v6750_v32, 0.0  ;;  %v7082_v28 = vrot.slane %v7065_v12, 6  ;;  %v7103_v0 = vsel %vm7083_vm8, %v7102_v44, %v7101_v17 }
 0x823   : > { %v7105_v41 = vsel %vm7086_vm9, %v7104_v6, %v7103_v0 }
 0x824   : > { %v6753_v57 = vadd.f32 %v11845_v22, %v6688_v16  ;;  %v7021_v22 = vpack.c.bf16 %v7005_v21, %v7005_v21  ;;  %v7084_v37 = vsel %vm7083_vm8, %v7082_v28, %v7081_v47  ;;  %v7069_v16 = vunpack.c.l.b16 %v7022_v60 }
 0x825   : > { %v7087_v29 = vsel %vm7086_vm9, %v7085_v3, %v7084_v37  ;;  %v7797_v3 = vld [vmem:[%s11942_s9 + $0x28] sm:$0xff]   ;;  %v7800_v37 = vld [vmem:[%s11942_s9 + $0x10] sm:$0xff]  }
 0x826   : > { %v6763_v20 = vmax.f32 %v6753_v57, 0.0  ;;  %v7068_v14 = vunpack.c.l.b16 %v7021_v22  ;;  %v7090_v49 = vsel %vm7089_vm10, %v7088_v23, %v7087_v29  ;;  %v7094_v36 = vrot.slane %v7069_v16, 2  ;;  %v7795_v22 = vld [vmem:[%s11942_s9 + $0x38] sm:$0xff]  }
 0x828   : > { %v6767_v26 = vmax.f32 %v6762_v34, %v6763_v20  ;;  %v7091_v12 = vrot.slane %v7068_v14, 3 }
 0x82a   : > { %v6919_v40 = vcombine.high %v6767_v26, %v6767_v26  ;;  %v6926_v31 = vrot.slane %v6767_v26, %v10640_v51  ;;  %v7093_v57 = vsel %vm7092_vm11, %v7091_v12, %v7090_v49 }
 0x82b   : > { %v7096_v7 = vsel %vm7095_vm12, %v7094_v36, %v7093_v57 }
 0x82c   : > { %v6933_v4 = vrot.slane %v6919_v40, %v10640_v51  ;;  %v6934_v46 = vcombine.high %v6926_v31, %v6926_v31  ;;  %v6942_v27 = vrot.slane %v6926_v31, %v10640_v51  ;;  %v7099_v13 = vsel %vm7098_vm13, %v7097_v54, %v7096_v7  ;;  %v7798_v40 = vld [vmem:[%s11942_s9 + $0x20] sm:$0xff]   ;;  %v7799_v31 = vld [vmem:[%s11942_s9 + $0x18] sm:$0xff]  }
 0x82e   : > { %v6935_v61 = vcombine.high %v6933_v4, %v6933_v4  ;;  %v6949_v18 = vrot.slane %v6933_v4, %v10640_v51  ;;  %v6956_v52 = vrot.slane %v6934_v46, %v10640_v51  ;;  %v6964_v53 = vcombine.high %v6942_v27, %v6942_v27 }
 0x830   : > { %v6963_v50 = vrot.slane %v6935_v61, %v10640_v51  ;;  %v6966_v39 = vcombine.high %v6956_v52, %v6956_v52  ;;  %v7012_v24 = vmax.f32 %v6942_v27, %v6956_v52  ;;  %v6965_v30 = vcombine.high %v6949_v18, %v6949_v18 }
 0x832   : > { %v6967_v56 = vcombine.high %v6963_v50, %v6963_v50  ;;  %v7013_v48 = vmax.f32 %v6964_v53, %v6966_v39  ;;  %v7014_v42 = vmax.f32 %v6949_v18, %v6963_v50  ;;  %v7028_v32 = vpack.c.bf16 %v7012_v24, %v7012_v24  ;;  %v7493_v18 = vld [vmem:[%s11943_s10] ss:$0 sm:$0xff] }
 0x834   : > { %v7015_v19 = vmax.f32 %v6965_v30, %v6967_v56  ;;  %v7029_v25 = vpack.c.bf16 %v7013_v48, %v7013_v48  ;;  %v7030_v51 = vpack.c.bf16 %v7014_v42, %v7014_v42  ;;  %v7075_v58 = vunpack.c.l.b16 %v7028_v32 }
 0x836   : > { %v7031_v21 = vpack.c.bf16 %v7015_v19, %v7015_v19  ;;  %v7076_v63 = vunpack.c.l.b16 %v7029_v25  ;;  %v7077_v43 = vunpack.c.l.b16 %v7030_v51  ;;  %v7106_v45 = vrot.slane %v7075_v58, 4 }
 0x838   : > { %v7078_v34 = vunpack.c.l.b16 %v7031_v21  ;;  %v7107_v20 = vsel %vm7089_vm10, %v7106_v45, %v7105_v41  ;;  %v7108_v28 = vrot.slane %v7076_v63, 3  ;;  %v7110_v62 = vrot.slane %v7077_v43, 2 }
 0x83a   : > { %v7109_v59 = vsel %vm7092_vm11, %v7108_v28, %v7107_v20  ;;  %v7112_v47 = vrot.slane %v7078_v34, 1 }
 0x83b   : > { %v7111_v26 = vsel %vm7095_vm12, %v7110_v62, %v7109_v59 }
 0x83c   : > { %v7113_v9 = vsel %vm7098_vm13, %v7112_v47, %v7111_v26 }
 0x83d   : > { %v7114_v1 = vpack.c.b16 %v7113_v9, %v7099_v13 }
 0x83f   : > { %7661 = vmatmul.mubr.msk.bf16.vlgmr.msra.gmra.mxu1 %vm7139_vm14, %v7114_v1 }
 0x840   : > { %7665 = vmatpush3.bf16.msra.mxu1 %v7795_v22  ;;  %7680 = vmatprep.mubr.msk.bf16.mxu1 %vm7922_vm6, %v12479_v11 }
 0x841   : > { %7666 = vmatprep.subr.bf16.mxu1 %v12479_v11 }
 0x844   : > { %7667 = vmatpush3.bf16.msra.mxu1 %v7796_v5 }
 0x845   : > { %7668 = vmatprep.subr.bf16.mxu1 %v12479_v11 }
 0x848   : > { %7669 = vmatpush3.bf16.msra.mxu1 %v7797_v3 }
 0x849   : > { %7670 = vmatprep.subr.bf16.mxu1 %v12479_v11 }
 0x84c   : > { %7671 = vmatpush3.bf16.msra.mxu1 %v7798_v40 }
 0x84d   : > { %7672 = vmatprep.subr.bf16.mxu1 %v12479_v11 }
 0x850   : > { %7673 = vmatpush3.bf16.msra.mxu1 %v7799_v31 }
 0x851   : > { %7674 = vmatprep.subr.bf16.mxu1 %v12479_v11 }
 0x854   : > { %7675 = vmatpush3.bf16.msra.mxu1 %v7800_v37 }
 0x855   : > { %7676 = vmatprep.subr.bf16.mxu1 %v12479_v11 }
 0x858   : > { %7677 = vmatpush3.bf16.msra.mxu1 %v7801_v8 }
 0x859   : > { %7678 = vmatprep.subr.bf16.mxu1 %v12479_v11 }
 0x85c   : > { %7679 = vmatpush3.bf16.msra.mxu1 %v7802_v2 }
 0x8ff   : > { %v7177_v4 = vpop.f32.mrf.mxu1 }
 0x900   : > { %v7178_v27 = vadd.f32 %v7487_v15, %v7177_v4 }
 0x901   : > { %v7662_v46 = vpop.f32.mrf.mxu1 }
 0x902   : > { %v7184_v35 = vmax.f32 %v7178_v27, 0.0 }
 0x903   : > { %v7180_v38 = vpop.f32.mrf.mxu1 }
 0x904   : > { %v7181_v60 = vadd.f32 %v7487_v15, %v7180_v38 }
 0x905   : > { %v7663_v14 = vpop.f32.mrf.mxu1 }
 0x906   : > { %v7185_v29 = vmax.f32 %v7181_v60, 0.0 }
 0x908   : > { %v7186_v61 = vpack.c.bf16 %v7185_v29, %v7184_v35 }
 0x90a   : > { %7681 = vmatmul.mubr.bf16.vlgmr.msra.gmra.mxu1 %v7186_v61 }
 0x9ca   : > { %v7292_v11 = vpop.f32.mrf.mxu1 }
 0x9cb   : > { %v7293_v52 = vadd.f32 %v7493_v18, %v7292_v11 }
 0x9cc   : > { %v7682_v23 = vpop.f32.mrf.mxu1 }
 0x9cd   : > { %v7502_v33 = vmul.f32 -1.442695, %v7293_v52 }
 0x9ce   : > { %v7295_v17 = vpop.f32.mrf.mxu1 }
 0x9cf   : > { %7803 = vpow2.f32 %v7502_v33  ;;  %v7296_v44 = vadd.f32 %v7493_v18, %v7295_v17 }
 0x9d0   : > { %v7683_v50 = vpop.f32.mrf.mxu1 }
 0x9d1   : > { %v7503_v53 = vmul.f32 -1.442695, %v7296_v44 }
 0x9d3   : > { %7805 = vpow2.f32 %v7503_v53 }
 0x9dc   : > { %v7804_v39 = vpop.eup %7803 }
 0x9dd   : > { %v7305_v24 = vadd.f32 1.0, %v7804_v39 }
 0x9df   : > { %7807 = vrcp.f32 %v7305_v24 }
 0x9e0   : > { %v7806_v55 = vpop.eup %7805 }
 0x9e1   : > { %v7306_v49 = vadd.f32 1.0, %v7806_v55 }
 0x9e3   : > { %7809 = vrcp.f32 %v7306_v49 }
 0x9ec   : > { %v7808_v30 = vpop.eup %7807 }
 0x9ed   : > { %7312 = vst.msk [vmem:[%s386_s12] sm:$0xff] %vm7311_vm15, %v7808_v30 }
 0x9f0   : > { %v7810_v56 = vpop.eup %7809 }
 0x9f1   : > { %7313 = vst.msk [vmem:[%s386_s12 + $0x8] sm:$0xff] %vm7311_vm15, %v7810_v56 }
 0x9f2 PF: > { %s21_s17 = sadd.s32 1, %s7898_s17  }
 0x9f3   : > { %p18_p4 = scmp.ge.s32.totalorder %s21_s17, 4  }
 0x9f5   :  { %20 = sbr.rel (!%p18_p4) target bundleno = 1 (0x1), region = 94 }

</bundles_post_ra>
